<compile_context>
chip_gen: v7x
topology: tpu7x:2x2x1
jax: 0.10.0
libtpu: 0.0.40
codegen_flags: <defaults>
</compile_context>

<pallas_src>
import functools

import jax
import jax.numpy as jnp
from jax import lax
from jax.experimental import pallas as pl
from jax.experimental.pallas import tpu as pltpu

NEG_SLOPE = 0.1   # LeakyReLU slope (pytorch-3dunet convention)
EPS = 1e-5        # GroupNorm eps (PyTorch default)


# ----------------------------------------------------------------------------
# helpers
# ----------------------------------------------------------------------------
def _pick_tile(S):
    """Largest lane tile (multiple of 128) that divides S; else the full S."""
    for t in (1024, 512, 256, 128):
        if S % t == 0:
            return t
    return S


# ----------------------------------------------------------------------------
# Pallas kernels
# ----------------------------------------------------------------------------
def _conv_mm_kernel(a_ref, w_ref, b_ref, o_ref, s1_ref, s2_ref, *, act):
    """Channel-major conv tile: (Cout,K)@(K,tm) + bias (+LeakyReLU).

    Also accumulates per-channel sum / sum-of-squares across the S-tile grid
    axis (resident accumulator outputs) so GroupNorm stats are free.
    """
    j = pl.program_id(1)

    @pl.when(j == 0)
    def _init():
        s1_ref[...] = jnp.zeros_like(s1_ref)
        s2_ref[...] = jnp.zeros_like(s2_ref)

    acc = jnp.dot(w_ref[...], a_ref[0], preferred_element_type=jnp.float32)
    acc = acc + b_ref[...]
    if act:
        acc = jnp.where(acc > 0, acc, NEG_SLOPE * acc)
    o_ref[0] = acc
    s1_ref[0] += jnp.sum(acc, axis=-1, keepdims=True)
    s2_ref[0] += jnp.sum(acc * acc, axis=-1, keepdims=True)


def conv_matmul(a, wmat, bias, act=0):
    """a: (N, K, S) bf16, wmat: (Cout, K) bf16, bias: (Cout,) f32.

    Returns (out (N, Cout, S) f32, ch_sum (N, Cout), ch_sumsq (N, Cout)).
    """
    N, K, S = a.shape
    Cout = wmat.shape[0]
    tm = _pick_tile(S)
    out, ssum, ssq = pl.pallas_call(
        functools.partial(_conv_mm_kernel, act=act),
        out_shape=(
            jax.ShapeDtypeStruct((N, Cout, S), jnp.float32),
            jax.ShapeDtypeStruct((N, Cout, 1), jnp.float32),
            jax.ShapeDtypeStruct((N, Cout, 1), jnp.float32),
        ),
        grid_spec=pltpu.PrefetchScalarGridSpec(
            num_scalar_prefetch=0,
            grid=(N, S // tm),
            in_specs=[
                pl.BlockSpec((1, K, tm), lambda n, j: (n, 0, j)),
                pl.BlockSpec((Cout, K), lambda n, j: (0, 0)),
                pl.BlockSpec((Cout, 1), lambda n, j: (0, 0)),
            ],
            out_specs=(
                pl.BlockSpec((1, Cout, tm), lambda n, j: (n, 0, j)),
                pl.BlockSpec((1, Cout, 1), lambda n, j: (n, 0, 0)),
                pl.BlockSpec((1, Cout, 1), lambda n, j: (n, 0, 0)),
            ),
        ),
        compiler_params=pltpu.CompilerParams(
            dimension_semantics=("parallel", "arbitrary")),
    )(a, wmat, bias.reshape(Cout, 1).astype(jnp.float32))
    return out, ssum[..., 0], ssq[..., 0]


def _affine_kernel(x_ref, a_ref, b_ref, o_ref, *, act):
    y = x_ref[0] * a_ref[0] + b_ref[0]
    if act:
        y = jnp.where(y > 0, y, NEG_SLOPE * y)
    o_ref[0] = y


def _affine_res_kernel(x_ref, a_ref, b_ref, r_ref, o_ref, *, act):
    y = x_ref[0] * a_ref[0] + b_ref[0] + r_ref[0]
    if act:
        y = jnp.where(y > 0, y, NEG_SLOPE * y)
    o_ref[0] = y


def affine_apply(x, scale, shift, residual=None, act=False):
    """y = x * scale[n,c] + shift[n,c] (+ residual) (+ LeakyReLU), tiled over S.

    Covers: GroupNorm apply, and the fused GN + SE + residual + leaky tail.
    """
    N, C, D, H, W = x.shape
    S = D * H * W
    tm = _pick_tile(S)
    xr = x.reshape(N, C, S)
    args = [xr, scale.reshape(N, C, 1), shift.reshape(N, C, 1)]
    in_specs = [
        pl.BlockSpec((1, C, tm), lambda n, j: (n, 0, j)),
        pl.BlockSpec((1, C, 1), lambda n, j: (n, 0, 0)),
        pl.BlockSpec((1, C, 1), lambda n, j: (n, 0, 0)),
    ]
    if residual is None:
        kernel = functools.partial(_affine_kernel, act=act)
    else:
        kernel = functools.partial(_affine_res_kernel, act=act)
        args.append(residual.reshape(N, C, S))
        in_specs.append(pl.BlockSpec((1, C, tm), lambda n, j: (n, 0, j)))
    out = pl.pallas_call(
        kernel,
        out_shape=jax.ShapeDtypeStruct((N, C, S), jnp.float32),
        grid_spec=pltpu.PrefetchScalarGridSpec(
            num_scalar_prefetch=0,
            grid=(N, S // tm),
            in_specs=in_specs,
            out_specs=pl.BlockSpec((1, C, tm), lambda n, j: (n, 0, j)),
        ),
        compiler_params=pltpu.CompilerParams(
            dimension_semantics=("parallel", "parallel")),
    )(*args)
    return out.reshape(N, C, D, H, W)


def _add_kernel(a_ref, b_ref, o_ref):
    o_ref[...] = a_ref[...] + b_ref[...]


def add_join(a, b):
    """Sum join (decoder upsample + encoder skip), tiled over spatial."""
    N, C, D, H, W = a.shape
    S = D * H * W
    tm = _pick_tile(S)
    a2 = a.reshape(N * C, S)
    b2 = b.reshape(N * C, S)
    out = pl.pallas_call(
        _add_kernel,
        out_shape=jax.ShapeDtypeStruct((N * C, S), jnp.float32),
        grid_spec=pltpu.PrefetchScalarGridSpec(
            num_scalar_prefetch=0,
            grid=(S // tm,),
            in_specs=[pl.BlockSpec((N * C, tm), lambda j: (0, j)),
                      pl.BlockSpec((N * C, tm), lambda j: (0, j))],
            out_specs=pl.BlockSpec((N * C, tm), lambda j: (0, j)),
        ),
        compiler_params=pltpu.CompilerParams(dimension_semantics=("parallel",)),
    )(a2, b2)
    return out.reshape(N, C, D, H, W)


# ----------------------------------------------------------------------------
# Conv / deconv glue (patch gather in XLA, matmul + epilogue in Pallas)
# ----------------------------------------------------------------------------
def _im2col_t(x, k, stride, pad):
    """Patch matrix in (N, K=Cin*k^3, S=Do*Ho*Wo) layout (pure reshape, bf16)."""
    x = x.astype(jnp.bfloat16)
    N, C, D, H, W = x.shape
    xp = jnp.pad(x, ((0, 0), (0, 0), (pad, pad), (pad, pad), (pad, pad)))
    Do = (D + 2 * pad - k) // stride + 1
    Ho = (H + 2 * pad - k) // stride + 1
    Wo = (W + 2 * pad - k) // stride + 1
    cols = []
    for kd in range(k):
        for kh in range(k):
            for kw in range(k):
                sl = xp[:, :,
                        kd: kd + (Do - 1) * stride + 1: stride,
                        kh: kh + (Ho - 1) * stride + 1: stride,
                        kw: kw + (Wo - 1) * stride + 1: stride]
                cols.append(sl)
    patches = jnp.stack(cols, axis=2)                     # (N, C, k^3, Do, Ho, Wo)
    patches = patches.reshape(N, C * k * k * k, Do * Ho * Wo)
    return patches, (Do, Ho, Wo)


def conv3d(x, w, b, stride=1, act=0):
    """Conv3d ('same' padding), channel-major Pallas matmul, fused bias/leaky/stats."""
    Cout, Cin, k, _, _ = w.shape
    pad = k // 2
    patches, (Do, Ho, Wo) = _im2col_t(x, k, stride, pad)
    wmat = w.reshape(Cout, Cin * k * k * k).astype(jnp.bfloat16)
    out, ssum, ssq = conv_matmul(patches, wmat, b, act=act)
    N = x.shape[0]
    return out.reshape(N, Cout, Do, Ho, Wo), ssum, ssq


def deconv3d(x, w, b, stride):
    """ConvTranspose3d with kernel_size == stride (no overlap) -> pure matmul."""
    N, Cin, D, H, W = x.shape
    Cout = w.shape[1]
    s = stride
    S = D * H * W
    xr = x.reshape(N, Cin, S).astype(jnp.bfloat16)
    # rows ordered (co, i, j, l) so the result is already sub-lattice major
    wmat = w.transpose(1, 2, 3, 4, 0).reshape(Cout * s ** 3, Cin).astype(jnp.bfloat16)
    bias_rep = jnp.repeat(b, s ** 3)
    out, _, _ = conv_matmul(xr, wmat, bias_rep, act=0)      # (N, Cout*s^3, S)
    out = out.reshape(N, Cout, s, s, s, D, H, W)
    # TODO(synk): this interleave is an XLA relayout; a strided output BlockSpec
    # is not expressible, so the Pallas kernel emits the lane-dense pre-layout.
    out = out.transpose(0, 1, 5, 2, 6, 3, 7, 4).reshape(N, Cout, D * s, H * s, W * s)
    return out


# ----------------------------------------------------------------------------
# GroupNorm / SE folding (tiny per-channel math stays in XLA; C <= 32)
# ----------------------------------------------------------------------------
def gn_affine_from_stats(ssum, ssq, gamma, beta, num_groups, S):
    """Fold GroupNorm into per-channel affine y = x*a + b from sum / sumsq."""
    N, C = ssum.shape
    Cg = C // num_groups
    cnt = float(Cg * S)
    gsum = ssum.reshape(N, num_groups, Cg).sum(-1)
    gsq = ssq.reshape(N, num_groups, Cg).sum(-1)
    mean = gsum / cnt
    var = jnp.maximum(gsq / cnt - mean * mean, 0.0)
    inv = lax.rsqrt(var + EPS)
    inv_c = jnp.repeat(inv, Cg, axis=1)                    # (N, C)
    mean_c = jnp.repeat(mean, Cg, axis=1)
    a = gamma[None, :] * inv_c
    b = beta[None, :] - mean_c * a
    return a, b


# ----------------------------------------------------------------------------
# Blocks
# ----------------------------------------------------------------------------
def single_conv(x, p, stride=1, with_act=True):
    # order 'clg': Conv3d -> LeakyReLU -> GroupNorm ; 'cg' when with_act=False
    y, ssum, ssq = conv3d(x, p['w'], p['b'], stride=stride,
                          act=1 if with_act else 0)
    S = y.shape[2] * y.shape[3] * y.shape[4]
    a, bsh = gn_affine_from_stats(ssum, ssq, p['gamma'], p['beta'], p['groups'], S)
    return affine_apply(y, a, bsh)


def se_resnet_block(x, p, stride, use_se):
    out = single_conv(x, p['conv1'], stride=stride, with_act=True)
    residual = out
    out = single_conv(out, p['conv2'], stride=1, with_act=True)

    # conv3 is order 'cg' (no activation).  Its GroupNorm, the SE channel
    # scaling, the residual add and the trailing LeakyReLU all collapse into a
    # single per-channel affine -> ONE fused tiled Pallas pass.
    p3 = p['conv3']
    y, ssum, ssq = conv3d(out, p3['w'], p3['b'], stride=1, act=0)
    S = y.shape[2] * y.shape[3] * y.shape[4]
    a, bsh = gn_affine_from_stats(ssum, ssq, p3['gamma'], p3['beta'],
                                  p3['groups'], S)
    if use_se:
        # SE squeeze: global mean of the post-GN tensor == a*mean_conv + b,
        # reconstructed from the conv stats -> no extra read of the activation.
        pooled = a * (ssum / S) + bsh                       # (N, C)
        h = jnp.maximum(pooled @ p['se_w1'] + p['se_b1'], 0.0)
        sc = jax.nn.sigmoid(h @ p['se_w2'] + p['se_b2'])    # (N, C)
        a = a * sc
        bsh = bsh * sc
    return affine_apply(y, a, bsh, residual=residual, act=True)


# ----------------------------------------------------------------------------
# Parameter init (deterministic, synthetic)
# ----------------------------------------------------------------------------
class KeyGen:
    def __init__(self, key):
        self.key = key

    def __call__(self):
        self.key, sub = jax.random.split(self.key)
        return sub


def _kaiming_conv(key, cout, cin, k):
    fan_out = cout * k ** 3
    std = (2.0 / fan_out) ** 0.5
    return std * jax.random.normal(key, (cout, cin, k, k, k), jnp.float32)


def make_single_conv(kg, cin, cout, k, groups):
    return dict(w=_kaiming_conv(kg(), cout, cin, k),
                b=jnp.zeros((cout,), jnp.float32),
                gamma=jnp.ones((cout,), jnp.float32),
                beta=jnp.zeros((cout,), jnp.float32),
                groups=groups)


def make_block(kg, cin, cout, k, groups, use_se, reduction):
    p = dict(conv1=make_single_conv(kg, cin, cout, k, groups),
             conv2=make_single_conv(kg, cout, cout, k, groups),
             conv3=make_single_conv(kg, cout, cout, k, groups))
    if use_se:
        cr = max(cout // reduction, 1)
        s1 = 1.0 / (cout ** 0.5)
        s2 = 1.0 / (cr ** 0.5)
        p['se_w1'] = jax.random.uniform(kg(), (cout, cr), jnp.float32, -s1, s1)
        p['se_b1'] = jax.random.uniform(kg(), (cr,), jnp.float32, -s1, s1)
        p['se_w2'] = jax.random.uniform(kg(), (cr, cout), jnp.float32, -s2, s2)
        p['se_b2'] = jax.random.uniform(kg(), (cout,), jnp.float32, -s2, s2)
    return p


def init_params(kg, cfg):
    enc_ch = cfg['encode_channels']
    groups = cfg['groups']
    use_SE = cfg['use_SE']
    red = cfg['SE_reduction']
    k = cfg['kernel_size']

    params = {'encoders': [], 'decoders': []}
    in_c = cfg['in_channels']
    for i, out_c in enumerate(enc_ch):
        if i == 0:
            params['encoders'].append(make_single_conv(kg, in_c, out_c, k, groups[0]))
        else:
            params['encoders'].append(
                make_block(kg, enc_ch[i - 1], out_c, k, groups[i], use_SE[i], red[i]))
        in_c = out_c

    dec_ch = list(reversed(enc_ch))
    dgroups = list(reversed(groups))
    dstrides = list(reversed(cfg['strides']))
    duse = list(reversed(use_SE))
    dred = list(reversed(red))
    for i in range(len(dec_ch) - 1):
        cin, cout = dec_ch[i], dec_ch[i + 1]
        s = dstrides[i]
        std = (2.0 / max(cin * s ** 3, 1)) ** 0.5
        dp = dict(
            up_w=std * jax.random.normal(kg(), (cin, cout, s, s, s), jnp.float32),
            up_b=jnp.zeros((cout,), jnp.float32),
            block=make_block(kg, cout, cout, k, dgroups[i], duse[i], dred[i]),
        )
        params['decoders'].append(dp)

    dc_last = dec_ch[-1]
    params['final_sc'] = make_single_conv(kg, dc_last, dc_last, k, cfg['group_final_conv'])
    params['final_w'] = _kaiming_conv(kg(), cfg['out_channels'], dc_last, 1)
    params['final_b'] = jnp.zeros((cfg['out_channels'],), jnp.float32)

    params['enc_strides'] = list(cfg['strides'])
    params['enc_use_SE'] = list(use_SE)
    params['dec_strides'] = dstrides[:len(dec_ch) - 1]
    params['dec_use_SE'] = duse[:len(dec_ch) - 1]
    return params


# ----------------------------------------------------------------------------
# Forward pass (mirrors SEResUNet3D.forward with GP=None, is_test=False)
# ----------------------------------------------------------------------------
def forward(x, params):
    encoders_features = []
    for i, ep in enumerate(params['encoders']):
        if i == 0:
            x = single_conv(x, ep, stride=params['enc_strides'][0], with_act=True)
        else:
            x = se_resnet_block(x, ep, stride=params['enc_strides'][i],
                                use_se=params['enc_use_SE'][i])
        encoders_features.insert(0, x)
    encoders_features = encoders_features[1:]

    for dp, feat, s, use_se in zip(params['decoders'], encoders_features,
                                   params['dec_strides'], params['dec_use_SE']):
        x = deconv3d(x, dp['up_w'], dp['up_b'], s)        # upsample
        x = add_join(x, feat)                              # sum join with skip
        x = se_resnet_block(x, dp['block'], stride=1, use_se=use_se)

    # FinalConv: SingleConv + 1x1x1 conv
    x = single_conv(x, params['final_sc'], stride=1, with_act=True)
    x, _, _ = conv3d(x, params['final_w'], params['final_b'], stride=1, act=0)
    # is_test=False -> final_activation (Sigmoid/Softmax) is NOT applied.
    return x


# ----------------------------------------------------------------------------
if __name__ == "__main__":
    cfg = dict(
        in_channels=1,
        out_channels=2,
        encode_channels=(8, 16, 32),
        groups=(4, 4, 4),
        strides=(1, 2, 2),
        use_SE=(False, True, True),
        SE_reduction=(1, 4, 4),
        kernel_size=3,
        group_final_conv=4,
    )

    kg = KeyGen(jax.random.PRNGKey(0))
    params = init_params(kg, cfg)

    x = jax.random.normal(jax.random.PRNGKey(0), (1, 1, 16, 16, 16), jnp.float32)

    fwd = jax.jit(lambda inp: forward(inp, params))
    out = fwd(x)
    jax.block_until_ready(out)
    assert out.shape == (1, cfg['out_channels'], 16, 16, 16), out.shape
    assert out.dtype == jnp.float32
    print("KERNEL_OK")
</pallas_src>

<mosaic_0001>
module attributes {stable_mosaic.version = 11 : i64} {
  func.func @_conv_mm_kernel(%arg0: i32, %arg1: i32, %arg2: memref<1x27x1024xbf16, #tpu.memory_space<vmem>>, %arg3: memref<8x27xbf16, #tpu.memory_space<vmem>>, %arg4: memref<8x1xf32, #tpu.memory_space<vmem>>, %arg5: memref<1x8x1024xf32, #tpu.memory_space<vmem>>, %arg6: memref<1x8x1xf32, #tpu.memory_space<vmem>>, %arg7: memref<1x8x1xf32, #tpu.memory_space<vmem>>) attributes {dimension_semantics = [#tpu.dimension_semantics<parallel>, #tpu.dimension_semantics<arbitrary>], iteration_bounds = array<i64: 1, 4>, scalar_prefetch = 0 : i64, scratch_operands = 0 : i64, tpu.core_type = #tpu.core_type<tc>, window_params = [{transform_indices = @transform_0, window_bounds = array<i64: 1, 27, 1024>}, {pipeline_mode = #tpu.pipeline_mode<synchronous>, transform_indices = @transform_1, window_bounds = array<i64: 8, 27>}, {pipeline_mode = #tpu.pipeline_mode<synchronous>, transform_indices = @transform_2, window_bounds = array<i64: 8, 1>}, {transform_indices = @transform_3, window_bounds = array<i64: 1, 8, 1024>}, {transform_indices = @transform_4, window_bounds = array<i64: 1, 8, 1>}, {transform_indices = @transform_5, window_bounds = array<i64: 1, 8, 1>}]} {
    %c0_i32 = arith.constant 0 : i32
    %0 = arith.cmpi eq, %arg1, %c0_i32 : i32
    %1 = arith.extui %0 : i1 to i32
    %c0_i32_0 = arith.constant 0 : i32
    %2 = arith.cmpi ne, %1, %c0_i32_0 : i32
    scf.if %2 {
      %cst_26 = arith.constant 0.000000e+00 : f32
      %35 = vector.broadcast %cst_26 : f32 to vector<1x8x1xf32>
      %c0_27 = arith.constant 0 : index
      %c0_28 = arith.constant 0 : index
      %c0_29 = arith.constant 0 : index
      %36 = vector.load %arg6[%c0_27, %c0_28, %c0_29] : memref<1x8x1xf32, #tpu.memory_space<vmem>>, vector<1x8x1xf32>
      tpu.vector_store %arg6[%c0_27, %c0_28, %c0_29], %35 {strides = array<i32>} : memref<1x8x1xf32, #tpu.memory_space<vmem>>, vector<1x8x1xf32>,
      %cst_30 = arith.constant 0.000000e+00 : f32
      %37 = vector.broadcast %cst_30 : f32 to vector<1x8x1xf32>
      %c0_31 = arith.constant 0 : index
      %c0_32 = arith.constant 0 : index
      %c0_33 = arith.constant 0 : index
      %38 = vector.load %arg7[%c0_31, %c0_32, %c0_33] : memref<1x8x1xf32, #tpu.memory_space<vmem>>, vector<1x8x1xf32>
      tpu.vector_store %arg7[%c0_31, %c0_32, %c0_33], %37 {strides = array<i32>} : memref<1x8x1xf32, #tpu.memory_space<vmem>>, vector<1x8x1xf32>,
    } else {
    }
    %c0 = arith.constant 0 : index
    %c0_1 = arith.constant 0 : index
    %3 = vector.load %arg3[%c0, %c0_1] : memref<8x27xbf16, #tpu.memory_space<vmem>>, vector<8x27xbf16>
    %c0_2 = arith.constant 0 : index
    %c0_3 = arith.constant 0 : index
    %c0_4 = arith.constant 0 : index
    %4 = vector.load %arg2[%c0_2, %c0_3, %c0_4] : memref<1x27x1024xbf16, #tpu.memory_space<vmem>>, vector<1x27x1024xbf16>
    %5 = vector.shape_cast %4 : vector<1x27x1024xbf16> to vector<27x1024xbf16>
    %cst = arith.constant dense<0.000000e+00> : vector<8x1024xf32>
    %6 = tpu.matmul %3, %5, %cst {dimension_numbers = #tpu.dot_dimension_numbers<[1], [0], [0], [1], [0, 0, 1, 1], [], []>} : vector<8x27xbf16>, vector<27x1024xbf16>, vector<8x1024xf32> -> vector<8x1024xf32>
    %c0_5 = arith.constant 0 : index
    %c0_6 = arith.constant 0 : index
    %7 = vector.load %arg4[%c0_5, %c0_6] : memref<8x1xf32, #tpu.memory_space<vmem>>, vector<8x1xf32>
    %8 = vector.broadcast %7 : vector<8x1xf32> to vector<8x1024xf32>
    %9 = arith.addf %6, %8 : vector<8x1024xf32>
    %cst_7 = arith.constant 0.000000e+00 : f32
    %10 = vector.broadcast %cst_7 : f32 to vector<8x1024xf32>
    %11 = arith.cmpf ogt, %9, %10 : vector<8x1024xf32>
    %cst_8 = arith.constant 1.000000e-01 : f32
    %12 = vector.broadcast %cst_8 : f32 to vector<8x1024xf32>
    %13 = arith.mulf %12, %9 : vector<8x1024xf32>
    %14 = arith.select %11, %9, %13 : vector<8x1024xi1>, vector<8x1024xf32>
    %c0_9 = arith.constant 0 : index
    %c0_10 = arith.constant 0 : index
    %c0_11 = arith.constant 0 : index
    %15 = vector.load %arg5[%c0_9, %c0_10, %c0_11] : memref<1x8x1024xf32, #tpu.memory_space<vmem>>, vector<1x8x1024xf32>
    %16 = vector.shape_cast %15 : vector<1x8x1024xf32> to vector<8x1024xf32>
    %17 = vector.shape_cast %14 : vector<8x1024xf32> to vector<1x8x1024xf32>
    tpu.vector_store %arg5[%c0_9, %c0_10, %c0_11], %17 {strides = array<i32>} : memref<1x8x1024xf32, #tpu.memory_space<vmem>>, vector<1x8x1024xf32>,
    %c0_12 = arith.constant 0 : index
    %c0_13 = arith.constant 0 : index
    %c0_14 = arith.constant 0 : index
    %18 = vector.load %arg6[%c0_12, %c0_13, %c0_14] : memref<1x8x1xf32, #tpu.memory_space<vmem>>, vector<1x8x1xf32>
    %19 = vector.shape_cast %18 : vector<1x8x1xf32> to vector<8x1xf32>
    %cst_15 = arith.constant dense<0.000000e+00> : vector<8xf32>
    %20 = vector.multi_reduction <add>, %14, %cst_15 [1] : vector<8x1024xf32> to vector<8xf32>
    %21 = vector.shape_cast %20 : vector<8xf32> to vector<8x1xf32>
    %22 = arith.addf %19, %21 : vector<8x1xf32>
    %c0_16 = arith.constant 0 : index
    %c0_17 = arith.constant 0 : index
    %c0_18 = arith.constant 0 : index
    %23 = vector.load %arg6[%c0_16, %c0_17, %c0_18] : memref<1x8x1xf32, #tpu.memory_space<vmem>>, vector<1x8x1xf32>
    %24 = vector.shape_cast %23 : vector<1x8x1xf32> to vector<8x1xf32>
    %25 = vector.shape_cast %22 : vector<8x1xf32> to vector<1x8x1xf32>
    tpu.vector_store %arg6[%c0_16, %c0_17, %c0_18], %25 {strides = array<i32>} : memref<1x8x1xf32, #tpu.memory_space<vmem>>, vector<1x8x1xf32>,
    %c0_19 = arith.constant 0 : index
    %c0_20 = arith.constant 0 : index
    %c0_21 = arith.constant 0 : index
    %26 = vector.load %arg7[%c0_19, %c0_20, %c0_21] : memref<1x8x1xf32, #tpu.memory_space<vmem>>, vector<1x8x1xf32>
    %27 = vector.shape_cast %26 : vector<1x8x1xf32> to vector<8x1xf32>
    %28 = arith.mulf %14, %14 : vector<8x1024xf32>
    %cst_22 = arith.constant dense<0.000000e+00> : vector<8xf32>
    %29 = vector.multi_reduction <add>, %28, %cst_22 [1] : vector<8x1024xf32> to vector<8xf32>
    %30 = vector.shape_cast %29 : vector<8xf32> to vector<8x1xf32>
    %31 = arith.addf %27, %30 : vector<8x1xf32>
    %c0_23 = arith.constant 0 : index
    %c0_24 = arith.constant 0 : index
    %c0_25 = arith.constant 0 : index
    %32 = vector.load %arg7[%c0_23, %c0_24, %c0_25] : memref<1x8x1xf32, #tpu.memory_space<vmem>>, vector<1x8x1xf32>
    %33 = vector.shape_cast %32 : vector<1x8x1xf32> to vector<8x1xf32>
    %34 = vector.shape_cast %31 : vector<8x1xf32> to vector<1x8x1xf32>
    tpu.vector_store %arg7[%c0_23, %c0_24, %c0_25], %34 {strides = array<i32>} : memref<1x8x1xf32, #tpu.memory_space<vmem>>, vector<1x8x1xf32>,
    return
  }
  func.func @transform_0(%arg0: i32, %arg1: i32) -> (i32, i32, i32) {
    %c0_i32 = arith.constant 0 : i32
    %c0_i32_0 = arith.constant 0 : i32
    return %arg0, %c0_i32, %arg1 : i32, i32, i32
  }
  func.func @transform_1(%arg0: i32, %arg1: i32) -> (i32, i32) {
    %c0_i32 = arith.constant 0 : i32
    %c0_i32_0 = arith.constant 0 : i32
    %c0_i32_1 = arith.constant 0 : i32
    return %c0_i32, %c0_i32_0 : i32, i32
  }
  func.func @transform_2(%arg0: i32, %arg1: i32) -> (i32, i32) {
    %c0_i32 = arith.constant 0 : i32
    %c0_i32_0 = arith.constant 0 : i32
    %c0_i32_1 = arith.constant 0 : i32
    return %c0_i32, %c0_i32_0 : i32, i32
  }
  func.func @transform_3(%arg0: i32, %arg1: i32) -> (i32, i32, i32) {
    %c0_i32 = arith.constant 0 : i32
    %c0_i32_0 = arith.constant 0 : i32
    return %arg0, %c0_i32, %arg1 : i32, i32, i32
  }
  func.func @transform_4(%arg0: i32, %arg1: i32) -> (i32, i32, i32) {
    %c0_i32 = arith.constant 0 : i32
    %c0_i32_0 = arith.constant 0 : i32
    %c0_i32_1 = arith.constant 0 : i32
    return %arg0, %c0_i32, %c0_i32_0 : i32, i32, i32
  }
  func.func @transform_5(%arg0: i32, %arg1: i32) -> (i32, i32, i32) {
    %c0_i32 = arith.constant 0 : i32
    %c0_i32_0 = arith.constant 0 : i32
    %c0_i32_1 = arith.constant 0 : i32
    return %arg0, %c0_i32, %c0_i32_0 : i32, i32, i32
  }
}

module attributes {stable_mosaic.version = 11 : i64} {
  func.func @_affine_kernel(%arg0: i32, %arg1: i32, %arg2: memref<1x8x1024xf32, #tpu.memory_space<vmem>>, %arg3: memref<1x8x1xf32, #tpu.memory_space<vmem>>, %arg4: memref<1x8x1xf32, #tpu.memory_space<vmem>>, %arg5: memref<1x8x1024xf32, #tpu.memory_space<vmem>>) attributes {dimension_semantics = [#tpu.dimension_semantics<parallel>, #tpu.dimension_semantics<parallel>], iteration_bounds = array<i64: 1, 4>, scalar_prefetch = 0 : i64, scratch_operands = 0 : i64, tpu.core_type = #tpu.core_type<tc>, window_params = [{transform_indices = @transform_0, window_bounds = array<i64: 1, 8, 1024>}, {transform_indices = @transform_1, window_bounds = array<i64: 1, 8, 1>}, {transform_indices = @transform_2, window_bounds = array<i64: 1, 8, 1>}, {transform_indices = @transform_3, window_bounds = array<i64: 1, 8, 1024>}]} {
    %c0 = arith.constant 0 : index
    %c0_0 = arith.constant 0 : index
    %c0_1 = arith.constant 0 : index
    %0 = vector.load %arg2[%c0, %c0_0, %c0_1] : memref<1x8x1024xf32, #tpu.memory_space<vmem>>, vector<1x8x1024xf32>
    %1 = vector.shape_cast %0 : vector<1x8x1024xf32> to vector<8x1024xf32>
    %c0_2 = arith.constant 0 : index
    %c0_3 = arith.constant 0 : index
    %c0_4 = arith.constant 0 : index
    %2 = vector.load %arg3[%c0_2, %c0_3, %c0_4] : memref<1x8x1xf32, #tpu.memory_space<vmem>>, vector<1x8x1xf32>
    %3 = vector.shape_cast %2 : vector<1x8x1xf32> to vector<8x1xf32>
    %4 = vector.broadcast %3 : vector<8x1xf32> to vector<8x1024xf32>
    %5 = arith.mulf %1, %4 : vector<8x1024xf32>
    %c0_5 = arith.constant 0 : index
    %c0_6 = arith.constant 0 : index
    %c0_7 = arith.constant 0 : index
    %6 = vector.load %arg4[%c0_5, %c0_6, %c0_7] : memref<1x8x1xf32, #tpu.memory_space<vmem>>, vector<1x8x1xf32>
    %7 = vector.shape_cast %6 : vector<1x8x1xf32> to vector<8x1xf32>
    %8 = vector.broadcast %7 : vector<8x1xf32> to vector<8x1024xf32>
    %9 = arith.addf %5, %8 : vector<8x1024xf32>
    %c0_8 = arith.constant 0 : index
    %c0_9 = arith.constant 0 : index
    %c0_10 = arith.constant 0 : index
    %10 = vector.load %arg5[%c0_8, %c0_9, %c0_10] : memref<1x8x1024xf32, #tpu.memory_space<vmem>>, vector<1x8x1024xf32>
    %11 = vector.shape_cast %10 : vector<1x8x1024xf32> to vector<8x1024xf32>
    %12 = vector.shape_cast %9 : vector<8x1024xf32> to vector<1x8x1024xf32>
    tpu.vector_store %arg5[%c0_8, %c0_9, %c0_10], %12 {strides = array<i32>} : memref<1x8x1024xf32, #tpu.memory_space<vmem>>, vector<1x8x1024xf32>,
    return
  }
  func.func @transform_0(%arg0: i32, %arg1: i32) -> (i32, i32, i32) {
    %c0_i32 = arith.constant 0 : i32
    %c0_i32_0 = arith.constant 0 : i32
    return %arg0, %c0_i32, %arg1 : i32, i32, i32
  }
  func.func @transform_1(%arg0: i32, %arg1: i32) -> (i32, i32, i32) {
    %c0_i32 = arith.constant 0 : i32
    %c0_i32_0 = arith.constant 0 : i32
    %c0_i32_1 = arith.constant 0 : i32
    return %arg0, %c0_i32, %c0_i32_0 : i32, i32, i32
  }
  func.func @transform_2(%arg0: i32, %arg1: i32) -> (i32, i32, i32) {
    %c0_i32 = arith.constant 0 : i32
    %c0_i32_0 = arith.constant 0 : i32
    %c0_i32_1 = arith.constant 0 : i32
    return %arg0, %c0_i32, %c0_i32_0 : i32, i32, i32
  }
  func.func @transform_3(%arg0: i32, %arg1: i32) -> (i32, i32, i32) {
    %c0_i32 = arith.constant 0 : i32
    %c0_i32_0 = arith.constant 0 : i32
    return %arg0, %c0_i32, %arg1 : i32, i32, i32
  }
}

module attributes {stable_mosaic.version = 11 : i64} {
  func.func @_conv_mm_kernel(%arg0: i32, %arg1: i32, %arg2: memref<1x216x512xbf16, #tpu.memory_space<vmem>>, %arg3: memref<16x216xbf16, #tpu.memory_space<vmem>>, %arg4: memref<16x1xf32, #tpu.memory_space<vmem>>, %arg5: memref<1x16x512xf32, #tpu.memory_space<vmem>>, %arg6: memref<1x16x1xf32, #tpu.memory_space<vmem>>, %arg7: memref<1x16x1xf32, #tpu.memory_space<vmem>>) attributes {dimension_semantics = [#tpu.dimension_semantics<parallel>, #tpu.dimension_semantics<arbitrary>], iteration_bounds = array<i64: 1, 1>, scalar_prefetch = 0 : i64, scratch_operands = 0 : i64, tpu.core_type = #tpu.core_type<tc>, window_params = [{transform_indices = @transform_0, window_bounds = array<i64: 1, 216, 512>}, {pipeline_mode = #tpu.pipeline_mode<synchronous>, transform_indices = @transform_1, window_bounds = array<i64: 16, 216>}, {pipeline_mode = #tpu.pipeline_mode<synchronous>, transform_indices = @transform_2, window_bounds = array<i64: 16, 1>}, {transform_indices = @transform_3, window_bounds = array<i64: 1, 16, 512>}, {transform_indices = @transform_4, window_bounds = array<i64: 1, 16, 1>}, {transform_indices = @transform_5, window_bounds = array<i64: 1, 16, 1>}]} {
    %c0_i32 = arith.constant 0 : i32
    %0 = arith.cmpi eq, %arg1, %c0_i32 : i32
    %1 = arith.extui %0 : i1 to i32
    %c0_i32_0 = arith.constant 0 : i32
    %2 = arith.cmpi ne, %1, %c0_i32_0 : i32
    scf.if %2 {
      %cst_26 = arith.constant 0.000000e+00 : f32
      %35 = vector.broadcast %cst_26 : f32 to vector<1x16x1xf32>
      %c0_27 = arith.constant 0 : index
      %c0_28 = arith.constant 0 : index
      %c0_29 = arith.constant 0 : index
      %36 = vector.load %arg6[%c0_27, %c0_28, %c0_29] : memref<1x16x1xf32, #tpu.memory_space<vmem>>, vector<1x16x1xf32>
      tpu.vector_store %arg6[%c0_27, %c0_28, %c0_29], %35 {strides = array<i32>} : memref<1x16x1xf32, #tpu.memory_space<vmem>>, vector<1x16x1xf32>,
      %cst_30 = arith.constant 0.000000e+00 : f32
      %37 = vector.broadcast %cst_30 : f32 to vector<1x16x1xf32>
      %c0_31 = arith.constant 0 : index
      %c0_32 = arith.constant 0 : index
      %c0_33 = arith.constant 0 : index
      %38 = vector.load %arg7[%c0_31, %c0_32, %c0_33] : memref<1x16x1xf32, #tpu.memory_space<vmem>>, vector<1x16x1xf32>
      tpu.vector_store %arg7[%c0_31, %c0_32, %c0_33], %37 {strides = array<i32>} : memref<1x16x1xf32, #tpu.memory_space<vmem>>, vector<1x16x1xf32>,
    } else {
    }
    %c0 = arith.constant 0 : index
    %c0_1 = arith.constant 0 : index
    %3 = vector.load %arg3[%c0, %c0_1] : memref<16x216xbf16, #tpu.memory_space<vmem>>, vector<16x216xbf16>
    %c0_2 = arith.constant 0 : index
    %c0_3 = arith.constant 0 : index
    %c0_4 = arith.constant 0 : index
    %4 = vector.load %arg2[%c0_2, %c0_3, %c0_4] : memref<1x216x512xbf16, #tpu.memory_space<vmem>>, vector<1x216x512xbf16>
    %5 = vector.shape_cast %4 : vector<1x216x512xbf16> to vector<216x512xbf16>
    %cst = arith.constant dense<0.000000e+00> : vector<16x512xf32>
    %6 = tpu.matmul %3, %5, %cst {dimension_numbers = #tpu.dot_dimension_numbers<[1], [0], [0], [1], [0, 0, 1, 1], [], []>} : vector<16x216xbf16>, vector<216x512xbf16>, vector<16x512xf32> -> vector<16x512xf32>
    %c0_5 = arith.constant 0 : index
    %c0_6 = arith.constant 0 : index
    %7 = vector.load %arg4[%c0_5, %c0_6] : memref<16x1xf32, #tpu.memory_space<vmem>>, vector<16x1xf32>
    %8 = vector.broadcast %7 : vector<16x1xf32> to vector<16x512xf32>
    %9 = arith.addf %6, %8 : vector<16x512xf32>
    %cst_7 = arith.constant 0.000000e+00 : f32
    %10 = vector.broadcast %cst_7 : f32 to vector<16x512xf32>
    %11 = arith.cmpf ogt, %9, %10 : vector<16x512xf32>
    %cst_8 = arith.constant 1.000000e-01 : f32
    %12 = vector.broadcast %cst_8 : f32 to vector<16x512xf32>
    %13 = arith.mulf %12, %9 : vector<16x512xf32>
    %14 = arith.select %11, %9, %13 : vector<16x512xi1>, vector<16x512xf32>
    %c0_9 = arith.constant 0 : index
    %c0_10 = arith.constant 0 : index
    %c0_11 = arith.constant 0 : index
    %15 = vector.load %arg5[%c0_9, %c0_10, %c0_11] : memref<1x16x512xf32, #tpu.memory_space<vmem>>, vector<1x16x512xf32>
    %16 = vector.shape_cast %15 : vector<1x16x512xf32> to vector<16x512xf32>
    %17 = vector.shape_cast %14 : vector<16x512xf32> to vector<1x16x512xf32>
    tpu.vector_store %arg5[%c0_9, %c0_10, %c0_11], %17 {strides = array<i32>} : memref<1x16x512xf32, #tpu.memory_space<vmem>>, vector<1x16x512xf32>,
    %c0_12 = arith.constant 0 : index
    %c0_13 = arith.constant 0 : index
    %c0_14 = arith.constant 0 : index
    %18 = vector.load %arg6[%c0_12, %c0_13, %c0_14] : memref<1x16x1xf32, #tpu.memory_space<vmem>>, vector<1x16x1xf32>
    %19 = vector.shape_cast %18 : vector<1x16x1xf32> to vector<16x1xf32>
    %cst_15 = arith.constant dense<0.000000e+00> : vector<16xf32>
    %20 = vector.multi_reduction <add>, %14, %cst_15 [1] : vector<16x512xf32> to vector<16xf32>
    %21 = vector.shape_cast %20 : vector<16xf32> to vector<16x1xf32>
    %22 = arith.addf %19, %21 : vector<16x1xf32>
    %c0_16 = arith.constant 0 : index
    %c0_17 = arith.constant 0 : index
    %c0_18 = arith.constant 0 : index
    %23 = vector.load %arg6[%c0_16, %c0_17, %c0_18] : memref<1x16x1xf32, #tpu.memory_space<vmem>>, vector<1x16x1xf32>
    %24 = vector.shape_cast %23 : vector<1x16x1xf32> to vector<16x1xf32>
    %25 = vector.shape_cast %22 : vector<16x1xf32> to vector<1x16x1xf32>
    tpu.vector_store %arg6[%c0_16, %c0_17, %c0_18], %25 {strides = array<i32>} : memref<1x16x1xf32, #tpu.memory_space<vmem>>, vector<1x16x1xf32>,
    %c0_19 = arith.constant 0 : index
    %c0_20 = arith.constant 0 : index
    %c0_21 = arith.constant 0 : index
    %26 = vector.load %arg7[%c0_19, %c0_20, %c0_21] : memref<1x16x1xf32, #tpu.memory_space<vmem>>, vector<1x16x1xf32>
    %27 = vector.shape_cast %26 : vector<1x16x1xf32> to vector<16x1xf32>
    %28 = arith.mulf %14, %14 : vector<16x512xf32>
    %cst_22 = arith.constant dense<0.000000e+00> : vector<16xf32>
    %29 = vector.multi_reduction <add>, %28, %cst_22 [1] : vector<16x512xf32> to vector<16xf32>
    %30 = vector.shape_cast %29 : vector<16xf32> to vector<16x1xf32>
    %31 = arith.addf %27, %30 : vector<16x1xf32>
    %c0_23 = arith.constant 0 : index
    %c0_24 = arith.constant 0 : index
    %c0_25 = arith.constant 0 : index
    %32 = vector.load %arg7[%c0_23, %c0_24, %c0_25] : memref<1x16x1xf32, #tpu.memory_space<vmem>>, vector<1x16x1xf32>
    %33 = vector.shape_cast %32 : vector<1x16x1xf32> to vector<16x1xf32>
    %34 = vector.shape_cast %31 : vector<16x1xf32> to vector<1x16x1xf32>
    tpu.vector_store %arg7[%c0_23, %c0_24, %c0_25], %34 {strides = array<i32>} : memref<1x16x1xf32, #tpu.memory_space<vmem>>, vector<1x16x1xf32>,
    return
  }
  func.func @transform_0(%arg0: i32, %arg1: i32) -> (i32, i32, i32) {
    %c0_i32 = arith.constant 0 : i32
    %c0_i32_0 = arith.constant 0 : i32
    return %arg0, %c0_i32, %arg1 : i32, i32, i32
  }
  func.func @transform_1(%arg0: i32, %arg1: i32) -> (i32, i32) {
    %c0_i32 = arith.constant 0 : i32
    %c0_i32_0 = arith.constant 0 : i32
    %c0_i32_1 = arith.constant 0 : i32
    return %c0_i32, %c0_i32_0 : i32, i32
  }
  func.func @transform_2(%arg0: i32, %arg1: i32) -> (i32, i32) {
    %c0_i32 = arith.constant 0 : i32
    %c0_i32_0 = arith.constant 0 : i32
    %c0_i32_1 = arith.constant 0 : i32
    return %c0_i32, %c0_i32_0 : i32, i32
  }
  func.func @transform_3(%arg0: i32, %arg1: i32) -> (i32, i32, i32) {
    %c0_i32 = arith.constant 0 : i32
    %c0_i32_0 = arith.constant 0 : i32
    return %arg0, %c0_i32, %arg1 : i32, i32, i32
  }
  func.func @transform_4(%arg0: i32, %arg1: i32) -> (i32, i32, i32) {
    %c0_i32 = arith.constant 0 : i32
    %c0_i32_0 = arith.constant 0 : i32
    %c0_i32_1 = arith.constant 0 : i32
    return %arg0, %c0_i32, %c0_i32_0 : i32, i32, i32
  }
  func.func @transform_5(%arg0: i32, %arg1: i32) -> (i32, i32, i32) {
    %c0_i32 = arith.constant 0 : i32
    %c0_i32_0 = arith.constant 0 : i32
    %c0_i32_1 = arith.constant 0 : i32
    return %arg0, %c0_i32, %c0_i32_0 : i32, i32, i32
  }
}

module attributes {stable_mosaic.version = 11 : i64} {
  func.func @_affine_kernel(%arg0: i32, %arg1: i32, %arg2: memref<1x16x512xf32, #tpu.memory_space<vmem>>, %arg3: memref<1x16x1xf32, #tpu.memory_space<vmem>>, %arg4: memref<1x16x1xf32, #tpu.memory_space<vmem>>, %arg5: memref<1x16x512xf32, #tpu.memory_space<vmem>>) attributes {dimension_semantics = [#tpu.dimension_semantics<parallel>, #tpu.dimension_semantics<parallel>], iteration_bounds = array<i64: 1, 1>, scalar_prefetch = 0 : i64, scratch_operands = 0 : i64, tpu.core_type = #tpu.core_type<tc>, window_params = [{transform_indices = @transform_0, window_bounds = array<i64: 1, 16, 512>}, {transform_indices = @transform_1, window_bounds = array<i64: 1, 16, 1>}, {transform_indices = @transform_2, window_bounds = array<i64: 1, 16, 1>}, {transform_indices = @transform_3, window_bounds = array<i64: 1, 16, 512>}]} {
    %c0 = arith.constant 0 : index
    %c0_0 = arith.constant 0 : index
    %c0_1 = arith.constant 0 : index
    %0 = vector.load %arg2[%c0, %c0_0, %c0_1] : memref<1x16x512xf32, #tpu.memory_space<vmem>>, vector<1x16x512xf32>
    %1 = vector.shape_cast %0 : vector<1x16x512xf32> to vector<16x512xf32>
    %c0_2 = arith.constant 0 : index
    %c0_3 = arith.constant 0 : index
    %c0_4 = arith.constant 0 : index
    %2 = vector.load %arg3[%c0_2, %c0_3, %c0_4] : memref<1x16x1xf32, #tpu.memory_space<vmem>>, vector<1x16x1xf32>
    %3 = vector.shape_cast %2 : vector<1x16x1xf32> to vector<16x1xf32>
    %4 = vector.broadcast %3 : vector<16x1xf32> to vector<16x512xf32>
    %5 = arith.mulf %1, %4 : vector<16x512xf32>
    %c0_5 = arith.constant 0 : index
    %c0_6 = arith.constant 0 : index
    %c0_7 = arith.constant 0 : index
    %6 = vector.load %arg4[%c0_5, %c0_6, %c0_7] : memref<1x16x1xf32, #tpu.memory_space<vmem>>, vector<1x16x1xf32>
    %7 = vector.shape_cast %6 : vector<1x16x1xf32> to vector<16x1xf32>
    %8 = vector.broadcast %7 : vector<16x1xf32> to vector<16x512xf32>
    %9 = arith.addf %5, %8 : vector<16x512xf32>
    %c0_8 = arith.constant 0 : index
    %c0_9 = arith.constant 0 : index
    %c0_10 = arith.constant 0 : index
    %10 = vector.load %arg5[%c0_8, %c0_9, %c0_10] : memref<1x16x512xf32, #tpu.memory_space<vmem>>, vector<1x16x512xf32>
    %11 = vector.shape_cast %10 : vector<1x16x512xf32> to vector<16x512xf32>
    %12 = vector.shape_cast %9 : vector<16x512xf32> to vector<1x16x512xf32>
    tpu.vector_store %arg5[%c0_8, %c0_9, %c0_10], %12 {strides = array<i32>} : memref<1x16x512xf32, #tpu.memory_space<vmem>>, vector<1x16x512xf32>,
    return
  }
  func.func @transform_0(%arg0: i32, %arg1: i32) -> (i32, i32, i32) {
    %c0_i32 = arith.constant 0 : i32
    %c0_i32_0 = arith.constant 0 : i32
    return %arg0, %c0_i32, %arg1 : i32, i32, i32
  }
  func.func @transform_1(%arg0: i32, %arg1: i32) -> (i32, i32, i32) {
    %c0_i32 = arith.constant 0 : i32
    %c0_i32_0 = arith.constant 0 : i32
    %c0_i32_1 = arith.constant 0 : i32
    return %arg0, %c0_i32, %c0_i32_0 : i32, i32, i32
  }
  func.func @transform_2(%arg0: i32, %arg1: i32) -> (i32, i32, i32) {
    %c0_i32 = arith.constant 0 : i32
    %c0_i32_0 = arith.constant 0 : i32
    %c0_i32_1 = arith.constant 0 : i32
    return %arg0, %c0_i32, %c0_i32_0 : i32, i32, i32
  }
  func.func @transform_3(%arg0: i32, %arg1: i32) -> (i32, i32, i32) {
    %c0_i32 = arith.constant 0 : i32
    %c0_i32_0 = arith.constant 0 : i32
    return %arg0, %c0_i32, %arg1 : i32, i32, i32
  }
}

module attributes {stable_mosaic.version = 11 : i64} {
  func.func @_conv_mm_kernel(%arg0: i32, %arg1: i32, %arg2: memref<1x432x512xbf16, #tpu.memory_space<vmem>>, %arg3: memref<16x432xbf16, #tpu.memory_space<vmem>>, %arg4: memref<16x1xf32, #tpu.memory_space<vmem>>, %arg5: memref<1x16x512xf32, #tpu.memory_space<vmem>>, %arg6: memref<1x16x1xf32, #tpu.memory_space<vmem>>, %arg7: memref<1x16x1xf32, #tpu.memory_space<vmem>>) attributes {dimension_semantics = [#tpu.dimension_semantics<parallel>, #tpu.dimension_semantics<arbitrary>], iteration_bounds = array<i64: 1, 1>, scalar_prefetch = 0 : i64, scratch_operands = 0 : i64, tpu.core_type = #tpu.core_type<tc>, window_params = [{transform_indices = @transform_0, window_bounds = array<i64: 1, 432, 512>}, {pipeline_mode = #tpu.pipeline_mode<synchronous>, transform_indices = @transform_1, window_bounds = array<i64: 16, 432>}, {pipeline_mode = #tpu.pipeline_mode<synchronous>, transform_indices = @transform_2, window_bounds = array<i64: 16, 1>}, {transform_indices = @transform_3, window_bounds = array<i64: 1, 16, 512>}, {transform_indices = @transform_4, window_bounds = array<i64: 1, 16, 1>}, {transform_indices = @transform_5, window_bounds = array<i64: 1, 16, 1>}]} {
    %c0_i32 = arith.constant 0 : i32
    %0 = arith.cmpi eq, %arg1, %c0_i32 : i32
    %1 = arith.extui %0 : i1 to i32
    %c0_i32_0 = arith.constant 0 : i32
    %2 = arith.cmpi ne, %1, %c0_i32_0 : i32
    scf.if %2 {
      %cst_26 = arith.constant 0.000000e+00 : f32
      %35 = vector.broadcast %cst_26 : f32 to vector<1x16x1xf32>
      %c0_27 = arith.constant 0 : index
      %c0_28 = arith.constant 0 : index
      %c0_29 = arith.constant 0 : index
      %36 = vector.load %arg6[%c0_27, %c0_28, %c0_29] : memref<1x16x1xf32, #tpu.memory_space<vmem>>, vector<1x16x1xf32>
      tpu.vector_store %arg6[%c0_27, %c0_28, %c0_29], %35 {strides = array<i32>} : memref<1x16x1xf32, #tpu.memory_space<vmem>>, vector<1x16x1xf32>,
      %cst_30 = arith.constant 0.000000e+00 : f32
      %37 = vector.broadcast %cst_30 : f32 to vector<1x16x1xf32>
      %c0_31 = arith.constant 0 : index
      %c0_32 = arith.constant 0 : index
      %c0_33 = arith.constant 0 : index
      %38 = vector.load %arg7[%c0_31, %c0_32, %c0_33] : memref<1x16x1xf32, #tpu.memory_space<vmem>>, vector<1x16x1xf32>
      tpu.vector_store %arg7[%c0_31, %c0_32, %c0_33], %37 {strides = array<i32>} : memref<1x16x1xf32, #tpu.memory_space<vmem>>, vector<1x16x1xf32>,
    } else {
    }
    %c0 = arith.constant 0 : index
    %c0_1 = arith.constant 0 : index
    %3 = vector.load %arg3[%c0, %c0_1] : memref<16x432xbf16, #tpu.memory_space<vmem>>, vector<16x432xbf16>
    %c0_2 = arith.constant 0 : index
    %c0_3 = arith.constant 0 : index
    %c0_4 = arith.constant 0 : index
    %4 = vector.load %arg2[%c0_2, %c0_3, %c0_4] : memref<1x432x512xbf16, #tpu.memory_space<vmem>>, vector<1x432x512xbf16>
    %5 = vector.shape_cast %4 : vector<1x432x512xbf16> to vector<432x512xbf16>
    %cst = arith.constant dense<0.000000e+00> : vector<16x512xf32>
    %6 = tpu.matmul %3, %5, %cst {dimension_numbers = #tpu.dot_dimension_numbers<[1], [0], [0], [1], [0, 0, 1, 1], [], []>} : vector<16x432xbf16>, vector<432x512xbf16>, vector<16x512xf32> -> vector<16x512xf32>
    %c0_5 = arith.constant 0 : index
    %c0_6 = arith.constant 0 : index
    %7 = vector.load %arg4[%c0_5, %c0_6] : memref<16x1xf32, #tpu.memory_space<vmem>>, vector<16x1xf32>
    %8 = vector.broadcast %7 : vector<16x1xf32> to vector<16x512xf32>
    %9 = arith.addf %6, %8 : vector<16x512xf32>
    %cst_7 = arith.constant 0.000000e+00 : f32
    %10 = vector.broadcast %cst_7 : f32 to vector<16x512xf32>
    %11 = arith.cmpf ogt, %9, %10 : vector<16x512xf32>
    %cst_8 = arith.constant 1.000000e-01 : f32
    %12 = vector.broadcast %cst_8 : f32 to vector<16x512xf32>
    %13 = arith.mulf %12, %9 : vector<16x512xf32>
    %14 = arith.select %11, %9, %13 : vector<16x512xi1>, vector<16x512xf32>
    %c0_9 = arith.constant 0 : index
    %c0_10 = arith.constant 0 : index
    %c0_11 = arith.constant 0 : index
    %15 = vector.load %arg5[%c0_9, %c0_10, %c0_11] : memref<1x16x512xf32, #tpu.memory_space<vmem>>, vector<1x16x512xf32>
    %16 = vector.shape_cast %15 : vector<1x16x512xf32> to vector<16x512xf32>
    %17 = vector.shape_cast %14 : vector<16x512xf32> to vector<1x16x512xf32>
    tpu.vector_store %arg5[%c0_9, %c0_10, %c0_11], %17 {strides = array<i32>} : memref<1x16x512xf32, #tpu.memory_space<vmem>>, vector<1x16x512xf32>,
    %c0_12 = arith.constant 0 : index
    %c0_13 = arith.constant 0 : index
    %c0_14 = arith.constant 0 : index
    %18 = vector.load %arg6[%c0_12, %c0_13, %c0_14] : memref<1x16x1xf32, #tpu.memory_space<vmem>>, vector<1x16x1xf32>
    %19 = vector.shape_cast %18 : vector<1x16x1xf32> to vector<16x1xf32>
    %cst_15 = arith.constant dense<0.000000e+00> : vector<16xf32>
    %20 = vector.multi_reduction <add>, %14, %cst_15 [1] : vector<16x512xf32> to vector<16xf32>
    %21 = vector.shape_cast %20 : vector<16xf32> to vector<16x1xf32>
    %22 = arith.addf %19, %21 : vector<16x1xf32>
    %c0_16 = arith.constant 0 : index
    %c0_17 = arith.constant 0 : index
    %c0_18 = arith.constant 0 : index
    %23 = vector.load %arg6[%c0_16, %c0_17, %c0_18] : memref<1x16x1xf32, #tpu.memory_space<vmem>>, vector<1x16x1xf32>
    %24 = vector.shape_cast %23 : vector<1x16x1xf32> to vector<16x1xf32>
    %25 = vector.shape_cast %22 : vector<16x1xf32> to vector<1x16x1xf32>
    tpu.vector_store %arg6[%c0_16, %c0_17, %c0_18], %25 {strides = array<i32>} : memref<1x16x1xf32, #tpu.memory_space<vmem>>, vector<1x16x1xf32>,
    %c0_19 = arith.constant 0 : index
    %c0_20 = arith.constant 0 : index
    %c0_21 = arith.constant 0 : index
    %26 = vector.load %arg7[%c0_19, %c0_20, %c0_21] : memref<1x16x1xf32, #tpu.memory_space<vmem>>, vector<1x16x1xf32>
    %27 = vector.shape_cast %26 : vector<1x16x1xf32> to vector<16x1xf32>
    %28 = arith.mulf %14, %14 : vector<16x512xf32>
    %cst_22 = arith.constant dense<0.000000e+00> : vector<16xf32>
    %29 = vector.multi_reduction <add>, %28, %cst_22 [1] : vector<16x512xf32> to vector<16xf32>
    %30 = vector.shape_cast %29 : vector<16xf32> to vector<16x1xf32>
    %31 = arith.addf %27, %30 : vector<16x1xf32>
    %c0_23 = arith.constant 0 : index
    %c0_24 = arith.constant 0 : index
    %c0_25 = arith.constant 0 : index
    %32 = vector.load %arg7[%c0_23, %c0_24, %c0_25] : memref<1x16x1xf32, #tpu.memory_space<vmem>>, vector<1x16x1xf32>
    %33 = vector.shape_cast %32 : vector<1x16x1xf32> to vector<16x1xf32>
    %34 = vector.shape_cast %31 : vector<16x1xf32> to vector<1x16x1xf32>
    tpu.vector_store %arg7[%c0_23, %c0_24, %c0_25], %34 {strides = array<i32>} : memref<1x16x1xf32, #tpu.memory_space<vmem>>, vector<1x16x1xf32>,
    return
  }
  func.func @transform_0(%arg0: i32, %arg1: i32) -> (i32, i32, i32) {
    %c0_i32 = arith.constant 0 : i32
    %c0_i32_0 = arith.constant 0 : i32
    return %arg0, %c0_i32, %arg1 : i32, i32, i32
  }
  func.func @transform_1(%arg0: i32, %arg1: i32) -> (i32, i32) {
    %c0_i32 = arith.constant 0 : i32
    %c0_i32_0 = arith.constant 0 : i32
    %c0_i32_1 = arith.constant 0 : i32
    return %c0_i32, %c0_i32_0 : i32, i32
  }
  func.func @transform_2(%arg0: i32, %arg1: i32) -> (i32, i32) {
    %c0_i32 = arith.constant 0 : i32
    %c0_i32_0 = arith.constant 0 : i32
    %c0_i32_1 = arith.constant 0 : i32
    return %c0_i32, %c0_i32_0 : i32, i32
  }
  func.func @transform_3(%arg0: i32, %arg1: i32) -> (i32, i32, i32) {
    %c0_i32 = arith.constant 0 : i32
    %c0_i32_0 = arith.constant 0 : i32
    return %arg0, %c0_i32, %arg1 : i32, i32, i32
  }
  func.func @transform_4(%arg0: i32, %arg1: i32) -> (i32, i32, i32) {
    %c0_i32 = arith.constant 0 : i32
    %c0_i32_0 = arith.constant 0 : i32
    %c0_i32_1 = arith.constant 0 : i32
    return %arg0, %c0_i32, %c0_i32_0 : i32, i32, i32
  }
  func.func @transform_5(%arg0: i32, %arg1: i32) -> (i32, i32, i32) {
    %c0_i32 = arith.constant 0 : i32
    %c0_i32_0 = arith.constant 0 : i32
    %c0_i32_1 = arith.constant 0 : i32
    return %arg0, %c0_i32, %c0_i32_0 : i32, i32, i32
  }
}

module attributes {stable_mosaic.version = 11 : i64} {
  func.func @_conv_mm_kernel(%arg0: i32, %arg1: i32, %arg2: memref<1x432x512xbf16, #tpu.memory_space<vmem>>, %arg3: memref<16x432xbf16, #tpu.memory_space<vmem>>, %arg4: memref<16x1xf32, #tpu.memory_space<vmem>>, %arg5: memref<1x16x512xf32, #tpu.memory_space<vmem>>, %arg6: memref<1x16x1xf32, #tpu.memory_space<vmem>>, %arg7: memref<1x16x1xf32, #tpu.memory_space<vmem>>) attributes {dimension_semantics = [#tpu.dimension_semantics<parallel>, #tpu.dimension_semantics<arbitrary>], iteration_bounds = array<i64: 1, 1>, scalar_prefetch = 0 : i64, scratch_operands = 0 : i64, tpu.core_type = #tpu.core_type<tc>, window_params = [{transform_indices = @transform_0, window_bounds = array<i64: 1, 432, 512>}, {pipeline_mode = #tpu.pipeline_mode<synchronous>, transform_indices = @transform_1, window_bounds = array<i64: 16, 432>}, {pipeline_mode = #tpu.pipeline_mode<synchronous>, transform_indices = @transform_2, window_bounds = array<i64: 16, 1>}, {transform_indices = @transform_3, window_bounds = array<i64: 1, 16, 512>}, {transform_indices = @transform_4, window_bounds = array<i64: 1, 16, 1>}, {transform_indices = @transform_5, window_bounds = array<i64: 1, 16, 1>}]} {
    %c0_i32 = arith.constant 0 : i32
    %0 = arith.cmpi eq, %arg1, %c0_i32 : i32
    %1 = arith.extui %0 : i1 to i32
    %c0_i32_0 = arith.constant 0 : i32
    %2 = arith.cmpi ne, %1, %c0_i32_0 : i32
    scf.if %2 {
      %cst_24 = arith.constant 0.000000e+00 : f32
      %30 = vector.broadcast %cst_24 : f32 to vector<1x16x1xf32>
      %c0_25 = arith.constant 0 : index
      %c0_26 = arith.constant 0 : index
      %c0_27 = arith.constant 0 : index
      %31 = vector.load %arg6[%c0_25, %c0_26, %c0_27] : memref<1x16x1xf32, #tpu.memory_space<vmem>>, vector<1x16x1xf32>
      tpu.vector_store %arg6[%c0_25, %c0_26, %c0_27], %30 {strides = array<i32>} : memref<1x16x1xf32, #tpu.memory_space<vmem>>, vector<1x16x1xf32>,
      %cst_28 = arith.constant 0.000000e+00 : f32
      %32 = vector.broadcast %cst_28 : f32 to vector<1x16x1xf32>
      %c0_29 = arith.constant 0 : index
      %c0_30 = arith.constant 0 : index
      %c0_31 = arith.constant 0 : index
      %33 = vector.load %arg7[%c0_29, %c0_30, %c0_31] : memref<1x16x1xf32, #tpu.memory_space<vmem>>, vector<1x16x1xf32>
      tpu.vector_store %arg7[%c0_29, %c0_30, %c0_31], %32 {strides = array<i32>} : memref<1x16x1xf32, #tpu.memory_space<vmem>>, vector<1x16x1xf32>,
    } else {
    }
    %c0 = arith.constant 0 : index
    %c0_1 = arith.constant 0 : index
    %3 = vector.load %arg3[%c0, %c0_1] : memref<16x432xbf16, #tpu.memory_space<vmem>>, vector<16x432xbf16>
    %c0_2 = arith.constant 0 : index
    %c0_3 = arith.constant 0 : index
    %c0_4 = arith.constant 0 : index
    %4 = vector.load %arg2[%c0_2, %c0_3, %c0_4] : memref<1x432x512xbf16, #tpu.memory_space<vmem>>, vector<1x432x512xbf16>
    %5 = vector.shape_cast %4 : vector<1x432x512xbf16> to vector<432x512xbf16>
    %cst = arith.constant dense<0.000000e+00> : vector<16x512xf32>
    %6 = tpu.matmul %3, %5, %cst {dimension_numbers = #tpu.dot_dimension_numbers<[1], [0], [0], [1], [0, 0, 1, 1], [], []>} : vector<16x432xbf16>, vector<432x512xbf16>, vector<16x512xf32> -> vector<16x512xf32>
    %c0_5 = arith.constant 0 : index
    %c0_6 = arith.constant 0 : index
    %7 = vector.load %arg4[%c0_5, %c0_6] : memref<16x1xf32, #tpu.memory_space<vmem>>, vector<16x1xf32>
    %8 = vector.broadcast %7 : vector<16x1xf32> to vector<16x512xf32>
    %9 = arith.addf %6, %8 : vector<16x512xf32>
    %c0_7 = arith.constant 0 : index
    %c0_8 = arith.constant 0 : index
    %c0_9 = arith.constant 0 : index
    %10 = vector.load %arg5[%c0_7, %c0_8, %c0_9] : memref<1x16x512xf32, #tpu.memory_space<vmem>>, vector<1x16x512xf32>
    %11 = vector.shape_cast %10 : vector<1x16x512xf32> to vector<16x512xf32>
    %12 = vector.shape_cast %9 : vector<16x512xf32> to vector<1x16x512xf32>
    tpu.vector_store %arg5[%c0_7, %c0_8, %c0_9], %12 {strides = array<i32>} : memref<1x16x512xf32, #tpu.memory_space<vmem>>, vector<1x16x512xf32>,
    %c0_10 = arith.constant 0 : index
    %c0_11 = arith.constant 0 : index
    %c0_12 = arith.constant 0 : index
    %13 = vector.load %arg6[%c0_10, %c0_11, %c0_12] : memref<1x16x1xf32, #tpu.memory_space<vmem>>, vector<1x16x1xf32>
    %14 = vector.shape_cast %13 : vector<1x16x1xf32> to vector<16x1xf32>
    %cst_13 = arith.constant dense<0.000000e+00> : vector<16xf32>
    %15 = vector.multi_reduction <add>, %9, %cst_13 [1] : vector<16x512xf32> to vector<16xf32>
    %16 = vector.shape_cast %15 : vector<16xf32> to vector<16x1xf32>
    %17 = arith.addf %14, %16 : vector<16x1xf32>
    %c0_14 = arith.constant 0 : index
    %c0_15 = arith.constant 0 : index
    %c0_16 = arith.constant 0 : index
    %18 = vector.load %arg6[%c0_14, %c0_15, %c0_16] : memref<1x16x1xf32, #tpu.memory_space<vmem>>, vector<1x16x1xf32>
    %19 = vector.shape_cast %18 : vector<1x16x1xf32> to vector<16x1xf32>
    %20 = vector.shape_cast %17 : vector<16x1xf32> to vector<1x16x1xf32>
    tpu.vector_store %arg6[%c0_14, %c0_15, %c0_16], %20 {strides = array<i32>} : memref<1x16x1xf32, #tpu.memory_space<vmem>>, vector<1x16x1xf32>,
    %c0_17 = arith.constant 0 : index
    %c0_18 = arith.constant 0 : index
    %c0_19 = arith.constant 0 : index
    %21 = vector.load %arg7[%c0_17, %c0_18, %c0_19] : memref<1x16x1xf32, #tpu.memory_space<vmem>>, vector<1x16x1xf32>
    %22 = vector.shape_cast %21 : vector<1x16x1xf32> to vector<16x1xf32>
    %23 = arith.mulf %9, %9 : vector<16x512xf32>
    %cst_20 = arith.constant dense<0.000000e+00> : vector<16xf32>
    %24 = vector.multi_reduction <add>, %23, %cst_20 [1] : vector<16x512xf32> to vector<16xf32>
    %25 = vector.shape_cast %24 : vector<16xf32> to vector<16x1xf32>
    %26 = arith.addf %22, %25 : vector<16x1xf32>
    %c0_21 = arith.constant 0 : index
    %c0_22 = arith.constant 0 : index
    %c0_23 = arith.constant 0 : index
    %27 = vector.load %arg7[%c0_21, %c0_22, %c0_23] : memref<1x16x1xf32, #tpu.memory_space<vmem>>, vector<1x16x1xf32>
    %28 = vector.shape_cast %27 : vector<1x16x1xf32> to vector<16x1xf32>
    %29 = vector.shape_cast %26 : vector<16x1xf32> to vector<1x16x1xf32>
    tpu.vector_store %arg7[%c0_21, %c0_22, %c0_23], %29 {strides = array<i32>} : memref<1x16x1xf32, #tpu.memory_space<vmem>>, vector<1x16x1xf32>,
    return
  }
  func.func @transform_0(%arg0: i32, %arg1: i32) -> (i32, i32, i32) {
    %c0_i32 = arith.constant 0 : i32
    %c0_i32_0 = arith.constant 0 : i32
    return %arg0, %c0_i32, %arg1 : i32, i32, i32
  }
  func.func @transform_1(%arg0: i32, %arg1: i32) -> (i32, i32) {
    %c0_i32 = arith.constant 0 : i32
    %c0_i32_0 = arith.constant 0 : i32
    %c0_i32_1 = arith.constant 0 : i32
    return %c0_i32, %c0_i32_0 : i32, i32
  }
  func.func @transform_2(%arg0: i32, %arg1: i32) -> (i32, i32) {
    %c0_i32 = arith.constant 0 : i32
    %c0_i32_0 = arith.constant 0 : i32
    %c0_i32_1 = arith.constant 0 : i32
    return %c0_i32, %c0_i32_0 : i32, i32
  }
  func.func @transform_3(%arg0: i32, %arg1: i32) -> (i32, i32, i32) {
    %c0_i32 = arith.constant 0 : i32
    %c0_i32_0 = arith.constant 0 : i32
    return %arg0, %c0_i32, %arg1 : i32, i32, i32
  }
  func.func @transform_4(%arg0: i32, %arg1: i32) -> (i32, i32, i32) {
    %c0_i32 = arith.constant 0 : i32
    %c0_i32_0 = arith.constant 0 : i32
    %c0_i32_1 = arith.constant 0 : i32
    return %arg0, %c0_i32, %c0_i32_0 : i32, i32, i32
  }
  func.func @transform_5(%arg0: i32, %arg1: i32) -> (i32, i32, i32) {
    %c0_i32 = arith.constant 0 : i32
    %c0_i32_0 = arith.constant 0 : i32
    %c0_i32_1 = arith.constant 0 : i32
    return %arg0, %c0_i32, %c0_i32_0 : i32, i32, i32
  }
}

module attributes {stable_mosaic.version = 11 : i64} {
  func.func @_affine_res_kernel(%arg0: i32, %arg1: i32, %arg2: memref<1x16x512xf32, #tpu.memory_space<vmem>>, %arg3: memref<1x16x1xf32, #tpu.memory_space<vmem>>, %arg4: memref<1x16x1xf32, #tpu.memory_space<vmem>>, %arg5: memref<1x16x512xf32, #tpu.memory_space<vmem>>, %arg6: memref<1x16x512xf32, #tpu.memory_space<vmem>>) attributes {dimension_semantics = [#tpu.dimension_semantics<parallel>, #tpu.dimension_semantics<parallel>], iteration_bounds = array<i64: 1, 1>, scalar_prefetch = 0 : i64, scratch_operands = 0 : i64, tpu.core_type = #tpu.core_type<tc>, window_params = [{transform_indices = @transform_0, window_bounds = array<i64: 1, 16, 512>}, {transform_indices = @transform_1, window_bounds = array<i64: 1, 16, 1>}, {transform_indices = @transform_2, window_bounds = array<i64: 1, 16, 1>}, {transform_indices = @transform_3, window_bounds = array<i64: 1, 16, 512>}, {transform_indices = @transform_4, window_bounds = array<i64: 1, 16, 512>}]} {
    %c0 = arith.constant 0 : index
    %c0_0 = arith.constant 0 : index
    %c0_1 = arith.constant 0 : index
    %0 = vector.load %arg2[%c0, %c0_0, %c0_1] : memref<1x16x512xf32, #tpu.memory_space<vmem>>, vector<1x16x512xf32>
    %1 = vector.shape_cast %0 : vector<1x16x512xf32> to vector<16x512xf32>
    %c0_2 = arith.constant 0 : index
    %c0_3 = arith.constant 0 : index
    %c0_4 = arith.constant 0 : index
    %2 = vector.load %arg3[%c0_2, %c0_3, %c0_4] : memref<1x16x1xf32, #tpu.memory_space<vmem>>, vector<1x16x1xf32>
    %3 = vector.shape_cast %2 : vector<1x16x1xf32> to vector<16x1xf32>
    %4 = vector.broadcast %3 : vector<16x1xf32> to vector<16x512xf32>
    %5 = arith.mulf %1, %4 : vector<16x512xf32>
    %c0_5 = arith.constant 0 : index
    %c0_6 = arith.constant 0 : index
    %c0_7 = arith.constant 0 : index
    %6 = vector.load %arg4[%c0_5, %c0_6, %c0_7] : memref<1x16x1xf32, #tpu.memory_space<vmem>>, vector<1x16x1xf32>
    %7 = vector.shape_cast %6 : vector<1x16x1xf32> to vector<16x1xf32>
    %8 = vector.broadcast %7 : vector<16x1xf32> to vector<16x512xf32>
    %9 = arith.addf %5, %8 : vector<16x512xf32>
    %c0_8 = arith.constant 0 : index
    %c0_9 = arith.constant 0 : index
    %c0_10 = arith.constant 0 : index
    %10 = vector.load %arg5[%c0_8, %c0_9, %c0_10] : memref<1x16x512xf32, #tpu.memory_space<vmem>>, vector<1x16x512xf32>
    %11 = vector.shape_cast %10 : vector<1x16x512xf32> to vector<16x512xf32>
    %12 = arith.addf %9, %11 : vector<16x512xf32>
    %cst = arith.constant 0.000000e+00 : f32
    %13 = vector.broadcast %cst : f32 to vector<16x512xf32>
    %14 = arith.cmpf ogt, %12, %13 : vector<16x512xf32>
    %cst_11 = arith.constant 1.000000e-01 : f32
    %15 = vector.broadcast %cst_11 : f32 to vector<16x512xf32>
    %16 = arith.mulf %15, %12 : vector<16x512xf32>
    %17 = arith.select %14, %12, %16 : vector<16x512xi1>, vector<16x512xf32>
    %c0_12 = arith.constant 0 : index
    %c0_13 = arith.constant 0 : index
    %c0_14 = arith.constant 0 : index
    %18 = vector.load %arg6[%c0_12, %c0_13, %c0_14] : memref<1x16x512xf32, #tpu.memory_space<vmem>>, vector<1x16x512xf32>
    %19 = vector.shape_cast %18 : vector<1x16x512xf32> to vector<16x512xf32>
    %20 = vector.shape_cast %17 : vector<16x512xf32> to vector<1x16x512xf32>
    tpu.vector_store %arg6[%c0_12, %c0_13, %c0_14], %20 {strides = array<i32>} : memref<1x16x512xf32, #tpu.memory_space<vmem>>, vector<1x16x512xf32>,
    return
  }
  func.func @transform_0(%arg0: i32, %arg1: i32) -> (i32, i32, i32) {
    %c0_i32 = arith.constant 0 : i32
    %c0_i32_0 = arith.constant 0 : i32
    return %arg0, %c0_i32, %arg1 : i32, i32, i32
  }
  func.func @transform_1(%arg0: i32, %arg1: i32) -> (i32, i32, i32) {
    %c0_i32 = arith.constant 0 : i32
    %c0_i32_0 = arith.constant 0 : i32
    %c0_i32_1 = arith.constant 0 : i32
    return %arg0, %c0_i32, %c0_i32_0 : i32, i32, i32
  }
  func.func @transform_2(%arg0: i32, %arg1: i32) -> (i32, i32, i32) {
    %c0_i32 = arith.constant 0 : i32
    %c0_i32_0 = arith.constant 0 : i32
    %c0_i32_1 = arith.constant 0 : i32
    return %arg0, %c0_i32, %c0_i32_0 : i32, i32, i32
  }
  func.func @transform_3(%arg0: i32, %arg1: i32) -> (i32, i32, i32) {
    %c0_i32 = arith.constant 0 : i32
    %c0_i32_0 = arith.constant 0 : i32
    return %arg0, %c0_i32, %arg1 : i32, i32, i32
  }
  func.func @transform_4(%arg0: i32, %arg1: i32) -> (i32, i32, i32) {
    %c0_i32 = arith.constant 0 : i32
    %c0_i32_0 = arith.constant 0 : i32
    return %arg0, %c0_i32, %arg1 : i32, i32, i32
  }
}

module attributes {stable_mosaic.version = 11 : i64} {
  func.func @_conv_mm_kernel(%arg0: i32, %arg1: i32, %arg2: memref<1x432x64xbf16, #tpu.memory_space<vmem>>, %arg3: memref<32x432xbf16, #tpu.memory_space<vmem>>, %arg4: memref<32x1xf32, #tpu.memory_space<vmem>>, %arg5: memref<1x32x64xf32, #tpu.memory_space<vmem>>, %arg6: memref<1x32x1xf32, #tpu.memory_space<vmem>>, %arg7: memref<1x32x1xf32, #tpu.memory_space<vmem>>) attributes {dimension_semantics = [#tpu.dimension_semantics<parallel>, #tpu.dimension_semantics<arbitrary>], iteration_bounds = array<i64: 1, 1>, scalar_prefetch = 0 : i64, scratch_operands = 0 : i64, tpu.core_type = #tpu.core_type<tc>, window_params = [{transform_indices = @transform_0, window_bounds = array<i64: 1, 432, 64>}, {pipeline_mode = #tpu.pipeline_mode<synchronous>, transform_indices = @transform_1, window_bounds = array<i64: 32, 432>}, {pipeline_mode = #tpu.pipeline_mode<synchronous>, transform_indices = @transform_2, window_bounds = array<i64: 32, 1>}, {transform_indices = @transform_3, window_bounds = array<i64: 1, 32, 64>}, {transform_indices = @transform_4, window_bounds = array<i64: 1, 32, 1>}, {transform_indices = @transform_5, window_bounds = array<i64: 1, 32, 1>}]} {
    %c0_i32 = arith.constant 0 : i32
    %0 = arith.cmpi eq, %arg1, %c0_i32 : i32
    %1 = arith.extui %0 : i1 to i32
    %c0_i32_0 = arith.constant 0 : i32
    %2 = arith.cmpi ne, %1, %c0_i32_0 : i32
    scf.if %2 {
      %cst_26 = arith.constant 0.000000e+00 : f32
      %35 = vector.broadcast %cst_26 : f32 to vector<1x32x1xf32>
      %c0_27 = arith.constant 0 : index
      %c0_28 = arith.constant 0 : index
      %c0_29 = arith.constant 0 : index
      %36 = vector.load %arg6[%c0_27, %c0_28, %c0_29] : memref<1x32x1xf32, #tpu.memory_space<vmem>>, vector<1x32x1xf32>
      tpu.vector_store %arg6[%c0_27, %c0_28, %c0_29], %35 {strides = array<i32>} : memref<1x32x1xf32, #tpu.memory_space<vmem>>, vector<1x32x1xf32>,
      %cst_30 = arith.constant 0.000000e+00 : f32
      %37 = vector.broadcast %cst_30 : f32 to vector<1x32x1xf32>
      %c0_31 = arith.constant 0 : index
      %c0_32 = arith.constant 0 : index
      %c0_33 = arith.constant 0 : index
      %38 = vector.load %arg7[%c0_31, %c0_32, %c0_33] : memref<1x32x1xf32, #tpu.memory_space<vmem>>, vector<1x32x1xf32>
      tpu.vector_store %arg7[%c0_31, %c0_32, %c0_33], %37 {strides = array<i32>} : memref<1x32x1xf32, #tpu.memory_space<vmem>>, vector<1x32x1xf32>,
    } else {
    }
    %c0 = arith.constant 0 : index
    %c0_1 = arith.constant 0 : index
    %3 = vector.load %arg3[%c0, %c0_1] : memref<32x432xbf16, #tpu.memory_space<vmem>>, vector<32x432xbf16>
    %c0_2 = arith.constant 0 : index
    %c0_3 = arith.constant 0 : index
    %c0_4 = arith.constant 0 : index
    %4 = vector.load %arg2[%c0_2, %c0_3, %c0_4] : memref<1x432x64xbf16, #tpu.memory_space<vmem>>, vector<1x432x64xbf16>
    %5 = vector.shape_cast %4 : vector<1x432x64xbf16> to vector<432x64xbf16>
    %cst = arith.constant dense<0.000000e+00> : vector<32x64xf32>
    %6 = tpu.matmul %3, %5, %cst {dimension_numbers = #tpu.dot_dimension_numbers<[1], [0], [0], [1], [0, 0, 1, 1], [], []>} : vector<32x432xbf16>, vector<432x64xbf16>, vector<32x64xf32> -> vector<32x64xf32>
    %c0_5 = arith.constant 0 : index
    %c0_6 = arith.constant 0 : index
    %7 = vector.load %arg4[%c0_5, %c0_6] : memref<32x1xf32, #tpu.memory_space<vmem>>, vector<32x1xf32>
    %8 = vector.broadcast %7 : vector<32x1xf32> to vector<32x64xf32>
    %9 = arith.addf %6, %8 : vector<32x64xf32>
    %cst_7 = arith.constant 0.000000e+00 : f32
    %10 = vector.broadcast %cst_7 : f32 to vector<32x64xf32>
    %11 = arith.cmpf ogt, %9, %10 : vector<32x64xf32>
    %cst_8 = arith.constant 1.000000e-01 : f32
    %12 = vector.broadcast %cst_8 : f32 to vector<32x64xf32>
    %13 = arith.mulf %12, %9 : vector<32x64xf32>
    %14 = arith.select %11, %9, %13 : vector<32x64xi1>, vector<32x64xf32>
    %c0_9 = arith.constant 0 : index
    %c0_10 = arith.constant 0 : index
    %c0_11 = arith.constant 0 : index
    %15 = vector.load %arg5[%c0_9, %c0_10, %c0_11] : memref<1x32x64xf32, #tpu.memory_space<vmem>>, vector<1x32x64xf32>
    %16 = vector.shape_cast %15 : vector<1x32x64xf32> to vector<32x64xf32>
    %17 = vector.shape_cast %14 : vector<32x64xf32> to vector<1x32x64xf32>
    tpu.vector_store %arg5[%c0_9, %c0_10, %c0_11], %17 {strides = array<i32>} : memref<1x32x64xf32, #tpu.memory_space<vmem>>, vector<1x32x64xf32>,
    %c0_12 = arith.constant 0 : index
    %c0_13 = arith.constant 0 : index
    %c0_14 = arith.constant 0 : index
    %18 = vector.load %arg6[%c0_12, %c0_13, %c0_14] : memref<1x32x1xf32, #tpu.memory_space<vmem>>, vector<1x32x1xf32>
    %19 = vector.shape_cast %18 : vector<1x32x1xf32> to vector<32x1xf32>
    %cst_15 = arith.constant dense<0.000000e+00> : vector<32xf32>
    %20 = vector.multi_reduction <add>, %14, %cst_15 [1] : vector<32x64xf32> to vector<32xf32>
    %21 = vector.shape_cast %20 : vector<32xf32> to vector<32x1xf32>
    %22 = arith.addf %19, %21 : vector<32x1xf32>
    %c0_16 = arith.constant 0 : index
    %c0_17 = arith.constant 0 : index
    %c0_18 = arith.constant 0 : index
    %23 = vector.load %arg6[%c0_16, %c0_17, %c0_18] : memref<1x32x1xf32, #tpu.memory_space<vmem>>, vector<1x32x1xf32>
    %24 = vector.shape_cast %23 : vector<1x32x1xf32> to vector<32x1xf32>
    %25 = vector.shape_cast %22 : vector<32x1xf32> to vector<1x32x1xf32>
    tpu.vector_store %arg6[%c0_16, %c0_17, %c0_18], %25 {strides = array<i32>} : memref<1x32x1xf32, #tpu.memory_space<vmem>>, vector<1x32x1xf32>,
    %c0_19 = arith.constant 0 : index
    %c0_20 = arith.constant 0 : index
    %c0_21 = arith.constant 0 : index
    %26 = vector.load %arg7[%c0_19, %c0_20, %c0_21] : memref<1x32x1xf32, #tpu.memory_space<vmem>>, vector<1x32x1xf32>
    %27 = vector.shape_cast %26 : vector<1x32x1xf32> to vector<32x1xf32>
    %28 = arith.mulf %14, %14 : vector<32x64xf32>
    %cst_22 = arith.constant dense<0.000000e+00> : vector<32xf32>
    %29 = vector.multi_reduction <add>, %28, %cst_22 [1] : vector<32x64xf32> to vector<32xf32>
    %30 = vector.shape_cast %29 : vector<32xf32> to vector<32x1xf32>
    %31 = arith.addf %27, %30 : vector<32x1xf32>
    %c0_23 = arith.constant 0 : index
    %c0_24 = arith.constant 0 : index
    %c0_25 = arith.constant 0 : index
    %32 = vector.load %arg7[%c0_23, %c0_24, %c0_25] : memref<1x32x1xf32, #tpu.memory_space<vmem>>, vector<1x32x1xf32>
    %33 = vector.shape_cast %32 : vector<1x32x1xf32> to vector<32x1xf32>
    %34 = vector.shape_cast %31 : vector<32x1xf32> to vector<1x32x1xf32>
    tpu.vector_store %arg7[%c0_23, %c0_24, %c0_25], %34 {strides = array<i32>} : memref<1x32x1xf32, #tpu.memory_space<vmem>>, vector<1x32x1xf32>,
    return
  }
  func.func @transform_0(%arg0: i32, %arg1: i32) -> (i32, i32, i32) {
    %c0_i32 = arith.constant 0 : i32
    %c0_i32_0 = arith.constant 0 : i32
    return %arg0, %c0_i32, %arg1 : i32, i32, i32
  }
  func.func @transform_1(%arg0: i32, %arg1: i32) -> (i32, i32) {
    %c0_i32 = arith.constant 0 : i32
    %c0_i32_0 = arith.constant 0 : i32
    %c0_i32_1 = arith.constant 0 : i32
    return %c0_i32, %c0_i32_0 : i32, i32
  }
  func.func @transform_2(%arg0: i32, %arg1: i32) -> (i32, i32) {
    %c0_i32 = arith.constant 0 : i32
    %c0_i32_0 = arith.constant 0 : i32
    %c0_i32_1 = arith.constant 0 : i32
    return %c0_i32, %c0_i32_0 : i32, i32
  }
  func.func @transform_3(%arg0: i32, %arg1: i32) -> (i32, i32, i32) {
    %c0_i32 = arith.constant 0 : i32
    %c0_i32_0 = arith.constant 0 : i32
    return %arg0, %c0_i32, %arg1 : i32, i32, i32
  }
  func.func @transform_4(%arg0: i32, %arg1: i32) -> (i32, i32, i32) {
    %c0_i32 = arith.constant 0 : i32
    %c0_i32_0 = arith.constant 0 : i32
    %c0_i32_1 = arith.constant 0 : i32
    return %arg0, %c0_i32, %c0_i32_0 : i32, i32, i32
  }
  func.func @transform_5(%arg0: i32, %arg1: i32) -> (i32, i32, i32) {
    %c0_i32 = arith.constant 0 : i32
    %c0_i32_0 = arith.constant 0 : i32
    %c0_i32_1 = arith.constant 0 : i32
    return %arg0, %c0_i32, %c0_i32_0 : i32, i32, i32
  }
}

module attributes {stable_mosaic.version = 11 : i64} {
  func.func @_affine_kernel(%arg0: i32, %arg1: i32, %arg2: memref<1x32x64xf32, #tpu.memory_space<vmem>>, %arg3: memref<1x32x1xf32, #tpu.memory_space<vmem>>, %arg4: memref<1x32x1xf32, #tpu.memory_space<vmem>>, %arg5: memref<1x32x64xf32, #tpu.memory_space<vmem>>) attributes {dimension_semantics = [#tpu.dimension_semantics<parallel>, #tpu.dimension_semantics<parallel>], iteration_bounds = array<i64: 1, 1>, scalar_prefetch = 0 : i64, scratch_operands = 0 : i64, tpu.core_type = #tpu.core_type<tc>, window_params = [{transform_indices = @transform_0, window_bounds = array<i64: 1, 32, 64>}, {transform_indices = @transform_1, window_bounds = array<i64: 1, 32, 1>}, {transform_indices = @transform_2, window_bounds = array<i64: 1, 32, 1>}, {transform_indices = @transform_3, window_bounds = array<i64: 1, 32, 64>}]} {
    %c0 = arith.constant 0 : index
    %c0_0 = arith.constant 0 : index
    %c0_1 = arith.constant 0 : index
    %0 = vector.load %arg2[%c0, %c0_0, %c0_1] : memref<1x32x64xf32, #tpu.memory_space<vmem>>, vector<1x32x64xf32>
    %1 = vector.shape_cast %0 : vector<1x32x64xf32> to vector<32x64xf32>
    %c0_2 = arith.constant 0 : index
    %c0_3 = arith.constant 0 : index
    %c0_4 = arith.constant 0 : index
    %2 = vector.load %arg3[%c0_2, %c0_3, %c0_4] : memref<1x32x1xf32, #tpu.memory_space<vmem>>, vector<1x32x1xf32>
    %3 = vector.shape_cast %2 : vector<1x32x1xf32> to vector<32x1xf32>
    %4 = vector.broadcast %3 : vector<32x1xf32> to vector<32x64xf32>
    %5 = arith.mulf %1, %4 : vector<32x64xf32>
    %c0_5 = arith.constant 0 : index
    %c0_6 = arith.constant 0 : index
    %c0_7 = arith.constant 0 : index
    %6 = vector.load %arg4[%c0_5, %c0_6, %c0_7] : memref<1x32x1xf32, #tpu.memory_space<vmem>>, vector<1x32x1xf32>
    %7 = vector.shape_cast %6 : vector<1x32x1xf32> to vector<32x1xf32>
    %8 = vector.broadcast %7 : vector<32x1xf32> to vector<32x64xf32>
    %9 = arith.addf %5, %8 : vector<32x64xf32>
    %c0_8 = arith.constant 0 : index
    %c0_9 = arith.constant 0 : index
    %c0_10 = arith.constant 0 : index
    %10 = vector.load %arg5[%c0_8, %c0_9, %c0_10] : memref<1x32x64xf32, #tpu.memory_space<vmem>>, vector<1x32x64xf32>
    %11 = vector.shape_cast %10 : vector<1x32x64xf32> to vector<32x64xf32>
    %12 = vector.shape_cast %9 : vector<32x64xf32> to vector<1x32x64xf32>
    tpu.vector_store %arg5[%c0_8, %c0_9, %c0_10], %12 {strides = array<i32>} : memref<1x32x64xf32, #tpu.memory_space<vmem>>, vector<1x32x64xf32>,
    return
  }
  func.func @transform_0(%arg0: i32, %arg1: i32) -> (i32, i32, i32) {
    %c0_i32 = arith.constant 0 : i32
    %c0_i32_0 = arith.constant 0 : i32
    return %arg0, %c0_i32, %arg1 : i32, i32, i32
  }
  func.func @transform_1(%arg0: i32, %arg1: i32) -> (i32, i32, i32) {
    %c0_i32 = arith.constant 0 : i32
    %c0_i32_0 = arith.constant 0 : i32
    %c0_i32_1 = arith.constant 0 : i32
    return %arg0, %c0_i32, %c0_i32_0 : i32, i32, i32
  }
  func.func @transform_2(%arg0: i32, %arg1: i32) -> (i32, i32, i32) {
    %c0_i32 = arith.constant 0 : i32
    %c0_i32_0 = arith.constant 0 : i32
    %c0_i32_1 = arith.constant 0 : i32
    return %arg0, %c0_i32, %c0_i32_0 : i32, i32, i32
  }
  func.func @transform_3(%arg0: i32, %arg1: i32) -> (i32, i32, i32) {
    %c0_i32 = arith.constant 0 : i32
    %c0_i32_0 = arith.constant 0 : i32
    return %arg0, %c0_i32, %arg1 : i32, i32, i32
  }
}

module attributes {stable_mosaic.version = 11 : i64} {
  func.func @_conv_mm_kernel(%arg0: i32, %arg1: i32, %arg2: memref<1x864x64xbf16, #tpu.memory_space<vmem>>, %arg3: memref<32x864xbf16, #tpu.memory_space<vmem>>, %arg4: memref<32x1xf32, #tpu.memory_space<vmem>>, %arg5: memref<1x32x64xf32, #tpu.memory_space<vmem>>, %arg6: memref<1x32x1xf32, #tpu.memory_space<vmem>>, %arg7: memref<1x32x1xf32, #tpu.memory_space<vmem>>) attributes {dimension_semantics = [#tpu.dimension_semantics<parallel>, #tpu.dimension_semantics<arbitrary>], iteration_bounds = array<i64: 1, 1>, scalar_prefetch = 0 : i64, scratch_operands = 0 : i64, tpu.core_type = #tpu.core_type<tc>, window_params = [{transform_indices = @transform_0, window_bounds = array<i64: 1, 864, 64>}, {pipeline_mode = #tpu.pipeline_mode<synchronous>, transform_indices = @transform_1, window_bounds = array<i64: 32, 864>}, {pipeline_mode = #tpu.pipeline_mode<synchronous>, transform_indices = @transform_2, window_bounds = array<i64: 32, 1>}, {transform_indices = @transform_3, window_bounds = array<i64: 1, 32, 64>}, {transform_indices = @transform_4, window_bounds = array<i64: 1, 32, 1>}, {transform_indices = @transform_5, window_bounds = array<i64: 1, 32, 1>}]} {
    %c0_i32 = arith.constant 0 : i32
    %0 = arith.cmpi eq, %arg1, %c0_i32 : i32
    %1 = arith.extui %0 : i1 to i32
    %c0_i32_0 = arith.constant 0 : i32
    %2 = arith.cmpi ne, %1, %c0_i32_0 : i32
    scf.if %2 {
      %cst_26 = arith.constant 0.000000e+00 : f32
      %35 = vector.broadcast %cst_26 : f32 to vector<1x32x1xf32>
      %c0_27 = arith.constant 0 : index
      %c0_28 = arith.constant 0 : index
      %c0_29 = arith.constant 0 : index
      %36 = vector.load %arg6[%c0_27, %c0_28, %c0_29] : memref<1x32x1xf32, #tpu.memory_space<vmem>>, vector<1x32x1xf32>
      tpu.vector_store %arg6[%c0_27, %c0_28, %c0_29], %35 {strides = array<i32>} : memref<1x32x1xf32, #tpu.memory_space<vmem>>, vector<1x32x1xf32>,
      %cst_30 = arith.constant 0.000000e+00 : f32
      %37 = vector.broadcast %cst_30 : f32 to vector<1x32x1xf32>
      %c0_31 = arith.constant 0 : index
      %c0_32 = arith.constant 0 : index
      %c0_33 = arith.constant 0 : index
      %38 = vector.load %arg7[%c0_31, %c0_32, %c0_33] : memref<1x32x1xf32, #tpu.memory_space<vmem>>, vector<1x32x1xf32>
      tpu.vector_store %arg7[%c0_31, %c0_32, %c0_33], %37 {strides = array<i32>} : memref<1x32x1xf32, #tpu.memory_space<vmem>>, vector<1x32x1xf32>,
    } else {
    }
    %c0 = arith.constant 0 : index
    %c0_1 = arith.constant 0 : index
    %3 = vector.load %arg3[%c0, %c0_1] : memref<32x864xbf16, #tpu.memory_space<vmem>>, vector<32x864xbf16>
    %c0_2 = arith.constant 0 : index
    %c0_3 = arith.constant 0 : index
    %c0_4 = arith.constant 0 : index
    %4 = vector.load %arg2[%c0_2, %c0_3, %c0_4] : memref<1x864x64xbf16, #tpu.memory_space<vmem>>, vector<1x864x64xbf16>
    %5 = vector.shape_cast %4 : vector<1x864x64xbf16> to vector<864x64xbf16>
    %cst = arith.constant dense<0.000000e+00> : vector<32x64xf32>
    %6 = tpu.matmul %3, %5, %cst {dimension_numbers = #tpu.dot_dimension_numbers<[1], [0], [0], [1], [0, 0, 1, 1], [], []>} : vector<32x864xbf16>, vector<864x64xbf16>, vector<32x64xf32> -> vector<32x64xf32>
    %c0_5 = arith.constant 0 : index
    %c0_6 = arith.constant 0 : index
    %7 = vector.load %arg4[%c0_5, %c0_6] : memref<32x1xf32, #tpu.memory_space<vmem>>, vector<32x1xf32>
    %8 = vector.broadcast %7 : vector<32x1xf32> to vector<32x64xf32>
    %9 = arith.addf %6, %8 : vector<32x64xf32>
    %cst_7 = arith.constant 0.000000e+00 : f32
    %10 = vector.broadcast %cst_7 : f32 to vector<32x64xf32>
    %11 = arith.cmpf ogt, %9, %10 : vector<32x64xf32>
    %cst_8 = arith.constant 1.000000e-01 : f32
    %12 = vector.broadcast %cst_8 : f32 to vector<32x64xf32>
    %13 = arith.mulf %12, %9 : vector<32x64xf32>
    %14 = arith.select %11, %9, %13 : vector<32x64xi1>, vector<32x64xf32>
    %c0_9 = arith.constant 0 : index
    %c0_10 = arith.constant 0 : index
    %c0_11 = arith.constant 0 : index
    %15 = vector.load %arg5[%c0_9, %c0_10, %c0_11] : memref<1x32x64xf32, #tpu.memory_space<vmem>>, vector<1x32x64xf32>
    %16 = vector.shape_cast %15 : vector<1x32x64xf32> to vector<32x64xf32>
    %17 = vector.shape_cast %14 : vector<32x64xf32> to vector<1x32x64xf32>
    tpu.vector_store %arg5[%c0_9, %c0_10, %c0_11], %17 {strides = array<i32>} : memref<1x32x64xf32, #tpu.memory_space<vmem>>, vector<1x32x64xf32>,
    %c0_12 = arith.constant 0 : index
    %c0_13 = arith.constant 0 : index
    %c0_14 = arith.constant 0 : index
    %18 = vector.load %arg6[%c0_12, %c0_13, %c0_14] : memref<1x32x1xf32, #tpu.memory_space<vmem>>, vector<1x32x1xf32>
    %19 = vector.shape_cast %18 : vector<1x32x1xf32> to vector<32x1xf32>
    %cst_15 = arith.constant dense<0.000000e+00> : vector<32xf32>
    %20 = vector.multi_reduction <add>, %14, %cst_15 [1] : vector<32x64xf32> to vector<32xf32>
    %21 = vector.shape_cast %20 : vector<32xf32> to vector<32x1xf32>
    %22 = arith.addf %19, %21 : vector<32x1xf32>
    %c0_16 = arith.constant 0 : index
    %c0_17 = arith.constant 0 : index
    %c0_18 = arith.constant 0 : index
    %23 = vector.load %arg6[%c0_16, %c0_17, %c0_18] : memref<1x32x1xf32, #tpu.memory_space<vmem>>, vector<1x32x1xf32>
    %24 = vector.shape_cast %23 : vector<1x32x1xf32> to vector<32x1xf32>
    %25 = vector.shape_cast %22 : vector<32x1xf32> to vector<1x32x1xf32>
    tpu.vector_store %arg6[%c0_16, %c0_17, %c0_18], %25 {strides = array<i32>} : memref<1x32x1xf32, #tpu.memory_space<vmem>>, vector<1x32x1xf32>,
    %c0_19 = arith.constant 0 : index
    %c0_20 = arith.constant 0 : index
    %c0_21 = arith.constant 0 : index
    %26 = vector.load %arg7[%c0_19, %c0_20, %c0_21] : memref<1x32x1xf32, #tpu.memory_space<vmem>>, vector<1x32x1xf32>
    %27 = vector.shape_cast %26 : vector<1x32x1xf32> to vector<32x1xf32>
    %28 = arith.mulf %14, %14 : vector<32x64xf32>
    %cst_22 = arith.constant dense<0.000000e+00> : vector<32xf32>
    %29 = vector.multi_reduction <add>, %28, %cst_22 [1] : vector<32x64xf32> to vector<32xf32>
    %30 = vector.shape_cast %29 : vector<32xf32> to vector<32x1xf32>
    %31 = arith.addf %27, %30 : vector<32x1xf32>
    %c0_23 = arith.constant 0 : index
    %c0_24 = arith.constant 0 : index
    %c0_25 = arith.constant 0 : index
    %32 = vector.load %arg7[%c0_23, %c0_24, %c0_25] : memref<1x32x1xf32, #tpu.memory_space<vmem>>, vector<1x32x1xf32>
    %33 = vector.shape_cast %32 : vector<1x32x1xf32> to vector<32x1xf32>
    %34 = vector.shape_cast %31 : vector<32x1xf32> to vector<1x32x1xf32>
    tpu.vector_store %arg7[%c0_23, %c0_24, %c0_25], %34 {strides = array<i32>} : memref<1x32x1xf32, #tpu.memory_space<vmem>>, vector<1x32x1xf32>,
    return
  }
  func.func @transform_0(%arg0: i32, %arg1: i32) -> (i32, i32, i32) {
    %c0_i32 = arith.constant 0 : i32
    %c0_i32_0 = arith.constant 0 : i32
    return %arg0, %c0_i32, %arg1 : i32, i32, i32
  }
  func.func @transform_1(%arg0: i32, %arg1: i32) -> (i32, i32) {
    %c0_i32 = arith.constant 0 : i32
    %c0_i32_0 = arith.constant 0 : i32
    %c0_i32_1 = arith.constant 0 : i32
    return %c0_i32, %c0_i32_0 : i32, i32
  }
  func.func @transform_2(%arg0: i32, %arg1: i32) -> (i32, i32) {
    %c0_i32 = arith.constant 0 : i32
    %c0_i32_0 = arith.constant 0 : i32
    %c0_i32_1 = arith.constant 0 : i32
    return %c0_i32, %c0_i32_0 : i32, i32
  }
  func.func @transform_3(%arg0: i32, %arg1: i32) -> (i32, i32, i32) {
    %c0_i32 = arith.constant 0 : i32
    %c0_i32_0 = arith.constant 0 : i32
    return %arg0, %c0_i32, %arg1 : i32, i32, i32
  }
  func.func @transform_4(%arg0: i32, %arg1: i32) -> (i32, i32, i32) {
    %c0_i32 = arith.constant 0 : i32
    %c0_i32_0 = arith.constant 0 : i32
    %c0_i32_1 = arith.constant 0 : i32
    return %arg0, %c0_i32, %c0_i32_0 : i32, i32, i32
  }
  func.func @transform_5(%arg0: i32, %arg1: i32) -> (i32, i32, i32) {
    %c0_i32 = arith.constant 0 : i32
    %c0_i32_0 = arith.constant 0 : i32
    %c0_i32_1 = arith.constant 0 : i32
    return %arg0, %c0_i32, %c0_i32_0 : i32, i32, i32
  }
}

module attributes {stable_mosaic.version = 11 : i64} {
  func.func @_conv_mm_kernel(%arg0: i32, %arg1: i32, %arg2: memref<1x864x64xbf16, #tpu.memory_space<vmem>>, %arg3: memref<32x864xbf16, #tpu.memory_space<vmem>>, %arg4: memref<32x1xf32, #tpu.memory_space<vmem>>, %arg5: memref<1x32x64xf32, #tpu.memory_space<vmem>>, %arg6: memref<1x32x1xf32, #tpu.memory_space<vmem>>, %arg7: memref<1x32x1xf32, #tpu.memory_space<vmem>>) attributes {dimension_semantics = [#tpu.dimension_semantics<parallel>, #tpu.dimension_semantics<arbitrary>], iteration_bounds = array<i64: 1, 1>, scalar_prefetch = 0 : i64, scratch_operands = 0 : i64, tpu.core_type = #tpu.core_type<tc>, window_params = [{transform_indices = @transform_0, window_bounds = array<i64: 1, 864, 64>}, {pipeline_mode = #tpu.pipeline_mode<synchronous>, transform_indices = @transform_1, window_bounds = array<i64: 32, 864>}, {pipeline_mode = #tpu.pipeline_mode<synchronous>, transform_indices = @transform_2, window_bounds = array<i64: 32, 1>}, {transform_indices = @transform_3, window_bounds = array<i64: 1, 32, 64>}, {transform_indices = @transform_4, window_bounds = array<i64: 1, 32, 1>}, {transform_indices = @transform_5, window_bounds = array<i64: 1, 32, 1>}]} {
    %c0_i32 = arith.constant 0 : i32
    %0 = arith.cmpi eq, %arg1, %c0_i32 : i32
    %1 = arith.extui %0 : i1 to i32
    %c0_i32_0 = arith.constant 0 : i32
    %2 = arith.cmpi ne, %1, %c0_i32_0 : i32
    scf.if %2 {
      %cst_24 = arith.constant 0.000000e+00 : f32
      %30 = vector.broadcast %cst_24 : f32 to vector<1x32x1xf32>
      %c0_25 = arith.constant 0 : index
      %c0_26 = arith.constant 0 : index
      %c0_27 = arith.constant 0 : index
      %31 = vector.load %arg6[%c0_25, %c0_26, %c0_27] : memref<1x32x1xf32, #tpu.memory_space<vmem>>, vector<1x32x1xf32>
      tpu.vector_store %arg6[%c0_25, %c0_26, %c0_27], %30 {strides = array<i32>} : memref<1x32x1xf32, #tpu.memory_space<vmem>>, vector<1x32x1xf32>,
      %cst_28 = arith.constant 0.000000e+00 : f32
      %32 = vector.broadcast %cst_28 : f32 to vector<1x32x1xf32>
      %c0_29 = arith.constant 0 : index
      %c0_30 = arith.constant 0 : index
      %c0_31 = arith.constant 0 : index
      %33 = vector.load %arg7[%c0_29, %c0_30, %c0_31] : memref<1x32x1xf32, #tpu.memory_space<vmem>>, vector<1x32x1xf32>
      tpu.vector_store %arg7[%c0_29, %c0_30, %c0_31], %32 {strides = array<i32>} : memref<1x32x1xf32, #tpu.memory_space<vmem>>, vector<1x32x1xf32>,
    } else {
    }
    %c0 = arith.constant 0 : index
    %c0_1 = arith.constant 0 : index
    %3 = vector.load %arg3[%c0, %c0_1] : memref<32x864xbf16, #tpu.memory_space<vmem>>, vector<32x864xbf16>
    %c0_2 = arith.constant 0 : index
    %c0_3 = arith.constant 0 : index
    %c0_4 = arith.constant 0 : index
    %4 = vector.load %arg2[%c0_2, %c0_3, %c0_4] : memref<1x864x64xbf16, #tpu.memory_space<vmem>>, vector<1x864x64xbf16>
    %5 = vector.shape_cast %4 : vector<1x864x64xbf16> to vector<864x64xbf16>
    %cst = arith.constant dense<0.000000e+00> : vector<32x64xf32>
    %6 = tpu.matmul %3, %5, %cst {dimension_numbers = #tpu.dot_dimension_numbers<[1], [0], [0], [1], [0, 0, 1, 1], [], []>} : vector<32x864xbf16>, vector<864x64xbf16>, vector<32x64xf32> -> vector<32x64xf32>
    %c0_5 = arith.constant 0 : index
    %c0_6 = arith.constant 0 : index
    %7 = vector.load %arg4[%c0_5, %c0_6] : memref<32x1xf32, #tpu.memory_space<vmem>>, vector<32x1xf32>
    %8 = vector.broadcast %7 : vector<32x1xf32> to vector<32x64xf32>
    %9 = arith.addf %6, %8 : vector<32x64xf32>
    %c0_7 = arith.constant 0 : index
    %c0_8 = arith.constant 0 : index
    %c0_9 = arith.constant 0 : index
    %10 = vector.load %arg5[%c0_7, %c0_8, %c0_9] : memref<1x32x64xf32, #tpu.memory_space<vmem>>, vector<1x32x64xf32>
    %11 = vector.shape_cast %10 : vector<1x32x64xf32> to vector<32x64xf32>
    %12 = vector.shape_cast %9 : vector<32x64xf32> to vector<1x32x64xf32>
    tpu.vector_store %arg5[%c0_7, %c0_8, %c0_9], %12 {strides = array<i32>} : memref<1x32x64xf32, #tpu.memory_space<vmem>>, vector<1x32x64xf32>,
    %c0_10 = arith.constant 0 : index
    %c0_11 = arith.constant 0 : index
    %c0_12 = arith.constant 0 : index
    %13 = vector.load %arg6[%c0_10, %c0_11, %c0_12] : memref<1x32x1xf32, #tpu.memory_space<vmem>>, vector<1x32x1xf32>
    %14 = vector.shape_cast %13 : vector<1x32x1xf32> to vector<32x1xf32>
    %cst_13 = arith.constant dense<0.000000e+00> : vector<32xf32>
    %15 = vector.multi_reduction <add>, %9, %cst_13 [1] : vector<32x64xf32> to vector<32xf32>
    %16 = vector.shape_cast %15 : vector<32xf32> to vector<32x1xf32>
    %17 = arith.addf %14, %16 : vector<32x1xf32>
    %c0_14 = arith.constant 0 : index
    %c0_15 = arith.constant 0 : index
    %c0_16 = arith.constant 0 : index
    %18 = vector.load %arg6[%c0_14, %c0_15, %c0_16] : memref<1x32x1xf32, #tpu.memory_space<vmem>>, vector<1x32x1xf32>
    %19 = vector.shape_cast %18 : vector<1x32x1xf32> to vector<32x1xf32>
    %20 = vector.shape_cast %17 : vector<32x1xf32> to vector<1x32x1xf32>
    tpu.vector_store %arg6[%c0_14, %c0_15, %c0_16], %20 {strides = array<i32>} : memref<1x32x1xf32, #tpu.memory_space<vmem>>, vector<1x32x1xf32>,
    %c0_17 = arith.constant 0 : index
    %c0_18 = arith.constant 0 : index
    %c0_19 = arith.constant 0 : index
    %21 = vector.load %arg7[%c0_17, %c0_18, %c0_19] : memref<1x32x1xf32, #tpu.memory_space<vmem>>, vector<1x32x1xf32>
    %22 = vector.shape_cast %21 : vector<1x32x1xf32> to vector<32x1xf32>
    %23 = arith.mulf %9, %9 : vector<32x64xf32>
    %cst_20 = arith.constant dense<0.000000e+00> : vector<32xf32>
    %24 = vector.multi_reduction <add>, %23, %cst_20 [1] : vector<32x64xf32> to vector<32xf32>
    %25 = vector.shape_cast %24 : vector<32xf32> to vector<32x1xf32>
    %26 = arith.addf %22, %25 : vector<32x1xf32>
    %c0_21 = arith.constant 0 : index
    %c0_22 = arith.constant 0 : index
    %c0_23 = arith.constant 0 : index
    %27 = vector.load %arg7[%c0_21, %c0_22, %c0_23] : memref<1x32x1xf32, #tpu.memory_space<vmem>>, vector<1x32x1xf32>
    %28 = vector.shape_cast %27 : vector<1x32x1xf32> to vector<32x1xf32>
    %29 = vector.shape_cast %26 : vector<32x1xf32> to vector<1x32x1xf32>
    tpu.vector_store %arg7[%c0_21, %c0_22, %c0_23], %29 {strides = array<i32>} : memref<1x32x1xf32, #tpu.memory_space<vmem>>, vector<1x32x1xf32>,
    return
  }
  func.func @transform_0(%arg0: i32, %arg1: i32) -> (i32, i32, i32) {
    %c0_i32 = arith.constant 0 : i32
    %c0_i32_0 = arith.constant 0 : i32
    return %arg0, %c0_i32, %arg1 : i32, i32, i32
  }
  func.func @transform_1(%arg0: i32, %arg1: i32) -> (i32, i32) {
    %c0_i32 = arith.constant 0 : i32
    %c0_i32_0 = arith.constant 0 : i32
    %c0_i32_1 = arith.constant 0 : i32
    return %c0_i32, %c0_i32_0 : i32, i32
  }
  func.func @transform_2(%arg0: i32, %arg1: i32) -> (i32, i32) {
    %c0_i32 = arith.constant 0 : i32
    %c0_i32_0 = arith.constant 0 : i32
    %c0_i32_1 = arith.constant 0 : i32
    return %c0_i32, %c0_i32_0 : i32, i32
  }
  func.func @transform_3(%arg0: i32, %arg1: i32) -> (i32, i32, i32) {
    %c0_i32 = arith.constant 0 : i32
    %c0_i32_0 = arith.constant 0 : i32
    return %arg0, %c0_i32, %arg1 : i32, i32, i32
  }
  func.func @transform_4(%arg0: i32, %arg1: i32) -> (i32, i32, i32) {
    %c0_i32 = arith.constant 0 : i32
    %c0_i32_0 = arith.constant 0 : i32
    %c0_i32_1 = arith.constant 0 : i32
    return %arg0, %c0_i32, %c0_i32_0 : i32, i32, i32
  }
  func.func @transform_5(%arg0: i32, %arg1: i32) -> (i32, i32, i32) {
    %c0_i32 = arith.constant 0 : i32
    %c0_i32_0 = arith.constant 0 : i32
    %c0_i32_1 = arith.constant 0 : i32
    return %arg0, %c0_i32, %c0_i32_0 : i32, i32, i32
  }
}

module attributes {stable_mosaic.version = 11 : i64} {
  func.func @_affine_res_kernel(%arg0: i32, %arg1: i32, %arg2: memref<1x32x64xf32, #tpu.memory_space<vmem>>, %arg3: memref<1x32x1xf32, #tpu.memory_space<vmem>>, %arg4: memref<1x32x1xf32, #tpu.memory_space<vmem>>, %arg5: memref<1x32x64xf32, #tpu.memory_space<vmem>>, %arg6: memref<1x32x64xf32, #tpu.memory_space<vmem>>) attributes {dimension_semantics = [#tpu.dimension_semantics<parallel>, #tpu.dimension_semantics<parallel>], iteration_bounds = array<i64: 1, 1>, scalar_prefetch = 0 : i64, scratch_operands = 0 : i64, tpu.core_type = #tpu.core_type<tc>, window_params = [{transform_indices = @transform_0, window_bounds = array<i64: 1, 32, 64>}, {transform_indices = @transform_1, window_bounds = array<i64: 1, 32, 1>}, {transform_indices = @transform_2, window_bounds = array<i64: 1, 32, 1>}, {transform_indices = @transform_3, window_bounds = array<i64: 1, 32, 64>}, {transform_indices = @transform_4, window_bounds = array<i64: 1, 32, 64>}]} {
    %c0 = arith.constant 0 : index
    %c0_0 = arith.constant 0 : index
    %c0_1 = arith.constant 0 : index
    %0 = vector.load %arg2[%c0, %c0_0, %c0_1] : memref<1x32x64xf32, #tpu.memory_space<vmem>>, vector<1x32x64xf32>
    %1 = vector.shape_cast %0 : vector<1x32x64xf32> to vector<32x64xf32>
    %c0_2 = arith.constant 0 : index
    %c0_3 = arith.constant 0 : index
    %c0_4 = arith.constant 0 : index
    %2 = vector.load %arg3[%c0_2, %c0_3, %c0_4] : memref<1x32x1xf32, #tpu.memory_space<vmem>>, vector<1x32x1xf32>
    %3 = vector.shape_cast %2 : vector<1x32x1xf32> to vector<32x1xf32>
    %4 = vector.broadcast %3 : vector<32x1xf32> to vector<32x64xf32>
    %5 = arith.mulf %1, %4 : vector<32x64xf32>
    %c0_5 = arith.constant 0 : index
    %c0_6 = arith.constant 0 : index
    %c0_7 = arith.constant 0 : index
    %6 = vector.load %arg4[%c0_5, %c0_6, %c0_7] : memref<1x32x1xf32, #tpu.memory_space<vmem>>, vector<1x32x1xf32>
    %7 = vector.shape_cast %6 : vector<1x32x1xf32> to vector<32x1xf32>
    %8 = vector.broadcast %7 : vector<32x1xf32> to vector<32x64xf32>
    %9 = arith.addf %5, %8 : vector<32x64xf32>
    %c0_8 = arith.constant 0 : index
    %c0_9 = arith.constant 0 : index
    %c0_10 = arith.constant 0 : index
    %10 = vector.load %arg5[%c0_8, %c0_9, %c0_10] : memref<1x32x64xf32, #tpu.memory_space<vmem>>, vector<1x32x64xf32>
    %11 = vector.shape_cast %10 : vector<1x32x64xf32> to vector<32x64xf32>
    %12 = arith.addf %9, %11 : vector<32x64xf32>
    %cst = arith.constant 0.000000e+00 : f32
    %13 = vector.broadcast %cst : f32 to vector<32x64xf32>
    %14 = arith.cmpf ogt, %12, %13 : vector<32x64xf32>
    %cst_11 = arith.constant 1.000000e-01 : f32
    %15 = vector.broadcast %cst_11 : f32 to vector<32x64xf32>
    %16 = arith.mulf %15, %12 : vector<32x64xf32>
    %17 = arith.select %14, %12, %16 : vector<32x64xi1>, vector<32x64xf32>
    %c0_12 = arith.constant 0 : index
    %c0_13 = arith.constant 0 : index
    %c0_14 = arith.constant 0 : index
    %18 = vector.load %arg6[%c0_12, %c0_13, %c0_14] : memref<1x32x64xf32, #tpu.memory_space<vmem>>, vector<1x32x64xf32>
    %19 = vector.shape_cast %18 : vector<1x32x64xf32> to vector<32x64xf32>
    %20 = vector.shape_cast %17 : vector<32x64xf32> to vector<1x32x64xf32>
    tpu.vector_store %arg6[%c0_12, %c0_13, %c0_14], %20 {strides = array<i32>} : memref<1x32x64xf32, #tpu.memory_space<vmem>>, vector<1x32x64xf32>,
    return
  }
  func.func @transform_0(%arg0: i32, %arg1: i32) -> (i32, i32, i32) {
    %c0_i32 = arith.constant 0 : i32
    %c0_i32_0 = arith.constant 0 : i32
    return %arg0, %c0_i32, %arg1 : i32, i32, i32
  }
  func.func @transform_1(%arg0: i32, %arg1: i32) -> (i32, i32, i32) {
    %c0_i32 = arith.constant 0 : i32
    %c0_i32_0 = arith.constant 0 : i32
    %c0_i32_1 = arith.constant 0 : i32
    return %arg0, %c0_i32, %c0_i32_0 : i32, i32, i32
  }
  func.func @transform_2(%arg0: i32, %arg1: i32) -> (i32, i32, i32) {
    %c0_i32 = arith.constant 0 : i32
    %c0_i32_0 = arith.constant 0 : i32
    %c0_i32_1 = arith.constant 0 : i32
    return %arg0, %c0_i32, %c0_i32_0 : i32, i32, i32
  }
  func.func @transform_3(%arg0: i32, %arg1: i32) -> (i32, i32, i32) {
    %c0_i32 = arith.constant 0 : i32
    %c0_i32_0 = arith.constant 0 : i32
    return %arg0, %c0_i32, %arg1 : i32, i32, i32
  }
  func.func @transform_4(%arg0: i32, %arg1: i32) -> (i32, i32, i32) {
    %c0_i32 = arith.constant 0 : i32
    %c0_i32_0 = arith.constant 0 : i32
    return %arg0, %c0_i32, %arg1 : i32, i32, i32
  }
}

module attributes {stable_mosaic.version = 11 : i64} {
  func.func @_conv_mm_kernel(%arg0: i32, %arg1: i32, %arg2: memref<1x32x64xbf16, #tpu.memory_space<vmem>>, %arg3: memref<128x32xbf16, #tpu.memory_space<vmem>>, %arg4: memref<128x1xf32, #tpu.memory_space<vmem>>, %arg5: memref<1x128x64xf32, #tpu.memory_space<vmem>>, %arg6: memref<1x128x1xf32, #tpu.memory_space<vmem>>, %arg7: memref<1x128x1xf32, #tpu.memory_space<vmem>>) attributes {dimension_semantics = [#tpu.dimension_semantics<parallel>, #tpu.dimension_semantics<arbitrary>], iteration_bounds = array<i64: 1, 1>, scalar_prefetch = 0 : i64, scratch_operands = 0 : i64, tpu.core_type = #tpu.core_type<tc>, window_params = [{transform_indices = @transform_0, window_bounds = array<i64: 1, 32, 64>}, {pipeline_mode = #tpu.pipeline_mode<synchronous>, transform_indices = @transform_1, window_bounds = array<i64: 128, 32>}, {pipeline_mode = #tpu.pipeline_mode<synchronous>, transform_indices = @transform_2, window_bounds = array<i64: 128, 1>}, {transform_indices = @transform_3, window_bounds = array<i64: 1, 128, 64>}, {transform_indices = @transform_4, window_bounds = array<i64: 1, 128, 1>}, {transform_indices = @transform_5, window_bounds = array<i64: 1, 128, 1>}]} {
    %c0_i32 = arith.constant 0 : i32
    %0 = arith.cmpi eq, %arg1, %c0_i32 : i32
    %1 = arith.extui %0 : i1 to i32
    %c0_i32_0 = arith.constant 0 : i32
    %2 = arith.cmpi ne, %1, %c0_i32_0 : i32
    scf.if %2 {
      %cst_24 = arith.constant 0.000000e+00 : f32
      %30 = vector.broadcast %cst_24 : f32 to vector<1x128x1xf32>
      %c0_25 = arith.constant 0 : index
      %c0_26 = arith.constant 0 : index
      %c0_27 = arith.constant 0 : index
      %31 = vector.load %arg6[%c0_25, %c0_26, %c0_27] : memref<1x128x1xf32, #tpu.memory_space<vmem>>, vector<1x128x1xf32>
      tpu.vector_store %arg6[%c0_25, %c0_26, %c0_27], %30 {strides = array<i32>} : memref<1x128x1xf32, #tpu.memory_space<vmem>>, vector<1x128x1xf32>,
      %cst_28 = arith.constant 0.000000e+00 : f32
      %32 = vector.broadcast %cst_28 : f32 to vector<1x128x1xf32>
      %c0_29 = arith.constant 0 : index
      %c0_30 = arith.constant 0 : index
      %c0_31 = arith.constant 0 : index
      %33 = vector.load %arg7[%c0_29, %c0_30, %c0_31] : memref<1x128x1xf32, #tpu.memory_space<vmem>>, vector<1x128x1xf32>
      tpu.vector_store %arg7[%c0_29, %c0_30, %c0_31], %32 {strides = array<i32>} : memref<1x128x1xf32, #tpu.memory_space<vmem>>, vector<1x128x1xf32>,
    } else {
    }
    %c0 = arith.constant 0 : index
    %c0_1 = arith.constant 0 : index
    %3 = vector.load %arg3[%c0, %c0_1] : memref<128x32xbf16, #tpu.memory_space<vmem>>, vector<128x32xbf16>
    %c0_2 = arith.constant 0 : index
    %c0_3 = arith.constant 0 : index
    %c0_4 = arith.constant 0 : index
    %4 = vector.load %arg2[%c0_2, %c0_3, %c0_4] : memref<1x32x64xbf16, #tpu.memory_space<vmem>>, vector<1x32x64xbf16>
    %5 = vector.shape_cast %4 : vector<1x32x64xbf16> to vector<32x64xbf16>
    %cst = arith.constant dense<0.000000e+00> : vector<128x64xf32>
    %6 = tpu.matmul %3, %5, %cst {dimension_numbers = #tpu.dot_dimension_numbers<[1], [0], [0], [1], [0, 0, 1, 1], [], []>} : vector<128x32xbf16>, vector<32x64xbf16>, vector<128x64xf32> -> vector<128x64xf32>
    %c0_5 = arith.constant 0 : index
    %c0_6 = arith.constant 0 : index
    %7 = vector.load %arg4[%c0_5, %c0_6] : memref<128x1xf32, #tpu.memory_space<vmem>>, vector<128x1xf32>
    %8 = vector.broadcast %7 : vector<128x1xf32> to vector<128x64xf32>
    %9 = arith.addf %6, %8 : vector<128x64xf32>
    %c0_7 = arith.constant 0 : index
    %c0_8 = arith.constant 0 : index
    %c0_9 = arith.constant 0 : index
    %10 = vector.load %arg5[%c0_7, %c0_8, %c0_9] : memref<1x128x64xf32, #tpu.memory_space<vmem>>, vector<1x128x64xf32>
    %11 = vector.shape_cast %10 : vector<1x128x64xf32> to vector<128x64xf32>
    %12 = vector.shape_cast %9 : vector<128x64xf32> to vector<1x128x64xf32>
    tpu.vector_store %arg5[%c0_7, %c0_8, %c0_9], %12 {strides = array<i32>} : memref<1x128x64xf32, #tpu.memory_space<vmem>>, vector<1x128x64xf32>,
    %c0_10 = arith.constant 0 : index
    %c0_11 = arith.constant 0 : index
    %c0_12 = arith.constant 0 : index
    %13 = vector.load %arg6[%c0_10, %c0_11, %c0_12] : memref<1x128x1xf32, #tpu.memory_space<vmem>>, vector<1x128x1xf32>
    %14 = vector.shape_cast %13 : vector<1x128x1xf32> to vector<128x1xf32>
    %cst_13 = arith.constant dense<0.000000e+00> : vector<128xf32>
    %15 = vector.multi_reduction <add>, %9, %cst_13 [1] : vector<128x64xf32> to vector<128xf32>
    %16 = vector.shape_cast %15 : vector<128xf32> to vector<128x1xf32>
    %17 = arith.addf %14, %16 : vector<128x1xf32>
    %c0_14 = arith.constant 0 : index
    %c0_15 = arith.constant 0 : index
    %c0_16 = arith.constant 0 : index
    %18 = vector.load %arg6[%c0_14, %c0_15, %c0_16] : memref<1x128x1xf32, #tpu.memory_space<vmem>>, vector<1x128x1xf32>
    %19 = vector.shape_cast %18 : vector<1x128x1xf32> to vector<128x1xf32>
    %20 = vector.shape_cast %17 : vector<128x1xf32> to vector<1x128x1xf32>
    tpu.vector_store %arg6[%c0_14, %c0_15, %c0_16], %20 {strides = array<i32>} : memref<1x128x1xf32, #tpu.memory_space<vmem>>, vector<1x128x1xf32>,
    %c0_17 = arith.constant 0 : index
    %c0_18 = arith.constant 0 : index
    %c0_19 = arith.constant 0 : index
    %21 = vector.load %arg7[%c0_17, %c0_18, %c0_19] : memref<1x128x1xf32, #tpu.memory_space<vmem>>, vector<1x128x1xf32>
    %22 = vector.shape_cast %21 : vector<1x128x1xf32> to vector<128x1xf32>
    %23 = arith.mulf %9, %9 : vector<128x64xf32>
    %cst_20 = arith.constant dense<0.000000e+00> : vector<128xf32>
    %24 = vector.multi_reduction <add>, %23, %cst_20 [1] : vector<128x64xf32> to vector<128xf32>
    %25 = vector.shape_cast %24 : vector<128xf32> to vector<128x1xf32>
    %26 = arith.addf %22, %25 : vector<128x1xf32>
    %c0_21 = arith.constant 0 : index
    %c0_22 = arith.constant 0 : index
    %c0_23 = arith.constant 0 : index
    %27 = vector.load %arg7[%c0_21, %c0_22, %c0_23] : memref<1x128x1xf32, #tpu.memory_space<vmem>>, vector<1x128x1xf32>
    %28 = vector.shape_cast %27 : vector<1x128x1xf32> to vector<128x1xf32>
    %29 = vector.shape_cast %26 : vector<128x1xf32> to vector<1x128x1xf32>
    tpu.vector_store %arg7[%c0_21, %c0_22, %c0_23], %29 {strides = array<i32>} : memref<1x128x1xf32, #tpu.memory_space<vmem>>, vector<1x128x1xf32>,
    return
  }
  func.func @transform_0(%arg0: i32, %arg1: i32) -> (i32, i32, i32) {
    %c0_i32 = arith.constant 0 : i32
    %c0_i32_0 = arith.constant 0 : i32
    return %arg0, %c0_i32, %arg1 : i32, i32, i32
  }
  func.func @transform_1(%arg0: i32, %arg1: i32) -> (i32, i32) {
    %c0_i32 = arith.constant 0 : i32
    %c0_i32_0 = arith.constant 0 : i32
    %c0_i32_1 = arith.constant 0 : i32
    return %c0_i32, %c0_i32_0 : i32, i32
  }
  func.func @transform_2(%arg0: i32, %arg1: i32) -> (i32, i32) {
    %c0_i32 = arith.constant 0 : i32
    %c0_i32_0 = arith.constant 0 : i32
    %c0_i32_1 = arith.constant 0 : i32
    return %c0_i32, %c0_i32_0 : i32, i32
  }
  func.func @transform_3(%arg0: i32, %arg1: i32) -> (i32, i32, i32) {
    %c0_i32 = arith.constant 0 : i32
    %c0_i32_0 = arith.constant 0 : i32
    return %arg0, %c0_i32, %arg1 : i32, i32, i32
  }
  func.func @transform_4(%arg0: i32, %arg1: i32) -> (i32, i32, i32) {
    %c0_i32 = arith.constant 0 : i32
    %c0_i32_0 = arith.constant 0 : i32
    %c0_i32_1 = arith.constant 0 : i32
    return %arg0, %c0_i32, %c0_i32_0 : i32, i32, i32
  }
  func.func @transform_5(%arg0: i32, %arg1: i32) -> (i32, i32, i32) {
    %c0_i32 = arith.constant 0 : i32
    %c0_i32_0 = arith.constant 0 : i32
    %c0_i32_1 = arith.constant 0 : i32
    return %arg0, %c0_i32, %c0_i32_0 : i32, i32, i32
  }
}

module attributes {stable_mosaic.version = 11 : i64} {
  func.func @_add_kernel(%arg0: i32, %arg1: memref<16x512xf32, #tpu.memory_space<vmem>>, %arg2: memref<16x512xf32, #tpu.memory_space<vmem>>, %arg3: memref<16x512xf32, #tpu.memory_space<vmem>>) attributes {dimension_semantics = [#tpu.dimension_semantics<parallel>], iteration_bounds = array<i64: 1>, scalar_prefetch = 0 : i64, scratch_operands = 0 : i64, tpu.core_type = #tpu.core_type<tc>, window_params = [{transform_indices = @transform_0, window_bounds = array<i64: 16, 512>}, {transform_indices = @transform_1, window_bounds = array<i64: 16, 512>}, {transform_indices = @transform_2, window_bounds = array<i64: 16, 512>}]} {
    %c0 = arith.constant 0 : index
    %c0_0 = arith.constant 0 : index
    %0 = vector.load %arg1[%c0, %c0_0] : memref<16x512xf32, #tpu.memory_space<vmem>>, vector<16x512xf32>
    %c0_1 = arith.constant 0 : index
    %c0_2 = arith.constant 0 : index
    %1 = vector.load %arg2[%c0_1, %c0_2] : memref<16x512xf32, #tpu.memory_space<vmem>>, vector<16x512xf32>
    %2 = arith.addf %0, %1 : vector<16x512xf32>
    %c0_3 = arith.constant 0 : index
    %c0_4 = arith.constant 0 : index
    %3 = vector.load %arg3[%c0_3, %c0_4] : memref<16x512xf32, #tpu.memory_space<vmem>>, vector<16x512xf32>
    tpu.vector_store %arg3[%c0_3, %c0_4], %2 {strides = array<i32>} : memref<16x512xf32, #tpu.memory_space<vmem>>, vector<16x512xf32>,
    return
  }
  func.func @transform_0(%arg0: i32) -> (i32, i32) {
    %c0_i32 = arith.constant 0 : i32
    %c0_i32_0 = arith.constant 0 : i32
    return %c0_i32, %arg0 : i32, i32
  }
  func.func @transform_1(%arg0: i32) -> (i32, i32) {
    %c0_i32 = arith.constant 0 : i32
    %c0_i32_0 = arith.constant 0 : i32
    return %c0_i32, %arg0 : i32, i32
  }
  func.func @transform_2(%arg0: i32) -> (i32, i32) {
    %c0_i32 = arith.constant 0 : i32
    %c0_i32_0 = arith.constant 0 : i32
    return %c0_i32, %arg0 : i32, i32
  }
}

module attributes {stable_mosaic.version = 11 : i64} {
  func.func @_conv_mm_kernel(%arg0: i32, %arg1: i32, %arg2: memref<1x16x512xbf16, #tpu.memory_space<vmem>>, %arg3: memref<64x16xbf16, #tpu.memory_space<vmem>>, %arg4: memref<64x1xf32, #tpu.memory_space<vmem>>, %arg5: memref<1x64x512xf32, #tpu.memory_space<vmem>>, %arg6: memref<1x64x1xf32, #tpu.memory_space<vmem>>, %arg7: memref<1x64x1xf32, #tpu.memory_space<vmem>>) attributes {dimension_semantics = [#tpu.dimension_semantics<parallel>, #tpu.dimension_semantics<arbitrary>], iteration_bounds = array<i64: 1, 1>, scalar_prefetch = 0 : i64, scratch_operands = 0 : i64, tpu.core_type = #tpu.core_type<tc>, window_params = [{transform_indices = @transform_0, window_bounds = array<i64: 1, 16, 512>}, {pipeline_mode = #tpu.pipeline_mode<synchronous>, transform_indices = @transform_1, window_bounds = array<i64: 64, 16>}, {pipeline_mode = #tpu.pipeline_mode<synchronous>, transform_indices = @transform_2, window_bounds = array<i64: 64, 1>}, {transform_indices = @transform_3, window_bounds = array<i64: 1, 64, 512>}, {transform_indices = @transform_4, window_bounds = array<i64: 1, 64, 1>}, {transform_indices = @transform_5, window_bounds = array<i64: 1, 64, 1>}]} {
    %c0_i32 = arith.constant 0 : i32
    %0 = arith.cmpi eq, %arg1, %c0_i32 : i32
    %1 = arith.extui %0 : i1 to i32
    %c0_i32_0 = arith.constant 0 : i32
    %2 = arith.cmpi ne, %1, %c0_i32_0 : i32
    scf.if %2 {
      %cst_24 = arith.constant 0.000000e+00 : f32
      %30 = vector.broadcast %cst_24 : f32 to vector<1x64x1xf32>
      %c0_25 = arith.constant 0 : index
      %c0_26 = arith.constant 0 : index
      %c0_27 = arith.constant 0 : index
      %31 = vector.load %arg6[%c0_25, %c0_26, %c0_27] : memref<1x64x1xf32, #tpu.memory_space<vmem>>, vector<1x64x1xf32>
      tpu.vector_store %arg6[%c0_25, %c0_26, %c0_27], %30 {strides = array<i32>} : memref<1x64x1xf32, #tpu.memory_space<vmem>>, vector<1x64x1xf32>,
      %cst_28 = arith.constant 0.000000e+00 : f32
      %32 = vector.broadcast %cst_28 : f32 to vector<1x64x1xf32>
      %c0_29 = arith.constant 0 : index
      %c0_30 = arith.constant 0 : index
      %c0_31 = arith.constant 0 : index
      %33 = vector.load %arg7[%c0_29, %c0_30, %c0_31] : memref<1x64x1xf32, #tpu.memory_space<vmem>>, vector<1x64x1xf32>
      tpu.vector_store %arg7[%c0_29, %c0_30, %c0_31], %32 {strides = array<i32>} : memref<1x64x1xf32, #tpu.memory_space<vmem>>, vector<1x64x1xf32>,
    } else {
    }
    %c0 = arith.constant 0 : index
    %c0_1 = arith.constant 0 : index
    %3 = vector.load %arg3[%c0, %c0_1] : memref<64x16xbf16, #tpu.memory_space<vmem>>, vector<64x16xbf16>
    %c0_2 = arith.constant 0 : index
    %c0_3 = arith.constant 0 : index
    %c0_4 = arith.constant 0 : index
    %4 = vector.load %arg2[%c0_2, %c0_3, %c0_4] : memref<1x16x512xbf16, #tpu.memory_space<vmem>>, vector<1x16x512xbf16>
    %5 = vector.shape_cast %4 : vector<1x16x512xbf16> to vector<16x512xbf16>
    %cst = arith.constant dense<0.000000e+00> : vector<64x512xf32>
    %6 = tpu.matmul %3, %5, %cst {dimension_numbers = #tpu.dot_dimension_numbers<[1], [0], [0], [1], [0, 0, 1, 1], [], []>} : vector<64x16xbf16>, vector<16x512xbf16>, vector<64x512xf32> -> vector<64x512xf32>
    %c0_5 = arith.constant 0 : index
    %c0_6 = arith.constant 0 : index
    %7 = vector.load %arg4[%c0_5, %c0_6] : memref<64x1xf32, #tpu.memory_space<vmem>>, vector<64x1xf32>
    %8 = vector.broadcast %7 : vector<64x1xf32> to vector<64x512xf32>
    %9 = arith.addf %6, %8 : vector<64x512xf32>
    %c0_7 = arith.constant 0 : index
    %c0_8 = arith.constant 0 : index
    %c0_9 = arith.constant 0 : index
    %10 = vector.load %arg5[%c0_7, %c0_8, %c0_9] : memref<1x64x512xf32, #tpu.memory_space<vmem>>, vector<1x64x512xf32>
    %11 = vector.shape_cast %10 : vector<1x64x512xf32> to vector<64x512xf32>
    %12 = vector.shape_cast %9 : vector<64x512xf32> to vector<1x64x512xf32>
    tpu.vector_store %arg5[%c0_7, %c0_8, %c0_9], %12 {strides = array<i32>} : memref<1x64x512xf32, #tpu.memory_space<vmem>>, vector<1x64x512xf32>,
    %c0_10 = arith.constant 0 : index
    %c0_11 = arith.constant 0 : index
    %c0_12 = arith.constant 0 : index
    %13 = vector.load %arg6[%c0_10, %c0_11, %c0_12] : memref<1x64x1xf32, #tpu.memory_space<vmem>>, vector<1x64x1xf32>
    %14 = vector.shape_cast %13 : vector<1x64x1xf32> to vector<64x1xf32>
    %cst_13 = arith.constant dense<0.000000e+00> : vector<64xf32>
    %15 = vector.multi_reduction <add>, %9, %cst_13 [1] : vector<64x512xf32> to vector<64xf32>
    %16 = vector.shape_cast %15 : vector<64xf32> to vector<64x1xf32>
    %17 = arith.addf %14, %16 : vector<64x1xf32>
    %c0_14 = arith.constant 0 : index
    %c0_15 = arith.constant 0 : index
    %c0_16 = arith.constant 0 : index
    %18 = vector.load %arg6[%c0_14, %c0_15, %c0_16] : memref<1x64x1xf32, #tpu.memory_space<vmem>>, vector<1x64x1xf32>
    %19 = vector.shape_cast %18 : vector<1x64x1xf32> to vector<64x1xf32>
    %20 = vector.shape_cast %17 : vector<64x1xf32> to vector<1x64x1xf32>
    tpu.vector_store %arg6[%c0_14, %c0_15, %c0_16], %20 {strides = array<i32>} : memref<1x64x1xf32, #tpu.memory_space<vmem>>, vector<1x64x1xf32>,
    %c0_17 = arith.constant 0 : index
    %c0_18 = arith.constant 0 : index
    %c0_19 = arith.constant 0 : index
    %21 = vector.load %arg7[%c0_17, %c0_18, %c0_19] : memref<1x64x1xf32, #tpu.memory_space<vmem>>, vector<1x64x1xf32>
    %22 = vector.shape_cast %21 : vector<1x64x1xf32> to vector<64x1xf32>
    %23 = arith.mulf %9, %9 : vector<64x512xf32>
    %cst_20 = arith.constant dense<0.000000e+00> : vector<64xf32>
    %24 = vector.multi_reduction <add>, %23, %cst_20 [1] : vector<64x512xf32> to vector<64xf32>
    %25 = vector.shape_cast %24 : vector<64xf32> to vector<64x1xf32>
    %26 = arith.addf %22, %25 : vector<64x1xf32>
    %c0_21 = arith.constant 0 : index
    %c0_22 = arith.constant 0 : index
    %c0_23 = arith.constant 0 : index
    %27 = vector.load %arg7[%c0_21, %c0_22, %c0_23] : memref<1x64x1xf32, #tpu.memory_space<vmem>>, vector<1x64x1xf32>
    %28 = vector.shape_cast %27 : vector<1x64x1xf32> to vector<64x1xf32>
    %29 = vector.shape_cast %26 : vector<64x1xf32> to vector<1x64x1xf32>
    tpu.vector_store %arg7[%c0_21, %c0_22, %c0_23], %29 {strides = array<i32>} : memref<1x64x1xf32, #tpu.memory_space<vmem>>, vector<1x64x1xf32>,
    return
  }
  func.func @transform_0(%arg0: i32, %arg1: i32) -> (i32, i32, i32) {
    %c0_i32 = arith.constant 0 : i32
    %c0_i32_0 = arith.constant 0 : i32
    return %arg0, %c0_i32, %arg1 : i32, i32, i32
  }
  func.func @transform_1(%arg0: i32, %arg1: i32) -> (i32, i32) {
    %c0_i32 = arith.constant 0 : i32
    %c0_i32_0 = arith.constant 0 : i32
    %c0_i32_1 = arith.constant 0 : i32
    return %c0_i32, %c0_i32_0 : i32, i32
  }
  func.func @transform_2(%arg0: i32, %arg1: i32) -> (i32, i32) {
    %c0_i32 = arith.constant 0 : i32
    %c0_i32_0 = arith.constant 0 : i32
    %c0_i32_1 = arith.constant 0 : i32
    return %c0_i32, %c0_i32_0 : i32, i32
  }
  func.func @transform_3(%arg0: i32, %arg1: i32) -> (i32, i32, i32) {
    %c0_i32 = arith.constant 0 : i32
    %c0_i32_0 = arith.constant 0 : i32
    return %arg0, %c0_i32, %arg1 : i32, i32, i32
  }
  func.func @transform_4(%arg0: i32, %arg1: i32) -> (i32, i32, i32) {
    %c0_i32 = arith.constant 0 : i32
    %c0_i32_0 = arith.constant 0 : i32
    %c0_i32_1 = arith.constant 0 : i32
    return %arg0, %c0_i32, %c0_i32_0 : i32, i32, i32
  }
  func.func @transform_5(%arg0: i32, %arg1: i32) -> (i32, i32, i32) {
    %c0_i32 = arith.constant 0 : i32
    %c0_i32_0 = arith.constant 0 : i32
    %c0_i32_1 = arith.constant 0 : i32
    return %arg0, %c0_i32, %c0_i32_0 : i32, i32, i32
  }
}

module attributes {stable_mosaic.version = 11 : i64} {
  func.func @_add_kernel(%arg0: i32, %arg1: memref<8x1024xf32, #tpu.memory_space<vmem>>, %arg2: memref<8x1024xf32, #tpu.memory_space<vmem>>, %arg3: memref<8x1024xf32, #tpu.memory_space<vmem>>) attributes {dimension_semantics = [#tpu.dimension_semantics<parallel>], iteration_bounds = array<i64: 4>, scalar_prefetch = 0 : i64, scratch_operands = 0 : i64, tpu.core_type = #tpu.core_type<tc>, window_params = [{transform_indices = @transform_0, window_bounds = array<i64: 8, 1024>}, {transform_indices = @transform_1, window_bounds = array<i64: 8, 1024>}, {transform_indices = @transform_2, window_bounds = array<i64: 8, 1024>}]} {
    %c0 = arith.constant 0 : index
    %c0_0 = arith.constant 0 : index
    %0 = vector.load %arg1[%c0, %c0_0] : memref<8x1024xf32, #tpu.memory_space<vmem>>, vector<8x1024xf32>
    %c0_1 = arith.constant 0 : index
    %c0_2 = arith.constant 0 : index
    %1 = vector.load %arg2[%c0_1, %c0_2] : memref<8x1024xf32, #tpu.memory_space<vmem>>, vector<8x1024xf32>
    %2 = arith.addf %0, %1 : vector<8x1024xf32>
    %c0_3 = arith.constant 0 : index
    %c0_4 = arith.constant 0 : index
    %3 = vector.load %arg3[%c0_3, %c0_4] : memref<8x1024xf32, #tpu.memory_space<vmem>>, vector<8x1024xf32>
    tpu.vector_store %arg3[%c0_3, %c0_4], %2 {strides = array<i32>} : memref<8x1024xf32, #tpu.memory_space<vmem>>, vector<8x1024xf32>,
    return
  }
  func.func @transform_0(%arg0: i32) -> (i32, i32) {
    %c0_i32 = arith.constant 0 : i32
    %c0_i32_0 = arith.constant 0 : i32
    return %c0_i32, %arg0 : i32, i32
  }
  func.func @transform_1(%arg0: i32) -> (i32, i32) {
    %c0_i32 = arith.constant 0 : i32
    %c0_i32_0 = arith.constant 0 : i32
    return %c0_i32, %arg0 : i32, i32
  }
  func.func @transform_2(%arg0: i32) -> (i32, i32) {
    %c0_i32 = arith.constant 0 : i32
    %c0_i32_0 = arith.constant 0 : i32
    return %c0_i32, %arg0 : i32, i32
  }
}

module attributes {stable_mosaic.version = 11 : i64} {
  func.func @_conv_mm_kernel(%arg0: i32, %arg1: i32, %arg2: memref<1x216x1024xbf16, #tpu.memory_space<vmem>>, %arg3: memref<8x216xbf16, #tpu.memory_space<vmem>>, %arg4: memref<8x1xf32, #tpu.memory_space<vmem>>, %arg5: memref<1x8x1024xf32, #tpu.memory_space<vmem>>, %arg6: memref<1x8x1xf32, #tpu.memory_space<vmem>>, %arg7: memref<1x8x1xf32, #tpu.memory_space<vmem>>) attributes {dimension_semantics = [#tpu.dimension_semantics<parallel>, #tpu.dimension_semantics<arbitrary>], iteration_bounds = array<i64: 1, 4>, scalar_prefetch = 0 : i64, scratch_operands = 0 : i64, tpu.core_type = #tpu.core_type<tc>, window_params = [{transform_indices = @transform_0, window_bounds = array<i64: 1, 216, 1024>}, {pipeline_mode = #tpu.pipeline_mode<synchronous>, transform_indices = @transform_1, window_bounds = array<i64: 8, 216>}, {pipeline_mode = #tpu.pipeline_mode<synchronous>, transform_indices = @transform_2, window_bounds = array<i64: 8, 1>}, {transform_indices = @transform_3, window_bounds = array<i64: 1, 8, 1024>}, {transform_indices = @transform_4, window_bounds = array<i64: 1, 8, 1>}, {transform_indices = @transform_5, window_bounds = array<i64: 1, 8, 1>}]} {
    %c0_i32 = arith.constant 0 : i32
    %0 = arith.cmpi eq, %arg1, %c0_i32 : i32
    %1 = arith.extui %0 : i1 to i32
    %c0_i32_0 = arith.constant 0 : i32
    %2 = arith.cmpi ne, %1, %c0_i32_0 : i32
    scf.if %2 {
      %cst_26 = arith.constant 0.000000e+00 : f32
      %35 = vector.broadcast %cst_26 : f32 to vector<1x8x1xf32>
      %c0_27 = arith.constant 0 : index
      %c0_28 = arith.constant 0 : index
      %c0_29 = arith.constant 0 : index
      %36 = vector.load %arg6[%c0_27, %c0_28, %c0_29] : memref<1x8x1xf32, #tpu.memory_space<vmem>>, vector<1x8x1xf32>
      tpu.vector_store %arg6[%c0_27, %c0_28, %c0_29], %35 {strides = array<i32>} : memref<1x8x1xf32, #tpu.memory_space<vmem>>, vector<1x8x1xf32>,
      %cst_30 = arith.constant 0.000000e+00 : f32
      %37 = vector.broadcast %cst_30 : f32 to vector<1x8x1xf32>
      %c0_31 = arith.constant 0 : index
      %c0_32 = arith.constant 0 : index
      %c0_33 = arith.constant 0 : index
      %38 = vector.load %arg7[%c0_31, %c0_32, %c0_33] : memref<1x8x1xf32, #tpu.memory_space<vmem>>, vector<1x8x1xf32>
      tpu.vector_store %arg7[%c0_31, %c0_32, %c0_33], %37 {strides = array<i32>} : memref<1x8x1xf32, #tpu.memory_space<vmem>>, vector<1x8x1xf32>,
    } else {
    }
    %c0 = arith.constant 0 : index
    %c0_1 = arith.constant 0 : index
    %3 = vector.load %arg3[%c0, %c0_1] : memref<8x216xbf16, #tpu.memory_space<vmem>>, vector<8x216xbf16>
    %c0_2 = arith.constant 0 : index
    %c0_3 = arith.constant 0 : index
    %c0_4 = arith.constant 0 : index
    %4 = vector.load %arg2[%c0_2, %c0_3, %c0_4] : memref<1x216x1024xbf16, #tpu.memory_space<vmem>>, vector<1x216x1024xbf16>
    %5 = vector.shape_cast %4 : vector<1x216x1024xbf16> to vector<216x1024xbf16>
    %cst = arith.constant dense<0.000000e+00> : vector<8x1024xf32>
    %6 = tpu.matmul %3, %5, %cst {dimension_numbers = #tpu.dot_dimension_numbers<[1], [0], [0], [1], [0, 0, 1, 1], [], []>} : vector<8x216xbf16>, vector<216x1024xbf16>, vector<8x1024xf32> -> vector<8x1024xf32>
    %c0_5 = arith.constant 0 : index
    %c0_6 = arith.constant 0 : index
    %7 = vector.load %arg4[%c0_5, %c0_6] : memref<8x1xf32, #tpu.memory_space<vmem>>, vector<8x1xf32>
    %8 = vector.broadcast %7 : vector<8x1xf32> to vector<8x1024xf32>
    %9 = arith.addf %6, %8 : vector<8x1024xf32>
    %cst_7 = arith.constant 0.000000e+00 : f32
    %10 = vector.broadcast %cst_7 : f32 to vector<8x1024xf32>
    %11 = arith.cmpf ogt, %9, %10 : vector<8x1024xf32>
    %cst_8 = arith.constant 1.000000e-01 : f32
    %12 = vector.broadcast %cst_8 : f32 to vector<8x1024xf32>
    %13 = arith.mulf %12, %9 : vector<8x1024xf32>
    %14 = arith.select %11, %9, %13 : vector<8x1024xi1>, vector<8x1024xf32>
    %c0_9 = arith.constant 0 : index
    %c0_10 = arith.constant 0 : index
    %c0_11 = arith.constant 0 : index
    %15 = vector.load %arg5[%c0_9, %c0_10, %c0_11] : memref<1x8x1024xf32, #tpu.memory_space<vmem>>, vector<1x8x1024xf32>
    %16 = vector.shape_cast %15 : vector<1x8x1024xf32> to vector<8x1024xf32>
    %17 = vector.shape_cast %14 : vector<8x1024xf32> to vector<1x8x1024xf32>
    tpu.vector_store %arg5[%c0_9, %c0_10, %c0_11], %17 {strides = array<i32>} : memref<1x8x1024xf32, #tpu.memory_space<vmem>>, vector<1x8x1024xf32>,
    %c0_12 = arith.constant 0 : index
    %c0_13 = arith.constant 0 : index
    %c0_14 = arith.constant 0 : index
    %18 = vector.load %arg6[%c0_12, %c0_13, %c0_14] : memref<1x8x1xf32, #tpu.memory_space<vmem>>, vector<1x8x1xf32>
    %19 = vector.shape_cast %18 : vector<1x8x1xf32> to vector<8x1xf32>
    %cst_15 = arith.constant dense<0.000000e+00> : vector<8xf32>
    %20 = vector.multi_reduction <add>, %14, %cst_15 [1] : vector<8x1024xf32> to vector<8xf32>
    %21 = vector.shape_cast %20 : vector<8xf32> to vector<8x1xf32>
    %22 = arith.addf %19, %21 : vector<8x1xf32>
    %c0_16 = arith.constant 0 : index
    %c0_17 = arith.constant 0 : index
    %c0_18 = arith.constant 0 : index
    %23 = vector.load %arg6[%c0_16, %c0_17, %c0_18] : memref<1x8x1xf32, #tpu.memory_space<vmem>>, vector<1x8x1xf32>
    %24 = vector.shape_cast %23 : vector<1x8x1xf32> to vector<8x1xf32>
    %25 = vector.shape_cast %22 : vector<8x1xf32> to vector<1x8x1xf32>
    tpu.vector_store %arg6[%c0_16, %c0_17, %c0_18], %25 {strides = array<i32>} : memref<1x8x1xf32, #tpu.memory_space<vmem>>, vector<1x8x1xf32>,
    %c0_19 = arith.constant 0 : index
    %c0_20 = arith.constant 0 : index
    %c0_21 = arith.constant 0 : index
    %26 = vector.load %arg7[%c0_19, %c0_20, %c0_21] : memref<1x8x1xf32, #tpu.memory_space<vmem>>, vector<1x8x1xf32>
    %27 = vector.shape_cast %26 : vector<1x8x1xf32> to vector<8x1xf32>
    %28 = arith.mulf %14, %14 : vector<8x1024xf32>
    %cst_22 = arith.constant dense<0.000000e+00> : vector<8xf32>
    %29 = vector.multi_reduction <add>, %28, %cst_22 [1] : vector<8x1024xf32> to vector<8xf32>
    %30 = vector.shape_cast %29 : vector<8xf32> to vector<8x1xf32>
    %31 = arith.addf %27, %30 : vector<8x1xf32>
    %c0_23 = arith.constant 0 : index
    %c0_24 = arith.constant 0 : index
    %c0_25 = arith.constant 0 : index
    %32 = vector.load %arg7[%c0_23, %c0_24, %c0_25] : memref<1x8x1xf32, #tpu.memory_space<vmem>>, vector<1x8x1xf32>
    %33 = vector.shape_cast %32 : vector<1x8x1xf32> to vector<8x1xf32>
    %34 = vector.shape_cast %31 : vector<8x1xf32> to vector<1x8x1xf32>
    tpu.vector_store %arg7[%c0_23, %c0_24, %c0_25], %34 {strides = array<i32>} : memref<1x8x1xf32, #tpu.memory_space<vmem>>, vector<1x8x1xf32>,
    return
  }
  func.func @transform_0(%arg0: i32, %arg1: i32) -> (i32, i32, i32) {
    %c0_i32 = arith.constant 0 : i32
    %c0_i32_0 = arith.constant 0 : i32
    return %arg0, %c0_i32, %arg1 : i32, i32, i32
  }
  func.func @transform_1(%arg0: i32, %arg1: i32) -> (i32, i32) {
    %c0_i32 = arith.constant 0 : i32
    %c0_i32_0 = arith.constant 0 : i32
    %c0_i32_1 = arith.constant 0 : i32
    return %c0_i32, %c0_i32_0 : i32, i32
  }
  func.func @transform_2(%arg0: i32, %arg1: i32) -> (i32, i32) {
    %c0_i32 = arith.constant 0 : i32
    %c0_i32_0 = arith.constant 0 : i32
    %c0_i32_1 = arith.constant 0 : i32
    return %c0_i32, %c0_i32_0 : i32, i32
  }
  func.func @transform_3(%arg0: i32, %arg1: i32) -> (i32, i32, i32) {
    %c0_i32 = arith.constant 0 : i32
    %c0_i32_0 = arith.constant 0 : i32
    return %arg0, %c0_i32, %arg1 : i32, i32, i32
  }
  func.func @transform_4(%arg0: i32, %arg1: i32) -> (i32, i32, i32) {
    %c0_i32 = arith.constant 0 : i32
    %c0_i32_0 = arith.constant 0 : i32
    %c0_i32_1 = arith.constant 0 : i32
    return %arg0, %c0_i32, %c0_i32_0 : i32, i32, i32
  }
  func.func @transform_5(%arg0: i32, %arg1: i32) -> (i32, i32, i32) {
    %c0_i32 = arith.constant 0 : i32
    %c0_i32_0 = arith.constant 0 : i32
    %c0_i32_1 = arith.constant 0 : i32
    return %arg0, %c0_i32, %c0_i32_0 : i32, i32, i32
  }
}

module attributes {stable_mosaic.version = 11 : i64} {
  func.func @_conv_mm_kernel(%arg0: i32, %arg1: i32, %arg2: memref<1x216x1024xbf16, #tpu.memory_space<vmem>>, %arg3: memref<8x216xbf16, #tpu.memory_space<vmem>>, %arg4: memref<8x1xf32, #tpu.memory_space<vmem>>, %arg5: memref<1x8x1024xf32, #tpu.memory_space<vmem>>, %arg6: memref<1x8x1xf32, #tpu.memory_space<vmem>>, %arg7: memref<1x8x1xf32, #tpu.memory_space<vmem>>) attributes {dimension_semantics = [#tpu.dimension_semantics<parallel>, #tpu.dimension_semantics<arbitrary>], iteration_bounds = array<i64: 1, 4>, scalar_prefetch = 0 : i64, scratch_operands = 0 : i64, tpu.core_type = #tpu.core_type<tc>, window_params = [{transform_indices = @transform_0, window_bounds = array<i64: 1, 216, 1024>}, {pipeline_mode = #tpu.pipeline_mode<synchronous>, transform_indices = @transform_1, window_bounds = array<i64: 8, 216>}, {pipeline_mode = #tpu.pipeline_mode<synchronous>, transform_indices = @transform_2, window_bounds = array<i64: 8, 1>}, {transform_indices = @transform_3, window_bounds = array<i64: 1, 8, 1024>}, {transform_indices = @transform_4, window_bounds = array<i64: 1, 8, 1>}, {transform_indices = @transform_5, window_bounds = array<i64: 1, 8, 1>}]} {
    %c0_i32 = arith.constant 0 : i32
    %0 = arith.cmpi eq, %arg1, %c0_i32 : i32
    %1 = arith.extui %0 : i1 to i32
    %c0_i32_0 = arith.constant 0 : i32
    %2 = arith.cmpi ne, %1, %c0_i32_0 : i32
    scf.if %2 {
      %cst_24 = arith.constant 0.000000e+00 : f32
      %30 = vector.broadcast %cst_24 : f32 to vector<1x8x1xf32>
      %c0_25 = arith.constant 0 : index
      %c0_26 = arith.constant 0 : index
      %c0_27 = arith.constant 0 : index
      %31 = vector.load %arg6[%c0_25, %c0_26, %c0_27] : memref<1x8x1xf32, #tpu.memory_space<vmem>>, vector<1x8x1xf32>
      tpu.vector_store %arg6[%c0_25, %c0_26, %c0_27], %30 {strides = array<i32>} : memref<1x8x1xf32, #tpu.memory_space<vmem>>, vector<1x8x1xf32>,
      %cst_28 = arith.constant 0.000000e+00 : f32
      %32 = vector.broadcast %cst_28 : f32 to vector<1x8x1xf32>
      %c0_29 = arith.constant 0 : index
      %c0_30 = arith.constant 0 : index
      %c0_31 = arith.constant 0 : index
      %33 = vector.load %arg7[%c0_29, %c0_30, %c0_31] : memref<1x8x1xf32, #tpu.memory_space<vmem>>, vector<1x8x1xf32>
      tpu.vector_store %arg7[%c0_29, %c0_30, %c0_31], %32 {strides = array<i32>} : memref<1x8x1xf32, #tpu.memory_space<vmem>>, vector<1x8x1xf32>,
    } else {
    }
    %c0 = arith.constant 0 : index
    %c0_1 = arith.constant 0 : index
    %3 = vector.load %arg3[%c0, %c0_1] : memref<8x216xbf16, #tpu.memory_space<vmem>>, vector<8x216xbf16>
    %c0_2 = arith.constant 0 : index
    %c0_3 = arith.constant 0 : index
    %c0_4 = arith.constant 0 : index
    %4 = vector.load %arg2[%c0_2, %c0_3, %c0_4] : memref<1x216x1024xbf16, #tpu.memory_space<vmem>>, vector<1x216x1024xbf16>
    %5 = vector.shape_cast %4 : vector<1x216x1024xbf16> to vector<216x1024xbf16>
    %cst = arith.constant dense<0.000000e+00> : vector<8x1024xf32>
    %6 = tpu.matmul %3, %5, %cst {dimension_numbers = #tpu.dot_dimension_numbers<[1], [0], [0], [1], [0, 0, 1, 1], [], []>} : vector<8x216xbf16>, vector<216x1024xbf16>, vector<8x1024xf32> -> vector<8x1024xf32>
    %c0_5 = arith.constant 0 : index
    %c0_6 = arith.constant 0 : index
    %7 = vector.load %arg4[%c0_5, %c0_6] : memref<8x1xf32, #tpu.memory_space<vmem>>, vector<8x1xf32>
    %8 = vector.broadcast %7 : vector<8x1xf32> to vector<8x1024xf32>
    %9 = arith.addf %6, %8 : vector<8x1024xf32>
    %c0_7 = arith.constant 0 : index
    %c0_8 = arith.constant 0 : index
    %c0_9 = arith.constant 0 : index
    %10 = vector.load %arg5[%c0_7, %c0_8, %c0_9] : memref<1x8x1024xf32, #tpu.memory_space<vmem>>, vector<1x8x1024xf32>
    %11 = vector.shape_cast %10 : vector<1x8x1024xf32> to vector<8x1024xf32>
    %12 = vector.shape_cast %9 : vector<8x1024xf32> to vector<1x8x1024xf32>
    tpu.vector_store %arg5[%c0_7, %c0_8, %c0_9], %12 {strides = array<i32>} : memref<1x8x1024xf32, #tpu.memory_space<vmem>>, vector<1x8x1024xf32>,
    %c0_10 = arith.constant 0 : index
    %c0_11 = arith.constant 0 : index
    %c0_12 = arith.constant 0 : index
    %13 = vector.load %arg6[%c0_10, %c0_11, %c0_12] : memref<1x8x1xf32, #tpu.memory_space<vmem>>, vector<1x8x1xf32>
    %14 = vector.shape_cast %13 : vector<1x8x1xf32> to vector<8x1xf32>
    %cst_13 = arith.constant dense<0.000000e+00> : vector<8xf32>
    %15 = vector.multi_reduction <add>, %9, %cst_13 [1] : vector<8x1024xf32> to vector<8xf32>
    %16 = vector.shape_cast %15 : vector<8xf32> to vector<8x1xf32>
    %17 = arith.addf %14, %16 : vector<8x1xf32>
    %c0_14 = arith.constant 0 : index
    %c0_15 = arith.constant 0 : index
    %c0_16 = arith.constant 0 : index
    %18 = vector.load %arg6[%c0_14, %c0_15, %c0_16] : memref<1x8x1xf32, #tpu.memory_space<vmem>>, vector<1x8x1xf32>
    %19 = vector.shape_cast %18 : vector<1x8x1xf32> to vector<8x1xf32>
    %20 = vector.shape_cast %17 : vector<8x1xf32> to vector<1x8x1xf32>
    tpu.vector_store %arg6[%c0_14, %c0_15, %c0_16], %20 {strides = array<i32>} : memref<1x8x1xf32, #tpu.memory_space<vmem>>, vector<1x8x1xf32>,
    %c0_17 = arith.constant 0 : index
    %c0_18 = arith.constant 0 : index
    %c0_19 = arith.constant 0 : index
    %21 = vector.load %arg7[%c0_17, %c0_18, %c0_19] : memref<1x8x1xf32, #tpu.memory_space<vmem>>, vector<1x8x1xf32>
    %22 = vector.shape_cast %21 : vector<1x8x1xf32> to vector<8x1xf32>
    %23 = arith.mulf %9, %9 : vector<8x1024xf32>
    %cst_20 = arith.constant dense<0.000000e+00> : vector<8xf32>
    %24 = vector.multi_reduction <add>, %23, %cst_20 [1] : vector<8x1024xf32> to vector<8xf32>
    %25 = vector.shape_cast %24 : vector<8xf32> to vector<8x1xf32>
    %26 = arith.addf %22, %25 : vector<8x1xf32>
    %c0_21 = arith.constant 0 : index
    %c0_22 = arith.constant 0 : index
    %c0_23 = arith.constant 0 : index
    %27 = vector.load %arg7[%c0_21, %c0_22, %c0_23] : memref<1x8x1xf32, #tpu.memory_space<vmem>>, vector<1x8x1xf32>
    %28 = vector.shape_cast %27 : vector<1x8x1xf32> to vector<8x1xf32>
    %29 = vector.shape_cast %26 : vector<8x1xf32> to vector<1x8x1xf32>
    tpu.vector_store %arg7[%c0_21, %c0_22, %c0_23], %29 {strides = array<i32>} : memref<1x8x1xf32, #tpu.memory_space<vmem>>, vector<1x8x1xf32>,
    return
  }
  func.func @transform_0(%arg0: i32, %arg1: i32) -> (i32, i32, i32) {
    %c0_i32 = arith.constant 0 : i32
    %c0_i32_0 = arith.constant 0 : i32
    return %arg0, %c0_i32, %arg1 : i32, i32, i32
  }
  func.func @transform_1(%arg0: i32, %arg1: i32) -> (i32, i32) {
    %c0_i32 = arith.constant 0 : i32
    %c0_i32_0 = arith.constant 0 : i32
    %c0_i32_1 = arith.constant 0 : i32
    return %c0_i32, %c0_i32_0 : i32, i32
  }
  func.func @transform_2(%arg0: i32, %arg1: i32) -> (i32, i32) {
    %c0_i32 = arith.constant 0 : i32
    %c0_i32_0 = arith.constant 0 : i32
    %c0_i32_1 = arith.constant 0 : i32
    return %c0_i32, %c0_i32_0 : i32, i32
  }
  func.func @transform_3(%arg0: i32, %arg1: i32) -> (i32, i32, i32) {
    %c0_i32 = arith.constant 0 : i32
    %c0_i32_0 = arith.constant 0 : i32
    return %arg0, %c0_i32, %arg1 : i32, i32, i32
  }
  func.func @transform_4(%arg0: i32, %arg1: i32) -> (i32, i32, i32) {
    %c0_i32 = arith.constant 0 : i32
    %c0_i32_0 = arith.constant 0 : i32
    %c0_i32_1 = arith.constant 0 : i32
    return %arg0, %c0_i32, %c0_i32_0 : i32, i32, i32
  }
  func.func @transform_5(%arg0: i32, %arg1: i32) -> (i32, i32, i32) {
    %c0_i32 = arith.constant 0 : i32
    %c0_i32_0 = arith.constant 0 : i32
    %c0_i32_1 = arith.constant 0 : i32
    return %arg0, %c0_i32, %c0_i32_0 : i32, i32, i32
  }
}

module attributes {stable_mosaic.version = 11 : i64} {
  func.func @_affine_res_kernel(%arg0: i32, %arg1: i32, %arg2: memref<1x8x1024xf32, #tpu.memory_space<vmem>>, %arg3: memref<1x8x1xf32, #tpu.memory_space<vmem>>, %arg4: memref<1x8x1xf32, #tpu.memory_space<vmem>>, %arg5: memref<1x8x1024xf32, #tpu.memory_space<vmem>>, %arg6: memref<1x8x1024xf32, #tpu.memory_space<vmem>>) attributes {dimension_semantics = [#tpu.dimension_semantics<parallel>, #tpu.dimension_semantics<parallel>], iteration_bounds = array<i64: 1, 4>, scalar_prefetch = 0 : i64, scratch_operands = 0 : i64, tpu.core_type = #tpu.core_type<tc>, window_params = [{transform_indices = @transform_0, window_bounds = array<i64: 1, 8, 1024>}, {transform_indices = @transform_1, window_bounds = array<i64: 1, 8, 1>}, {transform_indices = @transform_2, window_bounds = array<i64: 1, 8, 1>}, {transform_indices = @transform_3, window_bounds = array<i64: 1, 8, 1024>}, {transform_indices = @transform_4, window_bounds = array<i64: 1, 8, 1024>}]} {
    %c0 = arith.constant 0 : index
    %c0_0 = arith.constant 0 : index
    %c0_1 = arith.constant 0 : index
    %0 = vector.load %arg2[%c0, %c0_0, %c0_1] : memref<1x8x1024xf32, #tpu.memory_space<vmem>>, vector<1x8x1024xf32>
    %1 = vector.shape_cast %0 : vector<1x8x1024xf32> to vector<8x1024xf32>
    %c0_2 = arith.constant 0 : index
    %c0_3 = arith.constant 0 : index
    %c0_4 = arith.constant 0 : index
    %2 = vector.load %arg3[%c0_2, %c0_3, %c0_4] : memref<1x8x1xf32, #tpu.memory_space<vmem>>, vector<1x8x1xf32>
    %3 = vector.shape_cast %2 : vector<1x8x1xf32> to vector<8x1xf32>
    %4 = vector.broadcast %3 : vector<8x1xf32> to vector<8x1024xf32>
    %5 = arith.mulf %1, %4 : vector<8x1024xf32>
    %c0_5 = arith.constant 0 : index
    %c0_6 = arith.constant 0 : index
    %c0_7 = arith.constant 0 : index
    %6 = vector.load %arg4[%c0_5, %c0_6, %c0_7] : memref<1x8x1xf32, #tpu.memory_space<vmem>>, vector<1x8x1xf32>
    %7 = vector.shape_cast %6 : vector<1x8x1xf32> to vector<8x1xf32>
    %8 = vector.broadcast %7 : vector<8x1xf32> to vector<8x1024xf32>
    %9 = arith.addf %5, %8 : vector<8x1024xf32>
    %c0_8 = arith.constant 0 : index
    %c0_9 = arith.constant 0 : index
    %c0_10 = arith.constant 0 : index
    %10 = vector.load %arg5[%c0_8, %c0_9, %c0_10] : memref<1x8x1024xf32, #tpu.memory_space<vmem>>, vector<1x8x1024xf32>
    %11 = vector.shape_cast %10 : vector<1x8x1024xf32> to vector<8x1024xf32>
    %12 = arith.addf %9, %11 : vector<8x1024xf32>
    %cst = arith.constant 0.000000e+00 : f32
    %13 = vector.broadcast %cst : f32 to vector<8x1024xf32>
    %14 = arith.cmpf ogt, %12, %13 : vector<8x1024xf32>
    %cst_11 = arith.constant 1.000000e-01 : f32
    %15 = vector.broadcast %cst_11 : f32 to vector<8x1024xf32>
    %16 = arith.mulf %15, %12 : vector<8x1024xf32>
    %17 = arith.select %14, %12, %16 : vector<8x1024xi1>, vector<8x1024xf32>
    %c0_12 = arith.constant 0 : index
    %c0_13 = arith.constant 0 : index
    %c0_14 = arith.constant 0 : index
    %18 = vector.load %arg6[%c0_12, %c0_13, %c0_14] : memref<1x8x1024xf32, #tpu.memory_space<vmem>>, vector<1x8x1024xf32>
    %19 = vector.shape_cast %18 : vector<1x8x1024xf32> to vector<8x1024xf32>
    %20 = vector.shape_cast %17 : vector<8x1024xf32> to vector<1x8x1024xf32>
    tpu.vector_store %arg6[%c0_12, %c0_13, %c0_14], %20 {strides = array<i32>} : memref<1x8x1024xf32, #tpu.memory_space<vmem>>, vector<1x8x1024xf32>,
    return
  }
  func.func @transform_0(%arg0: i32, %arg1: i32) -> (i32, i32, i32) {
    %c0_i32 = arith.constant 0 : i32
    %c0_i32_0 = arith.constant 0 : i32
    return %arg0, %c0_i32, %arg1 : i32, i32, i32
  }
  func.func @transform_1(%arg0: i32, %arg1: i32) -> (i32, i32, i32) {
    %c0_i32 = arith.constant 0 : i32
    %c0_i32_0 = arith.constant 0 : i32
    %c0_i32_1 = arith.constant 0 : i32
    return %arg0, %c0_i32, %c0_i32_0 : i32, i32, i32
  }
  func.func @transform_2(%arg0: i32, %arg1: i32) -> (i32, i32, i32) {
    %c0_i32 = arith.constant 0 : i32
    %c0_i32_0 = arith.constant 0 : i32
    %c0_i32_1 = arith.constant 0 : i32
    return %arg0, %c0_i32, %c0_i32_0 : i32, i32, i32
  }
  func.func @transform_3(%arg0: i32, %arg1: i32) -> (i32, i32, i32) {
    %c0_i32 = arith.constant 0 : i32
    %c0_i32_0 = arith.constant 0 : i32
    return %arg0, %c0_i32, %arg1 : i32, i32, i32
  }
  func.func @transform_4(%arg0: i32, %arg1: i32) -> (i32, i32, i32) {
    %c0_i32 = arith.constant 0 : i32
    %c0_i32_0 = arith.constant 0 : i32
    return %arg0, %c0_i32, %arg1 : i32, i32, i32
  }
}

module attributes {stable_mosaic.version = 11 : i64} {
  func.func @_conv_mm_kernel(%arg0: i32, %arg1: i32, %arg2: memref<1x8x1024xbf16, #tpu.memory_space<vmem>>, %arg3: memref<2x8xbf16, #tpu.memory_space<vmem>>, %arg4: memref<2x1xf32, #tpu.memory_space<vmem>>, %arg5: memref<1x2x1024xf32, #tpu.memory_space<vmem>>, %arg6: memref<1x2x1xf32, #tpu.memory_space<vmem>>, %arg7: memref<1x2x1xf32, #tpu.memory_space<vmem>>) attributes {dimension_semantics = [#tpu.dimension_semantics<parallel>, #tpu.dimension_semantics<arbitrary>], iteration_bounds = array<i64: 1, 4>, scalar_prefetch = 0 : i64, scratch_operands = 0 : i64, tpu.core_type = #tpu.core_type<tc>, window_params = [{transform_indices = @transform_0, window_bounds = array<i64: 1, 8, 1024>}, {pipeline_mode = #tpu.pipeline_mode<synchronous>, transform_indices = @transform_1, window_bounds = array<i64: 2, 8>}, {pipeline_mode = #tpu.pipeline_mode<synchronous>, transform_indices = @transform_2, window_bounds = array<i64: 2, 1>}, {transform_indices = @transform_3, window_bounds = array<i64: 1, 2, 1024>}, {transform_indices = @transform_4, window_bounds = array<i64: 1, 2, 1>}, {transform_indices = @transform_5, window_bounds = array<i64: 1, 2, 1>}]} {
    %c0_i32 = arith.constant 0 : i32
    %0 = arith.cmpi eq, %arg1, %c0_i32 : i32
    %1 = arith.extui %0 : i1 to i32
    %c0_i32_0 = arith.constant 0 : i32
    %2 = arith.cmpi ne, %1, %c0_i32_0 : i32
    scf.if %2 {
      %cst_24 = arith.constant 0.000000e+00 : f32
      %30 = vector.broadcast %cst_24 : f32 to vector<1x2x1xf32>
      %c0_25 = arith.constant 0 : index
      %c0_26 = arith.constant 0 : index
      %c0_27 = arith.constant 0 : index
      %31 = vector.load %arg6[%c0_25, %c0_26, %c0_27] : memref<1x2x1xf32, #tpu.memory_space<vmem>>, vector<1x2x1xf32>
      tpu.vector_store %arg6[%c0_25, %c0_26, %c0_27], %30 {strides = array<i32>} : memref<1x2x1xf32, #tpu.memory_space<vmem>>, vector<1x2x1xf32>,
      %cst_28 = arith.constant 0.000000e+00 : f32
      %32 = vector.broadcast %cst_28 : f32 to vector<1x2x1xf32>
      %c0_29 = arith.constant 0 : index
      %c0_30 = arith.constant 0 : index
      %c0_31 = arith.constant 0 : index
      %33 = vector.load %arg7[%c0_29, %c0_30, %c0_31] : memref<1x2x1xf32, #tpu.memory_space<vmem>>, vector<1x2x1xf32>
      tpu.vector_store %arg7[%c0_29, %c0_30, %c0_31], %32 {strides = array<i32>} : memref<1x2x1xf32, #tpu.memory_space<vmem>>, vector<1x2x1xf32>,
    } else {
    }
    %c0 = arith.constant 0 : index
    %c0_1 = arith.constant 0 : index
    %3 = vector.load %arg3[%c0, %c0_1] : memref<2x8xbf16, #tpu.memory_space<vmem>>, vector<2x8xbf16>
    %c0_2 = arith.constant 0 : index
    %c0_3 = arith.constant 0 : index
    %c0_4 = arith.constant 0 : index
    %4 = vector.load %arg2[%c0_2, %c0_3, %c0_4] : memref<1x8x1024xbf16, #tpu.memory_space<vmem>>, vector<1x8x1024xbf16>
    %5 = vector.shape_cast %4 : vector<1x8x1024xbf16> to vector<8x1024xbf16>
    %cst = arith.constant dense<0.000000e+00> : vector<2x1024xf32>
    %6 = tpu.matmul %3, %5, %cst {dimension_numbers = #tpu.dot_dimension_numbers<[1], [0], [0], [1], [0, 0, 1, 1], [], []>} : vector<2x8xbf16>, vector<8x1024xbf16>, vector<2x1024xf32> -> vector<2x1024xf32>
    %c0_5 = arith.constant 0 : index
    %c0_6 = arith.constant 0 : index
    %7 = vector.load %arg4[%c0_5, %c0_6] : memref<2x1xf32, #tpu.memory_space<vmem>>, vector<2x1xf32>
    %8 = vector.broadcast %7 : vector<2x1xf32> to vector<2x1024xf32>
    %9 = arith.addf %6, %8 : vector<2x1024xf32>
    %c0_7 = arith.constant 0 : index
    %c0_8 = arith.constant 0 : index
    %c0_9 = arith.constant 0 : index
    %10 = vector.load %arg5[%c0_7, %c0_8, %c0_9] : memref<1x2x1024xf32, #tpu.memory_space<vmem>>, vector<1x2x1024xf32>
    %11 = vector.shape_cast %10 : vector<1x2x1024xf32> to vector<2x1024xf32>
    %12 = vector.shape_cast %9 : vector<2x1024xf32> to vector<1x2x1024xf32>
    tpu.vector_store %arg5[%c0_7, %c0_8, %c0_9], %12 {strides = array<i32>} : memref<1x2x1024xf32, #tpu.memory_space<vmem>>, vector<1x2x1024xf32>,
    %c0_10 = arith.constant 0 : index
    %c0_11 = arith.constant 0 : index
    %c0_12 = arith.constant 0 : index
    %13 = vector.load %arg6[%c0_10, %c0_11, %c0_12] : memref<1x2x1xf32, #tpu.memory_space<vmem>>, vector<1x2x1xf32>
    %14 = vector.shape_cast %13 : vector<1x2x1xf32> to vector<2x1xf32>
    %cst_13 = arith.constant dense<0.000000e+00> : vector<2xf32>
    %15 = vector.multi_reduction <add>, %9, %cst_13 [1] : vector<2x1024xf32> to vector<2xf32>
    %16 = vector.shape_cast %15 : vector<2xf32> to vector<2x1xf32>
    %17 = arith.addf %14, %16 : vector<2x1xf32>
    %c0_14 = arith.constant 0 : index
    %c0_15 = arith.constant 0 : index
    %c0_16 = arith.constant 0 : index
    %18 = vector.load %arg6[%c0_14, %c0_15, %c0_16] : memref<1x2x1xf32, #tpu.memory_space<vmem>>, vector<1x2x1xf32>
    %19 = vector.shape_cast %18 : vector<1x2x1xf32> to vector<2x1xf32>
    %20 = vector.shape_cast %17 : vector<2x1xf32> to vector<1x2x1xf32>
    tpu.vector_store %arg6[%c0_14, %c0_15, %c0_16], %20 {strides = array<i32>} : memref<1x2x1xf32, #tpu.memory_space<vmem>>, vector<1x2x1xf32>,
    %c0_17 = arith.constant 0 : index
    %c0_18 = arith.constant 0 : index
    %c0_19 = arith.constant 0 : index
    %21 = vector.load %arg7[%c0_17, %c0_18, %c0_19] : memref<1x2x1xf32, #tpu.memory_space<vmem>>, vector<1x2x1xf32>
    %22 = vector.shape_cast %21 : vector<1x2x1xf32> to vector<2x1xf32>
    %23 = arith.mulf %9, %9 : vector<2x1024xf32>
    %cst_20 = arith.constant dense<0.000000e+00> : vector<2xf32>
    %24 = vector.multi_reduction <add>, %23, %cst_20 [1] : vector<2x1024xf32> to vector<2xf32>
    %25 = vector.shape_cast %24 : vector<2xf32> to vector<2x1xf32>
    %26 = arith.addf %22, %25 : vector<2x1xf32>
    %c0_21 = arith.constant 0 : index
    %c0_22 = arith.constant 0 : index
    %c0_23 = arith.constant 0 : index
    %27 = vector.load %arg7[%c0_21, %c0_22, %c0_23] : memref<1x2x1xf32, #tpu.memory_space<vmem>>, vector<1x2x1xf32>
    %28 = vector.shape_cast %27 : vector<1x2x1xf32> to vector<2x1xf32>
    %29 = vector.shape_cast %26 : vector<2x1xf32> to vector<1x2x1xf32>
    tpu.vector_store %arg7[%c0_21, %c0_22, %c0_23], %29 {strides = array<i32>} : memref<1x2x1xf32, #tpu.memory_space<vmem>>, vector<1x2x1xf32>,
    return
  }
  func.func @transform_0(%arg0: i32, %arg1: i32) -> (i32, i32, i32) {
    %c0_i32 = arith.constant 0 : i32
    %c0_i32_0 = arith.constant 0 : i32
    return %arg0, %c0_i32, %arg1 : i32, i32, i32
  }
  func.func @transform_1(%arg0: i32, %arg1: i32) -> (i32, i32) {
    %c0_i32 = arith.constant 0 : i32
    %c0_i32_0 = arith.constant 0 : i32
    %c0_i32_1 = arith.constant 0 : i32
    return %c0_i32, %c0_i32_0 : i32, i32
  }
  func.func @transform_2(%arg0: i32, %arg1: i32) -> (i32, i32) {
    %c0_i32 = arith.constant 0 : i32
    %c0_i32_0 = arith.constant 0 : i32
    %c0_i32_1 = arith.constant 0 : i32
    return %c0_i32, %c0_i32_0 : i32, i32
  }
  func.func @transform_3(%arg0: i32, %arg1: i32) -> (i32, i32, i32) {
    %c0_i32 = arith.constant 0 : i32
    %c0_i32_0 = arith.constant 0 : i32
    return %arg0, %c0_i32, %arg1 : i32, i32, i32
  }
  func.func @transform_4(%arg0: i32, %arg1: i32) -> (i32, i32, i32) {
    %c0_i32 = arith.constant 0 : i32
    %c0_i32_0 = arith.constant 0 : i32
    %c0_i32_1 = arith.constant 0 : i32
    return %arg0, %c0_i32, %c0_i32_0 : i32, i32, i32
  }
  func.func @transform_5(%arg0: i32, %arg1: i32) -> (i32, i32, i32) {
    %c0_i32 = arith.constant 0 : i32
    %c0_i32_0 = arith.constant 0 : i32
    %c0_i32_1 = arith.constant 0 : i32
    return %arg0, %c0_i32, %c0_i32_0 : i32, i32, i32
  }
}

</mosaic_0001>

<bundles_post_ra>
// kernel: squeeze.33
= control target key start
LH: loop header
LB: loop body
LE: loop exit
PB: predicated region body
PF: predicated region fallthrough
CT: control target
= control target key end

     0   :  { %s37_s8 = smov 122   ;;  %vm7_vm0 = vcmask 15360   ;;  %s38_s9 = smov 124   ;;  %s55_s0 = inlined_call_operand.vmem [shape: f32[8], index: 0, kind: input, shape index: {}]   ;;  %s56_s1 = inlined_call_operand.vmem [shape: f32[4,2], index: 1, kind: output, shape index: {}]  }
   0x1   :  { %v4_v0 = vld [vmem:[%s55_s0] sm:$0x1]  ;;  %s36_s0 = smov 126  }
   0x2   :  { %5 = vst [vmem:[#allocation1] sm:$0x1] %v4_v0 }
   0x9   :  { %v9_v1 = vld [vmem:[#allocation1] sm:$0x1]  }
   0xa   :  { %v21_v2 = vld [vmem:[#allocation1] sm:$0x1]   ;;  %10 = vrot.lane.b32.xlu0 %v9_v1, %s36_s0 }
   0xb   :  { %22 = vrot.lane.b32.xlu1 %v21_v2, %s37_s8  ;;  %v6_v3 = vld [vmem:[#allocation1] sm:$0x1]  }
   0xc   :  { %v15_v4 = vld [vmem:[#allocation1] sm:$0x1]   ;;  %8 = vst.msk [vmem:[#allocation0] sm:$0x1] %vm7_vm0, %v6_v3  }
   0xe   :  { %16 = vrot.lane.b32.xlu0 %v15_v4, %s38_s9 }
  0x7c   :  { %v11_v5 = vpop.permute.xlu0 %10  }
  0x7d   :  { %v23_v6 = vpop.permute.xlu1 %22   ;;  %14 = vst.msk [vmem:[#allocation0 + $0x1] sm:$0x1] %vm7_vm0, %v11_v5  }
  0x7e   :  { %26 = vst.msk [vmem:[#allocation0 + $0x3] sm:$0x1] %vm7_vm0, %v23_v6  }
  0x80   :  { %v17_v7 = vpop.permute.xlu0 %16  }
  0x81   :  { %20 = vst.msk [vmem:[#allocation0 + $0x2] sm:$0x1] %vm7_vm0, %v17_v7  }
  0x88   :  { %v30_v8 = vld [vmem:[#allocation0] sm:$0xf] }
  0x89   :  { %32 = vst [vmem:[%s56_s1] sm:$0xf] %v30_v8 }

// kernel: _lambda_.33
= control target key start
LH: loop header
LB: loop body
LE: loop exit
PB: predicated region body
PF: predicated region fallthrough
CT: control target
= control target key end

     0   :  { %s988_s18 = smov 0   ;;  %s990_s19 = smov 0   ;;  %s1128_s0 = inlined_call_operand.vmem [shape: bf16[1,27,4096], index: 0, kind: input, shape index: {}]   ;;  %s1129_s1 = inlined_call_operand.vmem [shape: bf16[8,27], index: 1, kind: input, shape index: {}]   ;;  %s1130_s2 = inlined_call_operand.vmem [shape: f32[8,1], index: 2, kind: input, shape index: {}]   ;;  %s1131_s3 = inlined_call_operand.vmem [shape: f32[1,8,4096], index: 3, kind: output, shape index: {0}]   ;;  %s1132_s4 = inlined_call_operand.vmem [shape: f32[1,8,1], index: 4, kind: output, shape index: {1}]   ;;  %s1133_s5 = inlined_call_operand.vmem [shape: f32[1,8,1], index: 5, kind: output, shape index: {2}]  }
   0x1   :  { %s992_s20 = smov 0   ;;  %s994_s21 = smov 0  }
   0x2   :  { %s996_s22 = smov 0  }
   0x3 LB: > { %s25_s23 = sadd.s32 1, %s949_s21  ;;  %p44_p1 = scmp.ne.s32.totalorder %s941_s19, %s937_s18  ;;  %s953_s22 = sphi %s996_s22, %s16_s22   ;;  %s949_s21 = sphi %s994_s21, %s1137_s21   ;;  %s945_s20 = sphi %s992_s20, %s1136_s20   ;;  %s941_s19 = sphi %s990_s19, %s1135_s19   ;;  %s937_s18 = sphi %s988_s18, %s1134_s18  }
   0x4   : > { %p26_p0 = scmp.ge.s32.totalorder %s25_s23, 4  ;;  %p45_p2 = scmp.eq.s32.totalorder %s953_s22, 0 }
   0x5   : > { %s37_s25 = sadd.s32 1, %s941_s19  ;;  %p837_p5 = scmp.ge.s32.totalorder %s953_s22, 4 }
   0x6   : > { %s1139_s23 = smov (%p26_p0, %s25_s23), 0  ;;  %p46_p3 = por %p45_p2, %p44_p1 }
   0x7   : > { %s33_s24 = ssub.s32 %s949_s21, %s1139_s23  ;;  %198 = sbr.rel (%p837_p5) target bundleno = 26 (0x1a), region = 24 }
   0x8   : > { %p35_p4 = scmp.eq.s32.totalorder %s33_s24, 0 }
   0xa   : > { %s1023_s26 = scalar_select %p35_p4, %s941_s19, %s37_s25  }
   0xe   : > { %201 = sbr.rel (!%p46_p3) target bundleno = 26 (0x1a), region = 28  ;;  %s203_s27 = sand.u32 (%p46_p3), 1, %s941_s19  }
   0xf   : > { %s870_s28 = sshll.u32 (%p46_p3), %s949_s21, 5  ;;  %s838_s29 = sshll.u32 (%p46_p3), %s203_s27, 7 }
  0x10   : > { %s1031_s7 = scalar_lea.vmem (%p46_p3), %s1128_s0, %s870_s28  ;;  %s205_s8 = scalar_lea.vmem (%p46_p3), [#allocation2], %s838_s29 }
  0x11   : > { %v223_v0 = vld [vmem:[%s1031_s7] sm:$0xff] (%p46_p3)  ;;  %v225_v1 = vld [vmem:[%s1031_s7 + $0x8] sm:$0xff] (%p46_p3)  ;;  %v227_v2 = vld [vmem:[%s1031_s7 + $0x10] sm:$0xff] (%p46_p3) }
  0x12   : > { %224 = vst [vmem:[%s205_s8] sm:$0xff] (%p46_p3), %v223_v0  ;;  %226 = vst [vmem:[%s205_s8 + $0x8] sm:$0xff] (%p46_p3), %v225_v1  ;;  %v229_v3 = vld [vmem:[%s1031_s7 + $0x18] sm:$0xff] (%p46_p3)  ;;  %v231_v4 = vld [vmem:[%s1031_s7 + $0x80] sm:$0xff] (%p46_p3) }
  0x13   : > { %228 = vst [vmem:[%s205_s8 + $0x10] sm:$0xff] (%p46_p3), %v227_v2  ;;  %v233_v5 = vld [vmem:[%s1031_s7 + $0x88] sm:$0xff] (%p46_p3)  ;;  %230 = vst [vmem:[%s205_s8 + $0x18] sm:$0xff] (%p46_p3), %v229_v3  ;;  %v235_v6 = vld [vmem:[%s1031_s7 + $0x90] sm:$0xff] (%p46_p3) }
  0x14   : > { %232 = vst [vmem:[%s205_s8 + $0x20] sm:$0xff] (%p46_p3), %v231_v4  ;;  %234 = vst [vmem:[%s205_s8 + $0x28] sm:$0xff] (%p46_p3), %v233_v5  ;;  %v237_v7 = vld [vmem:[%s1031_s7 + $0x98] sm:$0xff] (%p46_p3)  ;;  %v239_v8 = vld [vmem:[%s1031_s7 + $0x100] sm:$0xff] (%p46_p3) }
  0x15   : > { %236 = vst [vmem:[%s205_s8 + $0x30] sm:$0xff] %v235_v6  ;;  %238 = vst [vmem:[%s205_s8 + $0x38] sm:$0xff] %v237_v7  ;;  %v241_v9 = vld [vmem:[%s1031_s7 + $0x108] sm:$0xff]  ;;  %v243_v10 = vld [vmem:[%s1031_s7 + $0x110] sm:$0xff] }
  0x16   : > { %240 = vst [vmem:[%s205_s8 + $0x40] sm:$0xff] %v239_v8  ;;  %v245_v11 = vld [vmem:[%s1031_s7 + $0x118] sm:$0xff]  ;;  %242 = vst [vmem:[%s205_s8 + $0x48] sm:$0xff] %v241_v9  ;;  %v247_v12 = vld [vmem:[%s1031_s7 + $0x180] sm:$0xff] }
  0x17   : > { %244 = vst [vmem:[%s205_s8 + $0x50] sm:$0xff] %v243_v10  ;;  %246 = vst [vmem:[%s205_s8 + $0x58] sm:$0xff] %v245_v11  ;;  %v249_v13 = vld [vmem:[%s1031_s7 + $0x188] sm:$0xff]  ;;  %v251_v14 = vld [vmem:[%s1031_s7 + $0x190] sm:$0xff] }
  0x18   : > { %248 = vst [vmem:[%s205_s8 + $0x60] sm:$0xff] %v247_v12  ;;  %250 = vst [vmem:[%s205_s8 + $0x68] sm:$0xff] %v249_v13  ;;  %v253_v15 = vld [vmem:[%s1031_s7 + $0x198] sm:$0xff] }
  0x19   : > { %252 = vst [vmem:[%s205_s8 + $0x70] sm:$0xff] %v251_v14  ;;  %254 = vst [vmem:[%s205_s8 + $0x78] sm:$0xff] %v253_v15 }
  0x1a PF: > { %p841_p6 = scmp.ge.s32.totalorder %s953_s22, 1  ;;  %p259_p7 = scmp.lt.s32.totalorder %s953_s22, 5 }
  0x1c   : > { %p260_p8 = pnand %p841_p6, %p259_p7 }
  0x1d   : > { %s266_s9 = sand.u32 (!%p260_p8), 1, %s937_s18   ;;  %s843_s10 = sshll.u32 (!%p260_p8), %s945_s20, 3 }
  0x1e   : > { %263 = sbr.rel (%p260_p8) target bundleno = 437 (0x1b5), region = 51  ;;  %s842_s11 = sshll.u32 (!%p260_p8), %s266_s9, 7 }
  0x1f   : > { %p309_p9 = scmp.lt.s32.totalorder (!%p260_p8), %s843_s10, 31  ;;  %s1058_s16 = scalar_lea.vmem (!%p260_p8), [#allocation2], %s842_s11 }
  0x20   : > { %p845_p10 = scmp.ne.s32.totalorder (!%p260_p8), %s945_s20, 0 }
  0x25   : > { %s1141_s10 = smov (!%p309_p9, %s843_s10), 31  ;;  %328 = sbr.rel (%p845_p10) target bundleno = 44 (0x2c), region = 59 }
  0x26   : > { %s844_s12 = sshll.u32 %s1141_s10, 3  ;;  %vm329_vm0 = vcmask (!%p845_p10), 7168   ;;  %v955_v16 = vmov (!%p845_p10), 0.0  }
  0x27   : > { %s1056_s15 = scalar_lea.vmem %s1131_s3, %s844_s12  ;;  %330 = vst.msk [vmem:[%s1132_s4] sm:$0xff] (!%p845_p10), %vm329_vm0, %v955_v16  ;;  %331 = vst.msk [vmem:[%s1133_s5] sm:$0xff] (!%p845_p10), %vm329_vm0, %v955_v16 }
  0x2c PF: > { %v333_v17 = vld [vmem:[%s1058_s16] sm:$0xff]  ;;  %v334_v19 = vld [vmem:[%s1058_s16 + $0x8] sm:$0xff]  ;;  %vm431_vm1 = vcmask 1044480   ;;  %vm432_vm2 = vcmask 1045504   ;;  %v956_v25 = vmov 65535   ;;  %v957_v33 = vmov 0  }
  0x2d   : > { %v337_v18 = vld [vmem:[%s1058_s16 + $0x20] sm:$0xff]  ;;  %v338_v21 = vld [vmem:[%s1058_s16 + $0x28] sm:$0xff]  ;;  %v433_v26 = vsel %vm431_vm1, 4294967295, %v956_v25  ;;  %491 = vmatprep.mubr.bf16.mxu0 %v957_v33  ;;  %532 = vmatprep.mubr.bf16.mxu1 %v957_v33  ;;  %v335_v37 = vld [vmem:[%s1058_s16 + $0x10] sm:$0xff]  ;;  %vm427_vm3 = vcmask 220160   ;;  %vm666_vm12 = vcmask 7168  }
  0x2e   : > { %v847_v20 = vcombine.high %v333_v17, %v337_v18  ;;  %v846_v22 = vcombine.low %v333_v17, %v337_v18  ;;  %v341_v23 = vld [vmem:[%s1058_s16 + $0x40] sm:$0xff]  ;;  %v849_v27 = vcombine.high %v334_v19, %v338_v21  ;;  %v848_v28 = vcombine.low %v334_v19, %v338_v21  ;;  %v342_v31 = vld [vmem:[%s1058_s16 + $0x48] sm:$0xff]  ;;  %v339_v38 = vld [vmem:[%s1058_s16 + $0x30] sm:$0xff]  ;;  %914 = vset.pattern.permute.xlu0 %v957_v33 }
  0x2f   : > { %v345_v24 = vld [vmem:[%s1058_s16 + $0x60] sm:$0x33]  ;;  %v434_v30 = vsel %vm432_vm2, %v433_v26, 0  ;;  %v346_v32 = vld [vmem:[%s1058_s16 + $0x68] sm:$0x33]  ;;  %v336_v39 = vld [vmem:[%s1058_s16 + $0x18] sm:$0xff]  ;;  %v851_v47 = vcombine.high %v335_v37, %v339_v38  ;;  %v850_v55 = vcombine.low %v335_v37, %v339_v38 }
  0x30   : > { %v855_v29 = vcombine.high %v341_v23, %v345_v24  ;;  %459 = vmatprep.subr.bf16.mxu0 %v847_v20  ;;  %v857_v34 = vcombine.high %v342_v31, %v346_v32  ;;  %v854_v35 = vcombine.low %v341_v23, %v345_v24  ;;  %v856_v36 = vcombine.low %v342_v31, %v346_v32  ;;  %v340_v41 = vld [vmem:[%s1058_s16 + $0x38] sm:$0xff]  ;;  %v343_v42 = vld [vmem:[%s1058_s16 + $0x50] sm:$0xff]  ;;  %v349_v50 = vld [vmem:[%s1130_s2] sm:$0xff] }
  0x31   : > { %500 = vmatprep.subr.bf16.mxu1 %v849_v27  ;;  %460 = vmatpush1.bf16.msra.mxu0 %v846_v22  ;;  %v347_v43 = vld [vmem:[%s1058_s16 + $0x70] sm:$0x33]  ;;  %v344_v48 = vld [vmem:[%s1058_s16 + $0x58] sm:$0xff]  ;;  %v853_v51 = vcombine.high %v336_v39, %v340_v41  ;;  %v332_v54 = vld [vmem:[%s1129_s1] sm:$0xf]  ;;  %v852_v57 = vcombine.low %v336_v39, %v340_v41 }
  0x32   : > { %v439_v40 = vand.u32 %v855_v29, %v434_v30  ;;  %501 = vmatpush1.bf16.msra.mxu1 %v848_v28  ;;  %v445_v44 = vand.u32 %v857_v34, %v434_v30  ;;  %v436_v45 = vand.u32 %v854_v35, %v434_v30  ;;  %v442_v46 = vand.u32 %v856_v36, %v434_v30  ;;  %v348_v49 = vld [vmem:[%s1058_s16 + $0x78] sm:$0x33] }
  0x33   : > { %v859_v52 = vcombine.high %v343_v42, %v347_v43  ;;  %v861_v53 = vcombine.high %v344_v48, %v348_v49  ;;  %352 = vperm.xlu0 %914, %v349_v50   ;;  %v858_v56 = vcombine.low %v343_v42, %v347_v43  ;;  %v860_v59 = vcombine.low %v344_v48, %v348_v49 }
  0x34   : > { %461 = vmatprep.subr.bf16.mxu0 %v439_v40  ;;  %502 = vmatprep.subr.bf16.mxu1 %v445_v44 }
  0x35   : > { %462 = vmatpush1.bf16.msra.mxu0 %v436_v45  ;;  %v451_v58 = vand.u32 %v859_v52, %v434_v30  ;;  %v457_v60 = vand.u32 %v861_v53, %v434_v30  ;;  %v448_v61 = vand.u32 %v858_v56, %v434_v30  ;;  %v454_v62 = vand.u32 %v860_v59, %v434_v30 }
  0x36   : > { %503 = vmatpush1.bf16.msra.mxu1 %v442_v46  ;;  %541 = vmatprep.subr.bf16.mxu0 %v851_v47 }
  0x37   : > { %582 = vmatprep.subr.bf16.mxu1 %v853_v51 }
  0x38   : > { %862 = vmatmul.mubr.msk.bf16.vlgmr.msra.gmra.mrb[0].mxu0 %vm427_vm3, %v332_v54 }
  0x39   : > { %863 = vmatmul.mubr.msk.bf16.vlgmr.msra.gmra.mrb[0].mxu1 %vm427_vm3, %v332_v54  ;;  %542 = vmatpush1.bf16.msra.mxu0 %v850_v55 }
  0x3a   : > { %583 = vmatpush1.bf16.msra.mxu1 %v852_v57  ;;  %543 = vmatprep.subr.bf16.mxu0 %v451_v58 }
  0x3b   : > { %584 = vmatprep.subr.bf16.mxu1 %v457_v60  ;;  %573 = vmatprep.mubr.bf16.mxu0 %v957_v33 }
  0x3c   : > { %614 = vmatprep.mubr.bf16.mxu1 %v957_v33 }
  0x3d   : > { %544 = vmatpush1.bf16.msra.mxu0 %v448_v61 }
  0x3e   : > { %585 = vmatpush1.bf16.msra.mxu1 %v454_v62  ;;  %v655_v62 = vld [vmem:[%s1132_s4] sm:$0xff] }
  0x40   : > { %864 = vmatmul.mubr.msk.bf16.vlgmr.msra.gmra.mrb[4].mxu0 %vm427_vm3, %v332_v54 }
  0x41   : > { %865 = vmatmul.mubr.msk.bf16.vlgmr.msra.gmra.mrb[4].mxu1 %vm427_vm3, %v332_v54 }
  0xb2   : > { %v353_v63 = vpop.permute.xlu0 %352 }
 0x10b   : > { %v493_v0 = vpop.f32.mrb[0].mxu0 }
 0x10c   : > { %v494_v1 = vadd.f32 %v493_v0, %v353_v63  ;;  %v534_v2 = vpop.f32.mrb[0].mxu1  ;;  %v495_v3 = vpop.f32.mrb[1].mxu0 }
 0x10d   : > { %v535_v4 = vadd.f32 %v534_v2, %v353_v63  ;;  %v496_v5 = vadd.f32 %v495_v3, %v353_v63  ;;  %v536_v6 = vpop.f32.mrb[1].mxu1  ;;  %v497_v7 = vpop.f32.mrb[2].mxu0 }
 0x10e   : > { %vm623_vm4 = vcmp.gt.f32.partialorder %v494_v1, 0.0  ;;  %v631_v8 = vmul.f32 0.1, %v494_v1  ;;  %v537_v9 = vadd.f32 %v536_v6, %v353_v63  ;;  %v498_v10 = vpop.f32.mrb[3].mxu0  ;;  %v538_v11 = vpop.f32.mrb[2].mxu1 }
 0x10f   : > { %vm625_vm5 = vcmp.gt.f32.partialorder %v535_v4, 0.0  ;;  %v633_v12 = vmul.f32 0.1, %v535_v4  ;;  %vm624_vm6 = vcmp.gt.f32.partialorder %v496_v5, 0.0  ;;  %v632_v13 = vmul.f32 0.1, %v496_v5 }
 0x110   : > { %v639_v14 = vsel %vm623_vm4, %v494_v1, %v631_v8  ;;  %vm626_vm7 = vcmp.gt.f32.partialorder %v537_v9, 0.0  ;;  %v634_v15 = vmul.f32 0.1, %v537_v9  ;;  %v539_v16 = vpop.f32.mrb[3].mxu1  ;;  %v668_v1 = vld [vmem:[%s1133_s5] sm:$0xff] }
 0x111   : > { %647 = vst [vmem:[%s1056_s15] sm:$0xff] %v639_v14  ;;  %v669_v17 = vmul.f32 %v639_v14, %v639_v14  ;;  %v641_v18 = vsel %vm625_vm5, %v535_v4, %v633_v12  ;;  %v640_v19 = vsel %vm624_vm6, %v496_v5, %v632_v13 }
 0x112   : > { %649 = vst [vmem:[%s1056_s15 + $0x10] sm:$0xff] %v641_v18  ;;  %648 = vst [vmem:[%s1056_s15 + $0x8] sm:$0xff] %v640_v19  ;;  %v656_v20 = vadd.f32 %v640_v19, %v639_v14  ;;  %v670_v21 = vmul.f32 %v640_v19, %v640_v19  ;;  %v642_v22 = vsel %vm626_vm7, %v537_v9, %v634_v15 }
 0x113   : > { %650 = vst [vmem:[%s1056_s15 + $0x18] sm:$0xff] %v642_v22  ;;  %v575_v23 = vpop.f32.mrb[4].mxu0  ;;  %v671_v29 = vmul.f32 %v641_v18, %v641_v18  ;;  %v672_v30 = vmul.f32 %v642_v22, %v642_v22 }
 0x114   : > { %v677_v24 = vadd.f32 %v670_v21, %v669_v17  ;;  %v657_v25 = vadd.f32 %v656_v20, %v641_v18  ;;  %v576_v26 = vadd.f32 %v575_v23, %v353_v63  ;;  %v616_v27 = vpop.f32.mrb[4].mxu1  ;;  %v577_v28 = vpop.f32.mrb[5].mxu0 }
 0x115   : > { %v617_v31 = vadd.f32 %v616_v27, %v353_v63  ;;  %v578_v32 = vadd.f32 %v577_v28, %v353_v63  ;;  %v618_v33 = vpop.f32.mrb[5].mxu1  ;;  %v579_v34 = vpop.f32.mrb[6].mxu0 }
 0x116   : > { %v658_v35 = vadd.f32 %v657_v25, %v642_v22  ;;  %vm627_vm8 = vcmp.gt.f32.partialorder %v576_v26, 0.0  ;;  %v635_v36 = vmul.f32 0.1, %v576_v26  ;;  %v619_v37 = vadd.f32 %v618_v33, %v353_v63  ;;  %v580_v38 = vpop.f32.mrb[7].mxu0  ;;  %v620_v39 = vpop.f32.mrb[6].mxu1 }
 0x117   : > { %vm629_vm9 = vcmp.gt.f32.partialorder %v617_v31, 0.0  ;;  %v637_v40 = vmul.f32 0.1, %v617_v31  ;;  %vm628_vm10 = vcmp.gt.f32.partialorder %v578_v32, 0.0  ;;  %v636_v41 = vmul.f32 0.1, %v578_v32 }
 0x118   : > { %v643_v42 = vsel %vm627_vm8, %v576_v26, %v635_v36  ;;  %vm630_vm11 = vcmp.gt.f32.partialorder %v619_v37, 0.0  ;;  %v638_v43 = vmul.f32 0.1, %v619_v37  ;;  %v621_v44 = vpop.f32.mrb[7].mxu1  ;;  %v678_v45 = vadd.f32 %v677_v24, %v671_v29 }
 0x119   : > { %651 = vst [vmem:[%s1056_s15 + $0x20] sm:$0xff] %v643_v42  ;;  %v659_v46 = vadd.f32 %v658_v35, %v643_v42  ;;  %v673_v47 = vmul.f32 %v643_v42, %v643_v42  ;;  %v645_v48 = vsel %vm629_vm9, %v617_v31, %v637_v40  ;;  %v644_v49 = vsel %vm628_vm10, %v578_v32, %v636_v41 }
 0x11a   : > { %653 = vst [vmem:[%s1056_s15 + $0x30] sm:$0xff] %v645_v48  ;;  %652 = vst [vmem:[%s1056_s15 + $0x28] sm:$0xff] %v644_v49  ;;  %v646_v50 = vsel %vm630_vm11, %v619_v37, %v638_v43  ;;  %v674_v51 = vmul.f32 %v644_v49, %v644_v49  ;;  %v679_v52 = vadd.f32 %v678_v45, %v672_v30 }
 0x11b   : > { %654 = vst [vmem:[%s1056_s15 + $0x38] sm:$0xff] %v646_v50  ;;  %v660_v53 = vadd.f32 %v659_v46, %v644_v49  ;;  %v675_v56 = vmul.f32 %v645_v48, %v645_v48  ;;  %v676_v59 = vmul.f32 %v646_v50, %v646_v50 }
 0x11c   : > { %v680_v54 = vadd.f32 %v679_v52, %v673_v47 }
 0x11d   : > { %v661_v55 = vadd.f32 %v660_v53, %v645_v48 }
 0x11e   : > { %v681_v57 = vadd.f32 %v680_v54, %v674_v51 }
 0x11f   : > { %v662_v58 = vadd.f32 %v661_v55, %v646_v50 }
 0x120   : > { %v682_v60 = vadd.f32 %v681_v57, %v675_v56 }
 0x121   : > { %663 = vadd.xlane.f32.xlu0 %v662_v58 }
 0x122   : > { %v683_v61 = vadd.f32 %v682_v60, %v676_v59 }
 0x124   : > { %684 = vadd.xlane.f32.xlu1 %v683_v61 }
 0x1ae   : > { %v664_v63 = vpop.xlane.xlu0 %663 }
 0x1af   : > { %v665_v0 = vadd.f32 %v664_v63, %v655_v62 }
 0x1b1   : > { %667 = vst.msk [vmem:[%s1132_s4] sm:$0xff] %vm666_vm12, %v665_v0  ;;  %v685_v2 = vpop.xlane.xlu1 %684 }
 0x1b2   : > { %v686_v3 = vadd.f32 %v685_v2, %v668_v1 }
 0x1b4   : > { %687 = vst.msk [vmem:[%s1133_s5] sm:$0xff] %vm666_vm12, %v686_v3 }
 0x1b5 PF: > { %s16_s22 = sadd.s32 1, %s953_s22   ;;  %s1134_s18 = smov %s941_s19 }
 0x1b6   : > { %p13_p11 = scmp.ge.s32.totalorder %s16_s22, 6   ;;  %s1135_s19 = smov %s1023_s26 }
 0x1b7   : > { %s1136_s20 = smov %s949_s21  ;;  %s1137_s21 = smov %s1139_s23 }
 0x1b8   :  { %15 = sbr.rel (!%p13_p11) target bundleno = 3 (0x3), region = 118 }

// kernel: _lambda_.34
= control target key start
LH: loop header
LB: loop body
LE: loop exit
PB: predicated region body
PF: predicated region fallthrough
CT: control target
= control target key end

     0   :  { %s489_s12 = smov 0   ;;  %s491_s13 = smov 0   ;;  %s528_s0 = inlined_call_operand.vmem [shape: f32[1,8,4096], index: 0, kind: input, shape index: {}]   ;;  %s529_s1 = inlined_call_operand.vmem [shape: f32[1,8,1], index: 1, kind: input, shape index: {}]   ;;  %s530_s2 = inlined_call_operand.vmem [shape: f32[1,8,1], index: 2, kind: input, shape index: {}]   ;;  %s531_s3 = inlined_call_operand.vmem [shape: f32[1,8,4096], index: 3, kind: output, shape index: {}]  }
   0x1   :  { %s493_s14 = smov 0  }
   0x2 LB: > { %s22_s15 = sadd.s32 1, %s462_s13  ;;  %p411_p0 = scmp.ge.s32.totalorder %s466_s14, 1  ;;  %s466_s14 = sphi %s493_s14, %s13_s14   ;;  %s462_s13 = sphi %s491_s13, %s533_s13   ;;  %s458_s12 = sphi %s489_s12, %s532_s12  }
   0x3   : > { %p23_p1 = scmp.ge.s32.totalorder %s22_s15, 4  ;;  %p176_p2 = scmp.lt.s32.totalorder %s466_s14, 5 }
   0x5   : > { %s535_s15 = smov (%p23_p1, %s22_s15), 0  ;;  %p177_p3 = pnand %p411_p0, %p176_p2 }
   0x6   : > { %v252_v0 = vld [vmem:[%s529_s1] sm:$0xff] (!%p177_p3)  ;;  %v468_v1 = vmov (!%p177_p3), 0   ;;  %s412_s20 = sshll.u32 (!%p177_p3), %s458_s12, 3 }
   0x7   : > { %180 = sbr.rel (%p177_p3) target bundleno = 146 (0x92), region = 32  ;;  %443 = vset.pattern.permute.xlu0 (!%p177_p3), %v468_v1  ;;  %v266_v2 = vld [vmem:[%s530_s2] sm:$0xff] (!%p177_p3)  ;;  %p219_p4 = scmp.lt.s32.totalorder (!%p177_p3), %s412_s20, 31 }
   0x8   : > { %255 = vperm.xlu0 (!%p177_p3), %443, %v252_v0  }
   0xc   : > { %269 = vperm.xlu0 (!%p177_p3), %443, %v266_v2  }
   0xe   : > { %s537_s20 = smov (!%p219_p4, %s412_s20), 31 }
   0xf   : > { %s413_s21 = sshll.u32 %s537_s20, 3 }
  0x10   : > { %s224_s24 = scalar_lea.vmem %s528_s0, %s413_s21  ;;  %s242_s27 = scalar_lea.vmem %s531_s3, %s413_s21 }
  0x11   : > { %v244_v3 = vld [vmem:[%s224_s24] sm:$0xff]  ;;  %v245_v4 = vld [vmem:[%s224_s24 + $0x8] sm:$0xff]  ;;  %v246_v6 = vld [vmem:[%s224_s24 + $0x10] sm:$0xff] }
  0x12   : > { %v247_v7 = vld [vmem:[%s224_s24 + $0x18] sm:$0xff]  ;;  %v248_v8 = vld [vmem:[%s224_s24 + $0x20] sm:$0xff]  ;;  %v249_v9 = vld [vmem:[%s224_s24 + $0x28] sm:$0xff] }
  0x13   : > { %v250_v10 = vld [vmem:[%s224_s24 + $0x30] sm:$0xff]  ;;  %v251_v11 = vld [vmem:[%s224_s24 + $0x38] sm:$0xff] }
  0x87   : > { %v256_v5 = vpop.permute.xlu0 %255 }
  0x88   : > { %v258_v12 = vmul.f32 %v256_v5, %v244_v3  ;;  %v259_v13 = vmul.f32 %v256_v5, %v245_v4  ;;  %v260_v14 = vmul.f32 %v256_v5, %v246_v6  ;;  %v261_v15 = vmul.f32 %v256_v5, %v247_v7 }
  0x89   : > { %v262_v17 = vmul.f32 %v256_v5, %v248_v8  ;;  %v263_v18 = vmul.f32 %v256_v5, %v249_v9  ;;  %v264_v19 = vmul.f32 %v256_v5, %v250_v10  ;;  %v265_v20 = vmul.f32 %v256_v5, %v251_v11 }
  0x8b   : > { %v270_v16 = vpop.permute.xlu0 %269 }
  0x8c   : > { %v272_v21 = vadd.f32 %v270_v16, %v258_v12  ;;  %v273_v22 = vadd.f32 %v270_v16, %v259_v13  ;;  %v274_v23 = vadd.f32 %v270_v16, %v260_v14  ;;  %v275_v24 = vadd.f32 %v270_v16, %v261_v15 }
  0x8d   : > { %v276_v25 = vadd.f32 %v270_v16, %v262_v17  ;;  %v277_v26 = vadd.f32 %v270_v16, %v263_v18  ;;  %v278_v27 = vadd.f32 %v270_v16, %v264_v19  ;;  %v279_v28 = vadd.f32 %v270_v16, %v265_v20 }
  0x8e   : > { %280 = vst [vmem:[%s242_s27] sm:$0xff] %v272_v21  ;;  %281 = vst [vmem:[%s242_s27 + $0x8] sm:$0xff] %v273_v22 }
  0x8f   : > { %282 = vst [vmem:[%s242_s27 + $0x10] sm:$0xff] %v274_v23  ;;  %283 = vst [vmem:[%s242_s27 + $0x18] sm:$0xff] %v275_v24 }
  0x90   : > { %284 = vst [vmem:[%s242_s27 + $0x20] sm:$0xff] %v276_v25  ;;  %285 = vst [vmem:[%s242_s27 + $0x28] sm:$0xff] %v277_v26 }
  0x91   : > { %286 = vst [vmem:[%s242_s27 + $0x30] sm:$0xff] %v278_v27  ;;  %287 = vst [vmem:[%s242_s27 + $0x38] sm:$0xff] %v279_v28 }
  0x92 PF: > { %s13_s14 = sadd.s32 1, %s466_s14   ;;  %s532_s12 = smov %s462_s13 }
  0x93   : > { %p10_p5 = scmp.ge.s32.totalorder %s13_s14, 6   ;;  %s533_s13 = smov %s535_s15 }
  0x95   :  { %12 = sbr.rel (!%p10_p5) target bundleno = 2 (0x2), region = 68 }

// kernel: squeeze.35
= control target key start
LH: loop header
LB: loop body
LE: loop exit
PB: predicated region body
PF: predicated region fallthrough
CT: control target
= control target key end

     0   :  { %s37_s8 = smov 116   ;;  %vm7_vm0 = vcmask 31744   ;;  %s38_s9 = smov 120   ;;  %s55_s0 = inlined_call_operand.vmem [shape: f32[16], index: 0, kind: input, shape index: {}]   ;;  %s56_s1 = inlined_call_operand.vmem [shape: f32[4,4], index: 1, kind: output, shape index: {}]  }
   0x1   :  { %v4_v0 = vld [vmem:[%s55_s0] sm:$0x1]  ;;  %s36_s0 = smov 124  }
   0x2   :  { %5 = vst [vmem:[#allocation1] sm:$0x1] %v4_v0 }
   0x9   :  { %v9_v1 = vld [vmem:[#allocation1] sm:$0x1]  }
   0xa   :  { %v21_v2 = vld [vmem:[#allocation1] sm:$0x1]   ;;  %10 = vrot.lane.b32.xlu0 %v9_v1, %s36_s0 }
   0xb   :  { %22 = vrot.lane.b32.xlu1 %v21_v2, %s37_s8  ;;  %v6_v3 = vld [vmem:[#allocation1] sm:$0x1]  }
   0xc   :  { %v15_v4 = vld [vmem:[#allocation1] sm:$0x1]   ;;  %8 = vst.msk [vmem:[#allocation0] sm:$0x1] %vm7_vm0, %v6_v3  }
   0xe   :  { %16 = vrot.lane.b32.xlu0 %v15_v4, %s38_s9 }
  0x7c   :  { %v11_v5 = vpop.permute.xlu0 %10  }
  0x7d   :  { %v23_v6 = vpop.permute.xlu1 %22   ;;  %14 = vst.msk [vmem:[#allocation0 + $0x1] sm:$0x1] %vm7_vm0, %v11_v5  }
  0x7e   :  { %26 = vst.msk [vmem:[#allocation0 + $0x3] sm:$0x1] %vm7_vm0, %v23_v6  }
  0x80   :  { %v17_v7 = vpop.permute.xlu0 %16  }
  0x81   :  { %20 = vst.msk [vmem:[#allocation0 + $0x2] sm:$0x1] %vm7_vm0, %v17_v7  }
  0x88   :  { %v30_v8 = vld [vmem:[#allocation0] sm:$0xf] }
  0x89   :  { %32 = vst [vmem:[%s56_s1] sm:$0xf] %v30_v8 }

// kernel: _lambda_.35
= control target key start
LH: loop header
LB: loop body
LE: loop exit
PB: predicated region body
PF: predicated region fallthrough
CT: control target
= control target key end

     0   :  { %v712_v1 = vmov 0   ;;  %vm374_vm0 = vcmask 719872   ;;  %vm378_vm1 = vcmask 1043456   ;;  %vm22_vm2 = vcmask 7168   ;;  %s992_s0 = inlined_call_operand.vmem [shape: bf16[1,216,512], index: 0, kind: input, shape index: {}]   ;;  %s993_s1 = inlined_call_operand.vmem [shape: bf16[16,216], index: 1, kind: input, shape index: {}]   ;;  %s994_s2 = inlined_call_operand.vmem [shape: f32[16,1], index: 2, kind: input, shape index: {}]   ;;  %s995_s4 = inlined_call_operand.vmem [shape: f32[1,16,1], index: 4, kind: output, shape index: {1}]   ;;  %s996_s3 = inlined_call_operand.vmem [shape: f32[1,16,512], index: 3, kind: output, shape index: {0}]   ;;  %s997_s5 = inlined_call_operand.vmem [shape: f32[1,16,1], index: 5, kind: output, shape index: {2}]  }
   0x1   :  { %v627_v0 = vld [vmem:[%s992_s0 + $0x4] ss:$16 sps:$4 sm:$0xff]   ;;  %626 = vset.pattern.permute.xlu0 %v712_v1  ;;  %v629_v2 = vld [vmem:[%s992_s0 + $0xc] ss:$16 sps:$4 sm:$0xff]   ;;  %v631_v3 = vld [vmem:[%s992_s0] ss:$16 sps:$4 sm:$0xff]  }
   0x2   :  { %391 = vmatprep.subr.bf16.mxu0 %v627_v0  ;;  %v632_v4 = vld [vmem:[%s992_s0 + $0x8] ss:$16 sps:$4 sm:$0xff]   ;;  %434 = vmatprep.subr.bf16.mxu1 %v629_v2  ;;  %v633_v5 = vld [vmem:[%s992_s0 + $0x24] ss:$16 sps:$4 sm:$0xff]   ;;  %v635_v6 = vld [vmem:[%s992_s0 + $0x2c] ss:$16 sps:$4 sm:$0xff]  }
   0x3   :  { %392 = vmatpush1.bf16.msra.mxu0 %v631_v3  ;;  %435 = vmatpush1.bf16.msra.mxu1 %v632_v4  ;;  %v637_v7 = vld [vmem:[%s992_s0 + $0x20] ss:$16 sps:$4 sm:$0xff]   ;;  %v638_v8 = vld [vmem:[%s992_s0 + $0x28] ss:$16 sps:$4 sm:$0xff]   ;;  %v639_v9 = vld [vmem:[%s992_s0 + $0x44] ss:$16 sps:$4 sm:$0xff]  }
   0x4   :  { %393 = vmatprep.subr.bf16.mxu0 %v633_v5  ;;  %436 = vmatprep.subr.bf16.mxu1 %v635_v6  ;;  %v641_v10 = vld [vmem:[%s992_s0 + $0x4c] ss:$16 sps:$4 sm:$0xff]   ;;  %v643_v11 = vld [vmem:[%s992_s0 + $0x40] ss:$16 sps:$4 sm:$0xff]   ;;  %v644_v12 = vld [vmem:[%s992_s0 + $0x48] ss:$16 sps:$4 sm:$0xff]  }
   0x5   :  { %v645_v13 = vld [vmem:[%s992_s0 + $0x64] ss:$16 sps:$4 sm:$0xff]   ;;  %v647_v14 = vld [vmem:[%s992_s0 + $0x6c] ss:$16 sps:$4 sm:$0xff]   ;;  %v649_v15 = vld [vmem:[%s992_s0 + $0x60] ss:$16 sps:$4 sm:$0xff]  }
   0x6   :  { %v650_v16 = vld [vmem:[%s992_s0 + $0x68] ss:$16 sps:$4 sm:$0xff]   ;;  %v651_v17 = vld [vmem:[%s992_s0 + $0x84] ss:$16 sps:$4 sm:$0xff]   ;;  %v653_v18 = vld [vmem:[%s992_s0 + $0x8c] ss:$16 sps:$4 sm:$0xff]  }
   0x7   :  { %394 = vmatpush1.bf16.msra.mxu0 %v637_v7  ;;  %437 = vmatpush1.bf16.msra.mxu1 %v638_v8  ;;  %v655_v19 = vld [vmem:[%s992_s0 + $0x80] ss:$16 sps:$4 sm:$0xff]   ;;  %v656_v20 = vld [vmem:[%s992_s0 + $0x88] ss:$16 sps:$4 sm:$0xff]   ;;  %v657_v21 = vld [vmem:[%s992_s0 + $0xa4] ss:$16 sps:$4 sm:$0xff]  }
   0x8   :  { %395 = vmatprep.subr.bf16.mxu0 %v639_v9  ;;  %438 = vmatprep.subr.bf16.mxu1 %v641_v10  ;;  %v659_v22 = vld [vmem:[%s992_s0 + $0xac] ss:$16 sps:$4 sm:$0xff]   ;;  %v661_v23 = vld [vmem:[%s992_s0 + $0xa0] ss:$16 sps:$4 sm:$0xff]   ;;  %v662_v24 = vld [vmem:[%s992_s0 + $0xa8] ss:$16 sps:$4 sm:$0xff]  }
   0x9   :  { %v663_v25 = vld [vmem:[%s992_s0 + $0xc4] ss:$16 sps:$4 sm:$0xff]   ;;  %v665_v26 = vld [vmem:[%s992_s0 + $0xcc] ss:$16 sps:$4 sm:$0xff]   ;;  %v667_v27 = vld [vmem:[%s992_s0 + $0xc0] ss:$16 sps:$4 sm:$0xff]  }
   0xa   :  { %v668_v28 = vld [vmem:[%s992_s0 + $0xc8] ss:$16 sps:$4 sm:$0xff]   ;;  %v669_v29 = vld [vmem:[%s992_s0 + $0xe4] ss:$16 sps:$4 sm:$0xff]   ;;  %v671_v30 = vld [vmem:[%s992_s0 + $0xec] ss:$16 sps:$4 sm:$0xff]  }
   0xb   :  { %396 = vmatpush1.bf16.msra.mxu0 %v643_v11  ;;  %439 = vmatpush1.bf16.msra.mxu1 %v644_v12  ;;  %v673_v31 = vld [vmem:[%s992_s0 + $0xe0] ss:$16 sps:$4 sm:$0xff]   ;;  %v674_v32 = vld [vmem:[%s992_s0 + $0xe8] ss:$16 sps:$4 sm:$0xff]   ;;  %v675_v33 = vld [vmem:[%s992_s0 + $0x104] ss:$16 sps:$4 sm:$0xff]  }
   0xc   :  { %397 = vmatprep.subr.bf16.mxu0 %v645_v13  ;;  %440 = vmatprep.subr.bf16.mxu1 %v647_v14  ;;  %v677_v34 = vld [vmem:[%s992_s0 + $0x10c] ss:$16 sps:$4 sm:$0xff]   ;;  %v679_v35 = vld [vmem:[%s992_s0 + $0x100] ss:$16 sps:$4 sm:$0xff]   ;;  %v680_v36 = vld [vmem:[%s992_s0 + $0x108] ss:$16 sps:$4 sm:$0xff]  }
   0xd   :  { %v681_v37 = vld [vmem:[%s992_s0 + $0x124] ss:$16 sps:$4 sm:$0xff]   ;;  %v683_v38 = vld [vmem:[%s992_s0 + $0x12c] ss:$16 sps:$4 sm:$0xff]   ;;  %v685_v39 = vld [vmem:[%s992_s0 + $0x120] ss:$16 sps:$4 sm:$0xff]  }
   0xe   :  { %v686_v40 = vld [vmem:[%s992_s0 + $0x128] ss:$16 sps:$4 sm:$0xff]   ;;  %v711_v41 = vld [vmem:[%s993_s1 + $0x4] ss:$8 sps:$4 sm:$0xff]   ;;  %v691_v45 = vld [vmem:[%s992_s0 + $0x140] ss:$16 sps:$4 sm:$0xff]  }
   0xf   :  { %398 = vmatpush1.bf16.msra.mxu0 %v649_v15  ;;  %441 = vmatpush1.bf16.msra.mxu1 %v650_v16  ;;  %v83_v42 = vld [vmem:[%s994_s2] sm:$0xff]  ;;  %v689_v44 = vld [vmem:[%s992_s0 + $0x14c] ss:$16 sps:$4 sm:$0xff]   ;;  %v692_v46 = vld [vmem:[%s992_s0 + $0x148] ss:$16 sps:$4 sm:$0xff]   ;;  %v713_v1 = vmov 0.0  }
  0x10   :  { %399 = vmatprep.subr.bf16.mxu0 %v651_v17  ;;  %442 = vmatprep.subr.bf16.mxu1 %v653_v18  ;;  %v687_v43 = vld [vmem:[%s992_s0 + $0x144] ss:$16 sps:$4 sm:$0xff]   ;;  %v84_v47 = vld [vmem:[%s994_s2 + $0x8] sm:$0xff]  ;;  %v697_v50 = vld [vmem:[%s992_s0 + $0x160] ss:$16 sps:$4 sm:$0xff]   ;;  %23 = vst.msk [vmem:[%s995_s4] sm:$0xff] %vm22_vm2, %v713_v1 }
  0x11   :  { %621 = vmatprep.mubr.msk.bf16.mxu0 %vm374_vm0, %v711_v41  ;;  %623 = vmatprep.mubr.msk.bf16.mxu1 %vm374_vm0, %v711_v41  ;;  %v693_v48 = vld [vmem:[%s992_s0 + $0x164] ss:$16 sps:$4 sm:$0xff]   ;;  %v695_v49 = vld [vmem:[%s992_s0 + $0x16c] ss:$16 sps:$4 sm:$0xff]   ;;  %v698_v51 = vld [vmem:[%s992_s0 + $0x168] ss:$16 sps:$4 sm:$0xff]  }
  0x12   :  { %87 = vperm.xlu0 %626, %v83_v42   ;;  %v699_v52 = vld [vmem:[%s992_s0 + $0x184] ss:$16 sps:$4 sm:$0xff]   ;;  %v701_v53 = vld [vmem:[%s992_s0 + $0x18c] ss:$16 sps:$4 sm:$0xff]   ;;  %v703_v56 = vld [vmem:[%s992_s0 + $0x180] ss:$16 sps:$4 sm:$0xff]  }
  0x13   :  { %400 = vmatpush1.bf16.msra.mxu0 %v655_v19  ;;  %443 = vmatpush1.bf16.msra.mxu1 %v656_v20  ;;  %v81_v54 = vld [vmem:[%s992_s0 + $0x1a0] sm:$0xff]  ;;  %v82_v55 = vld [vmem:[%s992_s0 + $0x1a8] sm:$0xff]  ;;  %24 = vst.msk [vmem:[%s995_s4 + $0x8] sm:$0xff] %vm22_vm2, %v713_v1  ;;  %25 = vst.msk [vmem:[%s997_s5] sm:$0xff] %vm22_vm2, %v713_v1 }
  0x14   :  { %401 = vmatprep.subr.bf16.mxu0 %v657_v21  ;;  %444 = vmatprep.subr.bf16.mxu1 %v659_v22  ;;  %v704_v57 = vld [vmem:[%s992_s0 + $0x188] ss:$16 sps:$4 sm:$0xff]   ;;  %v617_v58 = vcombine.high %v81_v54, %v81_v54  ;;  %v619_v59 = vcombine.high %v82_v55, %v82_v55  ;;  %v616_v60 = vcombine.low %v81_v54, %v81_v54 }
  0x15   :  { %v618_v61 = vcombine.low %v82_v55, %v82_v55  ;;  %v709_v0 = vld [vmem:[%s993_s1] ss:$8 sps:$4 sm:$0xff]   ;;  %26 = vst.msk [vmem:[%s997_s5 + $0x8] sm:$0xff] %vm22_vm2, %v713_v1 }
  0x16   :  { %92 = vperm.xlu0 %626, %v84_v47   ;;  %v380_v62 = vsel %vm378_vm1, %v616_v60, 0 }
  0x17   :  { %402 = vmatpush1.bf16.msra.mxu0 %v661_v23  ;;  %445 = vmatpush1.bf16.msra.mxu1 %v662_v24  ;;  %v386_v63 = vsel %vm378_vm1, %v618_v61, 0 }
  0x18   :  { %403 = vmatprep.subr.bf16.mxu0 %v663_v25  ;;  %446 = vmatprep.subr.bf16.mxu1 %v665_v26 }
  0x1a   :  { %v510_v61 = vld [vmem:[%s995_s4 + $0x8] sm:$0xff] }
  0x1b   :  { %404 = vmatpush1.bf16.msra.mxu0 %v667_v27  ;;  %447 = vmatpush1.bf16.msra.mxu1 %v668_v28 }
  0x1c   :  { %405 = vmatprep.subr.bf16.mxu0 %v669_v29  ;;  %448 = vmatprep.subr.bf16.mxu1 %v671_v30  ;;  %v527_v1 = vld [vmem:[%s997_s5 + $0x8] sm:$0xff] }
  0x1f   :  { %406 = vmatpush1.bf16.msra.mxu0 %v673_v31  ;;  %449 = vmatpush1.bf16.msra.mxu1 %v674_v32 }
  0x20   :  { %407 = vmatprep.subr.bf16.mxu0 %v675_v33  ;;  %450 = vmatprep.subr.bf16.mxu1 %v677_v34 }
  0x23   :  { %408 = vmatpush1.bf16.msra.mxu0 %v679_v35  ;;  %451 = vmatpush1.bf16.msra.mxu1 %v680_v36 }
  0x24   :  { %409 = vmatprep.subr.bf16.mxu0 %v681_v37  ;;  %452 = vmatprep.subr.bf16.mxu1 %v683_v38 }
  0x27   :  { %410 = vmatpush1.bf16.msra.mxu0 %v685_v39  ;;  %453 = vmatpush1.bf16.msra.mxu1 %v686_v40 }
  0x28   :  { %411 = vmatprep.subr.bf16.mxu0 %v687_v43  ;;  %454 = vmatprep.subr.bf16.mxu1 %v689_v44 }
  0x2b   :  { %412 = vmatpush1.bf16.msra.mxu0 %v691_v45  ;;  %455 = vmatpush1.bf16.msra.mxu1 %v692_v46 }
  0x2c   :  { %413 = vmatprep.subr.bf16.mxu0 %v693_v48  ;;  %456 = vmatprep.subr.bf16.mxu1 %v695_v49 }
  0x2f   :  { %414 = vmatpush1.bf16.msra.mxu0 %v697_v50  ;;  %457 = vmatpush1.bf16.msra.mxu1 %v698_v51 }
  0x30   :  { %415 = vmatprep.subr.bf16.mxu0 %v699_v52  ;;  %458 = vmatprep.subr.bf16.mxu1 %v701_v53 }
  0x33   :  { %416 = vmatpush1.bf16.msra.mxu0 %v703_v56  ;;  %459 = vmatpush1.bf16.msra.mxu1 %v704_v57  ;;  %v509_v56 = vld [vmem:[%s995_s4] sm:$0xff] }
  0x34   :  { %620 = vmatprep.subr.msk.bf16.mxu0 %vm378_vm1, %v617_v58  ;;  %622 = vmatprep.subr.msk.bf16.mxu1 %vm378_vm1, %v619_v59  ;;  %v526_v58 = vld [vmem:[%s997_s5] sm:$0xff] }
  0x37   :  { %418 = vmatpush1.bf16.msra.mxu0 %v380_v62  ;;  %461 = vmatpush1.bf16.msra.mxu1 %v386_v63 }
  0x3a   :  { %424 = vmatmul.mubr.bf16.vlgmr.msra.gmra.mrb[0].mxu0 %v709_v0  ;;  %467 = vmatmul.mubr.bf16.vlgmr.msra.gmra.mrb[0].mxu1 %v709_v0 }
  0x91   :  { %v88_v2 = vpop.permute.xlu0 %87 }
  0x95   :  { %v93_v3 = vpop.permute.xlu0 %92 }
 0x10d   :  { %v425_v4 = vpop.f32.mrb[0].mxu0  ;;  %v468_v5 = vpop.f32.mrb[0].mxu1 }
 0x10e   :  { %v426_v6 = vadd.f32 %v425_v4, %v88_v2  ;;  %v469_v7 = vadd.f32 %v468_v5, %v88_v2  ;;  %v427_v8 = vpop.f32.mrb[1].mxu0  ;;  %v470_v9 = vpop.f32.mrb[1].mxu1 }
 0x10f   :  { %v428_v10 = vadd.f32 %v427_v8, %v88_v2  ;;  %v471_v11 = vadd.f32 %v470_v9, %v88_v2  ;;  %v429_v12 = vpop.f32.mrb[2].mxu0  ;;  %v472_v13 = vpop.f32.mrb[2].mxu1 }
 0x110   :  { %vm477_vm3 = vcmp.gt.f32.partialorder %v426_v6, 0.0  ;;  %v485_v14 = vmul.f32 0.1, %v426_v6  ;;  %vm479_vm4 = vcmp.gt.f32.partialorder %v469_v7, 0.0  ;;  %v487_v15 = vmul.f32 0.1, %v469_v7 }
 0x111   :  { %vm478_vm5 = vcmp.gt.f32.partialorder %v428_v10, 0.0  ;;  %v486_v16 = vmul.f32 0.1, %v428_v10  ;;  %v488_v17 = vmul.f32 0.1, %v471_v11  ;;  %v430_v18 = vadd.f32 %v429_v12, %v93_v3  ;;  %v431_v19 = vpop.f32.mrb[3].mxu0 }
 0x112   :  { %v493_v20 = vsel %vm477_vm3, %v426_v6, %v485_v14  ;;  %v473_v21 = vadd.f32 %v472_v13, %v93_v3  ;;  %v432_v22 = vadd.f32 %v431_v19, %v93_v3  ;;  %v474_v23 = vpop.f32.mrb[3].mxu1  ;;  %vm480_vm6 = vcmp.gt.f32.partialorder %v471_v11, 0.0 }
 0x113   :  { %501 = vst [vmem:[%s996_s3] sm:$0xff] %v493_v20  ;;  %v528_v24 = vmul.f32 %v493_v20, %v493_v20  ;;  %v494_v25 = vsel %vm478_vm5, %v428_v10, %v486_v16  ;;  %vm481_vm7 = vcmp.gt.f32.partialorder %v430_v18, 0.0  ;;  %v489_v26 = vmul.f32 0.1, %v430_v18 }
 0x114   :  { %502 = vst [vmem:[%s996_s3 + $0x8] sm:$0xff] %v494_v25  ;;  %v529_v27 = vmul.f32 %v494_v25, %v494_v25  ;;  %vm483_vm8 = vcmp.gt.f32.partialorder %v473_v21, 0.0  ;;  %v491_v28 = vmul.f32 0.1, %v473_v21  ;;  %vm482_vm9 = vcmp.gt.f32.partialorder %v432_v22, 0.0 }
 0x115   :  { %v497_v29 = vsel %vm481_vm7, %v430_v18, %v489_v26  ;;  %v490_v30 = vmul.f32 0.1, %v432_v22  ;;  %v475_v31 = vadd.f32 %v474_v23, %v93_v3  ;;  %v495_v32 = vsel %vm479_vm4, %v469_v7, %v487_v15 }
 0x116   :  { %505 = vst [vmem:[%s996_s3 + $0x20] sm:$0xff] %v497_v29  ;;  %v532_v33 = vmul.f32 %v497_v29, %v497_v29  ;;  %v499_v34 = vsel %vm483_vm8, %v473_v21, %v491_v28  ;;  %v496_v35 = vsel %vm480_vm6, %v471_v11, %v488_v17  ;;  %503 = vst [vmem:[%s996_s3 + $0x10] sm:$0xff] %v495_v32 }
 0x117   :  { %v511_v36 = vadd.f32 %v494_v25, %v493_v20  ;;  %507 = vst [vmem:[%s996_s3 + $0x30] sm:$0xff] %v499_v34  ;;  %v498_v37 = vsel %vm482_vm9, %v432_v22, %v490_v30  ;;  %vm484_vm10 = vcmp.gt.f32.partialorder %v475_v31, 0.0  ;;  %v492_v38 = vmul.f32 0.1, %v475_v31  ;;  %504 = vst [vmem:[%s996_s3 + $0x18] sm:$0xff] %v496_v35 }
 0x118   :  { %506 = vst [vmem:[%s996_s3 + $0x28] sm:$0xff] %v498_v37  ;;  %v533_v39 = vmul.f32 %v498_v37, %v498_v37  ;;  %v530_v41 = vmul.f32 %v495_v32, %v495_v32  ;;  %v536_v42 = vadd.f32 %v529_v27, %v528_v24  ;;  %v531_v43 = vmul.f32 %v496_v35, %v496_v35 }
 0x119   :  { %v512_v40 = vadd.f32 %v511_v36, %v495_v32  ;;  %v500_v44 = vsel %vm484_vm10, %v475_v31, %v492_v38  ;;  %v516_v45 = vadd.f32 %v498_v37, %v497_v29  ;;  %v534_v48 = vmul.f32 %v499_v34, %v499_v34 }
 0x11a   :  { %v537_v47 = vadd.f32 %v536_v42, %v530_v41  ;;  %508 = vst [vmem:[%s996_s3 + $0x38] sm:$0xff] %v500_v44  ;;  %v541_v49 = vadd.f32 %v533_v39, %v532_v33  ;;  %v535_v52 = vmul.f32 %v500_v44, %v500_v44 }
 0x11b   :  { %v513_v46 = vadd.f32 %v512_v40, %v496_v35  ;;  %v517_v50 = vadd.f32 %v516_v45, %v499_v34 }
 0x11c   :  { %v538_v51 = vadd.f32 %v537_v47, %v531_v43  ;;  %v542_v53 = vadd.f32 %v541_v49, %v534_v48 }
 0x11d   :  { %514 = vadd.xlane.f32.xlu1 %v513_v46  ;;  %v518_v54 = vadd.f32 %v517_v50, %v500_v44 }
 0x11e   :  { %539 = vadd.xlane.f32.xlu0 %v538_v51  ;;  %v543_v55 = vadd.f32 %v542_v53, %v535_v52 }
 0x121   :  { %519 = vadd.xlane.f32.xlu1 %v518_v54 }
 0x125   :  { %544 = vadd.xlane.f32.xlu1 %v543_v55 }
 0x1aa   :  { %v515_v57 = vpop.xlane.xlu1 %514 }
 0x1ab   :  { %v521_v59 = vadd.f32 %v515_v57, %v509_v56  ;;  %v540_v60 = vpop.xlane.xlu0 %539 }
 0x1ac   :  { %v546_v62 = vadd.f32 %v540_v60, %v526_v58 }
 0x1ad   :  { %524 = vst.msk [vmem:[%s995_s4] sm:$0xff] %vm22_vm2, %v521_v59 }
 0x1ae   :  { %v520_v63 = vpop.xlane.xlu1 %519  ;;  %548 = vst.msk [vmem:[%s997_s5] sm:$0xff] %vm22_vm2, %v546_v62 }
 0x1af   :  { %v522_v0 = vadd.f32 %v520_v63, %v510_v61 }
 0x1b1   :  { %525 = vst.msk [vmem:[%s995_s4 + $0x8] sm:$0xff] %vm22_vm2, %v522_v0 }
 0x1b2   :  { %v545_v2 = vpop.xlane.xlu1 %544 }
 0x1b3   :  { %v547_v3 = vadd.f32 %v545_v2, %v527_v1 }
 0x1b5   :  { %549 = vst.msk [vmem:[%s997_s5 + $0x8] sm:$0xff] %vm22_vm2, %v547_v3 }

// kernel: _lambda_.36
= control target key start
LH: loop header
LB: loop body
LE: loop exit
PB: predicated region body
PF: predicated region fallthrough
CT: control target
= control target key end

     0   :  { %v77_v0 = vmov 0   ;;  %s158_s2 = inlined_call_operand.vmem [shape: f32[1,16,1], index: 2, kind: input, shape index: {}]   ;;  %s159_s1 = inlined_call_operand.vmem [shape: f32[1,16,1], index: 1, kind: input, shape index: {}]   ;;  %s160_s0 = inlined_call_operand.vmem [shape: f32[1,16,512], index: 0, kind: input, shape index: {}]   ;;  %s161_s3 = inlined_call_operand.vmem [shape: f32[1,16,512], index: 3, kind: output, shape index: {}]  }
   0x1   :  { %76 = vset.pattern.permute.xlu1 %v77_v0  ;;  %75 = vset.pattern.permute.xlu0 %v77_v0  ;;  %v42_v1 = vld [vmem:[%s158_s2] sm:$0xff]  ;;  %v43_v3 = vld [vmem:[%s158_s2 + $0x8] sm:$0xff]  ;;  %v16_v7 = vld [vmem:[%s160_s0 + $0x10] sm:$0xff] }
   0x2   :  { %v22_v2 = vld [vmem:[%s159_s1] sm:$0xff]  ;;  %46 = vperm.xlu1 %76, %v42_v1   ;;  %v23_v4 = vld [vmem:[%s159_s1 + $0x8] sm:$0xff]  ;;  %v17_v8 = vld [vmem:[%s160_s0 + $0x18] sm:$0xff] }
   0x3   :  { %26 = vperm.xlu0 %75, %v22_v2   ;;  %v14_v5 = vld [vmem:[%s160_s0] sm:$0xff]  ;;  %v15_v6 = vld [vmem:[%s160_s0 + $0x8] sm:$0xff]  ;;  %v20_v17 = vld [vmem:[%s160_s0 + $0x30] sm:$0xff] }
   0x4   :  { %v18_v15 = vld [vmem:[%s160_s0 + $0x20] sm:$0xff]  ;;  %v19_v16 = vld [vmem:[%s160_s0 + $0x28] sm:$0xff]  ;;  %v21_v18 = vld [vmem:[%s160_s0 + $0x38] sm:$0xff] }
   0x6   :  { %51 = vperm.xlu1 %76, %v43_v3  }
   0x7   :  { %31 = vperm.xlu0 %75, %v23_v4  }
  0x81   :  { %v47_v9 = vpop.permute.xlu1 %46 }
  0x82   :  { %v27_v10 = vpop.permute.xlu0 %26 }
  0x83   :  { %v34_v11 = vmul.f32 %v27_v10, %v14_v5  ;;  %v35_v12 = vmul.f32 %v27_v10, %v15_v6  ;;  %v36_v13 = vmul.f32 %v27_v10, %v16_v7  ;;  %v37_v14 = vmul.f32 %v27_v10, %v17_v8 }
  0x85   :  { %v54_v19 = vadd.f32 %v47_v9, %v34_v11  ;;  %v55_v20 = vadd.f32 %v47_v9, %v35_v12  ;;  %v56_v21 = vadd.f32 %v47_v9, %v36_v13  ;;  %v57_v22 = vadd.f32 %v47_v9, %v37_v14  ;;  %v52_v28 = vpop.permute.xlu1 %51 }
  0x86   :  { %v32_v23 = vpop.permute.xlu0 %31 }
  0x87   :  { %62 = vst [vmem:[%s161_s3] sm:$0xff] %v54_v19  ;;  %63 = vst [vmem:[%s161_s3 + $0x8] sm:$0xff] %v55_v20  ;;  %v38_v24 = vmul.f32 %v32_v23, %v18_v15  ;;  %v39_v25 = vmul.f32 %v32_v23, %v19_v16  ;;  %v40_v26 = vmul.f32 %v32_v23, %v20_v17 }
  0x88   :  { %64 = vst [vmem:[%s161_s3 + $0x10] sm:$0xff] %v56_v21  ;;  %65 = vst [vmem:[%s161_s3 + $0x18] sm:$0xff] %v57_v22  ;;  %v41_v27 = vmul.f32 %v32_v23, %v21_v18 }
  0x89   :  { %v58_v29 = vadd.f32 %v52_v28, %v38_v24  ;;  %v59_v30 = vadd.f32 %v52_v28, %v39_v25  ;;  %v60_v31 = vadd.f32 %v52_v28, %v40_v26 }
  0x8a   :  { %v61_v32 = vadd.f32 %v52_v28, %v41_v27 }
  0x8b   :  { %66 = vst [vmem:[%s161_s3 + $0x20] sm:$0xff] %v58_v29  ;;  %67 = vst [vmem:[%s161_s3 + $0x28] sm:$0xff] %v59_v30 }
  0x8c   :  { %68 = vst [vmem:[%s161_s3 + $0x30] sm:$0xff] %v60_v31  ;;  %69 = vst [vmem:[%s161_s3 + $0x38] sm:$0xff] %v61_v32 }

// kernel: _lambda_.37
= control target key start
LH: loop header
LB: loop body
LE: loop exit
PB: predicated region body
PF: predicated region fallthrough
CT: control target
= control target key end

     0   :  { %v1272_v1 = vmov 0   ;;  %vm710_vm0 = vcmask 392192   ;;  %vm22_vm1 = vcmask 7168   ;;  %s1720_s0 = inlined_call_operand.vmem [shape: bf16[1,432,512], index: 0, kind: input, shape index: {}]   ;;  %s1721_s1 = inlined_call_operand.vmem [shape: bf16[16,432], index: 1, kind: input, shape index: {}]   ;;  %s1722_s2 = inlined_call_operand.vmem [shape: f32[16,1], index: 2, kind: input, shape index: {}]   ;;  %s1723_s4 = inlined_call_operand.vmem [shape: f32[1,16,1], index: 4, kind: output, shape index: {1}]   ;;  %s1724_s3 = inlined_call_operand.vmem [shape: f32[1,16,512], index: 3, kind: output, shape index: {0}]   ;;  %s1725_s5 = inlined_call_operand.vmem [shape: f32[1,16,1], index: 5, kind: output, shape index: {2}]  }
   0x1   :  { %v1104_v0 = vld [vmem:[%s1720_s0 + $0x4] ss:$16 sps:$4 sm:$0xff]   ;;  %1103 = vset.pattern.permute.xlu0 %v1272_v1  ;;  %v1106_v2 = vld [vmem:[%s1720_s0 + $0xc] ss:$16 sps:$4 sm:$0xff]   ;;  %v1108_v3 = vld [vmem:[%s1720_s0] ss:$16 sps:$4 sm:$0xff]  }
   0x2   :  { %714 = vmatprep.subr.bf16.mxu0 %v1104_v0  ;;  %v1109_v4 = vld [vmem:[%s1720_s0 + $0x8] ss:$16 sps:$4 sm:$0xff]   ;;  %800 = vmatprep.subr.bf16.mxu1 %v1106_v2  ;;  %v1110_v5 = vld [vmem:[%s1720_s0 + $0x24] ss:$16 sps:$4 sm:$0xff]   ;;  %v1112_v6 = vld [vmem:[%s1720_s0 + $0x2c] ss:$16 sps:$4 sm:$0xff]  }
   0x3   :  { %715 = vmatpush1.bf16.msra.mxu0 %v1108_v3  ;;  %801 = vmatpush1.bf16.msra.mxu1 %v1109_v4  ;;  %v1114_v7 = vld [vmem:[%s1720_s0 + $0x20] ss:$16 sps:$4 sm:$0xff]   ;;  %v1115_v8 = vld [vmem:[%s1720_s0 + $0x28] ss:$16 sps:$4 sm:$0xff]   ;;  %v1116_v9 = vld [vmem:[%s1720_s0 + $0x44] ss:$16 sps:$4 sm:$0xff]  }
   0x4   :  { %716 = vmatprep.subr.bf16.mxu0 %v1110_v5  ;;  %802 = vmatprep.subr.bf16.mxu1 %v1112_v6  ;;  %v1118_v10 = vld [vmem:[%s1720_s0 + $0x4c] ss:$16 sps:$4 sm:$0xff]   ;;  %v1120_v11 = vld [vmem:[%s1720_s0 + $0x40] ss:$16 sps:$4 sm:$0xff]   ;;  %v1121_v12 = vld [vmem:[%s1720_s0 + $0x48] ss:$16 sps:$4 sm:$0xff]  }
   0x5   :  { %v1122_v13 = vld [vmem:[%s1720_s0 + $0x64] ss:$16 sps:$4 sm:$0xff]   ;;  %v1124_v14 = vld [vmem:[%s1720_s0 + $0x6c] ss:$16 sps:$4 sm:$0xff]   ;;  %v1126_v15 = vld [vmem:[%s1720_s0 + $0x60] ss:$16 sps:$4 sm:$0xff]  }
   0x6   :  { %v1127_v16 = vld [vmem:[%s1720_s0 + $0x68] ss:$16 sps:$4 sm:$0xff]   ;;  %v1128_v17 = vld [vmem:[%s1720_s0 + $0x84] ss:$16 sps:$4 sm:$0xff]   ;;  %v1130_v18 = vld [vmem:[%s1720_s0 + $0x8c] ss:$16 sps:$4 sm:$0xff]  }
   0x7   :  { %717 = vmatpush1.bf16.msra.mxu0 %v1114_v7  ;;  %803 = vmatpush1.bf16.msra.mxu1 %v1115_v8  ;;  %v1132_v19 = vld [vmem:[%s1720_s0 + $0x80] ss:$16 sps:$4 sm:$0xff]   ;;  %v1133_v20 = vld [vmem:[%s1720_s0 + $0x88] ss:$16 sps:$4 sm:$0xff]   ;;  %v1134_v21 = vld [vmem:[%s1720_s0 + $0xa4] ss:$16 sps:$4 sm:$0xff]  }
   0x8   :  { %718 = vmatprep.subr.bf16.mxu0 %v1116_v9  ;;  %804 = vmatprep.subr.bf16.mxu1 %v1118_v10  ;;  %v1136_v22 = vld [vmem:[%s1720_s0 + $0xac] ss:$16 sps:$4 sm:$0xff]   ;;  %v1138_v23 = vld [vmem:[%s1720_s0 + $0xa0] ss:$16 sps:$4 sm:$0xff]   ;;  %v1139_v24 = vld [vmem:[%s1720_s0 + $0xa8] ss:$16 sps:$4 sm:$0xff]  }
   0x9   :  { %v1140_v25 = vld [vmem:[%s1720_s0 + $0xc4] ss:$16 sps:$4 sm:$0xff]   ;;  %v1142_v26 = vld [vmem:[%s1720_s0 + $0xcc] ss:$16 sps:$4 sm:$0xff]   ;;  %v1144_v27 = vld [vmem:[%s1720_s0 + $0xc0] ss:$16 sps:$4 sm:$0xff]  }
   0xa   :  { %v1145_v28 = vld [vmem:[%s1720_s0 + $0xc8] ss:$16 sps:$4 sm:$0xff]   ;;  %v1146_v29 = vld [vmem:[%s1720_s0 + $0xe4] ss:$16 sps:$4 sm:$0xff]   ;;  %v1148_v30 = vld [vmem:[%s1720_s0 + $0xec] ss:$16 sps:$4 sm:$0xff]  }
   0xb   :  { %719 = vmatpush1.bf16.msra.mxu0 %v1120_v11  ;;  %805 = vmatpush1.bf16.msra.mxu1 %v1121_v12  ;;  %v1150_v31 = vld [vmem:[%s1720_s0 + $0xe0] ss:$16 sps:$4 sm:$0xff]   ;;  %v1151_v32 = vld [vmem:[%s1720_s0 + $0xe8] ss:$16 sps:$4 sm:$0xff]   ;;  %v1152_v33 = vld [vmem:[%s1720_s0 + $0x104] ss:$16 sps:$4 sm:$0xff]  }
   0xc   :  { %720 = vmatprep.subr.bf16.mxu0 %v1122_v13  ;;  %806 = vmatprep.subr.bf16.mxu1 %v1124_v14  ;;  %v1154_v34 = vld [vmem:[%s1720_s0 + $0x10c] ss:$16 sps:$4 sm:$0xff]   ;;  %v1156_v35 = vld [vmem:[%s1720_s0 + $0x100] ss:$16 sps:$4 sm:$0xff]   ;;  %v1157_v36 = vld [vmem:[%s1720_s0 + $0x108] ss:$16 sps:$4 sm:$0xff]  }
   0xd   :  { %v1158_v37 = vld [vmem:[%s1720_s0 + $0x124] ss:$16 sps:$4 sm:$0xff]   ;;  %v1160_v38 = vld [vmem:[%s1720_s0 + $0x12c] ss:$16 sps:$4 sm:$0xff]   ;;  %v1162_v39 = vld [vmem:[%s1720_s0 + $0x120] ss:$16 sps:$4 sm:$0xff]  }
   0xe   :  { %v1163_v40 = vld [vmem:[%s1720_s0 + $0x128] ss:$16 sps:$4 sm:$0xff]   ;;  %v1164_v41 = vld [vmem:[%s1720_s0 + $0x144] ss:$16 sps:$4 sm:$0xff]   ;;  %v1166_v42 = vld [vmem:[%s1720_s0 + $0x14c] ss:$16 sps:$4 sm:$0xff]  }
   0xf   :  { %721 = vmatpush1.bf16.msra.mxu0 %v1126_v15  ;;  %807 = vmatpush1.bf16.msra.mxu1 %v1127_v16  ;;  %v1168_v43 = vld [vmem:[%s1720_s0 + $0x140] ss:$16 sps:$4 sm:$0xff]   ;;  %v1169_v44 = vld [vmem:[%s1720_s0 + $0x148] ss:$16 sps:$4 sm:$0xff]   ;;  %v1170_v45 = vld [vmem:[%s1720_s0 + $0x164] ss:$16 sps:$4 sm:$0xff]  }
  0x10   :  { %722 = vmatprep.subr.bf16.mxu0 %v1128_v17  ;;  %808 = vmatprep.subr.bf16.mxu1 %v1130_v18  ;;  %v1172_v46 = vld [vmem:[%s1720_s0 + $0x16c] ss:$16 sps:$4 sm:$0xff]   ;;  %v1174_v47 = vld [vmem:[%s1720_s0 + $0x160] ss:$16 sps:$4 sm:$0xff]   ;;  %v1175_v48 = vld [vmem:[%s1720_s0 + $0x168] ss:$16 sps:$4 sm:$0xff]  }
  0x11   :  { %v1202_v49 = vld [vmem:[%s1721_s1 + $0x4] ss:$16 sps:$4 sm:$0xff]   ;;  %v1178_v51 = vld [vmem:[%s1720_s0 + $0x18c] ss:$16 sps:$4 sm:$0xff]   ;;  %v1180_v52 = vld [vmem:[%s1720_s0 + $0x180] ss:$16 sps:$4 sm:$0xff]  }
  0x12   :  { %v1176_v50 = vld [vmem:[%s1720_s0 + $0x184] ss:$16 sps:$4 sm:$0xff]   ;;  %746 = vmatprep.mubr.bf16.mxu0 %v1202_v49  ;;  %832 = vmatprep.mubr.bf16.mxu1 %v1202_v49  ;;  %v1181_v53 = vld [vmem:[%s1720_s0 + $0x188] ss:$16 sps:$4 sm:$0xff]   ;;  %v1184_v55 = vld [vmem:[%s1720_s0 + $0x1ac] ss:$16 sps:$4 sm:$0xff]  }
  0x13   :  { %723 = vmatpush1.bf16.msra.mxu0 %v1132_v19  ;;  %809 = vmatpush1.bf16.msra.mxu1 %v1133_v20  ;;  %v1182_v54 = vld [vmem:[%s1720_s0 + $0x1a4] ss:$16 sps:$4 sm:$0xff]   ;;  %v1186_v56 = vld [vmem:[%s1720_s0 + $0x1a0] ss:$16 sps:$4 sm:$0xff]   ;;  %v1187_v57 = vld [vmem:[%s1720_s0 + $0x1a8] ss:$16 sps:$4 sm:$0xff]  }
  0x14   :  { %724 = vmatprep.subr.bf16.mxu0 %v1134_v21  ;;  %810 = vmatprep.subr.bf16.mxu1 %v1136_v22  ;;  %v1188_v58 = vld [vmem:[%s1720_s0 + $0x1c4] ss:$16 sps:$4 sm:$0xff]   ;;  %v1190_v59 = vld [vmem:[%s1720_s0 + $0x1cc] ss:$16 sps:$4 sm:$0xff]   ;;  %v1192_v60 = vld [vmem:[%s1720_s0 + $0x1c0] ss:$16 sps:$4 sm:$0xff]  }
  0x15   :  { %v1193_v61 = vld [vmem:[%s1720_s0 + $0x1c8] ss:$16 sps:$4 sm:$0xff]   ;;  %v1194_v62 = vld [vmem:[%s1720_s0 + $0x1e4] ss:$16 sps:$4 sm:$0xff]   ;;  %v1196_v63 = vld [vmem:[%s1720_s0 + $0x1ec] ss:$16 sps:$4 sm:$0xff]  }
  0x16   :  { %v1198_v0 = vld [vmem:[%s1720_s0 + $0x1e0] ss:$16 sps:$4 sm:$0xff]   ;;  %v1199_v1 = vld [vmem:[%s1720_s0 + $0x1e8] ss:$16 sps:$4 sm:$0xff]   ;;  %v1205_v2 = vld [vmem:[%s1720_s0 + $0x204] ss:$16 sps:$4 sm:$0xff]  }
  0x17   :  { %725 = vmatpush1.bf16.msra.mxu0 %v1138_v23  ;;  %811 = vmatpush1.bf16.msra.mxu1 %v1139_v24  ;;  %v1208_v3 = vld [vmem:[%s1720_s0 + $0x20c] ss:$16 sps:$4 sm:$0xff]   ;;  %v1200_v4 = vld [vmem:[%s1721_s1] ss:$16 sps:$4 sm:$0xff]   ;;  %v1206_v6 = vld [vmem:[%s1720_s0 + $0x208] ss:$16 sps:$4 sm:$0xff]  }
  0x18   :  { %726 = vmatprep.subr.bf16.mxu0 %v1140_v25  ;;  %812 = vmatprep.subr.bf16.mxu1 %v1142_v26  ;;  %v1203_v5 = vld [vmem:[%s1720_s0 + $0x200] ss:$16 sps:$4 sm:$0xff]   ;;  %v1211_v7 = vld [vmem:[%s1720_s0 + $0x224] ss:$16 sps:$4 sm:$0xff]   ;;  %v1214_v8 = vld [vmem:[%s1720_s0 + $0x22c] ss:$16 sps:$4 sm:$0xff]  }
  0x19   :  { %v1209_v9 = vld [vmem:[%s1720_s0 + $0x220] ss:$16 sps:$4 sm:$0xff]   ;;  %v1212_v10 = vld [vmem:[%s1720_s0 + $0x228] ss:$16 sps:$4 sm:$0xff]   ;;  %v1217_v11 = vld [vmem:[%s1720_s0 + $0x244] ss:$16 sps:$4 sm:$0xff]  }
  0x1a   :  { %v1220_v12 = vld [vmem:[%s1720_s0 + $0x24c] ss:$16 sps:$4 sm:$0xff]   ;;  %v1215_v13 = vld [vmem:[%s1720_s0 + $0x240] ss:$16 sps:$4 sm:$0xff]   ;;  %v1218_v14 = vld [vmem:[%s1720_s0 + $0x248] ss:$16 sps:$4 sm:$0xff]  }
  0x1b   :  { %727 = vmatpush1.bf16.msra.mxu0 %v1144_v27  ;;  %813 = vmatpush1.bf16.msra.mxu1 %v1145_v28  ;;  %v1223_v15 = vld [vmem:[%s1720_s0 + $0x264] ss:$16 sps:$4 sm:$0xff]   ;;  %v1226_v16 = vld [vmem:[%s1720_s0 + $0x26c] ss:$16 sps:$4 sm:$0xff]   ;;  %v1221_v19 = vld [vmem:[%s1720_s0 + $0x260] ss:$16 sps:$4 sm:$0xff]  }
  0x1c   :  { %728 = vmatprep.subr.bf16.mxu0 %v1146_v29  ;;  %814 = vmatprep.subr.bf16.mxu1 %v1148_v30  ;;  %v1269_v17 = vld [vmem:[%s1721_s1 + $0xc] ss:$16 sps:$4 sm:$0xff]   ;;  %v139_v18 = vld [vmem:[%s1722_s2] sm:$0xff]  ;;  %v1224_v20 = vld [vmem:[%s1720_s0 + $0x268] ss:$16 sps:$4 sm:$0xff]  }
  0x1d   :  { %143 = vperm.xlu0 %1103, %v139_v18   ;;  %v140_v21 = vld [vmem:[%s1722_s2 + $0x8] sm:$0xff]  ;;  %v1229_v22 = vld [vmem:[%s1720_s0 + $0x284] ss:$16 sps:$4 sm:$0xff]   ;;  %v1227_v24 = vld [vmem:[%s1720_s0 + $0x280] ss:$16 sps:$4 sm:$0xff]  }
  0x1e   :  { %v1232_v23 = vld [vmem:[%s1720_s0 + $0x28c] ss:$16 sps:$4 sm:$0xff]   ;;  %v1230_v25 = vld [vmem:[%s1720_s0 + $0x288] ss:$16 sps:$4 sm:$0xff]   ;;  %v1235_v26 = vld [vmem:[%s1720_s0 + $0x2a4] ss:$16 sps:$4 sm:$0xff]  }
  0x1f   :  { %729 = vmatpush1.bf16.msra.mxu0 %v1150_v31  ;;  %815 = vmatpush1.bf16.msra.mxu1 %v1151_v32  ;;  %v1238_v27 = vld [vmem:[%s1720_s0 + $0x2ac] ss:$16 sps:$4 sm:$0xff]   ;;  %v1233_v28 = vld [vmem:[%s1720_s0 + $0x2a0] ss:$16 sps:$4 sm:$0xff]   ;;  %v1236_v29 = vld [vmem:[%s1720_s0 + $0x2a8] ss:$16 sps:$4 sm:$0xff]  }
  0x20   :  { %730 = vmatprep.subr.bf16.mxu0 %v1152_v33  ;;  %816 = vmatprep.subr.bf16.mxu1 %v1154_v34  ;;  %v1241_v30 = vld [vmem:[%s1720_s0 + $0x2c4] ss:$16 sps:$4 sm:$0xff]   ;;  %v1244_v31 = vld [vmem:[%s1720_s0 + $0x2cc] ss:$16 sps:$4 sm:$0xff]   ;;  %v1239_v32 = vld [vmem:[%s1720_s0 + $0x2c0] ss:$16 sps:$4 sm:$0xff]  }
  0x21   :  { %148 = vperm.xlu0 %1103, %v140_v21   ;;  %v1242_v33 = vld [vmem:[%s1720_s0 + $0x2c8] ss:$16 sps:$4 sm:$0xff]   ;;  %v1247_v34 = vld [vmem:[%s1720_s0 + $0x2e4] ss:$16 sps:$4 sm:$0xff]  }
  0x22   :  { %v1266_v49 = vld [vmem:[%s1720_s0 + $0x348] ss:$16 sps:$4 sm:$0xff]  }
  0x23   :  { %731 = vmatpush1.bf16.msra.mxu0 %v1156_v35  ;;  %817 = vmatpush1.bf16.msra.mxu1 %v1157_v36  ;;  %v1250_v35 = vld [vmem:[%s1720_s0 + $0x2ec] ss:$16 sps:$4 sm:$0xff]   ;;  %v1245_v36 = vld [vmem:[%s1720_s0 + $0x2e0] ss:$16 sps:$4 sm:$0xff]  }
  0x24   :  { %732 = vmatprep.subr.bf16.mxu0 %v1158_v37  ;;  %818 = vmatprep.subr.bf16.mxu1 %v1160_v38  ;;  %v1248_v37 = vld [vmem:[%s1720_s0 + $0x2e8] ss:$16 sps:$4 sm:$0xff]   ;;  %v1253_v38 = vld [vmem:[%s1720_s0 + $0x304] ss:$16 sps:$4 sm:$0xff]  }
  0x27   :  { %733 = vmatpush1.bf16.msra.mxu0 %v1162_v39  ;;  %819 = vmatpush1.bf16.msra.mxu1 %v1163_v40  ;;  %v1256_v39 = vld [vmem:[%s1720_s0 + $0x30c] ss:$16 sps:$4 sm:$0xff]   ;;  %v1251_v40 = vld [vmem:[%s1720_s0 + $0x300] ss:$16 sps:$4 sm:$0xff]  }
  0x28   :  { %734 = vmatprep.subr.bf16.mxu0 %v1164_v41  ;;  %820 = vmatprep.subr.bf16.mxu1 %v1166_v42  ;;  %v1254_v41 = vld [vmem:[%s1720_s0 + $0x308] ss:$16 sps:$4 sm:$0xff]   ;;  %v1259_v42 = vld [vmem:[%s1720_s0 + $0x324] ss:$16 sps:$4 sm:$0xff]  }
  0x2b   :  { %735 = vmatpush1.bf16.msra.mxu0 %v1168_v43  ;;  %821 = vmatpush1.bf16.msra.mxu1 %v1169_v44  ;;  %v1262_v43 = vld [vmem:[%s1720_s0 + $0x32c] ss:$16 sps:$4 sm:$0xff]   ;;  %v1257_v44 = vld [vmem:[%s1720_s0 + $0x320] ss:$16 sps:$4 sm:$0xff]  }
  0x2c   :  { %736 = vmatprep.subr.bf16.mxu0 %v1170_v45  ;;  %822 = vmatprep.subr.bf16.mxu1 %v1172_v46  ;;  %v1260_v45 = vld [vmem:[%s1720_s0 + $0x328] ss:$16 sps:$4 sm:$0xff]   ;;  %v1265_v46 = vld [vmem:[%s1720_s0 + $0x344] ss:$16 sps:$4 sm:$0xff]  }
  0x2f   :  { %737 = vmatpush1.bf16.msra.mxu0 %v1174_v47  ;;  %823 = vmatpush1.bf16.msra.mxu1 %v1175_v48  ;;  %v1268_v47 = vld [vmem:[%s1720_s0 + $0x34c] ss:$16 sps:$4 sm:$0xff]   ;;  %v1263_v48 = vld [vmem:[%s1720_s0 + $0x340] ss:$16 sps:$4 sm:$0xff]  }
  0x30   :  { %738 = vmatprep.subr.bf16.mxu0 %v1176_v50  ;;  %824 = vmatprep.subr.bf16.mxu1 %v1178_v51  ;;  %v1271_v50 = vld [vmem:[%s1721_s1 + $0x8] ss:$16 sps:$4 sm:$0xff]   ;;  %v1273_v51 = vmov 0.0  }
  0x31   :  { %23 = vst.msk [vmem:[%s1723_s4] sm:$0xff] %vm22_vm1, %v1273_v51  ;;  %24 = vst.msk [vmem:[%s1723_s4 + $0x8] sm:$0xff] %vm22_vm1, %v1273_v51 }
  0x32   :  { %25 = vst.msk [vmem:[%s1725_s5] sm:$0xff] %vm22_vm1, %v1273_v51  ;;  %26 = vst.msk [vmem:[%s1725_s5 + $0x8] sm:$0xff] %vm22_vm1, %v1273_v51 }
  0x33   :  { %739 = vmatpush1.bf16.msra.mxu0 %v1180_v52  ;;  %825 = vmatpush1.bf16.msra.mxu1 %v1181_v53 }
  0x34   :  { %740 = vmatprep.subr.bf16.mxu0 %v1182_v54  ;;  %826 = vmatprep.subr.bf16.mxu1 %v1184_v55 }
  0x37   :  { %741 = vmatpush1.bf16.msra.mxu0 %v1186_v56  ;;  %827 = vmatpush1.bf16.msra.mxu1 %v1187_v57 }
  0x38   :  { %742 = vmatprep.subr.bf16.mxu0 %v1188_v58  ;;  %828 = vmatprep.subr.bf16.mxu1 %v1190_v59 }
  0x39   :  { %v936_v51 = vld [vmem:[%s1725_s5 + $0x8] sm:$0xff] }
  0x3b   :  { %743 = vmatpush1.bf16.msra.mxu0 %v1192_v60  ;;  %829 = vmatpush1.bf16.msra.mxu1 %v1193_v61 }
  0x3c   :  { %744 = vmatprep.subr.bf16.mxu0 %v1194_v62  ;;  %830 = vmatprep.subr.bf16.mxu1 %v1196_v63 }
  0x3f   :  { %745 = vmatpush1.bf16.msra.mxu0 %v1198_v0  ;;  %831 = vmatpush1.bf16.msra.mxu1 %v1199_v1 }
  0x40   :  { %757 = vmatprep.subr.bf16.mxu0 %v1205_v2  ;;  %843 = vmatprep.subr.bf16.mxu1 %v1208_v3 }
  0x42   :  { %747 = vmatmul.mubr.bf16.vlgmr.msra.gmra.mrb[0].mxu0 %v1200_v4  ;;  %833 = vmatmul.mubr.bf16.vlgmr.msra.gmra.mrb[0].mxu1 %v1200_v4 }
  0x43   :  { %758 = vmatpush1.bf16.msra.mxu0 %v1203_v5  ;;  %844 = vmatpush1.bf16.msra.mxu1 %v1206_v6 }
  0x44   :  { %759 = vmatprep.subr.bf16.mxu0 %v1211_v7  ;;  %845 = vmatprep.subr.bf16.mxu1 %v1214_v8 }
  0x45   :  { %1083 = vmatprep.mubr.msk.bf16.mxu0 %vm710_vm0, %v1269_v17  ;;  %1084 = vmatprep.mubr.msk.bf16.mxu1 %vm710_vm0, %v1269_v17 }
  0x47   :  { %760 = vmatpush1.bf16.msra.mxu0 %v1209_v9  ;;  %846 = vmatpush1.bf16.msra.mxu1 %v1212_v10 }
  0x48   :  { %761 = vmatprep.subr.bf16.mxu0 %v1217_v11  ;;  %847 = vmatprep.subr.bf16.mxu1 %v1220_v12 }
  0x4b   :  { %762 = vmatpush1.bf16.msra.mxu0 %v1215_v13  ;;  %848 = vmatpush1.bf16.msra.mxu1 %v1218_v14 }
  0x4c   :  { %763 = vmatprep.subr.bf16.mxu0 %v1223_v15  ;;  %849 = vmatprep.subr.bf16.mxu1 %v1226_v16 }
  0x4f   :  { %764 = vmatpush1.bf16.msra.mxu0 %v1221_v19  ;;  %850 = vmatpush1.bf16.msra.mxu1 %v1224_v20 }
  0x50   :  { %765 = vmatprep.subr.bf16.mxu0 %v1229_v22  ;;  %851 = vmatprep.subr.bf16.mxu1 %v1232_v23 }
  0x53   :  { %766 = vmatpush1.bf16.msra.mxu0 %v1227_v24  ;;  %852 = vmatpush1.bf16.msra.mxu1 %v1230_v25 }
  0x54   :  { %767 = vmatprep.subr.bf16.mxu0 %v1235_v26  ;;  %853 = vmatprep.subr.bf16.mxu1 %v1238_v27 }
  0x57   :  { %768 = vmatpush1.bf16.msra.mxu0 %v1233_v28  ;;  %854 = vmatpush1.bf16.msra.mxu1 %v1236_v29 }
  0x58   :  { %769 = vmatprep.subr.bf16.mxu0 %v1241_v30  ;;  %855 = vmatprep.subr.bf16.mxu1 %v1244_v31 }
  0x5b   :  { %770 = vmatpush1.bf16.msra.mxu0 %v1239_v32  ;;  %856 = vmatpush1.bf16.msra.mxu1 %v1242_v33 }
  0x5c   :  { %771 = vmatprep.subr.bf16.mxu0 %v1247_v34  ;;  %857 = vmatprep.subr.bf16.mxu1 %v1250_v35 }
  0x5f   :  { %772 = vmatpush1.bf16.msra.mxu0 %v1245_v36  ;;  %858 = vmatpush1.bf16.msra.mxu1 %v1248_v37 }
  0x60   :  { %773 = vmatprep.subr.bf16.mxu0 %v1253_v38  ;;  %859 = vmatprep.subr.bf16.mxu1 %v1256_v39 }
  0x63   :  { %774 = vmatpush1.bf16.msra.mxu0 %v1251_v40  ;;  %860 = vmatpush1.bf16.msra.mxu1 %v1254_v41 }
  0x64   :  { %775 = vmatprep.subr.bf16.mxu0 %v1259_v42  ;;  %861 = vmatprep.subr.bf16.mxu1 %v1262_v43  ;;  %v918_v42 = vld [vmem:[%s1723_s4] sm:$0xff] }
  0x67   :  { %776 = vmatpush1.bf16.msra.mxu0 %v1257_v44  ;;  %862 = vmatpush1.bf16.msra.mxu1 %v1260_v45  ;;  %v935_v44 = vld [vmem:[%s1725_s5] sm:$0xff] }
  0x68   :  { %777 = vmatprep.subr.bf16.mxu0 %v1265_v46  ;;  %863 = vmatprep.subr.bf16.mxu1 %v1268_v47  ;;  %v919_v47 = vld [vmem:[%s1723_s4 + $0x8] sm:$0xff] }
  0x6b   :  { %778 = vmatpush1.bf16.msra.mxu0 %v1263_v48  ;;  %864 = vmatpush1.bf16.msra.mxu1 %v1266_v49 }
  0x6e   :  { %790 = vmatmul.mubr.bf16.vlgmr.msra.gmra.mrb[0].mxu0 %v1271_v50  ;;  %876 = vmatmul.mubr.bf16.vlgmr.msra.gmra.mrb[0].mxu1 %v1271_v50 }
  0x9c   :  { %v144_v52 = vpop.permute.xlu0 %143 }
  0xa0   :  { %v149_v53 = vpop.permute.xlu0 %148 }
 0x141   :  { %v791_v54 = vpop.f32.mrb[0].mxu0  ;;  %v877_v55 = vpop.f32.mrb[0].mxu1 }
 0x142   :  { %v1085_v56 = vadd.f32 %v791_v54, %v144_v52  ;;  %v1089_v57 = vadd.f32 %v877_v55, %v144_v52  ;;  %v793_v58 = vpop.f32.mrb[1].mxu0  ;;  %v879_v59 = vpop.f32.mrb[1].mxu1 }
 0x143   :  { %v1086_v60 = vadd.f32 %v793_v58, %v144_v52  ;;  %v1090_v61 = vadd.f32 %v879_v59, %v144_v52  ;;  %v795_v62 = vpop.f32.mrb[2].mxu0  ;;  %v881_v63 = vpop.f32.mrb[2].mxu1 }
 0x144   :  { %vm886_vm2 = vcmp.gt.f32.partialorder %v1085_v56, 0.0  ;;  %v894_v0 = vmul.f32 0.1, %v1085_v56  ;;  %vm888_vm3 = vcmp.gt.f32.partialorder %v1089_v57, 0.0  ;;  %v896_v1 = vmul.f32 0.1, %v1089_v57 }
 0x145   :  { %vm887_vm4 = vcmp.gt.f32.partialorder %v1086_v60, 0.0  ;;  %v895_v2 = vmul.f32 0.1, %v1086_v60  ;;  %v897_v3 = vmul.f32 0.1, %v1090_v61  ;;  %v1087_v4 = vadd.f32 %v795_v62, %v149_v53  ;;  %v797_v5 = vpop.f32.mrb[3].mxu0 }
 0x146   :  { %v902_v6 = vsel %vm886_vm2, %v1085_v56, %v894_v0  ;;  %v1091_v7 = vadd.f32 %v881_v63, %v149_v53  ;;  %v1088_v8 = vadd.f32 %v797_v5, %v149_v53  ;;  %v883_v9 = vpop.f32.mrb[3].mxu1  ;;  %vm889_vm5 = vcmp.gt.f32.partialorder %v1090_v61, 0.0 }
 0x147   :  { %910 = vst [vmem:[%s1724_s3] sm:$0xff] %v902_v6  ;;  %v937_v10 = vmul.f32 %v902_v6, %v902_v6  ;;  %v903_v11 = vsel %vm887_vm4, %v1086_v60, %v895_v2  ;;  %vm890_vm6 = vcmp.gt.f32.partialorder %v1087_v4, 0.0  ;;  %v898_v12 = vmul.f32 0.1, %v1087_v4 }
 0x148   :  { %911 = vst [vmem:[%s1724_s3 + $0x8] sm:$0xff] %v903_v11  ;;  %v938_v13 = vmul.f32 %v903_v11, %v903_v11  ;;  %vm892_vm7 = vcmp.gt.f32.partialorder %v1091_v7, 0.0  ;;  %v900_v14 = vmul.f32 0.1, %v1091_v7  ;;  %vm891_vm8 = vcmp.gt.f32.partialorder %v1088_v8, 0.0 }
 0x149   :  { %v906_v15 = vsel %vm890_vm6, %v1087_v4, %v898_v12  ;;  %v899_v16 = vmul.f32 0.1, %v1088_v8  ;;  %v1092_v17 = vadd.f32 %v883_v9, %v149_v53  ;;  %v904_v18 = vsel %vm888_vm3, %v1089_v57, %v896_v1 }
 0x14a   :  { %914 = vst [vmem:[%s1724_s3 + $0x20] sm:$0xff] %v906_v15  ;;  %v941_v19 = vmul.f32 %v906_v15, %v906_v15  ;;  %v908_v20 = vsel %vm892_vm7, %v1091_v7, %v900_v14  ;;  %v905_v21 = vsel %vm889_vm5, %v1090_v61, %v897_v3  ;;  %912 = vst [vmem:[%s1724_s3 + $0x10] sm:$0xff] %v904_v18 }
 0x14b   :  { %v920_v22 = vadd.f32 %v903_v11, %v902_v6  ;;  %916 = vst [vmem:[%s1724_s3 + $0x30] sm:$0xff] %v908_v20  ;;  %v907_v23 = vsel %vm891_vm8, %v1088_v8, %v899_v16  ;;  %vm893_vm9 = vcmp.gt.f32.partialorder %v1092_v17, 0.0  ;;  %v901_v24 = vmul.f32 0.1, %v1092_v17  ;;  %913 = vst [vmem:[%s1724_s3 + $0x18] sm:$0xff] %v905_v21 }
 0x14c   :  { %915 = vst [vmem:[%s1724_s3 + $0x28] sm:$0xff] %v907_v23  ;;  %v942_v25 = vmul.f32 %v907_v23, %v907_v23  ;;  %v939_v27 = vmul.f32 %v904_v18, %v904_v18  ;;  %v945_v28 = vadd.f32 %v938_v13, %v937_v10  ;;  %v940_v29 = vmul.f32 %v905_v21, %v905_v21 }
 0x14d   :  { %v921_v26 = vadd.f32 %v920_v22, %v904_v18  ;;  %v909_v30 = vsel %vm893_vm9, %v1092_v17, %v901_v24  ;;  %v925_v31 = vadd.f32 %v907_v23, %v906_v15  ;;  %v943_v34 = vmul.f32 %v908_v20, %v908_v20 }
 0x14e   :  { %v946_v33 = vadd.f32 %v945_v28, %v939_v27  ;;  %917 = vst [vmem:[%s1724_s3 + $0x38] sm:$0xff] %v909_v30  ;;  %v950_v35 = vadd.f32 %v942_v25, %v941_v19  ;;  %v944_v38 = vmul.f32 %v909_v30, %v909_v30 }
 0x14f   :  { %v922_v32 = vadd.f32 %v921_v26, %v905_v21  ;;  %v926_v36 = vadd.f32 %v925_v31, %v908_v20 }
 0x150   :  { %v947_v37 = vadd.f32 %v946_v33, %v940_v29  ;;  %v951_v39 = vadd.f32 %v950_v35, %v943_v34 }
 0x151   :  { %923 = vadd.xlane.f32.xlu1 %v922_v32  ;;  %v927_v40 = vadd.f32 %v926_v36, %v909_v30 }
 0x152   :  { %948 = vadd.xlane.f32.xlu0 %v947_v37  ;;  %v952_v41 = vadd.f32 %v951_v39, %v944_v38 }
 0x155   :  { %928 = vadd.xlane.f32.xlu1 %v927_v40 }
 0x159   :  { %953 = vadd.xlane.f32.xlu1 %v952_v41 }
 0x1de   :  { %v924_v43 = vpop.xlane.xlu1 %923 }
 0x1df   :  { %v930_v45 = vadd.f32 %v924_v43, %v918_v42  ;;  %v949_v46 = vpop.xlane.xlu0 %948 }
 0x1e0   :  { %v955_v48 = vadd.f32 %v949_v46, %v935_v44 }
 0x1e1   :  { %933 = vst.msk [vmem:[%s1723_s4] sm:$0xff] %vm22_vm1, %v930_v45 }
 0x1e2   :  { %v929_v49 = vpop.xlane.xlu1 %928  ;;  %957 = vst.msk [vmem:[%s1725_s5] sm:$0xff] %vm22_vm1, %v955_v48 }
 0x1e3   :  { %v931_v50 = vadd.f32 %v929_v49, %v919_v47 }
 0x1e5   :  { %934 = vst.msk [vmem:[%s1723_s4 + $0x8] sm:$0xff] %vm22_vm1, %v931_v50 }
 0x1e6   :  { %v954_v52 = vpop.xlane.xlu1 %953 }
 0x1e7   :  { %v956_v53 = vadd.f32 %v954_v52, %v936_v51 }
 0x1e9   :  { %958 = vst.msk [vmem:[%s1725_s5 + $0x8] sm:$0xff] %vm22_vm1, %v956_v53 }

// kernel: _lambda_.39
= control target key start
LH: loop header
LB: loop body
LE: loop exit
PB: predicated region body
PF: predicated region fallthrough
CT: control target
= control target key end

     0   :  { %v1248_v1 = vmov 0   ;;  %vm710_vm0 = vcmask 392192   ;;  %vm22_vm1 = vcmask 7168   ;;  %s1690_s0 = inlined_call_operand.vmem [shape: bf16[1,432,512], index: 0, kind: input, shape index: {}]   ;;  %s1691_s1 = inlined_call_operand.vmem [shape: bf16[16,432], index: 1, kind: input, shape index: {}]   ;;  %s1692_s2 = inlined_call_operand.vmem [shape: f32[16,1], index: 2, kind: input, shape index: {}]   ;;  %s1693_s4 = inlined_call_operand.vmem [shape: f32[1,16,1], index: 4, kind: output, shape index: {1}]   ;;  %s1694_s3 = inlined_call_operand.vmem [shape: f32[1,16,512], index: 3, kind: output, shape index: {0}]   ;;  %s1695_s5 = inlined_call_operand.vmem [shape: f32[1,16,1], index: 5, kind: output, shape index: {2}]  }
   0x1   :  { %v1080_v0 = vld [vmem:[%s1690_s0 + $0x4] ss:$16 sps:$4 sm:$0xff]   ;;  %1079 = vset.pattern.permute.xlu0 %v1248_v1  ;;  %v1082_v2 = vld [vmem:[%s1690_s0 + $0xc] ss:$16 sps:$4 sm:$0xff]   ;;  %v1084_v3 = vld [vmem:[%s1690_s0] ss:$16 sps:$4 sm:$0xff]  }
   0x2   :  { %714 = vmatprep.subr.bf16.mxu0 %v1080_v0  ;;  %v1085_v4 = vld [vmem:[%s1690_s0 + $0x8] ss:$16 sps:$4 sm:$0xff]   ;;  %800 = vmatprep.subr.bf16.mxu1 %v1082_v2  ;;  %v1086_v5 = vld [vmem:[%s1690_s0 + $0x24] ss:$16 sps:$4 sm:$0xff]   ;;  %v1088_v6 = vld [vmem:[%s1690_s0 + $0x2c] ss:$16 sps:$4 sm:$0xff]  }
   0x3   :  { %715 = vmatpush1.bf16.msra.mxu0 %v1084_v3  ;;  %801 = vmatpush1.bf16.msra.mxu1 %v1085_v4  ;;  %v1090_v7 = vld [vmem:[%s1690_s0 + $0x20] ss:$16 sps:$4 sm:$0xff]   ;;  %v1091_v8 = vld [vmem:[%s1690_s0 + $0x28] ss:$16 sps:$4 sm:$0xff]   ;;  %v1092_v9 = vld [vmem:[%s1690_s0 + $0x44] ss:$16 sps:$4 sm:$0xff]  }
   0x4   :  { %716 = vmatprep.subr.bf16.mxu0 %v1086_v5  ;;  %802 = vmatprep.subr.bf16.mxu1 %v1088_v6  ;;  %v1094_v10 = vld [vmem:[%s1690_s0 + $0x4c] ss:$16 sps:$4 sm:$0xff]   ;;  %v1096_v11 = vld [vmem:[%s1690_s0 + $0x40] ss:$16 sps:$4 sm:$0xff]   ;;  %v1097_v12 = vld [vmem:[%s1690_s0 + $0x48] ss:$16 sps:$4 sm:$0xff]  }
   0x5   :  { %v1098_v13 = vld [vmem:[%s1690_s0 + $0x64] ss:$16 sps:$4 sm:$0xff]   ;;  %v1100_v14 = vld [vmem:[%s1690_s0 + $0x6c] ss:$16 sps:$4 sm:$0xff]   ;;  %v1102_v15 = vld [vmem:[%s1690_s0 + $0x60] ss:$16 sps:$4 sm:$0xff]  }
   0x6   :  { %v1103_v16 = vld [vmem:[%s1690_s0 + $0x68] ss:$16 sps:$4 sm:$0xff]   ;;  %v1104_v17 = vld [vmem:[%s1690_s0 + $0x84] ss:$16 sps:$4 sm:$0xff]   ;;  %v1106_v18 = vld [vmem:[%s1690_s0 + $0x8c] ss:$16 sps:$4 sm:$0xff]  }
   0x7   :  { %717 = vmatpush1.bf16.msra.mxu0 %v1090_v7  ;;  %803 = vmatpush1.bf16.msra.mxu1 %v1091_v8  ;;  %v1108_v19 = vld [vmem:[%s1690_s0 + $0x80] ss:$16 sps:$4 sm:$0xff]   ;;  %v1109_v20 = vld [vmem:[%s1690_s0 + $0x88] ss:$16 sps:$4 sm:$0xff]   ;;  %v1110_v21 = vld [vmem:[%s1690_s0 + $0xa4] ss:$16 sps:$4 sm:$0xff]  }
   0x8   :  { %718 = vmatprep.subr.bf16.mxu0 %v1092_v9  ;;  %804 = vmatprep.subr.bf16.mxu1 %v1094_v10  ;;  %v1112_v22 = vld [vmem:[%s1690_s0 + $0xac] ss:$16 sps:$4 sm:$0xff]   ;;  %v1114_v23 = vld [vmem:[%s1690_s0 + $0xa0] ss:$16 sps:$4 sm:$0xff]   ;;  %v1115_v24 = vld [vmem:[%s1690_s0 + $0xa8] ss:$16 sps:$4 sm:$0xff]  }
   0x9   :  { %v1116_v25 = vld [vmem:[%s1690_s0 + $0xc4] ss:$16 sps:$4 sm:$0xff]   ;;  %v1118_v26 = vld [vmem:[%s1690_s0 + $0xcc] ss:$16 sps:$4 sm:$0xff]   ;;  %v1120_v27 = vld [vmem:[%s1690_s0 + $0xc0] ss:$16 sps:$4 sm:$0xff]  }
   0xa   :  { %v1121_v28 = vld [vmem:[%s1690_s0 + $0xc8] ss:$16 sps:$4 sm:$0xff]   ;;  %v1122_v29 = vld [vmem:[%s1690_s0 + $0xe4] ss:$16 sps:$4 sm:$0xff]   ;;  %v1124_v30 = vld [vmem:[%s1690_s0 + $0xec] ss:$16 sps:$4 sm:$0xff]  }
   0xb   :  { %719 = vmatpush1.bf16.msra.mxu0 %v1096_v11  ;;  %805 = vmatpush1.bf16.msra.mxu1 %v1097_v12  ;;  %v1126_v31 = vld [vmem:[%s1690_s0 + $0xe0] ss:$16 sps:$4 sm:$0xff]   ;;  %v1127_v32 = vld [vmem:[%s1690_s0 + $0xe8] ss:$16 sps:$4 sm:$0xff]   ;;  %v1128_v33 = vld [vmem:[%s1690_s0 + $0x104] ss:$16 sps:$4 sm:$0xff]  }
   0xc   :  { %720 = vmatprep.subr.bf16.mxu0 %v1098_v13  ;;  %806 = vmatprep.subr.bf16.mxu1 %v1100_v14  ;;  %v1130_v34 = vld [vmem:[%s1690_s0 + $0x10c] ss:$16 sps:$4 sm:$0xff]   ;;  %v1132_v35 = vld [vmem:[%s1690_s0 + $0x100] ss:$16 sps:$4 sm:$0xff]   ;;  %v1133_v36 = vld [vmem:[%s1690_s0 + $0x108] ss:$16 sps:$4 sm:$0xff]  }
   0xd   :  { %v1134_v37 = vld [vmem:[%s1690_s0 + $0x124] ss:$16 sps:$4 sm:$0xff]   ;;  %v1136_v38 = vld [vmem:[%s1690_s0 + $0x12c] ss:$16 sps:$4 sm:$0xff]   ;;  %v1138_v39 = vld [vmem:[%s1690_s0 + $0x120] ss:$16 sps:$4 sm:$0xff]  }
   0xe   :  { %v1139_v40 = vld [vmem:[%s1690_s0 + $0x128] ss:$16 sps:$4 sm:$0xff]   ;;  %v1140_v41 = vld [vmem:[%s1690_s0 + $0x144] ss:$16 sps:$4 sm:$0xff]   ;;  %v1142_v42 = vld [vmem:[%s1690_s0 + $0x14c] ss:$16 sps:$4 sm:$0xff]  }
   0xf   :  { %721 = vmatpush1.bf16.msra.mxu0 %v1102_v15  ;;  %807 = vmatpush1.bf16.msra.mxu1 %v1103_v16  ;;  %v1144_v43 = vld [vmem:[%s1690_s0 + $0x140] ss:$16 sps:$4 sm:$0xff]   ;;  %v1145_v44 = vld [vmem:[%s1690_s0 + $0x148] ss:$16 sps:$4 sm:$0xff]   ;;  %v1146_v45 = vld [vmem:[%s1690_s0 + $0x164] ss:$16 sps:$4 sm:$0xff]  }
  0x10   :  { %722 = vmatprep.subr.bf16.mxu0 %v1104_v17  ;;  %808 = vmatprep.subr.bf16.mxu1 %v1106_v18  ;;  %v1148_v46 = vld [vmem:[%s1690_s0 + $0x16c] ss:$16 sps:$4 sm:$0xff]   ;;  %v1150_v47 = vld [vmem:[%s1690_s0 + $0x160] ss:$16 sps:$4 sm:$0xff]   ;;  %v1151_v48 = vld [vmem:[%s1690_s0 + $0x168] ss:$16 sps:$4 sm:$0xff]  }
  0x11   :  { %v1178_v49 = vld [vmem:[%s1691_s1 + $0x4] ss:$16 sps:$4 sm:$0xff]   ;;  %v1154_v51 = vld [vmem:[%s1690_s0 + $0x18c] ss:$16 sps:$4 sm:$0xff]   ;;  %v1156_v52 = vld [vmem:[%s1690_s0 + $0x180] ss:$16 sps:$4 sm:$0xff]  }
  0x12   :  { %v1152_v50 = vld [vmem:[%s1690_s0 + $0x184] ss:$16 sps:$4 sm:$0xff]   ;;  %746 = vmatprep.mubr.bf16.mxu0 %v1178_v49  ;;  %832 = vmatprep.mubr.bf16.mxu1 %v1178_v49  ;;  %v1157_v53 = vld [vmem:[%s1690_s0 + $0x188] ss:$16 sps:$4 sm:$0xff]   ;;  %v1160_v55 = vld [vmem:[%s1690_s0 + $0x1ac] ss:$16 sps:$4 sm:$0xff]  }
  0x13   :  { %723 = vmatpush1.bf16.msra.mxu0 %v1108_v19  ;;  %809 = vmatpush1.bf16.msra.mxu1 %v1109_v20  ;;  %v1158_v54 = vld [vmem:[%s1690_s0 + $0x1a4] ss:$16 sps:$4 sm:$0xff]   ;;  %v1162_v56 = vld [vmem:[%s1690_s0 + $0x1a0] ss:$16 sps:$4 sm:$0xff]   ;;  %v1163_v57 = vld [vmem:[%s1690_s0 + $0x1a8] ss:$16 sps:$4 sm:$0xff]  }
  0x14   :  { %724 = vmatprep.subr.bf16.mxu0 %v1110_v21  ;;  %810 = vmatprep.subr.bf16.mxu1 %v1112_v22  ;;  %v1164_v58 = vld [vmem:[%s1690_s0 + $0x1c4] ss:$16 sps:$4 sm:$0xff]   ;;  %v1166_v59 = vld [vmem:[%s1690_s0 + $0x1cc] ss:$16 sps:$4 sm:$0xff]   ;;  %v1168_v60 = vld [vmem:[%s1690_s0 + $0x1c0] ss:$16 sps:$4 sm:$0xff]  }
  0x15   :  { %v1169_v61 = vld [vmem:[%s1690_s0 + $0x1c8] ss:$16 sps:$4 sm:$0xff]   ;;  %v1170_v62 = vld [vmem:[%s1690_s0 + $0x1e4] ss:$16 sps:$4 sm:$0xff]   ;;  %v1172_v63 = vld [vmem:[%s1690_s0 + $0x1ec] ss:$16 sps:$4 sm:$0xff]  }
  0x16   :  { %v1174_v0 = vld [vmem:[%s1690_s0 + $0x1e0] ss:$16 sps:$4 sm:$0xff]   ;;  %v1175_v1 = vld [vmem:[%s1690_s0 + $0x1e8] ss:$16 sps:$4 sm:$0xff]   ;;  %v1181_v2 = vld [vmem:[%s1690_s0 + $0x204] ss:$16 sps:$4 sm:$0xff]  }
  0x17   :  { %725 = vmatpush1.bf16.msra.mxu0 %v1114_v23  ;;  %811 = vmatpush1.bf16.msra.mxu1 %v1115_v24  ;;  %v1184_v3 = vld [vmem:[%s1690_s0 + $0x20c] ss:$16 sps:$4 sm:$0xff]   ;;  %v1176_v4 = vld [vmem:[%s1691_s1] ss:$16 sps:$4 sm:$0xff]   ;;  %v1182_v6 = vld [vmem:[%s1690_s0 + $0x208] ss:$16 sps:$4 sm:$0xff]  }
  0x18   :  { %726 = vmatprep.subr.bf16.mxu0 %v1116_v25  ;;  %812 = vmatprep.subr.bf16.mxu1 %v1118_v26  ;;  %v1179_v5 = vld [vmem:[%s1690_s0 + $0x200] ss:$16 sps:$4 sm:$0xff]   ;;  %v1187_v7 = vld [vmem:[%s1690_s0 + $0x224] ss:$16 sps:$4 sm:$0xff]   ;;  %v1190_v8 = vld [vmem:[%s1690_s0 + $0x22c] ss:$16 sps:$4 sm:$0xff]  }
  0x19   :  { %v1185_v9 = vld [vmem:[%s1690_s0 + $0x220] ss:$16 sps:$4 sm:$0xff]   ;;  %v1188_v10 = vld [vmem:[%s1690_s0 + $0x228] ss:$16 sps:$4 sm:$0xff]   ;;  %v1193_v11 = vld [vmem:[%s1690_s0 + $0x244] ss:$16 sps:$4 sm:$0xff]  }
  0x1a   :  { %v1196_v12 = vld [vmem:[%s1690_s0 + $0x24c] ss:$16 sps:$4 sm:$0xff]   ;;  %v1191_v13 = vld [vmem:[%s1690_s0 + $0x240] ss:$16 sps:$4 sm:$0xff]   ;;  %v1194_v14 = vld [vmem:[%s1690_s0 + $0x248] ss:$16 sps:$4 sm:$0xff]  }
  0x1b   :  { %727 = vmatpush1.bf16.msra.mxu0 %v1120_v27  ;;  %813 = vmatpush1.bf16.msra.mxu1 %v1121_v28  ;;  %v1199_v15 = vld [vmem:[%s1690_s0 + $0x264] ss:$16 sps:$4 sm:$0xff]   ;;  %v1202_v16 = vld [vmem:[%s1690_s0 + $0x26c] ss:$16 sps:$4 sm:$0xff]   ;;  %v1197_v19 = vld [vmem:[%s1690_s0 + $0x260] ss:$16 sps:$4 sm:$0xff]  }
  0x1c   :  { %728 = vmatprep.subr.bf16.mxu0 %v1122_v29  ;;  %814 = vmatprep.subr.bf16.mxu1 %v1124_v30  ;;  %v1245_v17 = vld [vmem:[%s1691_s1 + $0xc] ss:$16 sps:$4 sm:$0xff]   ;;  %v139_v18 = vld [vmem:[%s1692_s2] sm:$0xff]  ;;  %v1200_v20 = vld [vmem:[%s1690_s0 + $0x268] ss:$16 sps:$4 sm:$0xff]  }
  0x1d   :  { %143 = vperm.xlu0 %1079, %v139_v18   ;;  %v140_v21 = vld [vmem:[%s1692_s2 + $0x8] sm:$0xff]  ;;  %v1205_v22 = vld [vmem:[%s1690_s0 + $0x284] ss:$16 sps:$4 sm:$0xff]   ;;  %v1203_v24 = vld [vmem:[%s1690_s0 + $0x280] ss:$16 sps:$4 sm:$0xff]  }
  0x1e   :  { %v1208_v23 = vld [vmem:[%s1690_s0 + $0x28c] ss:$16 sps:$4 sm:$0xff]   ;;  %v1206_v25 = vld [vmem:[%s1690_s0 + $0x288] ss:$16 sps:$4 sm:$0xff]   ;;  %v1211_v26 = vld [vmem:[%s1690_s0 + $0x2a4] ss:$16 sps:$4 sm:$0xff]  }
  0x1f   :  { %729 = vmatpush1.bf16.msra.mxu0 %v1126_v31  ;;  %815 = vmatpush1.bf16.msra.mxu1 %v1127_v32  ;;  %v1214_v27 = vld [vmem:[%s1690_s0 + $0x2ac] ss:$16 sps:$4 sm:$0xff]   ;;  %v1209_v28 = vld [vmem:[%s1690_s0 + $0x2a0] ss:$16 sps:$4 sm:$0xff]   ;;  %v1212_v29 = vld [vmem:[%s1690_s0 + $0x2a8] ss:$16 sps:$4 sm:$0xff]  }
  0x20   :  { %730 = vmatprep.subr.bf16.mxu0 %v1128_v33  ;;  %816 = vmatprep.subr.bf16.mxu1 %v1130_v34  ;;  %v1217_v30 = vld [vmem:[%s1690_s0 + $0x2c4] ss:$16 sps:$4 sm:$0xff]   ;;  %v1220_v31 = vld [vmem:[%s1690_s0 + $0x2cc] ss:$16 sps:$4 sm:$0xff]   ;;  %v1215_v32 = vld [vmem:[%s1690_s0 + $0x2c0] ss:$16 sps:$4 sm:$0xff]  }
  0x21   :  { %148 = vperm.xlu0 %1079, %v140_v21   ;;  %v1218_v33 = vld [vmem:[%s1690_s0 + $0x2c8] ss:$16 sps:$4 sm:$0xff]   ;;  %v1223_v34 = vld [vmem:[%s1690_s0 + $0x2e4] ss:$16 sps:$4 sm:$0xff]  }
  0x22   :  { %v1242_v49 = vld [vmem:[%s1690_s0 + $0x348] ss:$16 sps:$4 sm:$0xff]  }
  0x23   :  { %731 = vmatpush1.bf16.msra.mxu0 %v1132_v35  ;;  %817 = vmatpush1.bf16.msra.mxu1 %v1133_v36  ;;  %v1226_v35 = vld [vmem:[%s1690_s0 + $0x2ec] ss:$16 sps:$4 sm:$0xff]   ;;  %v1221_v36 = vld [vmem:[%s1690_s0 + $0x2e0] ss:$16 sps:$4 sm:$0xff]  }
  0x24   :  { %732 = vmatprep.subr.bf16.mxu0 %v1134_v37  ;;  %818 = vmatprep.subr.bf16.mxu1 %v1136_v38  ;;  %v1224_v37 = vld [vmem:[%s1690_s0 + $0x2e8] ss:$16 sps:$4 sm:$0xff]   ;;  %v1229_v38 = vld [vmem:[%s1690_s0 + $0x304] ss:$16 sps:$4 sm:$0xff]  }
  0x27   :  { %733 = vmatpush1.bf16.msra.mxu0 %v1138_v39  ;;  %819 = vmatpush1.bf16.msra.mxu1 %v1139_v40  ;;  %v1232_v39 = vld [vmem:[%s1690_s0 + $0x30c] ss:$16 sps:$4 sm:$0xff]   ;;  %v1227_v40 = vld [vmem:[%s1690_s0 + $0x300] ss:$16 sps:$4 sm:$0xff]  }
  0x28   :  { %734 = vmatprep.subr.bf16.mxu0 %v1140_v41  ;;  %820 = vmatprep.subr.bf16.mxu1 %v1142_v42  ;;  %v1230_v41 = vld [vmem:[%s1690_s0 + $0x308] ss:$16 sps:$4 sm:$0xff]   ;;  %v1235_v42 = vld [vmem:[%s1690_s0 + $0x324] ss:$16 sps:$4 sm:$0xff]  }
  0x2b   :  { %735 = vmatpush1.bf16.msra.mxu0 %v1144_v43  ;;  %821 = vmatpush1.bf16.msra.mxu1 %v1145_v44  ;;  %v1238_v43 = vld [vmem:[%s1690_s0 + $0x32c] ss:$16 sps:$4 sm:$0xff]   ;;  %v1233_v44 = vld [vmem:[%s1690_s0 + $0x320] ss:$16 sps:$4 sm:$0xff]  }
  0x2c   :  { %736 = vmatprep.subr.bf16.mxu0 %v1146_v45  ;;  %822 = vmatprep.subr.bf16.mxu1 %v1148_v46  ;;  %v1236_v45 = vld [vmem:[%s1690_s0 + $0x328] ss:$16 sps:$4 sm:$0xff]   ;;  %v1241_v46 = vld [vmem:[%s1690_s0 + $0x344] ss:$16 sps:$4 sm:$0xff]  }
  0x2f   :  { %737 = vmatpush1.bf16.msra.mxu0 %v1150_v47  ;;  %823 = vmatpush1.bf16.msra.mxu1 %v1151_v48  ;;  %v1244_v47 = vld [vmem:[%s1690_s0 + $0x34c] ss:$16 sps:$4 sm:$0xff]   ;;  %v1239_v48 = vld [vmem:[%s1690_s0 + $0x340] ss:$16 sps:$4 sm:$0xff]  }
  0x30   :  { %738 = vmatprep.subr.bf16.mxu0 %v1152_v50  ;;  %824 = vmatprep.subr.bf16.mxu1 %v1154_v51  ;;  %v1247_v50 = vld [vmem:[%s1691_s1 + $0x8] ss:$16 sps:$4 sm:$0xff]   ;;  %v1249_v51 = vmov 0.0  }
  0x31   :  { %23 = vst.msk [vmem:[%s1693_s4] sm:$0xff] %vm22_vm1, %v1249_v51  ;;  %24 = vst.msk [vmem:[%s1693_s4 + $0x8] sm:$0xff] %vm22_vm1, %v1249_v51 }
  0x32   :  { %25 = vst.msk [vmem:[%s1695_s5] sm:$0xff] %vm22_vm1, %v1249_v51  ;;  %26 = vst.msk [vmem:[%s1695_s5 + $0x8] sm:$0xff] %vm22_vm1, %v1249_v51 }
  0x33   :  { %739 = vmatpush1.bf16.msra.mxu0 %v1156_v52  ;;  %825 = vmatpush1.bf16.msra.mxu1 %v1157_v53 }
  0x34   :  { %740 = vmatprep.subr.bf16.mxu0 %v1158_v54  ;;  %826 = vmatprep.subr.bf16.mxu1 %v1160_v55 }
  0x37   :  { %741 = vmatpush1.bf16.msra.mxu0 %v1162_v56  ;;  %827 = vmatpush1.bf16.msra.mxu1 %v1163_v57 }
  0x38   :  { %742 = vmatprep.subr.bf16.mxu0 %v1164_v58  ;;  %828 = vmatprep.subr.bf16.mxu1 %v1166_v59 }
  0x3b   :  { %743 = vmatpush1.bf16.msra.mxu0 %v1168_v60  ;;  %829 = vmatpush1.bf16.msra.mxu1 %v1169_v61 }
  0x3c   :  { %744 = vmatprep.subr.bf16.mxu0 %v1170_v62  ;;  %830 = vmatprep.subr.bf16.mxu1 %v1172_v63 }
  0x3f   :  { %745 = vmatpush1.bf16.msra.mxu0 %v1174_v0  ;;  %831 = vmatpush1.bf16.msra.mxu1 %v1175_v1 }
  0x40   :  { %757 = vmatprep.subr.bf16.mxu0 %v1181_v2  ;;  %843 = vmatprep.subr.bf16.mxu1 %v1184_v3 }
  0x42   :  { %747 = vmatmul.mubr.bf16.vlgmr.msra.gmra.mrb[0].mxu0 %v1176_v4  ;;  %833 = vmatmul.mubr.bf16.vlgmr.msra.gmra.mrb[0].mxu1 %v1176_v4 }
  0x43   :  { %758 = vmatpush1.bf16.msra.mxu0 %v1179_v5  ;;  %844 = vmatpush1.bf16.msra.mxu1 %v1182_v6 }
  0x44   :  { %759 = vmatprep.subr.bf16.mxu0 %v1187_v7  ;;  %845 = vmatprep.subr.bf16.mxu1 %v1190_v8 }
  0x45   :  { %1059 = vmatprep.mubr.msk.bf16.mxu0 %vm710_vm0, %v1245_v17  ;;  %1060 = vmatprep.mubr.msk.bf16.mxu1 %vm710_vm0, %v1245_v17 }
  0x47   :  { %760 = vmatpush1.bf16.msra.mxu0 %v1185_v9  ;;  %846 = vmatpush1.bf16.msra.mxu1 %v1188_v10 }
  0x48   :  { %761 = vmatprep.subr.bf16.mxu0 %v1193_v11  ;;  %847 = vmatprep.subr.bf16.mxu1 %v1196_v12 }
  0x4b   :  { %762 = vmatpush1.bf16.msra.mxu0 %v1191_v13  ;;  %848 = vmatpush1.bf16.msra.mxu1 %v1194_v14 }
  0x4c   :  { %763 = vmatprep.subr.bf16.mxu0 %v1199_v15  ;;  %849 = vmatprep.subr.bf16.mxu1 %v1202_v16 }
  0x4f   :  { %764 = vmatpush1.bf16.msra.mxu0 %v1197_v19  ;;  %850 = vmatpush1.bf16.msra.mxu1 %v1200_v20 }
  0x50   :  { %765 = vmatprep.subr.bf16.mxu0 %v1205_v22  ;;  %851 = vmatprep.subr.bf16.mxu1 %v1208_v23 }
  0x53   :  { %766 = vmatpush1.bf16.msra.mxu0 %v1203_v24  ;;  %852 = vmatpush1.bf16.msra.mxu1 %v1206_v25 }
  0x54   :  { %767 = vmatprep.subr.bf16.mxu0 %v1211_v26  ;;  %853 = vmatprep.subr.bf16.mxu1 %v1214_v27  ;;  %v894_v26 = vld [vmem:[%s1693_s4] sm:$0xff] }
  0x57   :  { %768 = vmatpush1.bf16.msra.mxu0 %v1209_v28  ;;  %854 = vmatpush1.bf16.msra.mxu1 %v1212_v29  ;;  %v911_v28 = vld [vmem:[%s1695_s5] sm:$0xff] }
  0x58   :  { %769 = vmatprep.subr.bf16.mxu0 %v1217_v30  ;;  %855 = vmatprep.subr.bf16.mxu1 %v1220_v31  ;;  %v895_v31 = vld [vmem:[%s1693_s4 + $0x8] sm:$0xff] }
  0x5b   :  { %770 = vmatpush1.bf16.msra.mxu0 %v1215_v32  ;;  %856 = vmatpush1.bf16.msra.mxu1 %v1218_v33 }
  0x5c   :  { %771 = vmatprep.subr.bf16.mxu0 %v1223_v34  ;;  %857 = vmatprep.subr.bf16.mxu1 %v1226_v35  ;;  %v912_v35 = vld [vmem:[%s1695_s5 + $0x8] sm:$0xff] }
  0x5f   :  { %772 = vmatpush1.bf16.msra.mxu0 %v1221_v36  ;;  %858 = vmatpush1.bf16.msra.mxu1 %v1224_v37 }
  0x60   :  { %773 = vmatprep.subr.bf16.mxu0 %v1229_v38  ;;  %859 = vmatprep.subr.bf16.mxu1 %v1232_v39 }
  0x63   :  { %774 = vmatpush1.bf16.msra.mxu0 %v1227_v40  ;;  %860 = vmatpush1.bf16.msra.mxu1 %v1230_v41 }
  0x64   :  { %775 = vmatprep.subr.bf16.mxu0 %v1235_v42  ;;  %861 = vmatprep.subr.bf16.mxu1 %v1238_v43 }
  0x67   :  { %776 = vmatpush1.bf16.msra.mxu0 %v1233_v44  ;;  %862 = vmatpush1.bf16.msra.mxu1 %v1236_v45 }
  0x68   :  { %777 = vmatprep.subr.bf16.mxu0 %v1241_v46  ;;  %863 = vmatprep.subr.bf16.mxu1 %v1244_v47 }
  0x6b   :  { %778 = vmatpush1.bf16.msra.mxu0 %v1239_v48  ;;  %864 = vmatpush1.bf16.msra.mxu1 %v1242_v49 }
  0x6e   :  { %790 = vmatmul.mubr.bf16.vlgmr.msra.gmra.mrb[0].mxu0 %v1247_v50  ;;  %876 = vmatmul.mubr.bf16.vlgmr.msra.gmra.mrb[0].mxu1 %v1247_v50 }
  0x9c   :  { %v144_v52 = vpop.permute.xlu0 %143 }
  0xa0   :  { %v149_v53 = vpop.permute.xlu0 %148 }
 0x141   :  { %v791_v54 = vpop.f32.mrb[0].mxu0  ;;  %v877_v55 = vpop.f32.mrb[0].mxu1 }
 0x142   :  { %v1061_v56 = vadd.f32 %v791_v54, %v144_v52  ;;  %v1065_v57 = vadd.f32 %v877_v55, %v144_v52  ;;  %v793_v58 = vpop.f32.mrb[1].mxu0  ;;  %v879_v59 = vpop.f32.mrb[1].mxu1 }
 0x143   :  { %v1062_v60 = vadd.f32 %v793_v58, %v144_v52  ;;  %v1066_v61 = vadd.f32 %v879_v59, %v144_v52  ;;  %v795_v62 = vpop.f32.mrb[2].mxu0  ;;  %v881_v63 = vpop.f32.mrb[2].mxu1 }
 0x144   :  { %886 = vst [vmem:[%s1694_s3] sm:$0xff] %v1061_v56  ;;  %v913_v0 = vmul.f32 %v1061_v56, %v1061_v56  ;;  %888 = vst [vmem:[%s1694_s3 + $0x10] sm:$0xff] %v1065_v57  ;;  %v1063_v1 = vadd.f32 %v795_v62, %v149_v53  ;;  %v1067_v2 = vadd.f32 %v881_v63, %v149_v53  ;;  %v797_v3 = vpop.f32.mrb[3].mxu0  ;;  %v883_v4 = vpop.f32.mrb[3].mxu1 }
 0x145   :  { %887 = vst [vmem:[%s1694_s3 + $0x8] sm:$0xff] %v1062_v60  ;;  %v914_v5 = vmul.f32 %v1062_v60, %v1062_v60  ;;  %889 = vst [vmem:[%s1694_s3 + $0x18] sm:$0xff] %v1066_v61  ;;  %v1064_v6 = vadd.f32 %v797_v3, %v149_v53  ;;  %v1068_v7 = vadd.f32 %v883_v4, %v149_v53 }
 0x146   :  { %v896_v8 = vadd.f32 %v1062_v60, %v1061_v56  ;;  %v915_v9 = vmul.f32 %v1065_v57, %v1065_v57  ;;  %890 = vst [vmem:[%s1694_s3 + $0x20] sm:$0xff] %v1063_v1  ;;  %v917_v10 = vmul.f32 %v1063_v1, %v1063_v1  ;;  %892 = vst [vmem:[%s1694_s3 + $0x30] sm:$0xff] %v1067_v2 }
 0x147   :  { %891 = vst [vmem:[%s1694_s3 + $0x28] sm:$0xff] %v1064_v6  ;;  %v901_v11 = vadd.f32 %v1064_v6, %v1063_v1  ;;  %v918_v12 = vmul.f32 %v1064_v6, %v1064_v6  ;;  %893 = vst [vmem:[%s1694_s3 + $0x38] sm:$0xff] %v1068_v7  ;;  %v921_v14 = vadd.f32 %v914_v5, %v913_v0 }
 0x148   :  { %v897_v13 = vadd.f32 %v1065_v57, %v896_v8  ;;  %v919_v15 = vmul.f32 %v1067_v2, %v1067_v2  ;;  %v916_v16 = vmul.f32 %v1066_v61, %v1066_v61  ;;  %v920_v23 = vmul.f32 %v1068_v7, %v1068_v7 }
 0x149   :  { %v922_v18 = vadd.f32 %v921_v14, %v915_v9  ;;  %v902_v19 = vadd.f32 %v1067_v2, %v901_v11  ;;  %v926_v20 = vadd.f32 %v918_v12, %v917_v10 }
 0x14a   :  { %v898_v17 = vadd.f32 %v1066_v61, %v897_v13 }
 0x14b   :  { %v923_v21 = vadd.f32 %v922_v18, %v916_v16  ;;  %v903_v22 = vadd.f32 %v1068_v7, %v902_v19  ;;  %v927_v24 = vadd.f32 %v926_v20, %v919_v15 }
 0x14c   :  { %899 = vadd.xlane.f32.xlu1 %v898_v17 }
 0x14d   :  { %924 = vadd.xlane.f32.xlu0 %v923_v21  ;;  %v928_v25 = vadd.f32 %v927_v24, %v920_v23 }
 0x150   :  { %904 = vadd.xlane.f32.xlu1 %v903_v22 }
 0x154   :  { %929 = vadd.xlane.f32.xlu1 %v928_v25 }
 0x1d9   :  { %v900_v27 = vpop.xlane.xlu1 %899 }
 0x1da   :  { %v906_v29 = vadd.f32 %v900_v27, %v894_v26  ;;  %v925_v30 = vpop.xlane.xlu0 %924 }
 0x1db   :  { %v931_v32 = vadd.f32 %v925_v30, %v911_v28 }
 0x1dc   :  { %909 = vst.msk [vmem:[%s1693_s4] sm:$0xff] %vm22_vm1, %v906_v29 }
 0x1dd   :  { %v905_v33 = vpop.xlane.xlu1 %904  ;;  %933 = vst.msk [vmem:[%s1695_s5] sm:$0xff] %vm22_vm1, %v931_v32 }
 0x1de   :  { %v907_v34 = vadd.f32 %v905_v33, %v895_v31 }
 0x1e0   :  { %910 = vst.msk [vmem:[%s1693_s4 + $0x8] sm:$0xff] %vm22_vm1, %v907_v34 }
 0x1e1   :  { %v930_v36 = vpop.xlane.xlu1 %929 }
 0x1e2   :  { %v932_v37 = vadd.f32 %v930_v36, %v912_v35 }
 0x1e4   :  { %934 = vst.msk [vmem:[%s1695_s5 + $0x8] sm:$0xff] %vm22_vm1, %v932_v37 }

// kernel: _lambda_.40
= control target key start
LH: loop header
LB: loop body
LE: loop exit
PB: predicated region body
PF: predicated region fallthrough
CT: control target
= control target key end

     0   :  { %v120_v0 = vmov 0   ;;  %s234_s2 = inlined_call_operand.vmem [shape: f32[1,16,1], index: 2, kind: input, shape index: {}]   ;;  %s235_s1 = inlined_call_operand.vmem [shape: f32[1,16,1], index: 1, kind: input, shape index: {}]   ;;  %s236_s0 = inlined_call_operand.vmem [shape: f32[1,16,512], index: 0, kind: input, shape index: {}]   ;;  %s237_s3 = inlined_call_operand.vmem [shape: f32[1,16,512], index: 3, kind: input, shape index: {}]   ;;  %s238_s4 = inlined_call_operand.vmem [shape: f32[1,16,512], index: 4, kind: output, shape index: {}]  }
   0x1   :  { %119 = vset.pattern.permute.xlu1 %v120_v0  ;;  %118 = vset.pattern.permute.xlu0 %v120_v0  ;;  %v45_v1 = vld [vmem:[%s234_s2] sm:$0xff]  ;;  %v46_v3 = vld [vmem:[%s234_s2 + $0x8] sm:$0xff]  ;;  %v19_v7 = vld [vmem:[%s236_s0 + $0x10] sm:$0xff] }
   0x2   :  { %v25_v2 = vld [vmem:[%s235_s1] sm:$0xff]  ;;  %49 = vperm.xlu1 %119, %v45_v1   ;;  %v26_v4 = vld [vmem:[%s235_s1 + $0x8] sm:$0xff]  ;;  %v20_v8 = vld [vmem:[%s236_s0 + $0x18] sm:$0xff] }
   0x3   :  { %29 = vperm.xlu0 %118, %v25_v2   ;;  %v17_v5 = vld [vmem:[%s236_s0] sm:$0xff]  ;;  %v18_v6 = vld [vmem:[%s236_s0 + $0x8] sm:$0xff]  ;;  %v67_v17 = vld [vmem:[%s237_s3 + $0x10] sm:$0xff] }
   0x4   :  { %v65_v11 = vld [vmem:[%s237_s3] sm:$0xff]  ;;  %v66_v12 = vld [vmem:[%s237_s3 + $0x8] sm:$0xff]  ;;  %v68_v18 = vld [vmem:[%s237_s3 + $0x18] sm:$0xff] }
   0x5   :  { %v21_v19 = vld [vmem:[%s236_s0 + $0x20] sm:$0xff]  ;;  %v22_v24 = vld [vmem:[%s236_s0 + $0x28] sm:$0xff]  ;;  %v23_v25 = vld [vmem:[%s236_s0 + $0x30] sm:$0xff] }
   0x6   :  { %54 = vperm.xlu1 %119, %v46_v3   ;;  %v24_v26 = vld [vmem:[%s236_s0 + $0x38] sm:$0xff]  ;;  %v69_v32 = vld [vmem:[%s237_s3 + $0x20] sm:$0xff]  ;;  %v70_v33 = vld [vmem:[%s237_s3 + $0x28] sm:$0xff] }
   0x7   :  { %34 = vperm.xlu0 %118, %v26_v4   ;;  %v71_v39 = vld [vmem:[%s237_s3 + $0x30] sm:$0xff]  ;;  %v72_v40 = vld [vmem:[%s237_s3 + $0x38] sm:$0xff] }
  0x81   :  { %v50_v10 = vpop.permute.xlu1 %49 }
  0x82   :  { %v30_v9 = vpop.permute.xlu0 %29 }
  0x83   :  { %v37_v13 = vmul.f32 %v30_v9, %v17_v5  ;;  %v38_v14 = vmul.f32 %v30_v9, %v18_v6  ;;  %v39_v15 = vmul.f32 %v30_v9, %v19_v7  ;;  %v40_v16 = vmul.f32 %v30_v9, %v20_v8 }
  0x85   :  { %v57_v20 = vadd.f32 %v50_v10, %v37_v13  ;;  %v58_v21 = vadd.f32 %v50_v10, %v38_v14  ;;  %v59_v22 = vadd.f32 %v50_v10, %v39_v15  ;;  %v60_v23 = vadd.f32 %v50_v10, %v40_v16  ;;  %v55_v38 = vpop.permute.xlu1 %54 }
  0x86   :  { %v35_v27 = vpop.permute.xlu0 %34 }
  0x87   :  { %v73_v28 = vadd.f32 %v65_v11, %v57_v20  ;;  %v74_v29 = vadd.f32 %v66_v12, %v58_v21  ;;  %v75_v30 = vadd.f32 %v67_v17, %v59_v22  ;;  %v76_v31 = vadd.f32 %v68_v18, %v60_v23 }
  0x88   :  { %v41_v34 = vmul.f32 %v35_v27, %v21_v19  ;;  %v42_v35 = vmul.f32 %v35_v27, %v22_v24  ;;  %v43_v36 = vmul.f32 %v35_v27, %v23_v25  ;;  %v44_v37 = vmul.f32 %v35_v27, %v24_v26 }
  0x89   :  { %vm81_vm0 = vcmp.gt.f32.partialorder %v73_v28, 0.0  ;;  %vm82_vm1 = vcmp.gt.f32.partialorder %v74_v29, 0.0  ;;  %vm83_vm2 = vcmp.gt.f32.partialorder %v75_v30, 0.0  ;;  %vm84_vm3 = vcmp.gt.f32.partialorder %v76_v31, 0.0 }
  0x8a   :  { %v89_v41 = vmul.f32 0.1, %v73_v28  ;;  %v90_v42 = vmul.f32 0.1, %v74_v29  ;;  %v91_v43 = vmul.f32 0.1, %v75_v30  ;;  %v61_v44 = vadd.f32 %v55_v38, %v41_v34 }
  0x8b   :  { %v92_v45 = vmul.f32 0.1, %v76_v31  ;;  %v62_v46 = vadd.f32 %v55_v38, %v42_v35  ;;  %v63_v47 = vadd.f32 %v55_v38, %v43_v36  ;;  %v64_v48 = vadd.f32 %v55_v38, %v44_v37 }
  0x8c   :  { %v97_v49 = vsel %vm81_vm0, %v73_v28, %v89_v41  ;;  %v98_v50 = vsel %vm82_vm1, %v74_v29, %v90_v42  ;;  %v99_v51 = vsel %vm83_vm2, %v75_v30, %v91_v43  ;;  %v77_v52 = vadd.f32 %v69_v32, %v61_v44 }
  0x8d   :  { %v100_v53 = vsel %vm84_vm3, %v76_v31, %v92_v45  ;;  %105 = vst [vmem:[%s238_s4] sm:$0xff] %v97_v49  ;;  %106 = vst [vmem:[%s238_s4 + $0x8] sm:$0xff] %v98_v50  ;;  %v78_v54 = vadd.f32 %v70_v33, %v62_v46  ;;  %v79_v55 = vadd.f32 %v71_v39, %v63_v47 }
  0x8e   :  { %107 = vst [vmem:[%s238_s4 + $0x10] sm:$0xff] %v99_v51  ;;  %v80_v56 = vadd.f32 %v72_v40, %v64_v48  ;;  %108 = vst [vmem:[%s238_s4 + $0x18] sm:$0xff] %v100_v53  ;;  %vm85_vm4 = vcmp.gt.f32.partialorder %v77_v52, 0.0  ;;  %v93_v57 = vmul.f32 0.1, %v77_v52 }
  0x8f   :  { %vm86_vm5 = vcmp.gt.f32.partialorder %v78_v54, 0.0  ;;  %vm87_vm6 = vcmp.gt.f32.partialorder %v79_v55, 0.0  ;;  %v94_v58 = vmul.f32 0.1, %v78_v54  ;;  %v95_v59 = vmul.f32 0.1, %v79_v55 }
  0x90   :  { %vm88_vm7 = vcmp.gt.f32.partialorder %v80_v56, 0.0  ;;  %v96_v60 = vmul.f32 0.1, %v80_v56  ;;  %v101_v61 = vsel %vm85_vm4, %v77_v52, %v93_v57 }
  0x91   :  { %v102_v62 = vsel %vm86_vm5, %v78_v54, %v94_v58  ;;  %109 = vst [vmem:[%s238_s4 + $0x20] sm:$0xff] %v101_v61  ;;  %v103_v63 = vsel %vm87_vm6, %v79_v55, %v95_v59 }
  0x92   :  { %v104_v0 = vsel %vm88_vm7, %v80_v56, %v96_v60  ;;  %110 = vst [vmem:[%s238_s4 + $0x28] sm:$0xff] %v102_v62  ;;  %111 = vst [vmem:[%s238_s4 + $0x30] sm:$0xff] %v103_v63 }
  0x93   :  { %112 = vst [vmem:[%s238_s4 + $0x38] sm:$0xff] %v104_v0 }

// kernel: _lambda_.41
= control target key start
LH: loop header
LB: loop body
LE: loop exit
PB: predicated region body
PF: predicated region fallthrough
CT: control target
= control target key end

     0   :  { %v612_v0 = vmov 0   ;;  %vm317_vm0 = vcmask 392192   ;;  %vm22_vm1 = vcmask 7168   ;;  %v613_v40 = vmov 0.0   ;;  %s896_s0 = inlined_call_operand.vmem [shape: bf16[1,432,64], index: 0, kind: input, shape index: {}]   ;;  %s897_s1 = inlined_call_operand.vmem [shape: bf16[32,432], index: 1, kind: input, shape index: {}]   ;;  %s898_s2 = inlined_call_operand.vmem [shape: f32[32,1], index: 2, kind: input, shape index: {}]   ;;  %s899_s4 = inlined_call_operand.vmem [shape: f32[1,32,1], index: 4, kind: output, shape index: {1}]   ;;  %s900_s3 = inlined_call_operand.vmem [shape: f32[1,32,64], index: 3, kind: output, shape index: {0}]   ;;  %s901_s5 = inlined_call_operand.vmem [shape: f32[1,32,1], index: 5, kind: output, shape index: {2}]  }
   0x1   :  { %373 = vmatprep.subr.bf16.mxu1 %v612_v0  ;;  %v573_v1 = vld [vmem:[%s896_s0 + $0x80] sm:$0xff]   ;;  %571 = vset.pattern.permute.xlu0 %v612_v0  ;;  %v576_v4 = vld [vmem:[%s896_s0 + $0x88] sm:$0xff]   ;;  %v579_v7 = vld [vmem:[%s896_s0 + $0x90] sm:$0xff]   ;;  %23 = vst.msk [vmem:[%s899_s4] sm:$0xff] %vm22_vm1, %v613_v40  ;;  %vm434_vm3 = vcmask 523264  }
   0x2   :  { %v574_v2 = vld [vmem:[%s896_s0 + $0x40] sm:$0xff]   ;;  %572 = vset.pattern.permute.xlu1 %v612_v0  ;;  %374 = vmatpush1.bf16.msra.mxu1 %v573_v1  ;;  %v577_v5 = vld [vmem:[%s896_s0 + $0x48] sm:$0xff]   ;;  %v580_v8 = vld [vmem:[%s896_s0 + $0x50] sm:$0xff]   ;;  %24 = vst.msk [vmem:[%s899_s4 + $0x8] sm:$0xff] %vm22_vm1, %v613_v40 }
   0x3   :  { %v575_v3 = vld [vmem:[%s896_s0] sm:$0xff]   ;;  %541 = vmatprep.subr.bf16.mxu0 %v574_v2  ;;  %375 = vmatprep.subr.bf16.mxu1 %v612_v0  ;;  %v578_v6 = vld [vmem:[%s896_s0 + $0x8] sm:$0xff]   ;;  %v581_v9 = vld [vmem:[%s896_s0 + $0x10] sm:$0xff]   ;;  %25 = vst.msk [vmem:[%s899_s4 + $0x10] sm:$0xff] %vm22_vm1, %v613_v40 }
   0x4   :  { %542 = vmatpush3.bf16.msra.mxu0 %v575_v3  ;;  %v582_v10 = vld [vmem:[%s896_s0 + $0x98] sm:$0xff]   ;;  %v586_v13 = vld [vmem:[%s896_s0 + $0x60] sm:$0xff]   ;;  %v589_v16 = vld [vmem:[%s896_s0 + $0x68] sm:$0xff]   ;;  %26 = vst.msk [vmem:[%s899_s4 + $0x18] sm:$0xff] %vm22_vm1, %v613_v40 }
   0x5   :  { %543 = vmatprep.subr.bf16.mxu0 %v577_v5  ;;  %v583_v11 = vld [vmem:[%s896_s0 + $0x58] sm:$0xff]   ;;  %v585_v14 = vld [vmem:[%s896_s0 + $0xa0] sm:$0xff]   ;;  %v588_v17 = vld [vmem:[%s896_s0 + $0xa8] sm:$0xff]   ;;  %28 = vst.msk [vmem:[%s901_s5 + $0x8] sm:$0xff] %vm22_vm1, %v613_v40 }
   0x6   :  { %376 = vmatpush1.bf16.msra.mxu1 %v576_v4  ;;  %v584_v12 = vld [vmem:[%s896_s0 + $0x18] sm:$0xff]   ;;  %v587_v15 = vld [vmem:[%s896_s0 + $0x20] sm:$0xff]   ;;  %v590_v18 = vld [vmem:[%s896_s0 + $0x28] sm:$0xff]   ;;  %27 = vst.msk [vmem:[%s901_s5] sm:$0xff] %vm22_vm1, %v613_v40 }
   0x7   :  { %377 = vmatprep.subr.bf16.mxu1 %v612_v0  ;;  %v592_v19 = vld [vmem:[%s896_s0 + $0x70] sm:$0xff]   ;;  %v594_v22 = vld [vmem:[%s896_s0 + $0xb8] sm:$0xff]   ;;  %v597_v26 = vld [vmem:[%s896_s0 + $0xc0] sm:$0xff]   ;;  %29 = vst.msk [vmem:[%s901_s5 + $0x10] sm:$0xff] %vm22_vm1, %v613_v40 }
   0x8   :  { %544 = vmatpush3.bf16.msra.mxu0 %v578_v6  ;;  %v591_v20 = vld [vmem:[%s896_s0 + $0xb0] sm:$0xff]   ;;  %v595_v23 = vld [vmem:[%s896_s0 + $0x78] sm:$0xff]   ;;  %v93_v30 = vld [vmem:[%s898_s2] sm:$0xff]  ;;  %30 = vst.msk [vmem:[%s901_s5 + $0x18] sm:$0xff] %vm22_vm1, %v613_v40 }
   0x9   :  { %545 = vmatprep.subr.bf16.mxu0 %v580_v8  ;;  %v593_v21 = vld [vmem:[%s896_s0 + $0x30] sm:$0xff]   ;;  %v596_v25 = vld [vmem:[%s896_s0 + $0x38] sm:$0xff]   ;;  %99 = vperm.xlu0 %571, %v93_v30   ;;  %v601_v32 = vld [vmem:[%s896_s0 + $0xc8] sm:$0xff]  }
   0xa   :  { %378 = vmatpush1.bf16.msra.mxu1 %v579_v7  ;;  %v600_v24 = vld [vmem:[%s897_s1 + $0x4] ss:$16 sps:$4 sm:$0xff]   ;;  %v607_v27 = vld [vmem:[%s897_s1 + $0xc] ss:$16 sps:$4 sm:$0xff]   ;;  %v598_v28 = vld [vmem:[%s897_s1] ss:$16 sps:$4 sm:$0xff]  }
   0xb   :  { %379 = vmatprep.subr.bf16.mxu1 %v612_v0  ;;  %356 = vmatprep.mubr.bf16.mxu0 %v600_v24  ;;  %v603_v29 = vld [vmem:[%s897_s1 + $0x24] ss:$16 sps:$4 sm:$0xff]   ;;  %v94_v33 = vld [vmem:[%s898_s2 + $0x8] sm:$0xff]  ;;  %v96_v34 = vld [vmem:[%s898_s2 + $0x18] sm:$0xff] }
   0xc   :  { %546 = vmatpush3.bf16.msra.mxu0 %v581_v9  ;;  %539 = vmatprep.mubr.msk.bf16.mxu1 %vm317_vm0, %v607_v27  ;;  %v95_v31 = vld [vmem:[%s898_s2 + $0x10] sm:$0xff]  ;;  %v605_v37 = vld [vmem:[%s897_s1 + $0x8] ss:$16 sps:$4 sm:$0xff]   ;;  %v609_v38 = vld [vmem:[%s897_s1 + $0x2c] ss:$16 sps:$4 sm:$0xff]  }
   0xd   :  { %547 = vmatprep.subr.bf16.mxu0 %v583_v11  ;;  %109 = vperm.xlu1 %572, %v95_v31   ;;  %v602_v35 = vld [vmem:[%s896_s0 + $0xd0] sm:$0xff]   ;;  %v611_v39 = vld [vmem:[%s897_s1 + $0x28] ss:$16 sps:$4 sm:$0xff]  }
   0xe   :  { %380 = vmatpush1.bf16.msra.mxu1 %v582_v10  ;;  %104 = vperm.xlu0 %571, %v94_v33   ;;  %v608_v36 = vld [vmem:[%s897_s1 + $0x20] ss:$16 sps:$4 sm:$0xff]   ;;  %v440_v31 = vld [vmem:[%s899_s4 + $0x8] sm:$0xff] }
   0xf   :  { %381 = vmatprep.subr.bf16.mxu1 %v612_v0  ;;  %v441_v40 = vld [vmem:[%s899_s4 + $0x10] sm:$0xff] }
  0x10   :  { %548 = vmatpush3.bf16.msra.mxu0 %v584_v12 }
  0x11   :  { %549 = vmatprep.subr.bf16.mxu0 %v586_v13  ;;  %114 = vperm.xlu1 %572, %v96_v34   ;;  %v465_v34 = vld [vmem:[%s901_s5 + $0x8] sm:$0xff] }
  0x12   :  { %382 = vmatpush1.bf16.msra.mxu1 %v585_v14 }
  0x13   :  { %383 = vmatprep.subr.bf16.mxu1 %v612_v0 }
  0x14   :  { %550 = vmatpush3.bf16.msra.mxu0 %v587_v15 }
  0x15   :  { %551 = vmatprep.subr.bf16.mxu0 %v589_v16 }
  0x16   :  { %384 = vmatpush1.bf16.msra.mxu1 %v588_v17 }
  0x17   :  { %385 = vmatprep.subr.bf16.mxu1 %v612_v0 }
  0x18   :  { %552 = vmatpush3.bf16.msra.mxu0 %v590_v18 }
  0x19   :  { %553 = vmatprep.subr.bf16.mxu0 %v592_v19 }
  0x1a   :  { %386 = vmatpush1.bf16.msra.mxu1 %v591_v20 }
  0x1b   :  { %387 = vmatprep.subr.bf16.mxu1 %v612_v0 }
  0x1c   :  { %554 = vmatpush3.bf16.msra.mxu0 %v593_v21 }
  0x1d   :  { %555 = vmatprep.subr.bf16.mxu0 %v595_v23 }
  0x1e   :  { %388 = vmatpush1.bf16.msra.mxu1 %v594_v22 }
  0x1f   :  { %389 = vmatprep.subr.bf16.mxu1 %v612_v0 }
  0x20   :  { %556 = vmatpush3.bf16.msra.mxu0 %v596_v25 }
  0x22   :  { %390 = vmatpush1.bf16.msra.mxu1 %v597_v26 }
  0x23   :  { %357 = vmatmul.mubr.bf16.vlgmr.msra.gmra.mrb[0].mxu0 %v598_v28  ;;  %391 = vmatprep.subr.bf16.mxu1 %v612_v0 }
  0x24   :  { %364 = vmatprep.mubr.bf16.mxu0 %v603_v29  ;;  %v439_v29 = vld [vmem:[%s899_s4] sm:$0xff] }
  0x26   :  { %392 = vmatpush1.bf16.msra.mxu1 %v601_v32 }
  0x27   :  { %393 = vmatprep.subr.bf16.mxu1 %v612_v0 }
  0x2a   :  { %394 = vmatpush1.bf16.msra.mxu1 %v602_v35 }
  0x2b   :  { %365 = vmatmul.mubr.bf16.gmra.mrb[4].mxu0 %v608_v36 }
  0x2d   :  { %406 = vmatmul.mubr.bf16.vlgmr.msra.gmra.mrb[0].mxu1 %v605_v37  ;;  %v464_v37 = vld [vmem:[%s901_s5] sm:$0xff] }
  0x2e   :  { %540 = vmatprep.mubr.msk.bf16.mxu1 %vm317_vm0, %v609_v38 }
  0x35   :  { %414 = vmatmul.mubr.bf16.gmra.mrb[4].mxu1 %v611_v39 }
  0x88   :  { %v100_v43 = vpop.permute.xlu0 %99 }
  0x8c   :  { %v110_v51 = vpop.permute.xlu1 %109 }
  0x8d   :  { %v105_v48 = vpop.permute.xlu0 %104 }
  0x90   :  { %v115_v4 = vpop.permute.xlu1 %114 }
  0xf6   :  { %v557_v41 = vpop.f32.mrb[0].mxu0 }
  0xf7   :  { %v558_v42 = vpop.f32.mrb[1].mxu0 }
  0xf8   :  { %v559_v44 = vadd.f32 %v558_v42, %v557_v41  ;;  %v560_v45 = vpop.f32.mrb[2].mxu0 }
  0xf9   :  { %v561_v46 = vpop.f32.mrb[3].mxu0 }
  0xfa   :  { %v562_v47 = vadd.f32 %v561_v46, %v560_v45  ;;  %v359_v50 = vadd.f32 %v559_v44, %v100_v43  ;;  %v466_v43 = vld [vmem:[%s901_s5 + $0x10] sm:$0xff]  ;;  %v442_v46 = vld [vmem:[%s899_s4 + $0x18] sm:$0xff] }
  0xfc   :  { %v362_v56 = vadd.f32 %v562_v47, %v105_v48 }
  0xfe   :  { %v563_v49 = vpop.f32.mrb[4].mxu0 }
  0xff   :  { %v564_v52 = vpop.f32.mrb[5].mxu0 }
 0x100   :  { %v407_v53 = vpop.f32.mrb[0].mxu1  ;;  %v565_v54 = vadd.f32 %v564_v52, %v563_v49  ;;  %v566_v55 = vpop.f32.mrb[6].mxu0 }
 0x101   :  { %v408_v57 = vadd.f32 %v407_v53, %v359_v50  ;;  %v409_v58 = vpop.f32.mrb[1].mxu1  ;;  %v567_v59 = vpop.f32.mrb[7].mxu0  ;;  %v467_v50 = vld [vmem:[%s901_s5 + $0x18] sm:$0xff] }
 0x102   :  { %v410_v60 = vpop.f32.mrb[2].mxu1  ;;  %v568_v61 = vadd.f32 %v567_v59, %v566_v55  ;;  %v367_v3 = vadd.f32 %v565_v54, %v110_v51 }
 0x103   :  { %v426_v62 = vmul.f32 0.1, %v408_v57  ;;  %v411_v63 = vadd.f32 %v410_v60, %v362_v56  ;;  %v412_v0 = vpop.f32.mrb[3].mxu1  ;;  %vm422_vm2 = vcmp.gt.f32.partialorder %v408_v57, 0.0 }
 0x104   :  { %v370_v11 = vadd.f32 %v568_v61, %v115_v4 }
 0x105   :  { %v427_v1 = vmul.f32 0.1, %v411_v63  ;;  %v430_v2 = vsel %vm422_vm2, %v408_v57, %v426_v62  ;;  %vm423_vm4 = vcmp.gt.f32.partialorder %v411_v63, 0.0 }
 0x106   :  { %v443_v5 = vsel %vm434_vm3, %v430_v2, 0.0  ;;  %435 = vst.msk [vmem:[%s900_s3] sm:$0xff] %vm434_vm3, %v430_v2  ;;  %v468_v10 = vmul.f32 %v430_v2, %v430_v2 }
 0x107   :  { %444 = vadd.xlane.f32.xlu0 %v443_v5  ;;  %v431_v6 = vsel %vm423_vm4, %v411_v63, %v427_v1 }
 0x108   :  { %v415_v7 = vpop.f32.mrb[4].mxu1  ;;  %v446_v8 = vsel %vm434_vm3, %v431_v6, 0.0  ;;  %436 = vst.msk [vmem:[%s900_s3 + $0x8] sm:$0xff] %vm434_vm3, %v431_v6  ;;  %v469_v9 = vmul.f32 %v431_v6, %v431_v6  ;;  %v472_v19 = vsel %vm434_vm3, %v468_v10, 0.0 }
 0x109   :  { %v416_v12 = vadd.f32 %v415_v7, %v367_v3  ;;  %v417_v13 = vpop.f32.mrb[5].mxu1  ;;  %447 = vadd.xlane.f32.xlu1 %v446_v8 }
 0x10a   :  { %v418_v14 = vpop.f32.mrb[6].mxu1  ;;  %v475_v15 = vsel %vm434_vm3, %v469_v9, 0.0 }
 0x10b   :  { %v428_v16 = vmul.f32 0.1, %v416_v12  ;;  %v419_v17 = vadd.f32 %v418_v14, %v370_v11  ;;  %v420_v18 = vpop.f32.mrb[7].mxu1  ;;  %476 = vadd.xlane.f32.xlu0 %v475_v15  ;;  %vm424_vm5 = vcmp.gt.f32.partialorder %v416_v12, 0.0 }
 0x10d   :  { %v429_v20 = vmul.f32 0.1, %v419_v17  ;;  %473 = vadd.xlane.f32.xlu1 %v472_v19  ;;  %v432_v21 = vsel %vm424_vm5, %v416_v12, %v428_v16  ;;  %vm425_vm6 = vcmp.gt.f32.partialorder %v419_v17, 0.0 }
 0x10e   :  { %437 = vst.msk [vmem:[%s900_s3 + $0x10] sm:$0xff] %vm434_vm3, %v432_v21  ;;  %v449_v22 = vsel %vm434_vm3, %v432_v21, 0.0  ;;  %v470_v23 = vmul.f32 %v432_v21, %v432_v21 }
 0x10f   :  { %450 = vadd.xlane.f32.xlu0 %v449_v22  ;;  %v433_v24 = vsel %vm425_vm6, %v419_v17, %v429_v20 }
 0x110   :  { %v478_v25 = vsel %vm434_vm3, %v470_v23, 0.0  ;;  %438 = vst.msk [vmem:[%s900_s3 + $0x18] sm:$0xff] %vm434_vm3, %v433_v24  ;;  %v452_v26 = vsel %vm434_vm3, %v433_v24, 0.0  ;;  %v471_v27 = vmul.f32 %v433_v24, %v433_v24 }
 0x111   :  { %479 = vadd.xlane.f32.xlu1 %v478_v25 }
 0x112   :  { %v481_v28 = vsel %vm434_vm3, %v471_v27, 0.0 }
 0x113   :  { %453 = vadd.xlane.f32.xlu0 %v452_v26 }
 0x117   :  { %482 = vadd.xlane.f32.xlu0 %v481_v28 }
 0x194   :  { %v445_v30 = vpop.xlane.xlu0 %444 }
 0x195   :  { %v455_v32 = vadd.f32 %v445_v30, %v439_v29 }
 0x196   :  { %v448_v33 = vpop.xlane.xlu1 %447 }
 0x197   :  { %460 = vst.msk [vmem:[%s899_s4] sm:$0xff] %vm22_vm1, %v455_v32  ;;  %v456_v35 = vadd.f32 %v448_v33, %v440_v31 }
 0x198   :  { %v477_v36 = vpop.xlane.xlu0 %476 }
 0x199   :  { %461 = vst.msk [vmem:[%s899_s4 + $0x8] sm:$0xff] %vm22_vm1, %v456_v35  ;;  %v485_v38 = vadd.f32 %v477_v36, %v465_v34 }
 0x19a   :  { %v474_v39 = vpop.xlane.xlu1 %473 }
 0x19b   :  { %489 = vst.msk [vmem:[%s901_s5 + $0x8] sm:$0xff] %vm22_vm1, %v485_v38  ;;  %v484_v41 = vadd.f32 %v474_v39, %v464_v37 }
 0x19c   :  { %v451_v42 = vpop.xlane.xlu0 %450 }
 0x19d   :  { %488 = vst.msk [vmem:[%s901_s5] sm:$0xff] %vm22_vm1, %v484_v41  ;;  %v457_v44 = vadd.f32 %v451_v42, %v441_v40 }
 0x19e   :  { %v480_v45 = vpop.xlane.xlu1 %479 }
 0x19f   :  { %462 = vst.msk [vmem:[%s899_s4 + $0x10] sm:$0xff] %vm22_vm1, %v457_v44  ;;  %v486_v47 = vadd.f32 %v480_v45, %v466_v43 }
 0x1a0   :  { %v454_v48 = vpop.xlane.xlu0 %453 }
 0x1a1   :  { %490 = vst.msk [vmem:[%s901_s5 + $0x10] sm:$0xff] %vm22_vm1, %v486_v47  ;;  %v458_v49 = vadd.f32 %v454_v48, %v442_v46 }
 0x1a3   :  { %463 = vst.msk [vmem:[%s899_s4 + $0x18] sm:$0xff] %vm22_vm1, %v458_v49 }
 0x1a4   :  { %v483_v51 = vpop.xlane.xlu0 %482 }
 0x1a5   :  { %v487_v52 = vadd.f32 %v483_v51, %v467_v50 }
 0x1a7   :  { %491 = vst.msk [vmem:[%s901_s5 + $0x18] sm:$0xff] %vm22_vm1, %v487_v52 }

// kernel: squeeze.42
= control target key start
LH: loop header
LB: loop body
LE: loop exit
PB: predicated region body
PF: predicated region fallthrough
CT: control target
= control target key end

     0   :  { %s37_s8 = smov 104   ;;  %vm7_vm0 = vcmask 64512   ;;  %s38_s9 = smov 112   ;;  %s55_s0 = inlined_call_operand.vmem [shape: f32[32], index: 0, kind: input, shape index: {}]   ;;  %s56_s1 = inlined_call_operand.vmem [shape: f32[4,8], index: 1, kind: output, shape index: {}]  }
   0x1   :  { %v4_v0 = vld [vmem:[%s55_s0] sm:$0x1]  ;;  %s36_s0 = smov 120  }
   0x2   :  { %5 = vst [vmem:[#allocation1] sm:$0x1] %v4_v0 }
   0x9   :  { %v9_v1 = vld [vmem:[#allocation1] sm:$0x1]  }
   0xa   :  { %v21_v2 = vld [vmem:[#allocation1] sm:$0x1]   ;;  %10 = vrot.lane.b32.xlu0 %v9_v1, %s36_s0 }
   0xb   :  { %22 = vrot.lane.b32.xlu1 %v21_v2, %s37_s8  ;;  %v6_v3 = vld [vmem:[#allocation1] sm:$0x1]  }
   0xc   :  { %v15_v4 = vld [vmem:[#allocation1] sm:$0x1]   ;;  %8 = vst.msk [vmem:[#allocation0] sm:$0x1] %vm7_vm0, %v6_v3  }
   0xe   :  { %16 = vrot.lane.b32.xlu0 %v15_v4, %s38_s9 }
  0x7c   :  { %v11_v5 = vpop.permute.xlu0 %10  }
  0x7d   :  { %v23_v6 = vpop.permute.xlu1 %22   ;;  %14 = vst.msk [vmem:[#allocation0 + $0x1] sm:$0x1] %vm7_vm0, %v11_v5  }
  0x7e   :  { %26 = vst.msk [vmem:[#allocation0 + $0x3] sm:$0x1] %vm7_vm0, %v23_v6  }
  0x80   :  { %v17_v7 = vpop.permute.xlu0 %16  }
  0x81   :  { %20 = vst.msk [vmem:[#allocation0 + $0x2] sm:$0x1] %vm7_vm0, %v17_v7  }
  0x88   :  { %v30_v8 = vld [vmem:[#allocation0] sm:$0xf] }
  0x89   :  { %32 = vst [vmem:[%s56_s1] sm:$0xf] %v30_v8 }

// kernel: _lambda_.42
= control target key start
LH: loop header
LB: loop body
LE: loop exit
PB: predicated region body
PF: predicated region fallthrough
CT: control target
= control target key end

     0   :  { %v86_v0 = vmov 0   ;;  %vm74_vm0 = vcmask 523264   ;;  %s155_s1 = inlined_call_operand.vmem [shape: f32[1,32,1], index: 1, kind: input, shape index: {}]   ;;  %s156_s2 = inlined_call_operand.vmem [shape: f32[1,32,1], index: 2, kind: input, shape index: {}]   ;;  %s157_s0 = inlined_call_operand.vmem [shape: f32[1,32,64], index: 0, kind: input, shape index: {}]   ;;  %s158_s3 = inlined_call_operand.vmem [shape: f32[1,32,64], index: 3, kind: output, shape index: {}]  }
   0x1   :  { %85 = vset.pattern.permute.xlu1 %v86_v0  ;;  %84 = vset.pattern.permute.xlu0 %v86_v0  ;;  %v20_v1 = vld [vmem:[%s155_s1 + $0x10] sm:$0xff]  ;;  %v18_v2 = vld [vmem:[%s155_s1] sm:$0xff]  ;;  %v21_v3 = vld [vmem:[%s155_s1 + $0x18] sm:$0xff] }
   0x2   :  { %34 = vperm.xlu1 %85, %v20_v1   ;;  %24 = vperm.xlu0 %84, %v18_v2   ;;  %v19_v4 = vld [vmem:[%s155_s1 + $0x8] sm:$0xff]  ;;  %v46_v6 = vld [vmem:[%s156_s2] sm:$0xff]  ;;  %v49_v7 = vld [vmem:[%s156_s2 + $0x18] sm:$0xff] }
   0x3   :  { %v47_v5 = vld [vmem:[%s156_s2 + $0x8] sm:$0xff]  ;;  %v48_v8 = vld [vmem:[%s156_s2 + $0x10] sm:$0xff]  ;;  %v14_v11 = vld [vmem:[%s157_s0] sm:$0xff] }
   0x4   :  { %v15_v14 = vld [vmem:[%s157_s0 + $0x8] sm:$0xff]  ;;  %v16_v17 = vld [vmem:[%s157_s0 + $0x10] sm:$0xff]  ;;  %v17_v18 = vld [vmem:[%s157_s0 + $0x18] sm:$0xff] }
   0x6   :  { %39 = vperm.xlu1 %85, %v21_v3   ;;  %29 = vperm.xlu0 %84, %v19_v4  }
   0xa   :  { %57 = vperm.xlu1 %85, %v47_v5   ;;  %52 = vperm.xlu0 %84, %v46_v6  }
   0xe   :  { %67 = vperm.xlu1 %85, %v49_v7   ;;  %62 = vperm.xlu0 %84, %v48_v8  }
  0x81   :  { %v35_v9 = vpop.permute.xlu1 %34  ;;  %v25_v10 = vpop.permute.xlu0 %24 }
  0x82   :  { %v42_v15 = vmul.f32 %v25_v10, %v14_v11  ;;  %v44_v23 = vmul.f32 %v35_v9, %v16_v17 }
  0x85   :  { %v40_v12 = vpop.permute.xlu1 %39  ;;  %v30_v13 = vpop.permute.xlu0 %29 }
  0x86   :  { %v43_v16 = vmul.f32 %v30_v13, %v15_v14  ;;  %v45_v24 = vmul.f32 %v40_v12, %v17_v18 }
  0x89   :  { %v58_v19 = vpop.permute.xlu1 %57  ;;  %v53_v20 = vpop.permute.xlu0 %52 }
  0x8a   :  { %v71_v21 = vadd.f32 %v58_v19, %v43_v16  ;;  %v70_v22 = vadd.f32 %v53_v20, %v42_v15 }
  0x8c   :  { %76 = vst.msk [vmem:[%s158_s3 + $0x8] sm:$0xff] %vm74_vm0, %v71_v21  ;;  %75 = vst.msk [vmem:[%s158_s3] sm:$0xff] %vm74_vm0, %v70_v22 }
  0x8d   :  { %v68_v25 = vpop.permute.xlu1 %67  ;;  %v63_v26 = vpop.permute.xlu0 %62 }
  0x8e   :  { %v73_v27 = vadd.f32 %v68_v25, %v45_v24  ;;  %v72_v28 = vadd.f32 %v63_v26, %v44_v23 }
  0x90   :  { %78 = vst.msk [vmem:[%s158_s3 + $0x18] sm:$0xff] %vm74_vm0, %v73_v27  ;;  %77 = vst.msk [vmem:[%s158_s3 + $0x10] sm:$0xff] %vm74_vm0, %v72_v28 }

// kernel: _lambda_.43
= control target key start
LH: loop header
LB: loop body
LE: loop exit
PB: predicated region body
PF: predicated region fallthrough
CT: control target
= control target key end

     0   :  { %v1114_v1 = vmov 0   ;;  %vm573_vm0 = vcmask 785408   ;;  %vm22_vm1 = vcmask 7168   ;;  %vm788_vm3 = vcmask 523264   ;;  %s1484_s0 = inlined_call_operand.vmem [shape: bf16[1,864,64], index: 0, kind: input, shape index: {}]   ;;  %s1485_s1 = inlined_call_operand.vmem [shape: bf16[32,864], index: 1, kind: input, shape index: {}]   ;;  %s1486_s2 = inlined_call_operand.vmem [shape: f32[32,1], index: 2, kind: input, shape index: {}]   ;;  %s1487_s4 = inlined_call_operand.vmem [shape: f32[1,32,1], index: 4, kind: output, shape index: {1}]   ;;  %s1488_s3 = inlined_call_operand.vmem [shape: f32[1,32,64], index: 3, kind: output, shape index: {0}]   ;;  %s1489_s5 = inlined_call_operand.vmem [shape: f32[1,32,1], index: 5, kind: output, shape index: {2}]  }
   0x1   :  { %v1040_v0 = vld [vmem:[%s1484_s0 + $0x40] sm:$0xff]   ;;  %1038 = vset.pattern.permute.xlu0 %v1114_v1  ;;  %1039 = vset.pattern.permute.xlu1 %v1114_v1  ;;  %v1044_v5 = vld [vmem:[%s1484_s0 + $0x48] sm:$0xff]   ;;  %v1048_v9 = vld [vmem:[%s1484_s0 + $0x50] sm:$0xff]  }
   0x2   :  { %v1041_v2 = vld [vmem:[%s1484_s0] sm:$0xff]   ;;  %928 = vmatprep.subr.bf16.mxu0 %v1040_v0  ;;  %v1045_v6 = vld [vmem:[%s1484_s0 + $0x8] sm:$0xff]   ;;  %v1049_v10 = vld [vmem:[%s1484_s0 + $0x10] sm:$0xff]  }
   0x3   :  { %v1042_v3 = vld [vmem:[%s1484_s0 + $0xc0] sm:$0xff]   ;;  %929 = vmatpush3.bf16.msra.mxu0 %v1041_v2  ;;  %v1046_v7 = vld [vmem:[%s1484_s0 + $0xc8] sm:$0xff]   ;;  %v1050_v11 = vld [vmem:[%s1484_s0 + $0xd0] sm:$0xff]  }
   0x4   :  { %v1043_v4 = vld [vmem:[%s1484_s0 + $0x80] sm:$0xff]   ;;  %956 = vmatprep.subr.bf16.mxu1 %v1042_v3  ;;  %930 = vmatprep.subr.bf16.mxu0 %v1044_v5  ;;  %v1047_v8 = vld [vmem:[%s1484_s0 + $0x88] sm:$0xff]   ;;  %v1051_v12 = vld [vmem:[%s1484_s0 + $0x90] sm:$0xff]  }
   0x5   :  { %957 = vmatpush3.bf16.msra.mxu1 %v1043_v4  ;;  %v1052_v13 = vld [vmem:[%s1484_s0 + $0x58] sm:$0xff]   ;;  %v1056_v17 = vld [vmem:[%s1484_s0 + $0x60] sm:$0xff]   ;;  %v1060_v21 = vld [vmem:[%s1484_s0 + $0x68] sm:$0xff]  }
   0x6   :  { %958 = vmatprep.subr.bf16.mxu1 %v1046_v7  ;;  %v1053_v14 = vld [vmem:[%s1484_s0 + $0x18] sm:$0xff]   ;;  %v1057_v18 = vld [vmem:[%s1484_s0 + $0x20] sm:$0xff]   ;;  %v1061_v22 = vld [vmem:[%s1484_s0 + $0x28] sm:$0xff]  }
   0x7   :  { %931 = vmatpush3.bf16.msra.mxu0 %v1045_v6  ;;  %v1054_v15 = vld [vmem:[%s1484_s0 + $0xd8] sm:$0xff]   ;;  %v1058_v19 = vld [vmem:[%s1484_s0 + $0xe0] sm:$0xff]   ;;  %v1062_v23 = vld [vmem:[%s1484_s0 + $0xe8] sm:$0xff]  }
   0x8   :  { %932 = vmatprep.subr.bf16.mxu0 %v1048_v9  ;;  %v1055_v16 = vld [vmem:[%s1484_s0 + $0x98] sm:$0xff]   ;;  %v1059_v20 = vld [vmem:[%s1484_s0 + $0xa0] sm:$0xff]   ;;  %v1063_v24 = vld [vmem:[%s1484_s0 + $0xa8] sm:$0xff]   ;;  %v1115_v9 = vmov 0.0  }
   0x9   :  { %959 = vmatpush3.bf16.msra.mxu1 %v1047_v8  ;;  %v1064_v25 = vld [vmem:[%s1484_s0 + $0x70] sm:$0xff]   ;;  %v1068_v29 = vld [vmem:[%s1484_s0 + $0x78] sm:$0xff]   ;;  %v1073_v33 = vld [vmem:[%s1485_s1 + $0x4] ss:$28 sps:$4 sm:$0xff]   ;;  %23 = vst.msk [vmem:[%s1487_s4] sm:$0xff] %vm22_vm1, %v1115_v9 }
   0xa   :  { %960 = vmatprep.subr.bf16.mxu1 %v1050_v11  ;;  %v1065_v26 = vld [vmem:[%s1484_s0 + $0x30] sm:$0xff]   ;;  %v1069_v30 = vld [vmem:[%s1484_s0 + $0x38] sm:$0xff]   ;;  %612 = vmatprep.mubr.bf16.mxu0 %v1073_v33  ;;  %v1075_v35 = vld [vmem:[%s1484_s0 + $0x140] sm:$0xff]   ;;  %24 = vst.msk [vmem:[%s1487_s4 + $0x8] sm:$0xff] %vm22_vm1, %v1115_v9 }
   0xb   :  { %933 = vmatpush3.bf16.msra.mxu0 %v1049_v10  ;;  %v1066_v27 = vld [vmem:[%s1484_s0 + $0xf0] sm:$0xff]   ;;  %v1070_v31 = vld [vmem:[%s1484_s0 + $0xf8] sm:$0xff]   ;;  %v1076_v36 = vld [vmem:[%s1485_s1 + $0x8] ss:$28 sps:$4 sm:$0xff]   ;;  %25 = vst.msk [vmem:[%s1487_s4 + $0x10] sm:$0xff] %vm22_vm1, %v1115_v9 }
   0xc   :  { %934 = vmatprep.subr.bf16.mxu0 %v1052_v13  ;;  %v1067_v28 = vld [vmem:[%s1484_s0 + $0xb0] sm:$0xff]   ;;  %v1071_v32 = vld [vmem:[%s1485_s1] ss:$28 sps:$4 sm:$0xff]   ;;  %v1078_v37 = vld [vmem:[%s1485_s1 + $0xc] ss:$28 sps:$4 sm:$0xff]   ;;  %26 = vst.msk [vmem:[%s1487_s4 + $0x18] sm:$0xff] %vm22_vm1, %v1115_v9 }
   0xd   :  { %961 = vmatpush3.bf16.msra.mxu1 %v1051_v12  ;;  %v1074_v34 = vld [vmem:[%s1484_s0 + $0xb8] sm:$0xff]   ;;  %v1079_v38 = vld [vmem:[%s1484_s0 + $0x100] sm:$0xff]   ;;  %661 = vmatprep.mubr.bf16.mxu1 %v1078_v37  ;;  %v1080_v39 = vld [vmem:[%s1484_s0 + $0x148] sm:$0xff]   ;;  %28 = vst.msk [vmem:[%s1489_s5 + $0x8] sm:$0xff] %vm22_vm1, %v1115_v9 }
   0xe   :  { %962 = vmatprep.subr.bf16.mxu1 %v1054_v15  ;;  %v1081_v40 = vld [vmem:[%s1484_s0 + $0x108] sm:$0xff]   ;;  %v1082_v41 = vld [vmem:[%s1484_s0 + $0x150] sm:$0xff]   ;;  %v1084_v42 = vld [vmem:[%s1484_s0 + $0x180] sm:$0xff]   ;;  %27 = vst.msk [vmem:[%s1489_s5] sm:$0xff] %vm22_vm1, %v1115_v9 }
   0xf   :  { %935 = vmatpush3.bf16.msra.mxu0 %v1053_v14  ;;  %v1083_v43 = vld [vmem:[%s1484_s0 + $0x110] sm:$0xff]   ;;  %v1085_v44 = vld [vmem:[%s1484_s0 + $0x158] sm:$0xff]   ;;  %v1087_v45 = vld [vmem:[%s1484_s0 + $0x188] sm:$0xff]   ;;  %29 = vst.msk [vmem:[%s1489_s5 + $0x10] sm:$0xff] %vm22_vm1, %v1115_v9 }
  0x10   :  { %936 = vmatprep.subr.bf16.mxu0 %v1056_v17  ;;  %v1086_v46 = vld [vmem:[%s1484_s0 + $0x118] sm:$0xff]   ;;  %v1088_v47 = vld [vmem:[%s1484_s0 + $0x160] sm:$0xff]   ;;  %v1090_v48 = vld [vmem:[%s1484_s0 + $0x190] sm:$0xff]   ;;  %30 = vst.msk [vmem:[%s1489_s5 + $0x18] sm:$0xff] %vm22_vm1, %v1115_v9 }
  0x11   :  { %963 = vmatpush3.bf16.msra.mxu1 %v1055_v16  ;;  %v1091_v49 = vld [vmem:[%s1485_s1 + $0x3c] ss:$28 sps:$4 sm:$0xff]   ;;  %v1089_v50 = vld [vmem:[%s1484_s0 + $0x120] sm:$0xff]   ;;  %v1093_v52 = vld [vmem:[%s1484_s0 + $0x168] sm:$0xff]  }
  0x12   :  { %964 = vmatprep.subr.bf16.mxu1 %v1058_v19  ;;  %v1094_v51 = vld [vmem:[%s1485_s1 + $0x38] ss:$28 sps:$4 sm:$0xff]   ;;  %v1097_v54 = vld [vmem:[%s1485_s1 + $0x44] ss:$28 sps:$4 sm:$0xff]   ;;  %v1095_v56 = vld [vmem:[%s1484_s0 + $0x128] sm:$0xff]  }
  0x13   :  { %937 = vmatpush3.bf16.msra.mxu0 %v1057_v18  ;;  %v1096_v53 = vld [vmem:[%s1484_s0 + $0x198] sm:$0xff]   ;;  %v1100_v57 = vld [vmem:[%s1484_s0 + $0x170] sm:$0xff]   ;;  %v1102_v58 = vld [vmem:[%s1484_s0 + $0x1a0] sm:$0xff]  }
  0x14   :  { %938 = vmatprep.subr.bf16.mxu0 %v1060_v21  ;;  %v1099_v55 = vld [vmem:[%s1485_s1 + $0x40] ss:$28 sps:$4 sm:$0xff]   ;;  %v1101_v59 = vld [vmem:[%s1484_s0 + $0x130] sm:$0xff]   ;;  %v1105_v61 = vld [vmem:[%s1484_s0 + $0x1a8] sm:$0xff]  }
  0x15   :  { %965 = vmatpush3.bf16.msra.mxu1 %v1059_v20  ;;  %v1103_v60 = vld [vmem:[%s1484_s0 + $0x178] sm:$0xff]   ;;  %v1108_v62 = vld [vmem:[%s1485_s1 + $0x14] ss:$28 sps:$4 sm:$0xff]   ;;  %v155_v2 = vld [vmem:[%s1486_s2] sm:$0xff] }
  0x16   :  { %966 = vmatprep.subr.bf16.mxu1 %v1062_v23  ;;  %v1109_v63 = vld [vmem:[%s1485_s1 + $0x18] ss:$28 sps:$4 sm:$0xff]   ;;  %v1110_v1 = vld [vmem:[%s1485_s1 + $0x50] ss:$28 sps:$4 sm:$0xff]   ;;  %161 = vperm.xlu0 %1038, %v155_v2   ;;  %v1113_v8 = vld [vmem:[%s1485_s1 + $0x48] ss:$28 sps:$4 sm:$0xff]  }
  0x17   :  { %939 = vmatpush3.bf16.msra.mxu0 %v1061_v22  ;;  %v1104_v0 = vld [vmem:[%s1484_s0 + $0x138] sm:$0xff]   ;;  %v157_v3 = vld [vmem:[%s1486_s2 + $0x10] sm:$0xff]  ;;  %v1111_v5 = vld [vmem:[%s1485_s1 + $0x4c] ss:$28 sps:$4 sm:$0xff]  }
  0x18   :  { %940 = vmatprep.subr.bf16.mxu0 %v1064_v25  ;;  %v1106_v4 = vld [vmem:[%s1485_s1 + $0x10] ss:$28 sps:$4 sm:$0xff]   ;;  %171 = vperm.xlu1 %1039, %v157_v3   ;;  %v158_v7 = vld [vmem:[%s1486_s2 + $0x18] sm:$0xff] }
  0x19   :  { %967 = vmatpush3.bf16.msra.mxu1 %v1063_v24  ;;  %v156_v6 = vld [vmem:[%s1486_s2 + $0x8] sm:$0xff] }
  0x1a   :  { %968 = vmatprep.subr.bf16.mxu1 %v1066_v27  ;;  %166 = vperm.xlu0 %1038, %v156_v6   ;;  %v819_v9 = vld [vmem:[%s1489_s5 + $0x8] sm:$0xff] }
  0x1b   :  { %941 = vmatpush3.bf16.msra.mxu0 %v1065_v26 }
  0x1c   :  { %942 = vmatprep.subr.bf16.mxu0 %v1068_v29  ;;  %176 = vperm.xlu1 %1039, %v158_v7  }
  0x1d   :  { %969 = vmatpush3.bf16.msra.mxu1 %v1067_v28 }
  0x1e   :  { %970 = vmatprep.subr.bf16.mxu1 %v1070_v31 }
  0x1f   :  { %943 = vmatpush3.bf16.msra.mxu0 %v1069_v30 }
  0x20   :  { %984 = vmatprep.subr.bf16.mxu0 %v1075_v35 }
  0x21   :  { %971 = vmatpush3.bf16.msra.mxu1 %v1074_v34 }
  0x22   :  { %613 = vmatmul.mubr.bf16.vlgmr.msra.gmra.mrb[0].mxu0 %v1071_v32  ;;  %1020 = vmatprep.subr.bf16.mxu1 %v1084_v42 }
  0x23   :  { %985 = vmatpush3.bf16.msra.mxu0 %v1079_v38  ;;  %620 = vmatprep.mubr.bf16.mxu0 %v1091_v49 }
  0x24   :  { %662 = vmatmul.mubr.bf16.vlgmr.msra.gmra.mrb[0].mxu1 %v1076_v36  ;;  %986 = vmatprep.subr.bf16.mxu0 %v1080_v39 }
  0x25   :  { %1021 = vmatpush3.bf16.msra.mxu1 %v1084_v42  ;;  %669 = vmatprep.mubr.bf16.mxu1 %v1097_v54 }
  0x26   :  { %1022 = vmatprep.subr.bf16.mxu1 %v1087_v45 }
  0x27   :  { %987 = vmatpush3.bf16.msra.mxu0 %v1081_v40 }
  0x28   :  { %988 = vmatprep.subr.bf16.mxu0 %v1082_v41 }
  0x29   :  { %1023 = vmatpush3.bf16.msra.mxu1 %v1087_v45 }
  0x2a   :  { %1024 = vmatprep.subr.bf16.mxu1 %v1090_v48  ;;  %621 = vmatmul.mubr.bf16.gmra.mrb[4].mxu0 %v1094_v51 }
  0x2b   :  { %989 = vmatpush3.bf16.msra.mxu0 %v1083_v43  ;;  %710 = vmatprep.mubr.bf16.mxu0 %v1108_v62 }
  0x2c   :  { %990 = vmatprep.subr.bf16.mxu0 %v1085_v44  ;;  %670 = vmatmul.mubr.bf16.gmra.mrb[4].mxu1 %v1099_v55 }
  0x2d   :  { %1025 = vmatpush3.bf16.msra.mxu1 %v1090_v48  ;;  %1032 = vmatprep.mubr.msk.bf16.mxu1 %vm573_vm0, %v1109_v63 }
  0x2e   :  { %1026 = vmatprep.subr.bf16.mxu1 %v1096_v53 }
  0x2f   :  { %991 = vmatpush3.bf16.msra.mxu0 %v1086_v46 }
  0x30   :  { %992 = vmatprep.subr.bf16.mxu0 %v1088_v47 }
  0x31   :  { %1027 = vmatpush3.bf16.msra.mxu1 %v1096_v53 }
  0x32   :  { %1028 = vmatprep.subr.bf16.mxu1 %v1102_v58 }
  0x33   :  { %993 = vmatpush3.bf16.msra.mxu0 %v1089_v50 }
  0x34   :  { %994 = vmatprep.subr.bf16.mxu0 %v1093_v52 }
  0x35   :  { %1029 = vmatpush3.bf16.msra.mxu1 %v1102_v58 }
  0x36   :  { %1030 = vmatprep.subr.bf16.mxu1 %v1105_v61 }
  0x37   :  { %995 = vmatpush3.bf16.msra.mxu0 %v1095_v56 }
  0x38   :  { %996 = vmatprep.subr.bf16.mxu0 %v1100_v57 }
  0x39   :  { %1031 = vmatpush3.bf16.msra.mxu1 %v1105_v61 }
  0x3b   :  { %997 = vmatpush3.bf16.msra.mxu0 %v1101_v59 }
  0x3c   :  { %998 = vmatprep.subr.bf16.mxu0 %v1103_v60  ;;  %1033 = vmatmul.mubr.msk.bf16.vlgmr.msra.gmra.mrb[8].mxu1 %vm573_vm0, %v1110_v1 }
  0x3f   :  { %999 = vmatpush3.bf16.msra.mxu0 %v1104_v0 }
  0x42   :  { %711 = vmatmul.mubr.bf16.vlgmr.msra.gmra.mrb[8].mxu0 %v1106_v4 }
  0x43   :  { %718 = vmatprep.mubr.bf16.mxu0 %v1111_v5 }
  0x4a   :  { %719 = vmatmul.mubr.bf16.gmra.mrb[12].mxu0 %v1113_v8 }
  0x95   :  { %v162_v10 = vpop.permute.xlu0 %161 }
  0x97   :  { %v172_v28 = vpop.permute.xlu1 %171 }
  0x99   :  { %v167_v15 = vpop.permute.xlu0 %166 }
  0x9b   :  { %v177_v34 = vpop.permute.xlu1 %176 }
  0xf5   :  { %v944_v11 = vpop.f32.mrb[0].mxu0 }
  0xf6   :  { %v945_v12 = vpop.f32.mrb[1].mxu0 }
  0xf7   :  { %v946_v13 = vadd.f32 %v945_v12, %v944_v11  ;;  %v947_v14 = vpop.f32.mrb[2].mxu0  ;;  %v972_v16 = vpop.f32.mrb[0].mxu1 }
  0xf8   :  { %v948_v17 = vpop.f32.mrb[3].mxu0  ;;  %v973_v20 = vpop.f32.mrb[1].mxu1 }
  0xf9   :  { %v615_v18 = vadd.f32 %v946_v13, %v162_v10  ;;  %v949_v19 = vadd.f32 %v948_v17, %v947_v14  ;;  %v974_v21 = vadd.f32 %v973_v20, %v972_v16  ;;  %v975_v22 = vpop.f32.mrb[2].mxu1 }
  0xfa   :  { %v976_v24 = vpop.f32.mrb[3].mxu1 }
  0xfb   :  { %v618_v23 = vadd.f32 %v949_v19, %v167_v15  ;;  %v664_v25 = vadd.f32 %v974_v21, %v615_v18  ;;  %v977_v26 = vadd.f32 %v976_v24, %v975_v22 }
  0xfd   :  { %v667_v27 = vadd.f32 %v977_v26, %v618_v23  ;;  %v950_v29 = vpop.f32.mrb[4].mxu0 }
  0xfe   :  { %v951_v30 = vpop.f32.mrb[5].mxu0 }
  0xff   :  { %v952_v31 = vadd.f32 %v951_v30, %v950_v29  ;;  %v953_v32 = vpop.f32.mrb[6].mxu0  ;;  %v978_v36 = vpop.f32.mrb[4].mxu1  ;;  %v794_v29 = vld [vmem:[%s1487_s4 + $0x8] sm:$0xff] }
 0x100   :  { %v954_v33 = vpop.f32.mrb[7].mxu0  ;;  %v979_v38 = vpop.f32.mrb[5].mxu1 }
 0x101   :  { %v623_v35 = vadd.f32 %v952_v31, %v172_v28  ;;  %v955_v37 = vadd.f32 %v954_v33, %v953_v32  ;;  %v980_v39 = vadd.f32 %v979_v38, %v978_v36  ;;  %v981_v40 = vpop.f32.mrb[6].mxu1 }
 0x102   :  { %v982_v42 = vpop.f32.mrb[7].mxu1 }
 0x103   :  { %v626_v41 = vadd.f32 %v955_v37, %v177_v34  ;;  %v672_v43 = vadd.f32 %v980_v39, %v623_v35  ;;  %v983_v44 = vadd.f32 %v982_v42, %v981_v40  ;;  %v818_v34 = vld [vmem:[%s1489_s5] sm:$0xff]  ;;  %v795_v37 = vld [vmem:[%s1487_s4 + $0x10] sm:$0xff] }
 0x104   :  { %v820_v40 = vld [vmem:[%s1489_s5 + $0x10] sm:$0xff] }
 0x105   :  { %v675_v45 = vadd.f32 %v983_v44, %v626_v41 }
 0x10f   :  { %v1034_v46 = vpop.f32.mrb[8].mxu1 }
 0x110   :  { %v761_v47 = vpop.f32.mrb[9].mxu1 }
 0x111   :  { %v1035_v49 = vpop.f32.mrb[10].mxu1 }
 0x112   :  { %v764_v51 = vpop.f32.mrb[11].mxu1 }
 0x115   :  { %v1000_v48 = vpop.f32.mrb[8].mxu0 }
 0x116   :  { %v1001_v50 = vpop.f32.mrb[9].mxu0 }
 0x117   :  { %v1002_v52 = vadd.f32 %v1001_v50, %v1000_v48  ;;  %v1003_v53 = vpop.f32.mrb[10].mxu0 }
 0x118   :  { %v1004_v54 = vpop.f32.mrb[11].mxu0 }
 0x119   :  { %v713_v55 = vadd.f32 %v1002_v52, %v664_v25  ;;  %v1005_v56 = vadd.f32 %v1004_v54, %v1003_v53 }
 0x11b   :  { %v762_v57 = vadd.f32 %v761_v47, %v713_v55  ;;  %v716_v58 = vadd.f32 %v1005_v56, %v667_v27  ;;  %v793_v27 = vld [vmem:[%s1487_s4] sm:$0xff]  ;;  %v821_v47 = vld [vmem:[%s1489_s5 + $0x18] sm:$0xff] }
 0x11d   :  { %v780_v59 = vmul.f32 0.1, %v762_v57  ;;  %v765_v60 = vadd.f32 %v764_v51, %v716_v58  ;;  %v1006_v61 = vpop.f32.mrb[12].mxu0  ;;  %vm776_vm2 = vcmp.gt.f32.partialorder %v762_v57, 0.0 }
 0x11e   :  { %v1007_v62 = vpop.f32.mrb[13].mxu0 }
 0x11f   :  { %v781_v63 = vmul.f32 0.1, %v765_v60  ;;  %v1008_v0 = vadd.f32 %v1007_v62, %v1006_v61  ;;  %v1009_v1 = vpop.f32.mrb[14].mxu0  ;;  %v784_v2 = vsel %vm776_vm2, %v762_v57, %v780_v59  ;;  %vm777_vm4 = vcmp.gt.f32.partialorder %v765_v60, 0.0 }
 0x120   :  { %v1010_v3 = vpop.f32.mrb[15].mxu0  ;;  %v797_v4 = vsel %vm788_vm3, %v784_v2, 0.0  ;;  %789 = vst.msk [vmem:[%s1488_s3] sm:$0xff] %vm788_vm3, %v784_v2  ;;  %v822_v11 = vmul.f32 %v784_v2, %v784_v2 }
 0x121   :  { %v721_v5 = vadd.f32 %v1008_v0, %v672_v43  ;;  %v1011_v6 = vadd.f32 %v1010_v3, %v1009_v1  ;;  %798 = vadd.xlane.f32.xlu0 %v797_v4  ;;  %v785_v7 = vsel %vm777_vm4, %v765_v60, %v781_v63  ;;  %v796_v43 = vld [vmem:[%s1487_s4 + $0x18] sm:$0xff] }
 0x122   :  { %v800_v8 = vsel %vm788_vm3, %v785_v7, 0.0  ;;  %790 = vst.msk [vmem:[%s1488_s3 + $0x8] sm:$0xff] %vm788_vm3, %v785_v7  ;;  %v823_v10 = vmul.f32 %v785_v7, %v785_v7  ;;  %v826_v17 = vsel %vm788_vm3, %v822_v11, 0.0 }
 0x123   :  { %v770_v12 = vadd.f32 %v1034_v46, %v721_v5  ;;  %v724_v13 = vadd.f32 %v1011_v6, %v675_v45  ;;  %801 = vadd.xlane.f32.xlu1 %v800_v8 }
 0x124   :  { %v829_v14 = vsel %vm788_vm3, %v823_v10, 0.0 }
 0x125   :  { %v773_v15 = vadd.f32 %v1035_v49, %v724_v13  ;;  %830 = vadd.xlane.f32.xlu0 %v829_v14  ;;  %vm778_vm5 = vcmp.gt.f32.partialorder %v770_v12, 0.0  ;;  %v782_v16 = vmul.f32 0.1, %v770_v12 }
 0x127   :  { %827 = vadd.xlane.f32.xlu1 %v826_v17  ;;  %v786_v18 = vsel %vm778_vm5, %v770_v12, %v782_v16  ;;  %vm779_vm6 = vcmp.gt.f32.partialorder %v773_v15, 0.0  ;;  %v783_v19 = vmul.f32 0.1, %v773_v15 }
 0x128   :  { %791 = vst.msk [vmem:[%s1488_s3 + $0x10] sm:$0xff] %vm788_vm3, %v786_v18  ;;  %v803_v20 = vsel %vm788_vm3, %v786_v18, 0.0  ;;  %v824_v21 = vmul.f32 %v786_v18, %v786_v18 }
 0x129   :  { %804 = vadd.xlane.f32.xlu0 %v803_v20  ;;  %v787_v22 = vsel %vm779_vm6, %v773_v15, %v783_v19 }
 0x12a   :  { %v832_v23 = vsel %vm788_vm3, %v824_v21, 0.0  ;;  %792 = vst.msk [vmem:[%s1488_s3 + $0x18] sm:$0xff] %vm788_vm3, %v787_v22  ;;  %v806_v24 = vsel %vm788_vm3, %v787_v22, 0.0  ;;  %v825_v25 = vmul.f32 %v787_v22, %v787_v22 }
 0x12b   :  { %833 = vadd.xlane.f32.xlu1 %v832_v23 }
 0x12c   :  { %v835_v26 = vsel %vm788_vm3, %v825_v25, 0.0 }
 0x12d   :  { %807 = vadd.xlane.f32.xlu0 %v806_v24 }
 0x131   :  { %836 = vadd.xlane.f32.xlu0 %v835_v26 }
 0x1ae   :  { %v799_v28 = vpop.xlane.xlu0 %798 }
 0x1af   :  { %v809_v30 = vadd.f32 %v799_v28, %v793_v27 }
 0x1b0   :  { %v802_v31 = vpop.xlane.xlu1 %801 }
 0x1b1   :  { %814 = vst.msk [vmem:[%s1487_s4] sm:$0xff] %vm22_vm1, %v809_v30  ;;  %v810_v32 = vadd.f32 %v802_v31, %v794_v29 }
 0x1b2   :  { %v831_v33 = vpop.xlane.xlu0 %830 }
 0x1b3   :  { %815 = vst.msk [vmem:[%s1487_s4 + $0x8] sm:$0xff] %vm22_vm1, %v810_v32  ;;  %v839_v35 = vadd.f32 %v831_v33, %v819_v9 }
 0x1b4   :  { %v828_v36 = vpop.xlane.xlu1 %827 }
 0x1b5   :  { %843 = vst.msk [vmem:[%s1489_s5 + $0x8] sm:$0xff] %vm22_vm1, %v839_v35  ;;  %v838_v38 = vadd.f32 %v828_v36, %v818_v34 }
 0x1b6   :  { %v805_v39 = vpop.xlane.xlu0 %804 }
 0x1b7   :  { %842 = vst.msk [vmem:[%s1489_s5] sm:$0xff] %vm22_vm1, %v838_v38  ;;  %v811_v41 = vadd.f32 %v805_v39, %v795_v37 }
 0x1b8   :  { %v834_v42 = vpop.xlane.xlu1 %833 }
 0x1b9   :  { %816 = vst.msk [vmem:[%s1487_s4 + $0x10] sm:$0xff] %vm22_vm1, %v811_v41  ;;  %v840_v44 = vadd.f32 %v834_v42, %v820_v40 }
 0x1ba   :  { %v808_v45 = vpop.xlane.xlu0 %807 }
 0x1bb   :  { %844 = vst.msk [vmem:[%s1489_s5 + $0x10] sm:$0xff] %vm22_vm1, %v840_v44  ;;  %v812_v46 = vadd.f32 %v808_v45, %v796_v43 }
 0x1bd   :  { %817 = vst.msk [vmem:[%s1487_s4 + $0x18] sm:$0xff] %vm22_vm1, %v812_v46 }
 0x1be   :  { %v837_v48 = vpop.xlane.xlu0 %836 }
 0x1bf   :  { %v841_v49 = vadd.f32 %v837_v48, %v821_v47 }
 0x1c1   :  { %845 = vst.msk [vmem:[%s1489_s5 + $0x18] sm:$0xff] %vm22_vm1, %v841_v49 }

// kernel: _lambda_.45
= control target key start
LH: loop header
LB: loop body
LE: loop exit
PB: predicated region body
PF: predicated region fallthrough
CT: control target
= control target key end

     0   :  { %v1102_v1 = vmov 0   ;;  %vm573_vm0 = vcmask 785408   ;;  %vm22_vm1 = vcmask 7168   ;;  %vm776_vm2 = vcmask 523264   ;;  %s1472_s0 = inlined_call_operand.vmem [shape: bf16[1,864,64], index: 0, kind: input, shape index: {}]   ;;  %s1473_s1 = inlined_call_operand.vmem [shape: bf16[32,864], index: 1, kind: input, shape index: {}]   ;;  %s1474_s2 = inlined_call_operand.vmem [shape: f32[32,1], index: 2, kind: input, shape index: {}]   ;;  %s1475_s4 = inlined_call_operand.vmem [shape: f32[1,32,1], index: 4, kind: output, shape index: {1}]   ;;  %s1476_s3 = inlined_call_operand.vmem [shape: f32[1,32,64], index: 3, kind: output, shape index: {0}]   ;;  %s1477_s5 = inlined_call_operand.vmem [shape: f32[1,32,1], index: 5, kind: output, shape index: {2}]  }
   0x1   :  { %v1028_v0 = vld [vmem:[%s1472_s0 + $0x40] sm:$0xff]   ;;  %1026 = vset.pattern.permute.xlu0 %v1102_v1  ;;  %1027 = vset.pattern.permute.xlu1 %v1102_v1  ;;  %v1032_v5 = vld [vmem:[%s1472_s0 + $0x48] sm:$0xff]   ;;  %v1036_v9 = vld [vmem:[%s1472_s0 + $0x50] sm:$0xff]  }
   0x2   :  { %v1029_v2 = vld [vmem:[%s1472_s0] sm:$0xff]   ;;  %916 = vmatprep.subr.bf16.mxu0 %v1028_v0  ;;  %v1033_v6 = vld [vmem:[%s1472_s0 + $0x8] sm:$0xff]   ;;  %v1037_v10 = vld [vmem:[%s1472_s0 + $0x10] sm:$0xff]  }
   0x3   :  { %v1030_v3 = vld [vmem:[%s1472_s0 + $0xc0] sm:$0xff]   ;;  %917 = vmatpush3.bf16.msra.mxu0 %v1029_v2  ;;  %v1034_v7 = vld [vmem:[%s1472_s0 + $0xc8] sm:$0xff]   ;;  %v1038_v11 = vld [vmem:[%s1472_s0 + $0xd0] sm:$0xff]  }
   0x4   :  { %v1031_v4 = vld [vmem:[%s1472_s0 + $0x80] sm:$0xff]   ;;  %944 = vmatprep.subr.bf16.mxu1 %v1030_v3  ;;  %918 = vmatprep.subr.bf16.mxu0 %v1032_v5  ;;  %v1035_v8 = vld [vmem:[%s1472_s0 + $0x88] sm:$0xff]   ;;  %v1039_v12 = vld [vmem:[%s1472_s0 + $0x90] sm:$0xff]  }
   0x5   :  { %945 = vmatpush3.bf16.msra.mxu1 %v1031_v4  ;;  %v1040_v13 = vld [vmem:[%s1472_s0 + $0x58] sm:$0xff]   ;;  %v1044_v17 = vld [vmem:[%s1472_s0 + $0x60] sm:$0xff]   ;;  %v1048_v21 = vld [vmem:[%s1472_s0 + $0x68] sm:$0xff]  }
   0x6   :  { %946 = vmatprep.subr.bf16.mxu1 %v1034_v7  ;;  %v1041_v14 = vld [vmem:[%s1472_s0 + $0x18] sm:$0xff]   ;;  %v1045_v18 = vld [vmem:[%s1472_s0 + $0x20] sm:$0xff]   ;;  %v1049_v22 = vld [vmem:[%s1472_s0 + $0x28] sm:$0xff]  }
   0x7   :  { %919 = vmatpush3.bf16.msra.mxu0 %v1033_v6  ;;  %v1042_v15 = vld [vmem:[%s1472_s0 + $0xd8] sm:$0xff]   ;;  %v1046_v19 = vld [vmem:[%s1472_s0 + $0xe0] sm:$0xff]   ;;  %v1050_v23 = vld [vmem:[%s1472_s0 + $0xe8] sm:$0xff]  }
   0x8   :  { %920 = vmatprep.subr.bf16.mxu0 %v1036_v9  ;;  %v1043_v16 = vld [vmem:[%s1472_s0 + $0x98] sm:$0xff]   ;;  %v1047_v20 = vld [vmem:[%s1472_s0 + $0xa0] sm:$0xff]   ;;  %v1051_v24 = vld [vmem:[%s1472_s0 + $0xa8] sm:$0xff]   ;;  %v1103_v9 = vmov 0.0  }
   0x9   :  { %947 = vmatpush3.bf16.msra.mxu1 %v1035_v8  ;;  %v1052_v25 = vld [vmem:[%s1472_s0 + $0x70] sm:$0xff]   ;;  %v1056_v29 = vld [vmem:[%s1472_s0 + $0x78] sm:$0xff]   ;;  %v1061_v33 = vld [vmem:[%s1473_s1 + $0x4] ss:$28 sps:$4 sm:$0xff]   ;;  %23 = vst.msk [vmem:[%s1475_s4] sm:$0xff] %vm22_vm1, %v1103_v9 }
   0xa   :  { %948 = vmatprep.subr.bf16.mxu1 %v1038_v11  ;;  %v1053_v26 = vld [vmem:[%s1472_s0 + $0x30] sm:$0xff]   ;;  %v1057_v30 = vld [vmem:[%s1472_s0 + $0x38] sm:$0xff]   ;;  %612 = vmatprep.mubr.bf16.mxu0 %v1061_v33  ;;  %v1063_v35 = vld [vmem:[%s1472_s0 + $0x140] sm:$0xff]   ;;  %24 = vst.msk [vmem:[%s1475_s4 + $0x8] sm:$0xff] %vm22_vm1, %v1103_v9 }
   0xb   :  { %921 = vmatpush3.bf16.msra.mxu0 %v1037_v10  ;;  %v1054_v27 = vld [vmem:[%s1472_s0 + $0xf0] sm:$0xff]   ;;  %v1058_v31 = vld [vmem:[%s1472_s0 + $0xf8] sm:$0xff]   ;;  %v1064_v36 = vld [vmem:[%s1473_s1 + $0x8] ss:$28 sps:$4 sm:$0xff]   ;;  %25 = vst.msk [vmem:[%s1475_s4 + $0x10] sm:$0xff] %vm22_vm1, %v1103_v9 }
   0xc   :  { %922 = vmatprep.subr.bf16.mxu0 %v1040_v13  ;;  %v1055_v28 = vld [vmem:[%s1472_s0 + $0xb0] sm:$0xff]   ;;  %v1059_v32 = vld [vmem:[%s1473_s1] ss:$28 sps:$4 sm:$0xff]   ;;  %v1066_v37 = vld [vmem:[%s1473_s1 + $0xc] ss:$28 sps:$4 sm:$0xff]   ;;  %26 = vst.msk [vmem:[%s1475_s4 + $0x18] sm:$0xff] %vm22_vm1, %v1103_v9 }
   0xd   :  { %949 = vmatpush3.bf16.msra.mxu1 %v1039_v12  ;;  %v1062_v34 = vld [vmem:[%s1472_s0 + $0xb8] sm:$0xff]   ;;  %v1067_v38 = vld [vmem:[%s1472_s0 + $0x100] sm:$0xff]   ;;  %661 = vmatprep.mubr.bf16.mxu1 %v1066_v37  ;;  %v1068_v39 = vld [vmem:[%s1472_s0 + $0x148] sm:$0xff]   ;;  %28 = vst.msk [vmem:[%s1477_s5 + $0x8] sm:$0xff] %vm22_vm1, %v1103_v9 }
   0xe   :  { %950 = vmatprep.subr.bf16.mxu1 %v1042_v15  ;;  %v1069_v40 = vld [vmem:[%s1472_s0 + $0x108] sm:$0xff]   ;;  %v1070_v41 = vld [vmem:[%s1472_s0 + $0x150] sm:$0xff]   ;;  %v1072_v42 = vld [vmem:[%s1472_s0 + $0x180] sm:$0xff]   ;;  %27 = vst.msk [vmem:[%s1477_s5] sm:$0xff] %vm22_vm1, %v1103_v9 }
   0xf   :  { %923 = vmatpush3.bf16.msra.mxu0 %v1041_v14  ;;  %v1071_v43 = vld [vmem:[%s1472_s0 + $0x110] sm:$0xff]   ;;  %v1073_v44 = vld [vmem:[%s1472_s0 + $0x158] sm:$0xff]   ;;  %v1075_v45 = vld [vmem:[%s1472_s0 + $0x188] sm:$0xff]   ;;  %29 = vst.msk [vmem:[%s1477_s5 + $0x10] sm:$0xff] %vm22_vm1, %v1103_v9 }
  0x10   :  { %924 = vmatprep.subr.bf16.mxu0 %v1044_v17  ;;  %v1074_v46 = vld [vmem:[%s1472_s0 + $0x118] sm:$0xff]   ;;  %v1076_v47 = vld [vmem:[%s1472_s0 + $0x160] sm:$0xff]   ;;  %v1078_v48 = vld [vmem:[%s1472_s0 + $0x190] sm:$0xff]   ;;  %30 = vst.msk [vmem:[%s1477_s5 + $0x18] sm:$0xff] %vm22_vm1, %v1103_v9 }
  0x11   :  { %951 = vmatpush3.bf16.msra.mxu1 %v1043_v16  ;;  %v1079_v49 = vld [vmem:[%s1473_s1 + $0x3c] ss:$28 sps:$4 sm:$0xff]   ;;  %v1077_v50 = vld [vmem:[%s1472_s0 + $0x120] sm:$0xff]   ;;  %v1081_v52 = vld [vmem:[%s1472_s0 + $0x168] sm:$0xff]  }
  0x12   :  { %952 = vmatprep.subr.bf16.mxu1 %v1046_v19  ;;  %v1082_v51 = vld [vmem:[%s1473_s1 + $0x38] ss:$28 sps:$4 sm:$0xff]   ;;  %v1085_v54 = vld [vmem:[%s1473_s1 + $0x44] ss:$28 sps:$4 sm:$0xff]   ;;  %v1083_v56 = vld [vmem:[%s1472_s0 + $0x128] sm:$0xff]  }
  0x13   :  { %925 = vmatpush3.bf16.msra.mxu0 %v1045_v18  ;;  %v1084_v53 = vld [vmem:[%s1472_s0 + $0x198] sm:$0xff]   ;;  %v1088_v57 = vld [vmem:[%s1472_s0 + $0x170] sm:$0xff]   ;;  %v1090_v58 = vld [vmem:[%s1472_s0 + $0x1a0] sm:$0xff]  }
  0x14   :  { %926 = vmatprep.subr.bf16.mxu0 %v1048_v21  ;;  %v1087_v55 = vld [vmem:[%s1473_s1 + $0x40] ss:$28 sps:$4 sm:$0xff]   ;;  %v1089_v59 = vld [vmem:[%s1472_s0 + $0x130] sm:$0xff]   ;;  %v1093_v61 = vld [vmem:[%s1472_s0 + $0x1a8] sm:$0xff]  }
  0x15   :  { %953 = vmatpush3.bf16.msra.mxu1 %v1047_v20  ;;  %v1091_v60 = vld [vmem:[%s1472_s0 + $0x178] sm:$0xff]   ;;  %v1096_v62 = vld [vmem:[%s1473_s1 + $0x14] ss:$28 sps:$4 sm:$0xff]   ;;  %v155_v2 = vld [vmem:[%s1474_s2] sm:$0xff] }
  0x16   :  { %954 = vmatprep.subr.bf16.mxu1 %v1050_v23  ;;  %v1097_v63 = vld [vmem:[%s1473_s1 + $0x18] ss:$28 sps:$4 sm:$0xff]   ;;  %v1098_v1 = vld [vmem:[%s1473_s1 + $0x50] ss:$28 sps:$4 sm:$0xff]   ;;  %161 = vperm.xlu0 %1026, %v155_v2   ;;  %v1101_v8 = vld [vmem:[%s1473_s1 + $0x48] ss:$28 sps:$4 sm:$0xff]  }
  0x17   :  { %927 = vmatpush3.bf16.msra.mxu0 %v1049_v22  ;;  %v1092_v0 = vld [vmem:[%s1472_s0 + $0x138] sm:$0xff]   ;;  %v157_v3 = vld [vmem:[%s1474_s2 + $0x10] sm:$0xff]  ;;  %v1099_v5 = vld [vmem:[%s1473_s1 + $0x4c] ss:$28 sps:$4 sm:$0xff]  }
  0x18   :  { %928 = vmatprep.subr.bf16.mxu0 %v1052_v25  ;;  %v1094_v4 = vld [vmem:[%s1473_s1 + $0x10] ss:$28 sps:$4 sm:$0xff]   ;;  %171 = vperm.xlu1 %1027, %v157_v3   ;;  %v158_v7 = vld [vmem:[%s1474_s2 + $0x18] sm:$0xff] }
  0x19   :  { %955 = vmatpush3.bf16.msra.mxu1 %v1051_v24  ;;  %v156_v6 = vld [vmem:[%s1474_s2 + $0x8] sm:$0xff] }
  0x1a   :  { %956 = vmatprep.subr.bf16.mxu1 %v1054_v27  ;;  %166 = vperm.xlu0 %1026, %v156_v6   ;;  %v807_v9 = vld [vmem:[%s1477_s5 + $0x8] sm:$0xff] }
  0x1b   :  { %929 = vmatpush3.bf16.msra.mxu0 %v1053_v26 }
  0x1c   :  { %930 = vmatprep.subr.bf16.mxu0 %v1056_v29  ;;  %176 = vperm.xlu1 %1027, %v158_v7  }
  0x1d   :  { %957 = vmatpush3.bf16.msra.mxu1 %v1055_v28 }
  0x1e   :  { %958 = vmatprep.subr.bf16.mxu1 %v1058_v31 }
  0x1f   :  { %931 = vmatpush3.bf16.msra.mxu0 %v1057_v30 }
  0x20   :  { %972 = vmatprep.subr.bf16.mxu0 %v1063_v35 }
  0x21   :  { %959 = vmatpush3.bf16.msra.mxu1 %v1062_v34 }
  0x22   :  { %613 = vmatmul.mubr.bf16.vlgmr.msra.gmra.mrb[0].mxu0 %v1059_v32  ;;  %1008 = vmatprep.subr.bf16.mxu1 %v1072_v42 }
  0x23   :  { %973 = vmatpush3.bf16.msra.mxu0 %v1067_v38  ;;  %620 = vmatprep.mubr.bf16.mxu0 %v1079_v49 }
  0x24   :  { %662 = vmatmul.mubr.bf16.vlgmr.msra.gmra.mrb[0].mxu1 %v1064_v36  ;;  %974 = vmatprep.subr.bf16.mxu0 %v1068_v39 }
  0x25   :  { %1009 = vmatpush3.bf16.msra.mxu1 %v1072_v42  ;;  %669 = vmatprep.mubr.bf16.mxu1 %v1085_v54 }
  0x26   :  { %1010 = vmatprep.subr.bf16.mxu1 %v1075_v45 }
  0x27   :  { %975 = vmatpush3.bf16.msra.mxu0 %v1069_v40 }
  0x28   :  { %976 = vmatprep.subr.bf16.mxu0 %v1070_v41 }
  0x29   :  { %1011 = vmatpush3.bf16.msra.mxu1 %v1075_v45 }
  0x2a   :  { %1012 = vmatprep.subr.bf16.mxu1 %v1078_v48  ;;  %621 = vmatmul.mubr.bf16.gmra.mrb[4].mxu0 %v1082_v51 }
  0x2b   :  { %977 = vmatpush3.bf16.msra.mxu0 %v1071_v43  ;;  %710 = vmatprep.mubr.bf16.mxu0 %v1096_v62 }
  0x2c   :  { %978 = vmatprep.subr.bf16.mxu0 %v1073_v44  ;;  %670 = vmatmul.mubr.bf16.gmra.mrb[4].mxu1 %v1087_v55 }
  0x2d   :  { %1013 = vmatpush3.bf16.msra.mxu1 %v1078_v48  ;;  %1020 = vmatprep.mubr.msk.bf16.mxu1 %vm573_vm0, %v1097_v63 }
  0x2e   :  { %1014 = vmatprep.subr.bf16.mxu1 %v1084_v53 }
  0x2f   :  { %979 = vmatpush3.bf16.msra.mxu0 %v1074_v46 }
  0x30   :  { %980 = vmatprep.subr.bf16.mxu0 %v1076_v47 }
  0x31   :  { %1015 = vmatpush3.bf16.msra.mxu1 %v1084_v53 }
  0x32   :  { %1016 = vmatprep.subr.bf16.mxu1 %v1090_v58 }
  0x33   :  { %981 = vmatpush3.bf16.msra.mxu0 %v1077_v50 }
  0x34   :  { %982 = vmatprep.subr.bf16.mxu0 %v1081_v52 }
  0x35   :  { %1017 = vmatpush3.bf16.msra.mxu1 %v1090_v58 }
  0x36   :  { %1018 = vmatprep.subr.bf16.mxu1 %v1093_v61 }
  0x37   :  { %983 = vmatpush3.bf16.msra.mxu0 %v1083_v56 }
  0x38   :  { %984 = vmatprep.subr.bf16.mxu0 %v1088_v57 }
  0x39   :  { %1019 = vmatpush3.bf16.msra.mxu1 %v1093_v61 }
  0x3b   :  { %985 = vmatpush3.bf16.msra.mxu0 %v1089_v59 }
  0x3c   :  { %986 = vmatprep.subr.bf16.mxu0 %v1091_v60  ;;  %1021 = vmatmul.mubr.msk.bf16.vlgmr.msra.gmra.mrb[8].mxu1 %vm573_vm0, %v1098_v1 }
  0x3f   :  { %987 = vmatpush3.bf16.msra.mxu0 %v1092_v0 }
  0x42   :  { %711 = vmatmul.mubr.bf16.vlgmr.msra.gmra.mrb[8].mxu0 %v1094_v4 }
  0x43   :  { %718 = vmatprep.mubr.bf16.mxu0 %v1099_v5 }
  0x4a   :  { %719 = vmatmul.mubr.bf16.gmra.mrb[12].mxu0 %v1101_v8 }
  0x95   :  { %v162_v10 = vpop.permute.xlu0 %161 }
  0x97   :  { %v172_v28 = vpop.permute.xlu1 %171 }
  0x99   :  { %v167_v15 = vpop.permute.xlu0 %166 }
  0x9b   :  { %v177_v34 = vpop.permute.xlu1 %176 }
  0xf5   :  { %v932_v11 = vpop.f32.mrb[0].mxu0 }
  0xf6   :  { %v933_v12 = vpop.f32.mrb[1].mxu0 }
  0xf7   :  { %v934_v13 = vadd.f32 %v933_v12, %v932_v11  ;;  %v935_v14 = vpop.f32.mrb[2].mxu0  ;;  %v960_v16 = vpop.f32.mrb[0].mxu1 }
  0xf8   :  { %v936_v17 = vpop.f32.mrb[3].mxu0  ;;  %v961_v20 = vpop.f32.mrb[1].mxu1 }
  0xf9   :  { %v615_v18 = vadd.f32 %v934_v13, %v162_v10  ;;  %v937_v19 = vadd.f32 %v936_v17, %v935_v14  ;;  %v962_v21 = vadd.f32 %v961_v20, %v960_v16  ;;  %v963_v22 = vpop.f32.mrb[2].mxu1 }
  0xfa   :  { %v964_v24 = vpop.f32.mrb[3].mxu1 }
  0xfb   :  { %v618_v23 = vadd.f32 %v937_v19, %v167_v15  ;;  %v664_v25 = vadd.f32 %v962_v21, %v615_v18  ;;  %v965_v26 = vadd.f32 %v964_v24, %v963_v22  ;;  %v781_v19 = vld [vmem:[%s1475_s4] sm:$0xff]  ;;  %v782_v21 = vld [vmem:[%s1475_s4 + $0x8] sm:$0xff] }
  0xfd   :  { %v667_v27 = vadd.f32 %v965_v26, %v618_v23  ;;  %v938_v29 = vpop.f32.mrb[4].mxu0  ;;  %v806_v26 = vld [vmem:[%s1477_s5] sm:$0xff] }
  0xfe   :  { %v939_v30 = vpop.f32.mrb[5].mxu0 }
  0xff   :  { %v940_v31 = vadd.f32 %v939_v30, %v938_v29  ;;  %v941_v32 = vpop.f32.mrb[6].mxu0  ;;  %v966_v36 = vpop.f32.mrb[4].mxu1  ;;  %v783_v29 = vld [vmem:[%s1475_s4 + $0x10] sm:$0xff] }
 0x100   :  { %v942_v33 = vpop.f32.mrb[7].mxu0  ;;  %v967_v38 = vpop.f32.mrb[5].mxu1 }
 0x101   :  { %v623_v35 = vadd.f32 %v940_v31, %v172_v28  ;;  %v943_v37 = vadd.f32 %v942_v33, %v941_v32  ;;  %v968_v39 = vadd.f32 %v967_v38, %v966_v36  ;;  %v969_v40 = vpop.f32.mrb[6].mxu1  ;;  %v808_v32 = vld [vmem:[%s1477_s5 + $0x10] sm:$0xff] }
 0x102   :  { %v970_v42 = vpop.f32.mrb[7].mxu1 }
 0x103   :  { %v626_v41 = vadd.f32 %v943_v37, %v177_v34  ;;  %v672_v43 = vadd.f32 %v968_v39, %v623_v35  ;;  %v971_v44 = vadd.f32 %v970_v42, %v969_v40  ;;  %v784_v35 = vld [vmem:[%s1475_s4 + $0x18] sm:$0xff] }
 0x104   :  { %v809_v39 = vld [vmem:[%s1477_s5 + $0x18] sm:$0xff] }
 0x105   :  { %v675_v45 = vadd.f32 %v971_v44, %v626_v41 }
 0x10f   :  { %v1022_v46 = vpop.f32.mrb[8].mxu1 }
 0x110   :  { %v761_v47 = vpop.f32.mrb[9].mxu1 }
 0x111   :  { %v1023_v49 = vpop.f32.mrb[10].mxu1 }
 0x112   :  { %v764_v51 = vpop.f32.mrb[11].mxu1 }
 0x115   :  { %v988_v48 = vpop.f32.mrb[8].mxu0 }
 0x116   :  { %v989_v50 = vpop.f32.mrb[9].mxu0 }
 0x117   :  { %v990_v52 = vadd.f32 %v989_v50, %v988_v48  ;;  %v991_v53 = vpop.f32.mrb[10].mxu0 }
 0x118   :  { %v992_v54 = vpop.f32.mrb[11].mxu0 }
 0x119   :  { %v713_v55 = vadd.f32 %v990_v52, %v664_v25  ;;  %v993_v56 = vadd.f32 %v992_v54, %v991_v53 }
 0x11b   :  { %v762_v57 = vadd.f32 %v761_v47, %v713_v55  ;;  %v716_v58 = vadd.f32 %v993_v56, %v667_v27 }
 0x11d   :  { %777 = vst.msk [vmem:[%s1476_s3] sm:$0xff] %vm776_vm2, %v762_v57  ;;  %v765_v59 = vadd.f32 %v764_v51, %v716_v58  ;;  %v994_v60 = vpop.f32.mrb[12].mxu0  ;;  %v785_v61 = vsel %vm776_vm2, %v762_v57, 0.0  ;;  %v810_v3 = vmul.f32 %v762_v57, %v762_v57 }
 0x11e   :  { %v995_v62 = vpop.f32.mrb[13].mxu0  ;;  %786 = vadd.xlane.f32.xlu0 %v785_v61 }
 0x11f   :  { %778 = vst.msk [vmem:[%s1476_s3 + $0x8] sm:$0xff] %vm776_vm2, %v765_v59  ;;  %v996_v63 = vadd.f32 %v995_v62, %v994_v60  ;;  %v997_v0 = vpop.f32.mrb[14].mxu0  ;;  %v788_v1 = vsel %vm776_vm2, %v765_v59, 0.0  ;;  %v811_v2 = vmul.f32 %v765_v59, %v765_v59  ;;  %v814_v11 = vsel %vm776_vm2, %v810_v3, 0.0 }
 0x120   :  { %v998_v4 = vpop.f32.mrb[15].mxu0  ;;  %789 = vadd.xlane.f32.xlu1 %v788_v1 }
 0x121   :  { %v721_v5 = vadd.f32 %v996_v63, %v672_v43  ;;  %v999_v6 = vadd.f32 %v998_v4, %v997_v0  ;;  %v817_v7 = vsel %vm776_vm2, %v811_v2, 0.0 }
 0x122   :  { %818 = vadd.xlane.f32.xlu0 %v817_v7 }
 0x123   :  { %v770_v8 = vadd.f32 %v1022_v46, %v721_v5  ;;  %v724_v10 = vadd.f32 %v999_v6, %v675_v45 }
 0x124   :  { %815 = vadd.xlane.f32.xlu1 %v814_v11 }
 0x125   :  { %779 = vst.msk [vmem:[%s1476_s3 + $0x10] sm:$0xff] %vm776_vm2, %v770_v8  ;;  %v773_v12 = vadd.f32 %v1023_v49, %v724_v10  ;;  %v791_v13 = vsel %vm776_vm2, %v770_v8, 0.0  ;;  %v812_v14 = vmul.f32 %v770_v8, %v770_v8 }
 0x126   :  { %792 = vadd.xlane.f32.xlu0 %v791_v13 }
 0x127   :  { %780 = vst.msk [vmem:[%s1476_s3 + $0x18] sm:$0xff] %vm776_vm2, %v773_v12  ;;  %v820_v15 = vsel %vm776_vm2, %v812_v14, 0.0  ;;  %v794_v16 = vsel %vm776_vm2, %v773_v12, 0.0  ;;  %v813_v17 = vmul.f32 %v773_v12, %v773_v12 }
 0x128   :  { %821 = vadd.xlane.f32.xlu1 %v820_v15 }
 0x129   :  { %v823_v18 = vsel %vm776_vm2, %v813_v17, 0.0 }
 0x12a   :  { %795 = vadd.xlane.f32.xlu0 %v794_v16 }
 0x12e   :  { %824 = vadd.xlane.f32.xlu0 %v823_v18 }
 0x1ab   :  { %v787_v20 = vpop.xlane.xlu0 %786 }
 0x1ac   :  { %v797_v22 = vadd.f32 %v787_v20, %v781_v19 }
 0x1ad   :  { %v790_v23 = vpop.xlane.xlu1 %789 }
 0x1ae   :  { %802 = vst.msk [vmem:[%s1475_s4] sm:$0xff] %vm22_vm1, %v797_v22  ;;  %v798_v24 = vadd.f32 %v790_v23, %v782_v21 }
 0x1af   :  { %v819_v25 = vpop.xlane.xlu0 %818 }
 0x1b0   :  { %803 = vst.msk [vmem:[%s1475_s4 + $0x8] sm:$0xff] %vm22_vm1, %v798_v24  ;;  %v827_v27 = vadd.f32 %v819_v25, %v807_v9 }
 0x1b1   :  { %v816_v28 = vpop.xlane.xlu1 %815 }
 0x1b2   :  { %831 = vst.msk [vmem:[%s1477_s5 + $0x8] sm:$0xff] %vm22_vm1, %v827_v27  ;;  %v826_v30 = vadd.f32 %v816_v28, %v806_v26 }
 0x1b3   :  { %v793_v31 = vpop.xlane.xlu0 %792 }
 0x1b4   :  { %830 = vst.msk [vmem:[%s1477_s5] sm:$0xff] %vm22_vm1, %v826_v30  ;;  %v799_v33 = vadd.f32 %v793_v31, %v783_v29 }
 0x1b5   :  { %v822_v34 = vpop.xlane.xlu1 %821 }
 0x1b6   :  { %804 = vst.msk [vmem:[%s1475_s4 + $0x10] sm:$0xff] %vm22_vm1, %v799_v33  ;;  %v828_v36 = vadd.f32 %v822_v34, %v808_v32 }
 0x1b7   :  { %v796_v37 = vpop.xlane.xlu0 %795 }
 0x1b8   :  { %832 = vst.msk [vmem:[%s1477_s5 + $0x10] sm:$0xff] %vm22_vm1, %v828_v36  ;;  %v800_v38 = vadd.f32 %v796_v37, %v784_v35 }
 0x1ba   :  { %805 = vst.msk [vmem:[%s1475_s4 + $0x18] sm:$0xff] %vm22_vm1, %v800_v38 }
 0x1bb   :  { %v825_v40 = vpop.xlane.xlu0 %824 }
 0x1bc   :  { %v829_v41 = vadd.f32 %v825_v40, %v809_v39 }
 0x1be   :  { %833 = vst.msk [vmem:[%s1477_s5 + $0x18] sm:$0xff] %vm22_vm1, %v829_v41 }

// kernel: _lambda_.46
= control target key start
LH: loop header
LB: loop body
LE: loop exit
PB: predicated region body
PF: predicated region fallthrough
CT: control target
= control target key end

     0   :  { %v109_v0 = vmov 0   ;;  %vm97_vm0 = vcmask 523264   ;;  %s199_s1 = inlined_call_operand.vmem [shape: f32[1,32,1], index: 1, kind: input, shape index: {}]   ;;  %s200_s2 = inlined_call_operand.vmem [shape: f32[1,32,1], index: 2, kind: input, shape index: {}]   ;;  %s201_s0 = inlined_call_operand.vmem [shape: f32[1,32,64], index: 0, kind: input, shape index: {}]   ;;  %s202_s3 = inlined_call_operand.vmem [shape: f32[1,32,64], index: 3, kind: input, shape index: {}]   ;;  %s203_s4 = inlined_call_operand.vmem [shape: f32[1,32,64], index: 4, kind: output, shape index: {}]  }
   0x1   :  { %108 = vset.pattern.permute.xlu1 %v109_v0  ;;  %107 = vset.pattern.permute.xlu0 %v109_v0  ;;  %v23_v1 = vld [vmem:[%s199_s1 + $0x10] sm:$0xff]  ;;  %v21_v2 = vld [vmem:[%s199_s1] sm:$0xff]  ;;  %v24_v3 = vld [vmem:[%s199_s1 + $0x18] sm:$0xff] }
   0x2   :  { %37 = vperm.xlu1 %108, %v23_v1   ;;  %27 = vperm.xlu0 %107, %v21_v2   ;;  %v22_v4 = vld [vmem:[%s199_s1 + $0x8] sm:$0xff]  ;;  %v49_v6 = vld [vmem:[%s200_s2] sm:$0xff]  ;;  %v52_v7 = vld [vmem:[%s200_s2 + $0x18] sm:$0xff] }
   0x3   :  { %v50_v5 = vld [vmem:[%s200_s2 + $0x8] sm:$0xff]  ;;  %v51_v8 = vld [vmem:[%s200_s2 + $0x10] sm:$0xff]  ;;  %v17_v11 = vld [vmem:[%s201_s0] sm:$0xff] }
   0x4   :  { %v18_v14 = vld [vmem:[%s201_s0 + $0x8] sm:$0xff]  ;;  %v77_v19 = vld [vmem:[%s202_s3] sm:$0xff]  ;;  %v19_v21 = vld [vmem:[%s201_s0 + $0x10] sm:$0xff] }
   0x5   :  { %v78_v17 = vld [vmem:[%s202_s3 + $0x8] sm:$0xff]  ;;  %v20_v22 = vld [vmem:[%s201_s0 + $0x18] sm:$0xff]  ;;  %v79_v31 = vld [vmem:[%s202_s3 + $0x10] sm:$0xff] }
   0x6   :  { %42 = vperm.xlu1 %108, %v24_v3   ;;  %32 = vperm.xlu0 %107, %v22_v4   ;;  %v80_v29 = vld [vmem:[%s202_s3 + $0x18] sm:$0xff] }
   0xa   :  { %60 = vperm.xlu1 %108, %v50_v5   ;;  %55 = vperm.xlu0 %107, %v49_v6  }
   0xe   :  { %70 = vperm.xlu1 %108, %v52_v7   ;;  %65 = vperm.xlu0 %107, %v51_v8  }
  0x81   :  { %v38_v9 = vpop.permute.xlu1 %37  ;;  %v28_v10 = vpop.permute.xlu0 %27 }
  0x82   :  { %v45_v15 = vmul.f32 %v28_v10, %v17_v11  ;;  %v47_v27 = vmul.f32 %v38_v9, %v19_v21 }
  0x85   :  { %v43_v12 = vpop.permute.xlu1 %42  ;;  %v33_v13 = vpop.permute.xlu0 %32 }
  0x86   :  { %v46_v16 = vmul.f32 %v33_v13, %v18_v14  ;;  %v48_v28 = vmul.f32 %v43_v12, %v20_v22 }
  0x89   :  { %v61_v18 = vpop.permute.xlu1 %60  ;;  %v56_v20 = vpop.permute.xlu0 %55 }
  0x8a   :  { %v74_v23 = vadd.f32 %v61_v18, %v46_v16  ;;  %v73_v24 = vadd.f32 %v56_v20, %v45_v15 }
  0x8c   :  { %v82_v25 = vadd.f32 %v78_v17, %v74_v23  ;;  %v81_v26 = vadd.f32 %v77_v19, %v73_v24 }
  0x8d   :  { %v71_v30 = vpop.permute.xlu1 %70  ;;  %v66_v32 = vpop.permute.xlu0 %65 }
  0x8e   :  { %vm86_vm1 = vcmp.gt.f32.partialorder %v82_v25, 0.0  ;;  %v90_v33 = vmul.f32 0.1, %v82_v25  ;;  %vm85_vm2 = vcmp.gt.f32.partialorder %v81_v26, 0.0  ;;  %v89_v34 = vmul.f32 0.1, %v81_v26 }
  0x8f   :  { %v76_v35 = vadd.f32 %v71_v30, %v48_v28  ;;  %v75_v36 = vadd.f32 %v66_v32, %v47_v27 }
  0x90   :  { %v94_v37 = vsel %vm86_vm1, %v82_v25, %v90_v33  ;;  %v93_v38 = vsel %vm85_vm2, %v81_v26, %v89_v34 }
  0x91   :  { %99 = vst.msk [vmem:[%s203_s4 + $0x8] sm:$0xff] %vm97_vm0, %v94_v37  ;;  %98 = vst.msk [vmem:[%s203_s4] sm:$0xff] %vm97_vm0, %v93_v38  ;;  %v84_v39 = vadd.f32 %v80_v29, %v76_v35  ;;  %v83_v40 = vadd.f32 %v79_v31, %v75_v36 }
  0x93   :  { %vm88_vm3 = vcmp.gt.f32.partialorder %v84_v39, 0.0  ;;  %v92_v41 = vmul.f32 0.1, %v84_v39  ;;  %vm87_vm4 = vcmp.gt.f32.partialorder %v83_v40, 0.0  ;;  %v91_v42 = vmul.f32 0.1, %v83_v40 }
  0x95   :  { %v96_v43 = vsel %vm88_vm3, %v84_v39, %v92_v41  ;;  %v95_v44 = vsel %vm87_vm4, %v83_v40, %v91_v42 }
  0x96   :  { %101 = vst.msk [vmem:[%s203_s4 + $0x18] sm:$0xff] %vm97_vm0, %v96_v43  ;;  %100 = vst.msk [vmem:[%s203_s4 + $0x10] sm:$0xff] %vm97_vm0, %v95_v44 }

// kernel: _lambda_.47
= control target key start
LH: loop header
LB: loop body
LE: loop exit
PB: predicated region body
PF: predicated region fallthrough
CT: control target
= control target key end

     0   :  { %11 = vsyncpa [#allocation3], 0  ;;  %vm225_vm0 = vcmask 261120   ;;  %v727_v7 = vmov 0   ;;  %s1129_s0 = inlined_call_operand.vmem [shape: bf16[1,32,64], index: 0, kind: input, shape index: {}]   ;;  %s1130_s1 = inlined_call_operand.vmem [shape: bf16[128,32], index: 1, kind: input, shape index: {}]   ;;  %s1131_s2 = inlined_call_operand.vmem [shape: f32[128,1], index: 2, kind: input, shape index: {}]   ;;  %s1132_s3 = inlined_call_operand.vmem [shape: f32[1,128,64], index: 3, kind: output, shape index: {0}]   ;;  %s1133_s4 = inlined_call_operand.hbm [shape: f32[1,128,1], index: 4, kind: output, shape index: {1}]   ;;  %s1134_s5 = inlined_call_operand.hbm [shape: f32[1,128,1], index: 5, kind: output, shape index: {2}]  }
   0x1   :  { %v669_v0 = vld [vmem:[%s1129_s0] sm:$0xff]   ;;  %v670_v1 = vld [vmem:[%s1129_s0 + $0x8] sm:$0xff]   ;;  %v675_v6 = vld [vmem:[%s1130_s1 + $0x10] sm:$0xff]   ;;  %667 = vset.pattern.permute.xlu0 %v727_v7  ;;  %668 = vset.pattern.permute.xlu1 %v727_v7 }
   0x2   :  { %637 = vmatprep.subr.bf16.mxu0 %v669_v0  ;;  %657 = vmatprep.subr.bf16.mxu1 %v669_v0  ;;  %v671_v2 = vld [vmem:[%s1130_s1] sm:$0xff]   ;;  %v673_v4 = vld [vmem:[%s1130_s1 + $0x8] sm:$0xff]   ;;  %v676_v8 = vld [vmem:[%s1130_s1 + $0x30] sm:$0xff]  }
   0x3   :  { %638 = vmatpush3.bf16.msra.mxu0 %v669_v0  ;;  %659 = vmatpush3.bf16.msra.mxu1 %v669_v0  ;;  %v672_v3 = vld [vmem:[%s1130_s1 + $0x20] sm:$0xff]   ;;  %v674_v5 = vld [vmem:[%s1130_s1 + $0x28] sm:$0xff]   ;;  %v79_v10 = vld [vmem:[%s1131_s2 + $0x10] sm:$0xff] }
   0x4   :  { %639 = vmatprep.subr.bf16.mxu0 %v670_v1  ;;  %658 = vmatprep.subr.bf16.mxu1 %v670_v1  ;;  %v77_v9 = vld [vmem:[%s1131_s2] sm:$0xff]  ;;  %v78_v11 = vld [vmem:[%s1131_s2 + $0x8] sm:$0xff]  ;;  %v80_v12 = vld [vmem:[%s1131_s2 + $0x18] sm:$0xff] }
   0x5   :  { %641 = vmatprep.mubr.msk.bf16.mxu0 %vm225_vm0, %v671_v2  ;;  %649 = vmatprep.mubr.msk.bf16.mxu1 %vm225_vm0, %v672_v3  ;;  %v677_v13 = vld [vmem:[%s1130_s1 + $0x18] sm:$0xff]  }
   0x6   :  { %95 = vperm.xlu0 %667, %v77_v9   ;;  %105 = vperm.xlu1 %668, %v79_v10   ;;  %v678_v14 = vld [vmem:[%s1130_s1 + $0x38] sm:$0xff]  }
   0x7   :  { %640 = vmatpush3.bf16.msra.mxu0 %v670_v1  ;;  %660 = vmatpush3.bf16.msra.mxu1 %v670_v1 }
   0xa   :  { %642 = vmatmul.mubr.msk.bf16.vlgmr.msra.gmra.mrb[0].mxu0 %vm225_vm0, %v673_v4  ;;  %650 = vmatmul.mubr.msk.bf16.vlgmr.msra.gmra.mrb[0].mxu1 %vm225_vm0, %v674_v5 }
   0xb   :  { %645 = vmatprep.mubr.msk.bf16.mxu0 %vm225_vm0, %v675_v6  ;;  %653 = vmatprep.mubr.msk.bf16.mxu1 %vm225_vm0, %v676_v8 }
   0xc   :  { %12 = vsyncpa [#allocation5], 0  ;;  %100 = vperm.xlu0 %667, %v78_v11   ;;  %110 = vperm.xlu1 %668, %v80_v12   ;;  %v81_v15 = vld [vmem:[%s1131_s2 + $0x20] sm:$0xff]  ;;  %v82_v16 = vld [vmem:[%s1131_s2 + $0x28] sm:$0xff]  ;;  %vm347_vm1 = vcmask 523264   ;;  %vm24_vm2 = vcmask 7168  }
   0xd   :  { %v83_v17 = vld [vmem:[%s1131_s2 + $0x30] sm:$0xff]  ;;  %v84_v18 = vld [vmem:[%s1131_s2 + $0x38] sm:$0xff]  ;;  %v85_v19 = vld [vmem:[%s1131_s2 + $0x40] sm:$0xff] }
   0xe   :  { %v86_v20 = vld [vmem:[%s1131_s2 + $0x48] sm:$0xff]  ;;  %v87_v21 = vld [vmem:[%s1131_s2 + $0x50] sm:$0xff]  ;;  %v88_v22 = vld [vmem:[%s1131_s2 + $0x58] sm:$0xff] }
   0xf   :  { %v89_v23 = vld [vmem:[%s1131_s2 + $0x60] sm:$0xff]  ;;  %v90_v24 = vld [vmem:[%s1131_s2 + $0x68] sm:$0xff]  ;;  %v91_v25 = vld [vmem:[%s1131_s2 + $0x70] sm:$0xff] }
  0x10   :  { %115 = vperm.xlu0 %667, %v81_v15   ;;  %120 = vperm.xlu1 %668, %v82_v16   ;;  %v92_v26 = vld [vmem:[%s1131_s2 + $0x78] sm:$0xff] }
  0x12   :  { %646 = vmatmul.mubr.msk.bf16.gmra.mrb[4].mxu0 %vm225_vm0, %v677_v13  ;;  %654 = vmatmul.mubr.msk.bf16.gmra.mrb[4].mxu1 %vm225_vm0, %v678_v14 }
  0x14   :  { %125 = vperm.xlu0 %667, %v83_v17   ;;  %130 = vperm.xlu1 %668, %v84_v18  }
  0x18   :  { %135 = vperm.xlu0 %667, %v85_v19   ;;  %140 = vperm.xlu1 %668, %v86_v20  }
  0x1c   :  { %145 = vperm.xlu0 %667, %v87_v21   ;;  %150 = vperm.xlu1 %668, %v88_v22  }
  0x20   :  { %155 = vperm.xlu0 %667, %v89_v23   ;;  %160 = vperm.xlu1 %668, %v90_v24   ;;  %v728_v23 = vmov 0.0  }
  0x21   :  { %35 = vst.msk [vmem:[#allocation2 + $0x50] sm:$0xff] %vm24_vm2, %v728_v23  ;;  %25 = vst.msk [vmem:[#allocation2] sm:$0xff] %vm24_vm2, %v728_v23 }
  0x22   :  { %26 = vst.msk [vmem:[#allocation2 + $0x8] sm:$0xff] %vm24_vm2, %v728_v23  ;;  %27 = vst.msk [vmem:[#allocation2 + $0x10] sm:$0xff] %vm24_vm2, %v728_v23 }
  0x23   :  { %28 = vst.msk [vmem:[#allocation2 + $0x18] sm:$0xff] %vm24_vm2, %v728_v23  ;;  %29 = vst.msk [vmem:[#allocation2 + $0x20] sm:$0xff] %vm24_vm2, %v728_v23 }
  0x24   :  { %165 = vperm.xlu0 %667, %v91_v25   ;;  %170 = vperm.xlu1 %668, %v92_v26   ;;  %30 = vst.msk [vmem:[#allocation2 + $0x28] sm:$0xff] %vm24_vm2, %v728_v23  ;;  %31 = vst.msk [vmem:[#allocation2 + $0x30] sm:$0xff] %vm24_vm2, %v728_v23 }
  0x25   :  { %32 = vst.msk [vmem:[#allocation2 + $0x38] sm:$0xff] %vm24_vm2, %v728_v23  ;;  %33 = vst.msk [vmem:[#allocation2 + $0x40] sm:$0xff] %vm24_vm2, %v728_v23 }
  0x26   :  { %34 = vst.msk [vmem:[#allocation2 + $0x48] sm:$0xff] %vm24_vm2, %v728_v23  ;;  %36 = vst.msk [vmem:[#allocation2 + $0x58] sm:$0xff] %vm24_vm2, %v728_v23 }
  0x27   :  { %37 = vst.msk [vmem:[#allocation2 + $0x60] sm:$0xff] %vm24_vm2, %v728_v23  ;;  %38 = vst.msk [vmem:[#allocation2 + $0x68] sm:$0xff] %vm24_vm2, %v728_v23 }
  0x28   :  { %39 = vst.msk [vmem:[#allocation2 + $0x70] sm:$0xff] %vm24_vm2, %v728_v23  ;;  %40 = vst.msk [vmem:[#allocation2 + $0x78] sm:$0xff] %vm24_vm2, %v728_v23 }
  0x29   :  { %41 = vst.msk [vmem:[#allocation4] sm:$0xff] %vm24_vm2, %v728_v23  ;;  %42 = vst.msk [vmem:[#allocation4 + $0x8] sm:$0xff] %vm24_vm2, %v728_v23 }
  0x2a   :  { %43 = vst.msk [vmem:[#allocation4 + $0x10] sm:$0xff] %vm24_vm2, %v728_v23  ;;  %44 = vst.msk [vmem:[#allocation4 + $0x18] sm:$0xff] %vm24_vm2, %v728_v23 }
  0x2b   :  { %45 = vst.msk [vmem:[#allocation4 + $0x20] sm:$0xff] %vm24_vm2, %v728_v23  ;;  %46 = vst.msk [vmem:[#allocation4 + $0x28] sm:$0xff] %vm24_vm2, %v728_v23 }
  0x2c   :  { %47 = vst.msk [vmem:[#allocation4 + $0x30] sm:$0xff] %vm24_vm2, %v728_v23  ;;  %48 = vst.msk [vmem:[#allocation4 + $0x38] sm:$0xff] %vm24_vm2, %v728_v23 }
  0x2d   :  { %49 = vst.msk [vmem:[#allocation4 + $0x40] sm:$0xff] %vm24_vm2, %v728_v23  ;;  %50 = vst.msk [vmem:[#allocation4 + $0x48] sm:$0xff] %vm24_vm2, %v728_v23 }
  0x2e   :  { %51 = vst.msk [vmem:[#allocation4 + $0x50] sm:$0xff] %vm24_vm2, %v728_v23  ;;  %52 = vst.msk [vmem:[#allocation4 + $0x58] sm:$0xff] %vm24_vm2, %v728_v23 }
  0x2f   :  { %53 = vst.msk [vmem:[#allocation4 + $0x60] sm:$0xff] %vm24_vm2, %v728_v23  ;;  %54 = vst.msk [vmem:[#allocation4 + $0x68] sm:$0xff] %vm24_vm2, %v728_v23 }
  0x30   :  { %55 = vst.msk [vmem:[#allocation4 + $0x70] sm:$0xff] %vm24_vm2, %v728_v23  ;;  %56 = vst.msk [vmem:[#allocation4 + $0x78] sm:$0xff] %vm24_vm2, %v728_v23 }
  0x85   :  { %v96_v27 = vpop.permute.xlu0 %95  ;;  %v106_v28 = vpop.permute.xlu1 %105 }
  0x8b   :  { %v101_v29 = vpop.permute.xlu0 %100  ;;  %v111_v30 = vpop.permute.xlu1 %110 }
  0x8f   :  { %v116_v31 = vpop.permute.xlu0 %115  ;;  %v849_v32 = vpop.permute.xlu1 %120 }
  0x93   :  { %v126_v33 = vpop.permute.xlu0 %125  ;;  %v131_v34 = vpop.permute.xlu1 %130 }
  0x97   :  { %v136_v35 = vpop.permute.xlu0 %135  ;;  %v141_v36 = vpop.permute.xlu1 %140 }
  0x9b   :  { %v146_v37 = vpop.permute.xlu0 %145  ;;  %v151_v38 = vpop.permute.xlu1 %150 }
  0x9f   :  { %v156_v39 = vpop.permute.xlu0 %155  ;;  %v161_v40 = vpop.permute.xlu1 %160 }
  0xa3   :  { %v166_v59 = vpop.permute.xlu0 %165  ;;  %v171_v60 = vpop.permute.xlu1 %170 }
  0xdd   :  { %v643_v41 = vpop.f32.mrb[0].mxu0  ;;  %v651_v42 = vpop.f32.mrb[0].mxu1 }
  0xde   :  { %v293_v43 = vadd.f32 %v643_v41, %v106_v28  ;;  %v325_v44 = vadd.f32 %v651_v42, %v146_v37  ;;  %v284_v45 = vpop.f32.mrb[1].mxu0  ;;  %v316_v46 = vpop.f32.mrb[1].mxu1 }
  0xdf   :  { %v851_v47 = vadd.f32 %v284_v45, %v96_v27  ;;  %v853_v48 = vadd.f32 %v316_v46, %v136_v35  ;;  %v644_v49 = vpop.f32.mrb[2].mxu0  ;;  %v652_v50 = vpop.f32.mrb[2].mxu1 }
  0xe0   :  { %350 = vst.msk [vmem:[%s1132_s3 + $0x10] sm:$0xff] %vm347_vm1, %v293_v43  ;;  %358 = vst.msk [vmem:[%s1132_s3 + $0x50] sm:$0xff] %vm347_vm1, %v325_v44  ;;  %v863_v51 = vadd.f32 %v644_v49, %v111_v30  ;;  %v865_v52 = vadd.f32 %v652_v50, %v151_v38  ;;  %v287_v53 = vpop.f32.mrb[3].mxu0  ;;  %v319_v54 = vpop.f32.mrb[3].mxu1  ;;  %v410_v55 = vsel %vm347_vm1, %v325_v44, 0.0  ;;  %v386_v56 = vsel %vm347_vm1, %v293_v43, 0.0 }
  0xe1   :  { %348 = vst.msk [vmem:[%s1132_s3] sm:$0xff] %vm347_vm1, %v851_v47  ;;  %356 = vst.msk [vmem:[%s1132_s3 + $0x40] sm:$0xff] %vm347_vm1, %v853_v48  ;;  %v879_v57 = vadd.f32 %v287_v53, %v101_v29  ;;  %v881_v58 = vadd.f32 %v319_v54, %v141_v36  ;;  %411 = vadd.xlane.f32.xlu1 %v410_v55  ;;  %387 = vadd.xlane.f32.xlu0 %v386_v56  ;;  %v404_v61 = vsel %vm347_vm1, %v853_v48, 0.0 }
  0xe2   :  { %351 = vst.msk [vmem:[%s1132_s3 + $0x18] sm:$0xff] %vm347_vm1, %v863_v51  ;;  %359 = vst.msk [vmem:[%s1132_s3 + $0x58] sm:$0xff] %vm347_vm1, %v865_v52  ;;  %v380_v62 = vsel %vm347_vm1, %v851_v47, 0.0  ;;  %v479_v63 = vmul.f32 %v293_v43, %v293_v43  ;;  %v389_v10 = vsel %vm347_vm1, %v863_v51, 0.0  ;;  %v487_v16 = vmul.f32 %v325_v44, %v325_v44 }
  0xe3   :  { %349 = vst.msk [vmem:[%s1132_s3 + $0x8] sm:$0xff] %vm347_vm1, %v879_v57  ;;  %357 = vst.msk [vmem:[%s1132_s3 + $0x48] sm:$0xff] %vm347_vm1, %v881_v58  ;;  %v413_v20 = vsel %vm347_vm1, %v865_v52, 0.0  ;;  %v383_v24 = vsel %vm347_vm1, %v879_v57, 0.0  ;;  %v407_v25 = vsel %vm347_vm1, %v881_v58, 0.0  ;;  %v477_v26 = vmul.f32 %v851_v47, %v851_v47 }
  0xe4   :  { %v499_v15 = vsel %vm347_vm1, %v479_v63, 0.0  ;;  %v523_v19 = vsel %vm347_vm1, %v487_v16, 0.0  ;;  %v480_v27 = vmul.f32 %v863_v51, %v863_v51  ;;  %v485_v30 = vmul.f32 %v853_v48, %v853_v48 }
  0xe5   :  { %v655_v0 = vpop.f32.mrb[4].mxu1  ;;  %405 = vadd.xlane.f32.xlu1 %v404_v61  ;;  %v647_v1 = vpop.f32.mrb[4].mxu0  ;;  %381 = vadd.xlane.f32.xlu0 %v380_v62  ;;  %v493_v28 = vsel %vm347_vm1, %v477_v26, 0.0  ;;  %v486_v37 = vmul.f32 %v881_v58, %v881_v58  ;;  %v366_v61 = vld [vmem:[#allocation2 + $0x10] sm:$0xff]  ;;  %v461_v26 = vld [vmem:[#allocation4] sm:$0xff] }
  0xe6   :  { %v907_v2 = vadd.f32 %v655_v0, %v166_v59  ;;  %v909_v3 = vadd.f32 %v647_v1, %v126_v33  ;;  %v300_v4 = vpop.f32.mrb[5].mxu0  ;;  %v332_v5 = vpop.f32.mrb[5].mxu1  ;;  %v502_v29 = vsel %vm347_vm1, %v480_v27, 0.0  ;;  %v464_v27 = vld [vmem:[#allocation4 + $0x18] sm:$0xff] }
  0xe7   :  { %v911_v6 = vadd.f32 %v300_v4, %v116_v31  ;;  %v913_v7 = vadd.f32 %v332_v5, %v156_v39  ;;  %v648_v8 = vpop.f32.mrb[6].mxu0  ;;  %v656_v9 = vpop.f32.mrb[6].mxu1  ;;  %v488_v31 = vmul.f32 %v865_v52, %v865_v52  ;;  %v520_v39 = vsel %vm347_vm1, %v486_v37, 0.0 }
  0xe8   :  { %362 = vst.msk [vmem:[%s1132_s3 + $0x70] sm:$0xff] %vm347_vm1, %v907_v2  ;;  %354 = vst.msk [vmem:[%s1132_s3 + $0x30] sm:$0xff] %vm347_vm1, %v909_v3  ;;  %v927_v11 = vadd.f32 %v648_v8, %v131_v34  ;;  %v929_v12 = vadd.f32 %v656_v9, %v171_v60  ;;  %v303_v13 = vpop.f32.mrb[7].mxu0  ;;  %v335_v14 = vpop.f32.mrb[7].mxu1  ;;  %v478_v34 = vmul.f32 %v879_v57, %v879_v57  ;;  %v398_v35 = vsel %vm347_vm1, %v909_v3, 0.0  ;;  %v374_v60 = vld [vmem:[#allocation2 + $0x50] sm:$0xff] }
  0xe9   :  { %352 = vst.msk [vmem:[%s1132_s3 + $0x20] sm:$0xff] %vm347_vm1, %v911_v6  ;;  %360 = vst.msk [vmem:[%s1132_s3 + $0x60] sm:$0xff] %vm347_vm1, %v913_v7  ;;  %v943_v17 = vadd.f32 %v303_v13, %v849_v32  ;;  %v945_v18 = vadd.f32 %v335_v14, %v161_v40  ;;  %500 = vadd.xlane.f32.xlu1 %v499_v15  ;;  %390 = vadd.xlane.f32.xlu0 %v389_v10  ;;  %v517_v32 = vsel %vm347_vm1, %v485_v30, 0.0  ;;  %v463_v8 = vld [vmem:[#allocation4 + $0x10] sm:$0xff]  ;;  %v367_v9 = vld [vmem:[#allocation2 + $0x18] sm:$0xff] }
  0xea   :  { %355 = vst.msk [vmem:[%s1132_s3 + $0x38] sm:$0xff] %vm347_vm1, %v927_v11  ;;  %363 = vst.msk [vmem:[%s1132_s3 + $0x78] sm:$0xff] %vm347_vm1, %v929_v12  ;;  %v492_v21 = vmul.f32 %v929_v12, %v929_v12  ;;  %v526_v33 = vsel %vm347_vm1, %v488_v31, 0.0  ;;  %v496_v36 = vsel %vm347_vm1, %v478_v34, 0.0  ;;  %v422_v38 = vsel %vm347_vm1, %v907_v2, 0.0  ;;  %v471_v14 = vld [vmem:[#allocation4 + $0x50] sm:$0xff] }
  0xeb   :  { %353 = vst.msk [vmem:[%s1132_s3 + $0x28] sm:$0xff] %vm347_vm1, %v943_v17  ;;  %361 = vst.msk [vmem:[%s1132_s3 + $0x68] sm:$0xff] %vm347_vm1, %v945_v18  ;;  %v392_v40 = vsel %vm347_vm1, %v911_v6, 0.0  ;;  %v401_v41 = vsel %vm347_vm1, %v927_v11, 0.0  ;;  %v416_v42 = vsel %vm347_vm1, %v913_v7, 0.0  ;;  %v425_v43 = vsel %vm347_vm1, %v929_v12, 0.0 }
  0xec   :  { %v973_v22 = vsel %vm347_vm1, %v492_v21, 0.0  ;;  %v483_v44 = vmul.f32 %v909_v3, %v909_v3  ;;  %v395_v46 = vsel %vm347_vm1, %v943_v17, 0.0  ;;  %v481_v47 = vmul.f32 %v911_v6, %v911_v6  ;;  %v364_v3 = vld [vmem:[#allocation2] sm:$0xff]  ;;  %v375_v15 = vld [vmem:[#allocation2 + $0x58] sm:$0xff]  ;;  %v373_v21 = vld [vmem:[#allocation2 + $0x48] sm:$0xff]  ;;  %s729_s3 = smov [#allocation2]  }
  0xed   :  { %524 = vadd.xlane.f32.xlu1 %v523_v19  ;;  %414 = vadd.xlane.f32.xlu0 %v413_v20  ;;  %v419_v49 = vsel %vm347_vm1, %v945_v18, 0.0  ;;  %v489_v50 = vmul.f32 %v913_v7, %v913_v7  ;;  %v484_v51 = vmul.f32 %v927_v11, %v927_v11  ;;  %v491_v54 = vmul.f32 %v907_v2, %v907_v2  ;;  %v372_v2 = vld [vmem:[#allocation2 + $0x40] sm:$0xff]  ;;  %v365_v20 = vld [vmem:[#allocation2 + $0x8] sm:$0xff]  ;;  %s580_s20 = sshll.u32 %s729_s3, 4  ;;  %s581_s20 = int_to_ptr.vmem [resolvable:$true] %s580_s20 }
  0xee   :  { %v511_v45 = vsel %vm347_vm1, %v483_v44, 0.0  ;;  %v505_v48 = vsel %vm347_vm1, %v481_v47, 0.0  ;;  %v482_v55 = vmul.f32 %v943_v17, %v943_v17  ;;  %v490_v58 = vmul.f32 %v945_v18, %v945_v18  ;;  %v378_v44 = vld [vmem:[#allocation2 + $0x70] sm:$0xff]  ;;  %s679_s21 = scalar_lea.vmem %s581_s20, 2048  ;;  %p684_p1 = scmp.lt.s32.totalorder %s581_s20, %s581_s20 }
  0xef   :  { %v529_v52 = vsel %vm347_vm1, %v489_v50, 0.0  ;;  %v514_v53 = vsel %vm347_vm1, %v484_v51, 0.0  ;;  %v535_v56 = vsel %vm347_vm1, %v491_v54, 0.0  ;;  %v368_v50 = vld [vmem:[#allocation2 + $0x20] sm:$0xff]  ;;  %v371_v51 = vld [vmem:[#allocation2 + $0x38] sm:$0xff]  ;;  %p680_p0 = scmp.ne.s32.totalorder %s581_s20, %s679_s21  ;;  %p685_p2 = scmp.lt.s32.totalorder %s679_s21, %s679_s21 }
  0xf0   :  { %v508_v57 = vsel %vm347_vm1, %v482_v55, 0.0  ;;  %v532_v59 = vsel %vm347_vm1, %v490_v58, 0.0 }
  0xf1   :  { %384 = vadd.xlane.f32.xlu1 %v383_v24  ;;  %408 = vadd.xlane.f32.xlu0 %v407_v25  ;;  %p686_p3 = por %p685_p2, %p684_p1 }
  0xf3   :  { %p687_p4 = pnand %p686_p3, %p680_p0 }
  0xf5   :  { %494 = vadd.xlane.f32.xlu1 %v493_v28  ;;  %503 = vadd.xlane.f32.xlu0 %v502_v29 }
  0xf9   :  { %518 = vadd.xlane.f32.xlu1 %v517_v32  ;;  %527 = vadd.xlane.f32.xlu0 %v526_v33  ;;  %v469_v32 = vld [vmem:[#allocation4 + $0x40] sm:$0xff]  ;;  %v472_v33 = vld [vmem:[#allocation4 + $0x58] sm:$0xff] }
  0xfd   :  { %399 = vadd.xlane.f32.xlu1 %v398_v35  ;;  %497 = vadd.xlane.f32.xlu0 %v496_v36 }
 0x101   :  { %423 = vadd.xlane.f32.xlu1 %v422_v38  ;;  %521 = vadd.xlane.f32.xlu0 %v520_v39  ;;  %v370_v38 = vld [vmem:[#allocation2 + $0x30] sm:$0xff]  ;;  %v462_v39 = vld [vmem:[#allocation4 + $0x8] sm:$0xff] }
 0x105   :  { %393 = vadd.xlane.f32.xlu1 %v392_v40  ;;  %402 = vadd.xlane.f32.xlu0 %v401_v41 }
 0x109   :  { %417 = vadd.xlane.f32.xlu1 %v416_v42  ;;  %426 = vadd.xlane.f32.xlu0 %v425_v43 }
 0x10d   :  { %512 = vadd.xlane.f32.xlu1 %v511_v45  ;;  %396 = vadd.xlane.f32.xlu0 %v395_v46  ;;  %v470_v45 = vld [vmem:[#allocation4 + $0x48] sm:$0xff] }
 0x111   :  { %506 = vadd.xlane.f32.xlu1 %v505_v48  ;;  %420 = vadd.xlane.f32.xlu0 %v419_v49 }
 0x115   :  { %530 = vadd.xlane.f32.xlu1 %v529_v52  ;;  %515 = vadd.xlane.f32.xlu0 %v514_v53 }
 0x119   :  { %536 = vadd.xlane.f32.xlu1 %v535_v56  ;;  %509 = vadd.xlane.f32.xlu0 %v508_v57  ;;  %v376_v56 = vld [vmem:[#allocation2 + $0x60] sm:$0xff]  ;;  %v379_v57 = vld [vmem:[#allocation2 + $0x78] sm:$0xff] }
 0x11d   :  { %533 = vadd.xlane.f32.xlu0 %v532_v59 }
 0x121   :  { %539 = vadd.xlane.f32.xlu0 %v973_v22 }
 0x16e   :  { %v412_v62 = vpop.xlane.xlu1 %411  ;;  %v388_v63 = vpop.xlane.xlu0 %387 }
 0x16f   :  { %v438_v0 = vadd.f32 %v412_v62, %v374_v60  ;;  %v430_v1 = vadd.f32 %v388_v63, %v366_v61  ;;  %v467_v62 = vld [vmem:[#allocation4 + $0x30] sm:$0xff]  ;;  %v369_v63 = vld [vmem:[#allocation2 + $0x28] sm:$0xff] }
 0x171   :  { %455 = vst.msk [vmem:[#allocation2 + $0x50] sm:$0xff] %vm24_vm2, %v438_v0  ;;  %447 = vst.msk [vmem:[#allocation2 + $0x10] sm:$0xff] %vm24_vm2, %v430_v1 }
 0x172   :  { %v406_v4 = vpop.xlane.xlu1 %405  ;;  %v382_v5 = vpop.xlane.xlu0 %381 }
 0x173   :  { %v436_v6 = vadd.f32 %v406_v4, %v372_v2  ;;  %v428_v7 = vadd.f32 %v382_v5, %v364_v3  ;;  %v465_v4 = vld [vmem:[#allocation4 + $0x20] sm:$0xff]  ;;  %v377_v5 = vld [vmem:[#allocation2 + $0x68] sm:$0xff] }
 0x175   :  { %453 = vst.msk [vmem:[#allocation2 + $0x40] sm:$0xff] %vm24_vm2, %v436_v6  ;;  %445 = vst.msk [vmem:[#allocation2] sm:$0xff] %vm24_vm2, %v428_v7 }
 0x176   :  { %v501_v10 = vpop.xlane.xlu1 %500  ;;  %v391_v11 = vpop.xlane.xlu0 %390 }
 0x177   :  { %v543_v12 = vadd.f32 %v501_v10, %v463_v8  ;;  %v431_v13 = vadd.f32 %v391_v11, %v367_v9  ;;  %v473_v10 = vld [vmem:[#allocation4 + $0x60] sm:$0xff]  ;;  %v468_v11 = vld [vmem:[#allocation4 + $0x38] sm:$0xff] }
 0x179   :  { %559 = vst.msk [vmem:[#allocation4 + $0x10] sm:$0xff] %vm24_vm2, %v543_v12  ;;  %448 = vst.msk [vmem:[#allocation2 + $0x18] sm:$0xff] %vm24_vm2, %v431_v13 }
 0x17a   :  { %v525_v16 = vpop.xlane.xlu1 %524  ;;  %v415_v17 = vpop.xlane.xlu0 %414 }
 0x17b   :  { %v551_v18 = vadd.f32 %v525_v16, %v471_v14  ;;  %v439_v19 = vadd.f32 %v415_v17, %v375_v15 }
 0x17d   :  { %567 = vst.msk [vmem:[#allocation4 + $0x50] sm:$0xff] %vm24_vm2, %v551_v18  ;;  %456 = vst.msk [vmem:[#allocation2 + $0x58] sm:$0xff] %vm24_vm2, %v439_v19 }
 0x17e   :  { %v385_v22 = vpop.xlane.xlu1 %384  ;;  %v409_v23 = vpop.xlane.xlu0 %408 }
 0x17f   :  { %v429_v24 = vadd.f32 %v385_v22, %v365_v20  ;;  %v437_v25 = vadd.f32 %v409_v23, %v373_v21 }
 0x181   :  { %446 = vst.msk [vmem:[#allocation2 + $0x8] sm:$0xff] %vm24_vm2, %v429_v24  ;;  %454 = vst.msk [vmem:[#allocation2 + $0x48] sm:$0xff] %vm24_vm2, %v437_v25 }
 0x182   :  { %v495_v28 = vpop.xlane.xlu1 %494  ;;  %v504_v29 = vpop.xlane.xlu0 %503 }
 0x183   :  { %v541_v30 = vadd.f32 %v495_v28, %v461_v26  ;;  %v544_v31 = vadd.f32 %v504_v29, %v464_v27 }
 0x185   :  { %557 = vst.msk [vmem:[#allocation4] sm:$0xff] %vm24_vm2, %v541_v30  ;;  %560 = vst.msk [vmem:[#allocation4 + $0x18] sm:$0xff] %vm24_vm2, %v544_v31 }
 0x186   :  { %v519_v34 = vpop.xlane.xlu1 %518  ;;  %v528_v35 = vpop.xlane.xlu0 %527 }
 0x187   :  { %v549_v36 = vadd.f32 %v519_v34, %v469_v32  ;;  %v552_v37 = vadd.f32 %v528_v35, %v472_v33 }
 0x189   :  { %565 = vst.msk [vmem:[#allocation4 + $0x40] sm:$0xff] %vm24_vm2, %v549_v36  ;;  %568 = vst.msk [vmem:[#allocation4 + $0x58] sm:$0xff] %vm24_vm2, %v552_v37 }
 0x18a   :  { %v400_v40 = vpop.xlane.xlu1 %399  ;;  %v498_v41 = vpop.xlane.xlu0 %497 }
 0x18b   :  { %v434_v42 = vadd.f32 %v400_v40, %v370_v38  ;;  %v542_v43 = vadd.f32 %v498_v41, %v462_v39 }
 0x18d   :  { %451 = vst.msk [vmem:[#allocation2 + $0x30] sm:$0xff] %vm24_vm2, %v434_v42  ;;  %558 = vst.msk [vmem:[#allocation4 + $0x8] sm:$0xff] %vm24_vm2, %v542_v43 }
 0x18e   :  { %v424_v46 = vpop.xlane.xlu1 %423  ;;  %v522_v47 = vpop.xlane.xlu0 %521 }
 0x18f   :  { %v442_v48 = vadd.f32 %v424_v46, %v378_v44  ;;  %v550_v49 = vadd.f32 %v522_v47, %v470_v45 }
 0x191   :  { %459 = vst.msk [vmem:[#allocation2 + $0x70] sm:$0xff] %vm24_vm2, %v442_v48  ;;  %566 = vst.msk [vmem:[#allocation4 + $0x48] sm:$0xff] %vm24_vm2, %v550_v49 }
 0x192   :  { %v394_v52 = vpop.xlane.xlu1 %393  ;;  %v403_v53 = vpop.xlane.xlu0 %402 }
 0x193   :  { %v432_v54 = vadd.f32 %v394_v52, %v368_v50  ;;  %v435_v55 = vadd.f32 %v403_v53, %v371_v51 }
 0x195   :  { %449 = vst.msk [vmem:[#allocation2 + $0x20] sm:$0xff] %vm24_vm2, %v432_v54  ;;  %452 = vst.msk [vmem:[#allocation2 + $0x38] sm:$0xff] %vm24_vm2, %v435_v55 }
 0x196   :  { %v418_v58 = vpop.xlane.xlu1 %417  ;;  %v427_v59 = vpop.xlane.xlu0 %426 }
 0x197   :  { %v440_v60 = vadd.f32 %v418_v58, %v376_v56  ;;  %v443_v61 = vadd.f32 %v427_v59, %v379_v57 }
 0x199   :  { %457 = vst.msk [vmem:[#allocation2 + $0x60] sm:$0xff] %vm24_vm2, %v440_v60  ;;  %460 = vst.msk [vmem:[#allocation2 + $0x78] sm:$0xff] %vm24_vm2, %v443_v61 }
 0x19a   :  { %v513_v0 = vpop.xlane.xlu1 %512  ;;  %v397_v1 = vpop.xlane.xlu0 %396 }
 0x19b   :  { %v547_v2 = vadd.f32 %v513_v0, %v467_v62  ;;  %v433_v3 = vadd.f32 %v397_v1, %v369_v63 }
 0x19d   :  { %563 = vst.msk [vmem:[#allocation4 + $0x30] sm:$0xff] %vm24_vm2, %v547_v2  ;;  %450 = vst.msk [vmem:[#allocation2 + $0x28] sm:$0xff] %vm24_vm2, %v433_v3 }
 0x19e   :  { %v507_v6 = vpop.xlane.xlu1 %506  ;;  %v421_v7 = vpop.xlane.xlu0 %420 }
 0x19f   :  { %v545_v8 = vadd.f32 %v507_v6, %v465_v4  ;;  %v441_v9 = vadd.f32 %v421_v7, %v377_v5 }
 0x1a1   :  { %561 = vst.msk [vmem:[#allocation4 + $0x20] sm:$0xff] %vm24_vm2, %v545_v8  ;;  %458 = vst.msk [vmem:[#allocation2 + $0x68] sm:$0xff] %vm24_vm2, %v441_v9 }
 0x1a2   :  { %v531_v12 = vpop.xlane.xlu1 %530  ;;  %v516_v13 = vpop.xlane.xlu0 %515 }
 0x1a3   :  { %690 = shalt.err (!%p687_p4)
}
 0x1a4   :  { %s691_s24 = scalar_lea.hbm %s1133_s4, 2048 }
 0x1a5   :  { %p692_p5 = scmp.ne.s32.totalorder %s1133_s4, %s691_s24  ;;  %p695_p6 = scmp.lt.u32.totalorder %s691_s24, %s1133_s4 }
 0x1a7   :  { %p697_p7 = pnand %p695_p6, %p692_p5 }
 0x1a9   :  { %700 = shalt.err (!%p697_p7)
}
 0x1aa   :  { %s730_s0 = smov 128   ;;  %s731_s28 = smov 8   ;;  %v553_v14 = vadd.f32 %v531_v12, %v473_v10  ;;  %v548_v15 = vadd.f32 %v516_v13, %v468_v11  ;;  %v475_v16 = vld [vmem:[#allocation4 + $0x70] sm:$0xff]  ;;  %v466_v17 = vld [vmem:[#allocation4 + $0x28] sm:$0xff]  ;;  %v537_v18 = vpop.xlane.xlu1 %536  ;;  %v510_v19 = vpop.xlane.xlu0 %509  ;;  %v476_v25 = vld [vmem:[#allocation4 + $0x78] sm:$0xff] }
 0x1ab   :  { %586 = dma.vmem_to_hbm [thread:$0]  %s581_s20, 2048, %s1133_s4, [#allocation3], %s730_s0, %s730_s0, %s731_s28   ;;  %v555_v20 = vadd.f32 %v537_v18, %v475_v16  ;;  %v546_v21 = vadd.f32 %v510_v19, %v466_v17  ;;  %v474_v22 = vld [vmem:[#allocation4 + $0x68] sm:$0xff] }
 0x1ac   :  { %569 = vst.msk [vmem:[#allocation4 + $0x60] sm:$0xff] %vm24_vm2, %v553_v14  ;;  %564 = vst.msk [vmem:[#allocation4 + $0x38] sm:$0xff] %vm24_vm2, %v548_v15  ;;  %s732_s4 = smov [#allocation4]  }
 0x1ad   :  { %571 = vst.msk [vmem:[#allocation4 + $0x70] sm:$0xff] %vm24_vm2, %v555_v20  ;;  %562 = vst.msk [vmem:[#allocation4 + $0x28] sm:$0xff] %vm24_vm2, %v546_v21  ;;  %s592_s6 = sshll.u32 %s732_s4, 4  ;;  %s593_s6 = int_to_ptr.vmem [resolvable:$true] %s592_s6 }
 0x1ae   :  { %v534_v23 = vpop.xlane.xlu0 %533  ;;  %s701_s7 = scalar_lea.vmem %s593_s6, 2048  ;;  %p706_p9 = scmp.lt.s32.totalorder %s593_s6, %s593_s6 }
 0x1af   :  { %v554_v24 = vadd.f32 %v534_v23, %v474_v22  ;;  %p702_p8 = scmp.ne.s32.totalorder %s593_s6, %s701_s7  ;;  %p707_p10 = scmp.lt.s32.totalorder %s701_s7, %s701_s7 }
 0x1b1   :  { %570 = vst.msk [vmem:[#allocation4 + $0x68] sm:$0xff] %vm24_vm2, %v554_v24  ;;  %p708_p11 = por %p707_p10, %p706_p9 }
 0x1b2   :  { %v540_v26 = vpop.xlane.xlu0 %539 }
 0x1b3   :  { %v556_v27 = vadd.f32 %v540_v26, %v476_v25  ;;  %p709_p12 = pnand %p708_p11, %p702_p8 }
 0x1b5   :  { %572 = vst.msk [vmem:[#allocation4 + $0x78] sm:$0xff] %vm24_vm2, %v556_v27 }
 0x1b6   :  { %712 = shalt.err (!%p709_p12)
}
 0x1b7   :  { %s713_s10 = scalar_lea.hbm %s1134_s5, 2048 }
 0x1b8   :  { %p714_p13 = scmp.ne.s32.totalorder %s1134_s5, %s713_s10  ;;  %p717_p0 = scmp.lt.u32.totalorder %s713_s10, %s1134_s5 }
 0x1ba   :  { %p719_p1 = pnand %p717_p0, %p714_p13 }
 0x1bc   :  { %722 = shalt.err (!%p719_p1)
}
 0x1bd   :  { %598 = dma.vmem_to_hbm [thread:$0]  %s593_s6, 2048, %s1134_s5, [#allocation5], %s730_s0, %s730_s0, %s731_s28  }
 0x1be   :  { %723 = dma.done.wait [#allocation3], 2048  }
 0x1bf   :  { %724 = vsyncadd [#allocation3], 4294965248 }
 0x1c0   :  { %725 = dma.done.wait [#allocation5], 2048  }
 0x1c1   :  { %726 = vsyncadd [#allocation5], 4294965248 }
 0x1c2   :  { %607 = vsyncpa [#allocation3], 1 }
 0x1c3   :  { %608 = vsyncpa [#allocation5], 1 }

// kernel: _lambda_.48
= control target key start
LH: loop header
LB: loop body
LE: loop exit
PB: predicated region body
PF: predicated region fallthrough
CT: control target
= control target key end

     0   :  { %s134_s0 = inlined_call_operand.vmem [shape: f32[16,512], index: 0, kind: input, shape index: {}]   ;;  %s135_s1 = inlined_call_operand.vmem [shape: f32[16,512], index: 1, kind: input, shape index: {}]   ;;  %s136_s2 = inlined_call_operand.vmem [shape: f32[16,512], index: 2, kind: output, shape index: {}]  }
   0x1   :  { %v11_v0 = vld [vmem:[%s134_s0] sm:$0xff]  ;;  %v12_v2 = vld [vmem:[%s134_s0 + $0x8] sm:$0xff]  ;;  %v13_v5 = vld [vmem:[%s134_s0 + $0x10] sm:$0xff] }
   0x2   :  { %v19_v1 = vld [vmem:[%s135_s1] sm:$0xff]  ;;  %v20_v4 = vld [vmem:[%s135_s1 + $0x8] sm:$0xff]  ;;  %v21_v6 = vld [vmem:[%s135_s1 + $0x10] sm:$0xff] }
   0x3   :  { %v27_v3 = vadd.f32 %v19_v1, %v11_v0  ;;  %v28_v7 = vadd.f32 %v20_v4, %v12_v2  ;;  %v29_v8 = vadd.f32 %v21_v6, %v13_v5  ;;  %v14_v9 = vld [vmem:[%s134_s0 + $0x18] sm:$0xff]  ;;  %v15_v11 = vld [vmem:[%s134_s0 + $0x20] sm:$0xff]  ;;  %v16_v14 = vld [vmem:[%s134_s0 + $0x28] sm:$0xff] }
   0x4   :  { %v22_v10 = vld [vmem:[%s135_s1 + $0x18] sm:$0xff]  ;;  %v23_v13 = vld [vmem:[%s135_s1 + $0x20] sm:$0xff]  ;;  %v24_v15 = vld [vmem:[%s135_s1 + $0x28] sm:$0xff] }
   0x5   :  { %35 = vst [vmem:[%s136_s2] sm:$0xff] %v27_v3  ;;  %v30_v12 = vadd.f32 %v22_v10, %v14_v9  ;;  %36 = vst [vmem:[%s136_s2 + $0x8] sm:$0xff] %v28_v7  ;;  %v31_v16 = vadd.f32 %v23_v13, %v15_v11  ;;  %v32_v17 = vadd.f32 %v24_v15, %v16_v14  ;;  %v17_v18 = vld [vmem:[%s134_s0 + $0x30] sm:$0xff]  ;;  %v18_v20 = vld [vmem:[%s134_s0 + $0x38] sm:$0xff] }
   0x6   :  { %37 = vst [vmem:[%s136_s2 + $0x10] sm:$0xff] %v29_v8  ;;  %v25_v19 = vld [vmem:[%s135_s1 + $0x30] sm:$0xff]  ;;  %v26_v22 = vld [vmem:[%s135_s1 + $0x38] sm:$0xff] }
   0x7   :  { %38 = vst [vmem:[%s136_s2 + $0x18] sm:$0xff] %v30_v12  ;;  %v33_v21 = vadd.f32 %v25_v19, %v17_v18  ;;  %39 = vst [vmem:[%s136_s2 + $0x20] sm:$0xff] %v31_v16  ;;  %v34_v23 = vadd.f32 %v26_v22, %v18_v20 }
   0x8   :  { %40 = vst [vmem:[%s136_s2 + $0x28] sm:$0xff] %v32_v17 }
   0x9   :  { %41 = vst [vmem:[%s136_s2 + $0x30] sm:$0xff] %v33_v21  ;;  %42 = vst [vmem:[%s136_s2 + $0x38] sm:$0xff] %v34_v23 }

// kernel: _lambda_.55
= control target key start
LH: loop header
LB: loop body
LE: loop exit
PB: predicated region body
PF: predicated region fallthrough
CT: control target
= control target key end

     0   :  { %11 = vsyncpa [#allocation3], 0  ;;  %v611_v2 = vmov 0   ;;  %vm141_vm0 = vcmask 130048   ;;  %s861_s0 = inlined_call_operand.vmem [shape: bf16[1,16,512], index: 0, kind: input, shape index: {}]   ;;  %s862_s1 = inlined_call_operand.vmem [shape: bf16[64,16], index: 1, kind: input, shape index: {}]   ;;  %s863_s2 = inlined_call_operand.vmem [shape: f32[64,1], index: 2, kind: input, shape index: {}]   ;;  %s864_s3 = inlined_call_operand.vmem [shape: f32[1,64,512], index: 3, kind: output, shape index: {0}]   ;;  %s865_s4 = inlined_call_operand.hbm [shape: f32[1,64,1], index: 4, kind: output, shape index: {1}]   ;;  %s866_s5 = inlined_call_operand.hbm [shape: f32[1,64,1], index: 5, kind: output, shape index: {2}]  }
   0x1   :  { %v553_v0 = vld [vmem:[%s861_s0 + $0x4] ss:$16 sps:$4 sm:$0xff]   ;;  %v555_v1 = vld [vmem:[%s861_s0 + $0xc] ss:$16 sps:$4 sm:$0xff]   ;;  %186 = vmatprep.mubr.bf16.mxu0 %v611_v2  ;;  %259 = vmatprep.mubr.bf16.mxu1 %v611_v2  ;;  %v557_v3 = vld [vmem:[%s861_s0] ss:$16 sps:$4 sm:$0xff]  }
   0x2   :  { %154 = vmatprep.subr.bf16.mxu0 %v553_v0  ;;  %v558_v4 = vld [vmem:[%s861_s0 + $0x8] ss:$16 sps:$4 sm:$0xff]   ;;  %551 = vset.pattern.permute.xlu0 %v611_v2  ;;  %v559_v5 = vld [vmem:[%s862_s1] sm:$0xff]   ;;  %v55_v7 = vld [vmem:[%s863_s2 + $0x10] sm:$0xff] }
   0x3   :  { %227 = vmatprep.subr.bf16.mxu1 %v555_v1  ;;  %552 = vset.pattern.permute.xlu1 %v611_v2  ;;  %v53_v6 = vld [vmem:[%s863_s2] sm:$0xff] }
   0x4   :  { %155 = vmatpush1.bf16.msra.mxu0 %v557_v3  ;;  %228 = vmatpush1.bf16.msra.mxu1 %v558_v4 }
   0x5   :  { %63 = vperm.xlu0 %551, %v53_v6   ;;  %73 = vperm.xlu1 %552, %v55_v7  }
   0x7   :  { %537 = vmatmul.mubr.msk.bf16.vlgmr.msra.gmra.mrb[0].mxu0 %vm141_vm0, %v559_v5  ;;  %541 = vmatmul.mubr.msk.bf16.vlgmr.msra.gmra.mrb[0].mxu1 %vm141_vm0, %v559_v5 }
   0x8   :  { %196 = vmatprep.mubr.bf16.mxu0 %v611_v2  ;;  %269 = vmatprep.mubr.bf16.mxu1 %v611_v2 }
   0x9   :  { %12 = vsyncpa [#allocation5], 0  ;;  %v54_v8 = vld [vmem:[%s863_s2 + $0x8] sm:$0xff]  ;;  %v56_v9 = vld [vmem:[%s863_s2 + $0x18] sm:$0xff]  ;;  %vm24_vm1 = vcmask 7168   ;;  %s614_s0 = smov [#allocation4]  }
   0xa   :  { %v560_v10 = vld [vmem:[%s862_s1 + $0x8] sm:$0xff]   ;;  %68 = vperm.xlu0 %551, %v54_v8   ;;  %78 = vperm.xlu1 %552, %v56_v9   ;;  %v57_v11 = vld [vmem:[%s863_s2 + $0x20] sm:$0xff]  ;;  %v59_v13 = vld [vmem:[%s863_s2 + $0x30] sm:$0xff]  ;;  %s512_s6 = sshll.u32 %s614_s0, 4  ;;  %s513_s6 = int_to_ptr.vmem [resolvable:$true] %s512_s6 }
   0xb   :  { %v58_v12 = vld [vmem:[%s863_s2 + $0x28] sm:$0xff]  ;;  %v60_v14 = vld [vmem:[%s863_s2 + $0x38] sm:$0xff]  ;;  %v561_v15 = vld [vmem:[%s862_s1 + $0x10] sm:$0xff]  }
   0xc   :  { %v562_v16 = vld [vmem:[%s862_s1 + $0x18] sm:$0xff]  }
   0xe   :  { %83 = vperm.xlu0 %551, %v57_v11   ;;  %88 = vperm.xlu1 %552, %v58_v12  }
   0xf   :  { %538 = vmatmul.mubr.msk.bf16.gmra.mrb[4].mxu0 %vm141_vm0, %v560_v10  ;;  %542 = vmatmul.mubr.msk.bf16.gmra.mrb[4].mxu1 %vm141_vm0, %v560_v10 }
  0x10   :  { %206 = vmatprep.mubr.bf16.mxu0 %v611_v2  ;;  %279 = vmatprep.mubr.bf16.mxu1 %v611_v2 }
  0x12   :  { %93 = vperm.xlu0 %551, %v59_v13   ;;  %98 = vperm.xlu1 %552, %v60_v14  }
  0x17   :  { %539 = vmatmul.mubr.msk.bf16.gmra.mrb[8].mxu0 %vm141_vm0, %v561_v15  ;;  %543 = vmatmul.mubr.msk.bf16.gmra.mrb[8].mxu1 %vm141_vm0, %v561_v15 }
  0x18   :  { %216 = vmatprep.mubr.bf16.mxu0 %v611_v2  ;;  %289 = vmatprep.mubr.bf16.mxu1 %v611_v2 }
  0x1f   :  { %540 = vmatmul.mubr.msk.bf16.gmra.mrb[12].mxu0 %vm141_vm0, %v562_v16  ;;  %544 = vmatmul.mubr.msk.bf16.gmra.mrb[12].mxu1 %vm141_vm0, %v562_v16 }
  0x84   :  { %v64_v17 = vpop.permute.xlu0 %63  ;;  %v74_v19 = vpop.permute.xlu1 %73 }
  0x89   :  { %v69_v18 = vpop.permute.xlu0 %68  ;;  %v79_v44 = vpop.permute.xlu1 %78 }
  0x8d   :  { %v84_v16 = vpop.permute.xlu0 %83 }
  0xda   :  { %v188_v20 = vpop.f32.mrb[0].mxu0  ;;  %v261_v21 = vpop.f32.mrb[0].mxu1 }
  0xdb   :  { %v189_v22 = vadd.f32 %v188_v20, %v64_v17  ;;  %v262_v23 = vadd.f32 %v261_v21, %v64_v17  ;;  %v190_v24 = vpop.f32.mrb[1].mxu0  ;;  %v263_v25 = vpop.f32.mrb[1].mxu1 }
  0xdc   :  { %v191_v26 = vadd.f32 %v190_v24, %v64_v17  ;;  %v264_v27 = vadd.f32 %v263_v25, %v64_v17  ;;  %v192_v28 = vpop.f32.mrb[2].mxu0  ;;  %v265_v29 = vpop.f32.mrb[2].mxu1 }
  0xdd   :  { %300 = vst [vmem:[%s864_s3] sm:$0xff] %v189_v22  ;;  %v405_v30 = vmul.f32 %v189_v22, %v189_v22  ;;  %302 = vst [vmem:[%s864_s3 + $0x10] sm:$0xff] %v262_v23  ;;  %v193_v31 = vadd.f32 %v192_v28, %v69_v18  ;;  %v266_v32 = vadd.f32 %v265_v29, %v69_v18  ;;  %v194_v33 = vpop.f32.mrb[3].mxu0  ;;  %v267_v34 = vpop.f32.mrb[3].mxu1 }
  0xde   :  { %301 = vst [vmem:[%s864_s3 + $0x8] sm:$0xff] %v191_v26  ;;  %v340_v35 = vadd.f32 %v191_v26, %v189_v22  ;;  %v406_v36 = vmul.f32 %v191_v26, %v191_v26  ;;  %303 = vst [vmem:[%s864_s3 + $0x18] sm:$0xff] %v264_v27  ;;  %v195_v37 = vadd.f32 %v194_v33, %v69_v18  ;;  %v89_v17 = vpop.permute.xlu1 %88 }
  0xdf   :  { %v268_v38 = vadd.f32 %v267_v34, %v69_v18  ;;  %304 = vst [vmem:[%s864_s3 + $0x20] sm:$0xff] %v193_v31  ;;  %v409_v39 = vmul.f32 %v193_v31, %v193_v31  ;;  %306 = vst [vmem:[%s864_s3 + $0x30] sm:$0xff] %v266_v32  ;;  %v407_v43 = vmul.f32 %v262_v23, %v262_v23 }
  0xe0   :  { %305 = vst [vmem:[%s864_s3 + $0x28] sm:$0xff] %v195_v37  ;;  %v345_v40 = vadd.f32 %v195_v37, %v193_v31  ;;  %v410_v41 = vmul.f32 %v195_v37, %v195_v37  ;;  %v341_v42 = vadd.f32 %v340_v35, %v262_v23  ;;  %v437_v45 = vadd.f32 %v406_v36, %v405_v30 }
  0xe1   :  { %307 = vst [vmem:[%s864_s3 + $0x38] sm:$0xff] %v268_v38  ;;  %v411_v46 = vmul.f32 %v266_v32, %v266_v32  ;;  %v408_v56 = vmul.f32 %v264_v27, %v264_v27  ;;  %v412_v5 = vmul.f32 %v268_v38, %v268_v38 }
  0xe2   :  { %v198_v47 = vpop.f32.mrb[4].mxu0  ;;  %v271_v48 = vpop.f32.mrb[4].mxu1  ;;  %v342_v49 = vadd.f32 %v341_v42, %v264_v27  ;;  %v346_v50 = vadd.f32 %v345_v40, %v266_v32  ;;  %v442_v51 = vadd.f32 %v410_v41, %v409_v39  ;;  %v438_v57 = vadd.f32 %v437_v45, %v407_v43 }
  0xe3   :  { %v199_v52 = vadd.f32 %v198_v47, %v74_v19  ;;  %v272_v53 = vadd.f32 %v271_v48, %v74_v19  ;;  %v200_v54 = vpop.f32.mrb[5].mxu0  ;;  %v273_v55 = vpop.f32.mrb[5].mxu1 }
  0xe4   :  { %v201_v58 = vadd.f32 %v200_v54, %v74_v19  ;;  %v274_v59 = vadd.f32 %v273_v55, %v74_v19  ;;  %v202_v60 = vpop.f32.mrb[6].mxu0  ;;  %v275_v61 = vpop.f32.mrb[6].mxu1  ;;  %343 = vadd.xlane.f32.xlu0 %v342_v49  ;;  %v347_v62 = vadd.f32 %v346_v50, %v268_v38  ;;  %v443_v63 = vadd.f32 %v442_v51, %v411_v46 }
  0xe5   :  { %308 = vst [vmem:[%s864_s3 + $0x40] sm:$0xff] %v199_v52  ;;  %v413_v0 = vmul.f32 %v199_v52, %v199_v52  ;;  %310 = vst [vmem:[%s864_s3 + $0x50] sm:$0xff] %v272_v53  ;;  %v203_v1 = vadd.f32 %v202_v60, %v79_v44  ;;  %v276_v2 = vadd.f32 %v275_v61, %v79_v44  ;;  %v204_v3 = vpop.f32.mrb[7].mxu0  ;;  %v277_v4 = vpop.f32.mrb[7].mxu1 }
  0xe6   :  { %309 = vst [vmem:[%s864_s3 + $0x48] sm:$0xff] %v201_v58  ;;  %v350_v6 = vadd.f32 %v201_v58, %v199_v52  ;;  %v414_v7 = vmul.f32 %v201_v58, %v201_v58  ;;  %311 = vst [vmem:[%s864_s3 + $0x58] sm:$0xff] %v274_v59  ;;  %v205_v8 = vadd.f32 %v204_v3, %v79_v44  ;;  %348 = vadd.xlane.f32.xlu1 %v347_v62  ;;  %v94_v54 = vpop.permute.xlu0 %93  ;;  %v99_v55 = vpop.permute.xlu1 %98 }
  0xe7   :  { %v278_v9 = vadd.f32 %v277_v4, %v79_v44  ;;  %312 = vst [vmem:[%s864_s3 + $0x60] sm:$0xff] %v203_v1  ;;  %v417_v10 = vmul.f32 %v203_v1, %v203_v1  ;;  %314 = vst [vmem:[%s864_s3 + $0x70] sm:$0xff] %v276_v2  ;;  %v444_v11 = vadd.f32 %v443_v63, %v412_v5 }
  0xe8   :  { %v439_v12 = vadd.f32 %v438_v57, %v408_v56  ;;  %313 = vst [vmem:[%s864_s3 + $0x68] sm:$0xff] %v205_v8  ;;  %v355_v13 = vadd.f32 %v205_v8, %v203_v1  ;;  %v418_v14 = vmul.f32 %v205_v8, %v205_v8  ;;  %v351_v15 = vadd.f32 %v350_v6, %v272_v53 }
  0xe9   :  { %315 = vst [vmem:[%s864_s3 + $0x78] sm:$0xff] %v278_v9  ;;  %v415_v18 = vmul.f32 %v272_v53, %v272_v53  ;;  %445 = vadd.xlane.f32.xlu0 %v444_v11  ;;  %v447_v19 = vadd.f32 %v414_v7, %v413_v0  ;;  %v419_v20 = vmul.f32 %v276_v2, %v276_v2  ;;  %v612_v0 = vmov 0.0  }
  0xea   :  { %v208_v21 = vpop.f32.mrb[8].mxu0  ;;  %v281_v22 = vpop.f32.mrb[8].mxu1  ;;  %440 = vadd.xlane.f32.xlu1 %v439_v12  ;;  %v352_v23 = vadd.f32 %v351_v15, %v274_v59  ;;  %v356_v24 = vadd.f32 %v355_v13, %v276_v2  ;;  %v452_v25 = vadd.f32 %v418_v14, %v417_v10  ;;  %v416_v30 = vmul.f32 %v274_v59, %v274_v59 }
  0xeb   :  { %v209_v26 = vadd.f32 %v208_v21, %v84_v16  ;;  %v282_v27 = vadd.f32 %v281_v22, %v84_v16  ;;  %v210_v28 = vpop.f32.mrb[9].mxu0  ;;  %v283_v29 = vpop.f32.mrb[9].mxu1  ;;  %v448_v31 = vadd.f32 %v447_v19, %v415_v18  ;;  %v420_v43 = vmul.f32 %v278_v9, %v278_v9  ;;  %25 = vst.msk [vmem:[#allocation2] sm:$0xff] %vm24_vm1, %v612_v0 }
  0xec   :  { %v211_v32 = vadd.f32 %v210_v28, %v84_v16  ;;  %v751_v33 = vadd.f32 %v283_v29, %v84_v16  ;;  %v212_v34 = vpop.f32.mrb[10].mxu0  ;;  %v285_v35 = vpop.f32.mrb[10].mxu1  ;;  %v357_v36 = vadd.f32 %v356_v24, %v278_v9  ;;  %v453_v37 = vadd.f32 %v452_v25, %v419_v20  ;;  %26 = vst.msk [vmem:[#allocation2 + $0x8] sm:$0xff] %vm24_vm1, %v612_v0 }
  0xed   :  { %316 = vst [vmem:[%s864_s3 + $0x80] sm:$0xff] %v209_v26  ;;  %v421_v38 = vmul.f32 %v209_v26, %v209_v26  ;;  %318 = vst [vmem:[%s864_s3 + $0x90] sm:$0xff] %v282_v27  ;;  %v213_v39 = vadd.f32 %v212_v34, %v89_v17  ;;  %v286_v40 = vadd.f32 %v285_v35, %v89_v17  ;;  %353 = vadd.xlane.f32.xlu0 %v352_v23  ;;  %v214_v41 = vpop.f32.mrb[11].mxu0  ;;  %v287_v42 = vpop.f32.mrb[11].mxu1 }
  0xee   :  { %317 = vst [vmem:[%s864_s3 + $0x88] sm:$0xff] %v211_v32  ;;  %v360_v44 = vadd.f32 %v211_v32, %v209_v26  ;;  %v422_v45 = vmul.f32 %v211_v32, %v211_v32  ;;  %319 = vst [vmem:[%s864_s3 + $0x98] sm:$0xff] %v751_v33  ;;  %v215_v46 = vadd.f32 %v214_v41, %v89_v17 }
  0xef   :  { %v288_v47 = vadd.f32 %v287_v42, %v89_v17  ;;  %320 = vst [vmem:[%s864_s3 + $0xa0] sm:$0xff] %v213_v39  ;;  %v425_v48 = vmul.f32 %v213_v39, %v213_v39  ;;  %322 = vst [vmem:[%s864_s3 + $0xb0] sm:$0xff] %v286_v40  ;;  %v449_v49 = vadd.f32 %v448_v31, %v416_v30 }
  0xf0   :  { %v454_v50 = vadd.f32 %v453_v37, %v420_v43  ;;  %321 = vst [vmem:[%s864_s3 + $0xa8] sm:$0xff] %v215_v46  ;;  %v365_v51 = vadd.f32 %v215_v46, %v213_v39  ;;  %v426_v52 = vmul.f32 %v215_v46, %v215_v46  ;;  %v361_v53 = vadd.f32 %v360_v44, %v282_v27 }
  0xf1   :  { %323 = vst [vmem:[%s864_s3 + $0xb8] sm:$0xff] %v288_v47  ;;  %v423_v56 = vmul.f32 %v282_v27, %v282_v27  ;;  %450 = vadd.xlane.f32.xlu1 %v449_v49  ;;  %358 = vadd.xlane.f32.xlu0 %v357_v36  ;;  %v457_v57 = vadd.f32 %v422_v45, %v421_v38  ;;  %27 = vst.msk [vmem:[#allocation2 + $0x10] sm:$0xff] %vm24_vm1, %v612_v0 }
  0xf2   :  { %v427_v58 = vmul.f32 %v286_v40, %v286_v40  ;;  %v218_v59 = vpop.f32.mrb[12].mxu0  ;;  %v291_v60 = vpop.f32.mrb[12].mxu1  ;;  %v362_v61 = vadd.f32 %v361_v53, %v751_v33  ;;  %v366_v62 = vadd.f32 %v365_v51, %v286_v40  ;;  %v462_v63 = vadd.f32 %v426_v52, %v425_v48  ;;  %28 = vst.msk [vmem:[#allocation2 + $0x18] sm:$0xff] %vm24_vm1, %v612_v0  ;;  %v332_v42 = vld [vmem:[#allocation2] sm:$0xff] }
  0xf3   :  { %29 = vst.msk [vmem:[#allocation2 + $0x20] sm:$0xff] %vm24_vm1, %v612_v0  ;;  %30 = vst.msk [vmem:[#allocation2 + $0x28] sm:$0xff] %vm24_vm1, %v612_v0  ;;  %v219_v1 = vadd.f32 %v218_v59, %v94_v54  ;;  %v292_v2 = vadd.f32 %v291_v60, %v94_v54  ;;  %v220_v3 = vpop.f32.mrb[13].mxu0  ;;  %v293_v4 = vpop.f32.mrb[13].mxu1  ;;  %v424_v5 = vmul.f32 %v751_v33, %v751_v33  ;;  %v333_v44 = vld [vmem:[#allocation2 + $0x8] sm:$0xff] }
  0xf4   :  { %31 = vst.msk [vmem:[#allocation2 + $0x30] sm:$0xff] %vm24_vm1, %v612_v0  ;;  %32 = vst.msk [vmem:[#allocation2 + $0x38] sm:$0xff] %vm24_vm1, %v612_v0  ;;  %v458_v6 = vadd.f32 %v457_v57, %v423_v56  ;;  %v221_v7 = vadd.f32 %v220_v3, %v94_v54  ;;  %v294_v8 = vadd.f32 %v293_v4, %v94_v54  ;;  %v222_v9 = vpop.f32.mrb[14].mxu0  ;;  %v295_v10 = vpop.f32.mrb[14].mxu1 }
  0xf5   :  { %33 = vst.msk [vmem:[#allocation4] sm:$0xff] %vm24_vm1, %v612_v0  ;;  %34 = vst.msk [vmem:[#allocation4 + $0x8] sm:$0xff] %vm24_vm1, %v612_v0  ;;  %v367_v11 = vadd.f32 %v366_v62, %v288_v47  ;;  %v463_v12 = vadd.f32 %v462_v63, %v427_v58  ;;  %v429_v13 = vmul.f32 %v219_v1, %v219_v1  ;;  %363 = vadd.xlane.f32.xlu1 %v362_v61  ;;  %v224_v16 = vpop.f32.mrb[15].mxu0  ;;  %v297_v17 = vpop.f32.mrb[15].mxu1 }
  0xf6   :  { %35 = vst.msk [vmem:[#allocation4 + $0x10] sm:$0xff] %vm24_vm1, %v612_v0  ;;  %36 = vst.msk [vmem:[#allocation4 + $0x18] sm:$0xff] %vm24_vm1, %v612_v0  ;;  %v223_v14 = vadd.f32 %v222_v9, %v99_v55  ;;  %v296_v15 = vadd.f32 %v295_v10, %v99_v55  ;;  %v428_v18 = vmul.f32 %v288_v47, %v288_v47  ;;  %455 = vadd.xlane.f32.xlu0 %v454_v50 }
  0xf7   :  { %37 = vst.msk [vmem:[#allocation4 + $0x20] sm:$0xff] %vm24_vm1, %v612_v0  ;;  %38 = vst.msk [vmem:[#allocation4 + $0x28] sm:$0xff] %vm24_vm1, %v612_v0  ;;  %v370_v19 = vadd.f32 %v221_v7, %v219_v1  ;;  %v430_v20 = vmul.f32 %v221_v7, %v221_v7  ;;  %v225_v21 = vadd.f32 %v224_v16, %v99_v55 }
  0xf8   :  { %39 = vst.msk [vmem:[#allocation4 + $0x30] sm:$0xff] %vm24_vm1, %v612_v0  ;;  %40 = vst.msk [vmem:[#allocation4 + $0x38] sm:$0xff] %vm24_vm1, %v612_v0  ;;  %v298_v22 = vadd.f32 %v297_v17, %v99_v55  ;;  %v433_v23 = vmul.f32 %v223_v14, %v223_v14  ;;  %v459_v24 = vadd.f32 %v458_v6, %v424_v5  ;;  %v334_v54 = vld [vmem:[#allocation2 + $0x10] sm:$0xff] }
  0xf9   :  { %324 = vst [vmem:[%s864_s3 + $0xc0] sm:$0xff] %v219_v1  ;;  %326 = vst [vmem:[%s864_s3 + $0xd0] sm:$0xff] %v292_v2  ;;  %v464_v25 = vadd.f32 %v463_v12, %v428_v18  ;;  %v375_v26 = vadd.f32 %v225_v21, %v223_v14  ;;  %v434_v27 = vmul.f32 %v225_v21, %v225_v21  ;;  %v335_v58 = vld [vmem:[#allocation2 + $0x18] sm:$0xff] }
  0xfa   :  { %325 = vst [vmem:[%s864_s3 + $0xc8] sm:$0xff] %v221_v7  ;;  %327 = vst [vmem:[%s864_s3 + $0xd8] sm:$0xff] %v294_v8  ;;  %v371_v28 = vadd.f32 %v370_v19, %v292_v2  ;;  %v431_v29 = vmul.f32 %v292_v2, %v292_v2  ;;  %460 = vadd.xlane.f32.xlu1 %v459_v24  ;;  %v467_v30 = vadd.f32 %v430_v20, %v429_v13  ;;  %v336_v63 = vld [vmem:[#allocation2 + $0x20] sm:$0xff]  ;;  %v337_v6 = vld [vmem:[#allocation2 + $0x28] sm:$0xff] }
  0xfb   :  { %328 = vst [vmem:[%s864_s3 + $0xe0] sm:$0xff] %v223_v14  ;;  %330 = vst [vmem:[%s864_s3 + $0xf0] sm:$0xff] %v296_v15  ;;  %v435_v31 = vmul.f32 %v296_v15, %v296_v15  ;;  %368 = vadd.xlane.f32.xlu0 %v367_v11  ;;  %v376_v33 = vadd.f32 %v375_v26, %v296_v15  ;;  %v472_v34 = vadd.f32 %v434_v27, %v433_v23  ;;  %v338_v11 = vld [vmem:[#allocation2 + $0x30] sm:$0xff]  ;;  %v339_v18 = vld [vmem:[#allocation2 + $0x38] sm:$0xff] }
  0xfc   :  { %329 = vst [vmem:[%s864_s3 + $0xe8] sm:$0xff] %v225_v21  ;;  %331 = vst [vmem:[%s864_s3 + $0xf8] sm:$0xff] %v298_v22  ;;  %v372_v32 = vadd.f32 %v371_v28, %v294_v8  ;;  %v432_v35 = vmul.f32 %v294_v8, %v294_v8  ;;  %v468_v36 = vadd.f32 %v467_v30, %v431_v29  ;;  %v398_v48 = vld [vmem:[#allocation4 + $0x8] sm:$0xff]  ;;  %v397_v49 = vld [vmem:[#allocation4] sm:$0xff]  ;;  %s613_s3 = smov [#allocation2]  }
  0xfd   :  { %v377_v37 = vadd.f32 %v376_v33, %v298_v22  ;;  %v436_v38 = vmul.f32 %v298_v22, %v298_v22  ;;  %v473_v39 = vadd.f32 %v472_v34, %v435_v31  ;;  %v399_v57 = vld [vmem:[#allocation4 + $0x10] sm:$0xff]  ;;  %v400_v0 = vld [vmem:[#allocation4 + $0x18] sm:$0xff]  ;;  %s500_s30 = sshll.u32 %s613_s3, 4  ;;  %s501_s30 = int_to_ptr.vmem [resolvable:$true] %s500_s30 }
  0xfe   :  { %373 = vadd.xlane.f32.xlu1 %v372_v32  ;;  %v469_v40 = vadd.f32 %v468_v36, %v432_v35  ;;  %v401_v5 = vld [vmem:[#allocation4 + $0x20] sm:$0xff]  ;;  %v402_v12 = vld [vmem:[#allocation4 + $0x28] sm:$0xff]  ;;  %s563_s7 = scalar_lea.vmem %s501_s30, 1024  ;;  %p568_p1 = scmp.lt.s32.totalorder %s501_s30, %s501_s30 }
  0xff   :  { %465 = vadd.xlane.f32.xlu0 %v464_v25  ;;  %v474_v41 = vadd.f32 %v473_v39, %v436_v38  ;;  %v403_v17 = vld [vmem:[#allocation4 + $0x30] sm:$0xff]  ;;  %v404_v23 = vld [vmem:[#allocation4 + $0x38] sm:$0xff]  ;;  %p564_p0 = scmp.ne.s32.totalorder %s501_s30, %s563_s7  ;;  %p569_p2 = scmp.lt.s32.totalorder %s563_s7, %s563_s7 }
 0x101   :  { %p570_p3 = por %p569_p2, %p568_p1 }
 0x102   :  { %470 = vadd.xlane.f32.xlu1 %v469_v40 }
 0x103   :  { %378 = vadd.xlane.f32.xlu0 %v377_v37  ;;  %p571_p4 = pnand %p570_p3, %p564_p0 }
 0x107   :  { %475 = vadd.xlane.f32.xlu0 %v474_v41 }
 0x171   :  { %v344_v43 = vpop.xlane.xlu0 %343 }
 0x172   :  { %v380_v45 = vadd.f32 %v344_v43, %v332_v42 }
 0x173   :  { %v349_v46 = vpop.xlane.xlu1 %348 }
 0x174   :  { %389 = vst.msk [vmem:[#allocation2] sm:$0xff] %vm24_vm1, %v380_v45  ;;  %v381_v47 = vadd.f32 %v349_v46, %v333_v44 }
 0x176   :  { %390 = vst.msk [vmem:[#allocation2 + $0x8] sm:$0xff] %vm24_vm1, %v381_v47  ;;  %v446_v50 = vpop.xlane.xlu0 %445 }
 0x177   :  { %v478_v51 = vadd.f32 %v446_v50, %v398_v48  ;;  %v441_v52 = vpop.xlane.xlu1 %440 }
 0x178   :  { %v477_v53 = vadd.f32 %v441_v52, %v397_v49 }
 0x179   :  { %486 = vst.msk [vmem:[#allocation4 + $0x8] sm:$0xff] %vm24_vm1, %v478_v51 }
 0x17a   :  { %485 = vst.msk [vmem:[#allocation4] sm:$0xff] %vm24_vm1, %v477_v53  ;;  %v354_v55 = vpop.xlane.xlu0 %353 }
 0x17b   :  { %v382_v56 = vadd.f32 %v354_v55, %v334_v54 }
 0x17d   :  { %391 = vst.msk [vmem:[#allocation2 + $0x10] sm:$0xff] %vm24_vm1, %v382_v56 }
 0x17e   :  { %v451_v59 = vpop.xlane.xlu1 %450  ;;  %v359_v60 = vpop.xlane.xlu0 %358 }
 0x17f   :  { %v479_v61 = vadd.f32 %v451_v59, %v399_v57  ;;  %v383_v62 = vadd.f32 %v359_v60, %v335_v58 }
 0x181   :  { %487 = vst.msk [vmem:[#allocation4 + $0x10] sm:$0xff] %vm24_vm1, %v479_v61  ;;  %392 = vst.msk [vmem:[#allocation2 + $0x18] sm:$0xff] %vm24_vm1, %v383_v62 }
 0x182   :  { %v364_v1 = vpop.xlane.xlu1 %363 }
 0x183   :  { %v384_v2 = vadd.f32 %v364_v1, %v336_v63  ;;  %v456_v3 = vpop.xlane.xlu0 %455 }
 0x184   :  { %v480_v4 = vadd.f32 %v456_v3, %v400_v0 }
 0x185   :  { %393 = vst.msk [vmem:[#allocation2 + $0x20] sm:$0xff] %vm24_vm1, %v384_v2 }
 0x186   :  { %488 = vst.msk [vmem:[#allocation4 + $0x18] sm:$0xff] %vm24_vm1, %v480_v4 }
 0x187   :  { %v461_v7 = vpop.xlane.xlu1 %460 }
 0x188   :  { %v481_v8 = vadd.f32 %v461_v7, %v401_v5  ;;  %v369_v9 = vpop.xlane.xlu0 %368 }
 0x189   :  { %v385_v10 = vadd.f32 %v369_v9, %v337_v6 }
 0x18a   :  { %489 = vst.msk [vmem:[#allocation4 + $0x20] sm:$0xff] %vm24_vm1, %v481_v8 }
 0x18b   :  { %394 = vst.msk [vmem:[#allocation2 + $0x28] sm:$0xff] %vm24_vm1, %v385_v10  ;;  %v374_v13 = vpop.xlane.xlu1 %373 }
 0x18c   :  { %v386_v14 = vadd.f32 %v374_v13, %v338_v11  ;;  %v466_v15 = vpop.xlane.xlu0 %465 }
 0x18d   :  { %v482_v16 = vadd.f32 %v466_v15, %v402_v12 }
 0x18e   :  { %395 = vst.msk [vmem:[#allocation2 + $0x30] sm:$0xff] %vm24_vm1, %v386_v14 }
 0x18f   :  { %490 = vst.msk [vmem:[#allocation4 + $0x28] sm:$0xff] %vm24_vm1, %v482_v16  ;;  %v471_v19 = vpop.xlane.xlu1 %470 }
 0x190   :  { %v483_v20 = vadd.f32 %v471_v19, %v403_v17  ;;  %v379_v21 = vpop.xlane.xlu0 %378 }
 0x191   :  { %v387_v22 = vadd.f32 %v379_v21, %v339_v18 }
 0x192   :  { %491 = vst.msk [vmem:[#allocation4 + $0x30] sm:$0xff] %vm24_vm1, %v483_v20 }
 0x193   :  { %396 = vst.msk [vmem:[#allocation2 + $0x38] sm:$0xff] %vm24_vm1, %v387_v22 }
 0x194   :  { %v476_v24 = vpop.xlane.xlu0 %475 }
 0x195   :  { %574 = shalt.err (!%p571_p4)
}
 0x196   :  { %s575_s10 = scalar_lea.hbm %s865_s4, 1024 }
 0x197   :  { %p576_p5 = scmp.ne.s32.totalorder %s865_s4, %s575_s10  ;;  %p579_p6 = scmp.lt.u32.totalorder %s575_s10, %s865_s4 }
 0x199   :  { %p581_p7 = pnand %p579_p6, %p576_p5 }
 0x19b   :  { %584 = shalt.err (!%p581_p7)
}
 0x19c   :  { %s615_s15 = smov 128   ;;  %s616_s16 = smov 8   ;;  %v484_v25 = vadd.f32 %v476_v24, %v404_v23 }
 0x19d   :  { %506 = dma.vmem_to_hbm [thread:$0]  %s501_s30, 1024, %s865_s4, [#allocation3], %s615_s15, %s615_s15, %s616_s16  }
 0x19e   :  { %492 = vst.msk [vmem:[#allocation4 + $0x38] sm:$0xff] %vm24_vm1, %v484_v25  ;;  %s585_s19 = scalar_lea.vmem %s513_s6, 1024  ;;  %p590_p9 = scmp.lt.s32.totalorder %s513_s6, %s513_s6 }
 0x19f   :  { %p586_p8 = scmp.ne.s32.totalorder %s513_s6, %s585_s19  ;;  %p591_p10 = scmp.lt.s32.totalorder %s585_s19, %s585_s19 }
 0x1a1   :  { %p592_p11 = por %p591_p10, %p590_p9 }
 0x1a3   :  { %p593_p12 = pnand %p592_p11, %p586_p8 }
 0x1a5   :  { %596 = shalt.err (!%p593_p12)
}
 0x1a6   :  { %s597_s22 = scalar_lea.hbm %s866_s5, 1024 }
 0x1a7   :  { %p598_p13 = scmp.ne.s32.totalorder %s866_s5, %s597_s22  ;;  %p601_p0 = scmp.lt.u32.totalorder %s597_s22, %s866_s5 }
 0x1a9   :  { %p603_p1 = pnand %p601_p0, %p598_p13 }
 0x1ab   :  { %606 = shalt.err (!%p603_p1)
}
 0x1ac   :  { %518 = dma.vmem_to_hbm [thread:$0]  %s513_s6, 1024, %s866_s5, [#allocation5], %s615_s15, %s615_s15, %s616_s16  }
 0x1ad   :  { %607 = dma.done.wait [#allocation3], 1024  }
 0x1ae   :  { %608 = vsyncadd [#allocation3], 4294966272 }
 0x1af   :  { %609 = dma.done.wait [#allocation5], 1024  }
 0x1b0   :  { %610 = vsyncadd [#allocation5], 4294966272 }
 0x1b1   :  { %527 = vsyncpa [#allocation3], 1 }
 0x1b2   :  { %528 = vsyncpa [#allocation5], 1 }

// kernel: _lambda_.56
= control target key start
LH: loop header
LB: loop body
LE: loop exit
PB: predicated region body
PF: predicated region fallthrough
CT: control target
= control target key end

     0   :  { %s313_s9 = smov 0   ;;  %s343_s0 = inlined_call_operand.vmem [shape: f32[8,4096], index: 0, kind: input, shape index: {}]   ;;  %s344_s1 = inlined_call_operand.vmem [shape: f32[8,4096], index: 1, kind: input, shape index: {}]   ;;  %s345_s2 = inlined_call_operand.vmem [shape: f32[8,4096], index: 2, kind: output, shape index: {}]  }
   0x1 LB: > { %s269_s10 = sadd.s32 4294967295, %s296_s9   ;;  %p273_p0 = scmp.ge.s32.totalorder %s296_s9, 1  ;;  %s296_s9 = sphi %s313_s9, %s12_s9  }
   0x2   : > { %p124_p1 = scmp.lt.s32.totalorder %s296_s9, 5 }
   0x4   : > { %p125_p2 = pnand %p273_p0, %p124_p1 }
   0x5   : > { %s274_s11 = sshll.u32 (!%p125_p2), %s269_s10, 3 }
   0x6   : > { %128 = sbr.rel (%p125_p2) target bundleno = 25 (0x19), region = 28  ;;  %p152_p3 = scmp.lt.s32.totalorder (!%p125_p2), %s274_s11, 31 }
   0xd   : > { %s347_s11 = smov (!%p152_p3, %s274_s11), 31 }
   0xe   : > { %s275_s12 = sshll.u32 %s347_s11, 3 }
   0xf   : > { %s155_s15 = scalar_lea.vmem %s343_s0, %s275_s12  ;;  %s161_s18 = scalar_lea.vmem %s344_s1, %s275_s12 }
  0x10   : > { %s330_s21 = scalar_lea.vmem %s345_s2, %s275_s12  ;;  %v169_v0 = vld [vmem:[%s155_s15] sm:$0xff]  ;;  %v170_v2 = vld [vmem:[%s155_s15 + $0x8] sm:$0xff]  ;;  %v171_v5 = vld [vmem:[%s155_s15 + $0x10] sm:$0xff] }
  0x11   : > { %v177_v1 = vld [vmem:[%s161_s18] sm:$0xff]  ;;  %v178_v4 = vld [vmem:[%s161_s18 + $0x8] sm:$0xff]  ;;  %v179_v6 = vld [vmem:[%s161_s18 + $0x10] sm:$0xff] }
  0x12   : > { %v185_v3 = vadd.f32 %v177_v1, %v169_v0  ;;  %v186_v7 = vadd.f32 %v178_v4, %v170_v2  ;;  %v187_v8 = vadd.f32 %v179_v6, %v171_v5  ;;  %v172_v9 = vld [vmem:[%s155_s15 + $0x18] sm:$0xff]  ;;  %v173_v11 = vld [vmem:[%s155_s15 + $0x20] sm:$0xff]  ;;  %v174_v14 = vld [vmem:[%s155_s15 + $0x28] sm:$0xff] }
  0x13   : > { %v180_v10 = vld [vmem:[%s161_s18 + $0x18] sm:$0xff]  ;;  %v181_v13 = vld [vmem:[%s161_s18 + $0x20] sm:$0xff]  ;;  %v182_v15 = vld [vmem:[%s161_s18 + $0x28] sm:$0xff] }
  0x14   : > { %193 = vst [vmem:[%s330_s21] sm:$0xff] %v185_v3  ;;  %v188_v12 = vadd.f32 %v180_v10, %v172_v9  ;;  %194 = vst [vmem:[%s330_s21 + $0x8] sm:$0xff] %v186_v7  ;;  %v189_v16 = vadd.f32 %v181_v13, %v173_v11  ;;  %v190_v17 = vadd.f32 %v182_v15, %v174_v14  ;;  %v175_v18 = vld [vmem:[%s155_s15 + $0x30] sm:$0xff]  ;;  %v176_v20 = vld [vmem:[%s155_s15 + $0x38] sm:$0xff] }
  0x15   : > { %195 = vst [vmem:[%s330_s21 + $0x10] sm:$0xff] %v187_v8  ;;  %v183_v19 = vld [vmem:[%s161_s18 + $0x30] sm:$0xff]  ;;  %v184_v22 = vld [vmem:[%s161_s18 + $0x38] sm:$0xff] }
  0x16   : > { %196 = vst [vmem:[%s330_s21 + $0x18] sm:$0xff] %v188_v12  ;;  %v191_v21 = vadd.f32 %v183_v19, %v175_v18  ;;  %197 = vst [vmem:[%s330_s21 + $0x20] sm:$0xff] %v189_v16  ;;  %v192_v23 = vadd.f32 %v184_v22, %v176_v20 }
  0x17   : > { %198 = vst [vmem:[%s330_s21 + $0x28] sm:$0xff] %v190_v17 }
  0x18   : > { %199 = vst [vmem:[%s330_s21 + $0x30] sm:$0xff] %v191_v21  ;;  %200 = vst [vmem:[%s330_s21 + $0x38] sm:$0xff] %v192_v23 }
  0x19 PF: > { %s12_s9 = sadd.s32 1, %s296_s9  }
  0x1a   : > { %p9_p4 = scmp.ge.s32.totalorder %s12_s9, 6  }
  0x1c   :  { %11 = sbr.rel (!%p9_p4) target bundleno = 1 (0x1), region = 61 }

// kernel: _lambda_.57
= control target key start
LH: loop header
LB: loop body
LE: loop exit
PB: predicated region body
PF: predicated region fallthrough
CT: control target
= control target key end

     0   :  { %s1845_s18 = smov 0   ;;  %s1847_s19 = smov 0   ;;  %s2305_s0 = inlined_call_operand.vmem [shape: bf16[1,216,4096], index: 0, kind: input, shape index: {}]   ;;  %s2306_s1 = inlined_call_operand.vmem [shape: bf16[8,216], index: 1, kind: input, shape index: {}]   ;;  %s2307_s2 = inlined_call_operand.vmem [shape: f32[8,1], index: 2, kind: input, shape index: {}]   ;;  %s2308_s3 = inlined_call_operand.vmem [shape: f32[1,8,4096], index: 3, kind: output, shape index: {0}]   ;;  %s2309_s4 = inlined_call_operand.vmem [shape: f32[1,8,1], index: 4, kind: output, shape index: {1}]   ;;  %s2310_s5 = inlined_call_operand.vmem [shape: f32[1,8,1], index: 5, kind: output, shape index: {2}]  }
   0x1   :  { %s1849_s20 = smov 0   ;;  %s1851_s21 = smov 0  }
   0x2   :  { %s1853_s22 = smov 0  }
   0x3 LB: > { %s25_s23 = sadd.s32 1, %s1807_s21  ;;  %p44_p1 = scmp.ne.s32.totalorder %s1799_s19, %s1795_s18  ;;  %s1811_s22 = sphi %s1853_s22, %s16_s22   ;;  %s1807_s21 = sphi %s1851_s21, %s2314_s21   ;;  %s1803_s20 = sphi %s1849_s20, %s2313_s20   ;;  %s1799_s19 = sphi %s1847_s19, %s2312_s19   ;;  %s1795_s18 = sphi %s1845_s18, %s2311_s18  }
   0x4   : > { %p26_p0 = scmp.ge.s32.totalorder %s25_s23, 4  ;;  %p45_p2 = scmp.eq.s32.totalorder %s1811_s22, 0 }
   0x5   : > { %s37_s25 = sadd.s32 1, %s1799_s19  ;;  %p1584_p5 = scmp.ge.s32.totalorder %s1811_s22, 4 }
   0x6   : > { %s2316_s23 = smov (%p26_p0, %s25_s23), 0  ;;  %p46_p3 = por %p45_p2, %p44_p1 }
   0x7   : > { %s33_s24 = ssub.s32 %s1807_s21, %s2316_s23  ;;  %198 = sbr.rel (%p1584_p5) target bundleno = 73 (0x49), region = 24 }
   0x8   : > { %p35_p4 = scmp.eq.s32.totalorder %s33_s24, 0 }
   0xa   : > { %s1880_s26 = scalar_select %p35_p4, %s1799_s19, %s37_s25  }
   0xe   : > { %201 = sbr.rel (!%p46_p3) target bundleno = 73 (0x49), region = 28  ;;  %s203_s27 = sand.u32 (%p46_p3), 1, %s1799_s19  }
   0xf   : > { %s1717_s28 = sshll.u32 (%p46_p3), %s1807_s21, 5  ;;  %s1718_s29 = smul.u32 (%p46_p3), 864, %s203_s27 }
  0x10   : > { %s1888_s7 = scalar_lea.vmem (%p46_p3), %s2305_s0, %s1717_s28 }
  0x11   : > { %v223_v0 = vld [vmem:[%s1888_s7] sm:$0xff] (%p46_p3)  ;;  %v225_v1 = vld [vmem:[%s1888_s7 + $0x8] sm:$0xff] (%p46_p3)  ;;  %v227_v2 = vld [vmem:[%s1888_s7 + $0x10] sm:$0xff] (%p46_p3)  ;;  %s1896_s8 = scalar_lea.vmem (%p46_p3), [#allocation2], %s1718_s29 }
  0x12   : > { %v229_v3 = vld [vmem:[%s1888_s7 + $0x18] sm:$0xff] (%p46_p3)  ;;  %v231_v4 = vld [vmem:[%s1888_s7 + $0x80] sm:$0xff] (%p46_p3)  ;;  %v233_v5 = vld [vmem:[%s1888_s7 + $0x88] sm:$0xff] (%p46_p3)  ;;  %224 = vst [vmem:[%s1896_s8] sm:$0xff] (%p46_p3), %v223_v0 }
  0x13   : > { %226 = vst [vmem:[%s1896_s8 + $0x8] sm:$0xff] (%p46_p3), %v225_v1  ;;  %228 = vst [vmem:[%s1896_s8 + $0x10] sm:$0xff] (%p46_p3), %v227_v2  ;;  %v235_v6 = vld [vmem:[%s1888_s7 + $0x90] sm:$0xff] (%p46_p3)  ;;  %v237_v7 = vld [vmem:[%s1888_s7 + $0x98] sm:$0xff] (%p46_p3) }
  0x14   : > { %230 = vst [vmem:[%s1896_s8 + $0x18] sm:$0xff] (%p46_p3), %v229_v3  ;;  %232 = vst [vmem:[%s1896_s8 + $0x20] sm:$0xff] (%p46_p3), %v231_v4  ;;  %v239_v8 = vld [vmem:[%s1888_s7 + $0x100] sm:$0xff] (%p46_p3)  ;;  %v241_v9 = vld [vmem:[%s1888_s7 + $0x108] sm:$0xff] (%p46_p3) }
  0x15   : > { %234 = vst [vmem:[%s1896_s8 + $0x28] sm:$0xff] %v233_v5  ;;  %236 = vst [vmem:[%s1896_s8 + $0x30] sm:$0xff] %v235_v6  ;;  %v243_v10 = vld [vmem:[%s1888_s7 + $0x110] sm:$0xff]  ;;  %v245_v11 = vld [vmem:[%s1888_s7 + $0x118] sm:$0xff] }
  0x16   : > { %238 = vst [vmem:[%s1896_s8 + $0x38] sm:$0xff] %v237_v7  ;;  %240 = vst [vmem:[%s1896_s8 + $0x40] sm:$0xff] %v239_v8  ;;  %v247_v12 = vld [vmem:[%s1888_s7 + $0x180] sm:$0xff]  ;;  %v249_v13 = vld [vmem:[%s1888_s7 + $0x188] sm:$0xff] }
  0x17   : > { %242 = vst [vmem:[%s1896_s8 + $0x48] sm:$0xff] %v241_v9  ;;  %244 = vst [vmem:[%s1896_s8 + $0x50] sm:$0xff] %v243_v10  ;;  %v251_v14 = vld [vmem:[%s1888_s7 + $0x190] sm:$0xff]  ;;  %v253_v15 = vld [vmem:[%s1888_s7 + $0x198] sm:$0xff] }
  0x18   : > { %246 = vst [vmem:[%s1896_s8 + $0x58] sm:$0xff] %v245_v11  ;;  %248 = vst [vmem:[%s1896_s8 + $0x60] sm:$0xff] %v247_v12  ;;  %v255_v16 = vld [vmem:[%s1888_s7 + $0x200] sm:$0xff]  ;;  %v257_v17 = vld [vmem:[%s1888_s7 + $0x208] sm:$0xff] }
  0x19   : > { %250 = vst [vmem:[%s1896_s8 + $0x68] sm:$0xff] %v249_v13  ;;  %252 = vst [vmem:[%s1896_s8 + $0x70] sm:$0xff] %v251_v14  ;;  %v259_v18 = vld [vmem:[%s1888_s7 + $0x210] sm:$0xff]  ;;  %v261_v19 = vld [vmem:[%s1888_s7 + $0x218] sm:$0xff] }
  0x1a   : > { %254 = vst [vmem:[%s1896_s8 + $0x78] sm:$0xff] %v253_v15  ;;  %256 = vst [vmem:[%s1896_s8 + $0x80] sm:$0xff] %v255_v16  ;;  %v263_v20 = vld [vmem:[%s1888_s7 + $0x280] sm:$0xff]  ;;  %v265_v21 = vld [vmem:[%s1888_s7 + $0x288] sm:$0xff] }
  0x1b   : > { %258 = vst [vmem:[%s1896_s8 + $0x88] sm:$0xff] %v257_v17  ;;  %260 = vst [vmem:[%s1896_s8 + $0x90] sm:$0xff] %v259_v18  ;;  %v267_v22 = vld [vmem:[%s1888_s7 + $0x290] sm:$0xff]  ;;  %v269_v23 = vld [vmem:[%s1888_s7 + $0x298] sm:$0xff] }
  0x1c   : > { %262 = vst [vmem:[%s1896_s8 + $0x98] sm:$0xff] %v261_v19  ;;  %264 = vst [vmem:[%s1896_s8 + $0xa0] sm:$0xff] %v263_v20  ;;  %v271_v24 = vld [vmem:[%s1888_s7 + $0x300] sm:$0xff]  ;;  %v273_v25 = vld [vmem:[%s1888_s7 + $0x308] sm:$0xff] }
  0x1d   : > { %266 = vst [vmem:[%s1896_s8 + $0xa8] sm:$0xff] %v265_v21  ;;  %268 = vst [vmem:[%s1896_s8 + $0xb0] sm:$0xff] %v267_v22  ;;  %v275_v26 = vld [vmem:[%s1888_s7 + $0x310] sm:$0xff]  ;;  %v277_v27 = vld [vmem:[%s1888_s7 + $0x318] sm:$0xff] }
  0x1e   : > { %270 = vst [vmem:[%s1896_s8 + $0xb8] sm:$0xff] %v269_v23  ;;  %272 = vst [vmem:[%s1896_s8 + $0xc0] sm:$0xff] %v271_v24  ;;  %v279_v28 = vld [vmem:[%s1888_s7 + $0x380] sm:$0xff]  ;;  %v281_v29 = vld [vmem:[%s1888_s7 + $0x388] sm:$0xff] }
  0x1f   : > { %274 = vst [vmem:[%s1896_s8 + $0xc8] sm:$0xff] %v273_v25  ;;  %276 = vst [vmem:[%s1896_s8 + $0xd0] sm:$0xff] %v275_v26  ;;  %v283_v30 = vld [vmem:[%s1888_s7 + $0x390] sm:$0xff]  ;;  %v285_v31 = vld [vmem:[%s1888_s7 + $0x398] sm:$0xff] }
  0x20   : > { %278 = vst [vmem:[%s1896_s8 + $0xd8] sm:$0xff] %v277_v27  ;;  %280 = vst [vmem:[%s1896_s8 + $0xe0] sm:$0xff] %v279_v28  ;;  %v287_v32 = vld [vmem:[%s1888_s7 + $0x400] sm:$0xff]  ;;  %v289_v33 = vld [vmem:[%s1888_s7 + $0x408] sm:$0xff] }
  0x21   : > { %282 = vst [vmem:[%s1896_s8 + $0xe8] sm:$0xff] %v281_v29  ;;  %284 = vst [vmem:[%s1896_s8 + $0xf0] sm:$0xff] %v283_v30  ;;  %v291_v34 = vld [vmem:[%s1888_s7 + $0x410] sm:$0xff]  ;;  %v293_v35 = vld [vmem:[%s1888_s7 + $0x418] sm:$0xff] }
  0x22   : > { %286 = vst [vmem:[%s1896_s8 + $0xf8] sm:$0xff] %v285_v31  ;;  %288 = vst [vmem:[%s1896_s8 + $0x100] sm:$0xff] %v287_v32  ;;  %v295_v36 = vld [vmem:[%s1888_s7 + $0x480] sm:$0xff]  ;;  %v297_v37 = vld [vmem:[%s1888_s7 + $0x488] sm:$0xff] }
  0x23   : > { %290 = vst [vmem:[%s1896_s8 + $0x108] sm:$0xff] %v289_v33  ;;  %292 = vst [vmem:[%s1896_s8 + $0x110] sm:$0xff] %v291_v34  ;;  %v299_v38 = vld [vmem:[%s1888_s7 + $0x490] sm:$0xff]  ;;  %v301_v39 = vld [vmem:[%s1888_s7 + $0x498] sm:$0xff] }
  0x24   : > { %294 = vst [vmem:[%s1896_s8 + $0x118] sm:$0xff] %v293_v35  ;;  %296 = vst [vmem:[%s1896_s8 + $0x120] sm:$0xff] %v295_v36  ;;  %v303_v40 = vld [vmem:[%s1888_s7 + $0x500] sm:$0xff]  ;;  %v305_v41 = vld [vmem:[%s1888_s7 + $0x508] sm:$0xff] }
  0x25   : > { %298 = vst [vmem:[%s1896_s8 + $0x128] sm:$0xff] %v297_v37  ;;  %300 = vst [vmem:[%s1896_s8 + $0x130] sm:$0xff] %v299_v38  ;;  %v307_v42 = vld [vmem:[%s1888_s7 + $0x510] sm:$0xff]  ;;  %v309_v43 = vld [vmem:[%s1888_s7 + $0x518] sm:$0xff] }
  0x26   : > { %302 = vst [vmem:[%s1896_s8 + $0x138] sm:$0xff] %v301_v39  ;;  %304 = vst [vmem:[%s1896_s8 + $0x140] sm:$0xff] %v303_v40  ;;  %v311_v44 = vld [vmem:[%s1888_s7 + $0x580] sm:$0xff]  ;;  %v313_v45 = vld [vmem:[%s1888_s7 + $0x588] sm:$0xff] }
  0x27   : > { %306 = vst [vmem:[%s1896_s8 + $0x148] sm:$0xff] %v305_v41  ;;  %308 = vst [vmem:[%s1896_s8 + $0x150] sm:$0xff] %v307_v42  ;;  %v315_v46 = vld [vmem:[%s1888_s7 + $0x590] sm:$0xff]  ;;  %v317_v47 = vld [vmem:[%s1888_s7 + $0x598] sm:$0xff] }
  0x28   : > { %310 = vst [vmem:[%s1896_s8 + $0x158] sm:$0xff] %v309_v43  ;;  %312 = vst [vmem:[%s1896_s8 + $0x160] sm:$0xff] %v311_v44  ;;  %v319_v48 = vld [vmem:[%s1888_s7 + $0x600] sm:$0xff]  ;;  %v321_v49 = vld [vmem:[%s1888_s7 + $0x608] sm:$0xff] }
  0x29   : > { %314 = vst [vmem:[%s1896_s8 + $0x168] sm:$0xff] %v313_v45  ;;  %316 = vst [vmem:[%s1896_s8 + $0x170] sm:$0xff] %v315_v46  ;;  %v323_v50 = vld [vmem:[%s1888_s7 + $0x610] sm:$0xff]  ;;  %v325_v51 = vld [vmem:[%s1888_s7 + $0x618] sm:$0xff] }
  0x2a   : > { %318 = vst [vmem:[%s1896_s8 + $0x178] sm:$0xff] %v317_v47  ;;  %320 = vst [vmem:[%s1896_s8 + $0x180] sm:$0xff] %v319_v48  ;;  %v327_v52 = vld [vmem:[%s1888_s7 + $0x680] sm:$0xff]  ;;  %v329_v53 = vld [vmem:[%s1888_s7 + $0x688] sm:$0xff] }
  0x2b   : > { %322 = vst [vmem:[%s1896_s8 + $0x188] sm:$0xff] %v321_v49  ;;  %324 = vst [vmem:[%s1896_s8 + $0x190] sm:$0xff] %v323_v50  ;;  %v331_v54 = vld [vmem:[%s1888_s7 + $0x690] sm:$0xff]  ;;  %v333_v55 = vld [vmem:[%s1888_s7 + $0x698] sm:$0xff] }
  0x2c   : > { %326 = vst [vmem:[%s1896_s8 + $0x198] sm:$0xff] %v325_v51  ;;  %328 = vst [vmem:[%s1896_s8 + $0x1a0] sm:$0xff] %v327_v52  ;;  %v335_v56 = vld [vmem:[%s1888_s7 + $0x700] sm:$0xff]  ;;  %v337_v57 = vld [vmem:[%s1888_s7 + $0x708] sm:$0xff] }
  0x2d   : > { %330 = vst [vmem:[%s1896_s8 + $0x1a8] sm:$0xff] %v329_v53  ;;  %332 = vst [vmem:[%s1896_s8 + $0x1b0] sm:$0xff] %v331_v54  ;;  %v339_v58 = vld [vmem:[%s1888_s7 + $0x710] sm:$0xff]  ;;  %v341_v59 = vld [vmem:[%s1888_s7 + $0x718] sm:$0xff] }
  0x2e   : > { %334 = vst [vmem:[%s1896_s8 + $0x1b8] sm:$0xff] %v333_v55  ;;  %336 = vst [vmem:[%s1896_s8 + $0x1c0] sm:$0xff] %v335_v56  ;;  %v343_v60 = vld [vmem:[%s1888_s7 + $0x780] sm:$0xff]  ;;  %v345_v61 = vld [vmem:[%s1888_s7 + $0x788] sm:$0xff] }
  0x2f   : > { %338 = vst [vmem:[%s1896_s8 + $0x1c8] sm:$0xff] %v337_v57  ;;  %340 = vst [vmem:[%s1896_s8 + $0x1d0] sm:$0xff] %v339_v58  ;;  %v347_v62 = vld [vmem:[%s1888_s7 + $0x790] sm:$0xff]  ;;  %v349_v63 = vld [vmem:[%s1888_s7 + $0x798] sm:$0xff] }
  0x30   : > { %342 = vst [vmem:[%s1896_s8 + $0x1d8] sm:$0xff] %v341_v59  ;;  %344 = vst [vmem:[%s1896_s8 + $0x1e0] sm:$0xff] %v343_v60  ;;  %v351_v0 = vld [vmem:[%s1888_s7 + $0x800] sm:$0xff]  ;;  %v353_v1 = vld [vmem:[%s1888_s7 + $0x808] sm:$0xff] }
  0x31   : > { %346 = vst [vmem:[%s1896_s8 + $0x1e8] sm:$0xff] %v345_v61  ;;  %348 = vst [vmem:[%s1896_s8 + $0x1f0] sm:$0xff] %v347_v62  ;;  %v355_v2 = vld [vmem:[%s1888_s7 + $0x810] sm:$0xff]  ;;  %v357_v3 = vld [vmem:[%s1888_s7 + $0x818] sm:$0xff] }
  0x32   : > { %350 = vst [vmem:[%s1896_s8 + $0x1f8] sm:$0xff] %v349_v63  ;;  %352 = vst [vmem:[%s1896_s8 + $0x200] sm:$0xff] %v351_v0  ;;  %v359_v4 = vld [vmem:[%s1888_s7 + $0x880] sm:$0xff]  ;;  %v361_v5 = vld [vmem:[%s1888_s7 + $0x888] sm:$0xff] }
  0x33   : > { %354 = vst [vmem:[%s1896_s8 + $0x208] sm:$0xff] %v353_v1  ;;  %356 = vst [vmem:[%s1896_s8 + $0x210] sm:$0xff] %v355_v2  ;;  %v363_v6 = vld [vmem:[%s1888_s7 + $0x890] sm:$0xff]  ;;  %v365_v7 = vld [vmem:[%s1888_s7 + $0x898] sm:$0xff] }
  0x34   : > { %358 = vst [vmem:[%s1896_s8 + $0x218] sm:$0xff] %v357_v3  ;;  %360 = vst [vmem:[%s1896_s8 + $0x220] sm:$0xff] %v359_v4  ;;  %v367_v8 = vld [vmem:[%s1888_s7 + $0x900] sm:$0xff]  ;;  %v369_v9 = vld [vmem:[%s1888_s7 + $0x908] sm:$0xff] }
  0x35   : > { %362 = vst [vmem:[%s1896_s8 + $0x228] sm:$0xff] %v361_v5  ;;  %364 = vst [vmem:[%s1896_s8 + $0x230] sm:$0xff] %v363_v6  ;;  %v371_v10 = vld [vmem:[%s1888_s7 + $0x910] sm:$0xff]  ;;  %v373_v11 = vld [vmem:[%s1888_s7 + $0x918] sm:$0xff] }
  0x36   : > { %366 = vst [vmem:[%s1896_s8 + $0x238] sm:$0xff] %v365_v7  ;;  %368 = vst [vmem:[%s1896_s8 + $0x240] sm:$0xff] %v367_v8  ;;  %v375_v12 = vld [vmem:[%s1888_s7 + $0x980] sm:$0xff]  ;;  %v377_v13 = vld [vmem:[%s1888_s7 + $0x988] sm:$0xff] }
  0x37   : > { %370 = vst [vmem:[%s1896_s8 + $0x248] sm:$0xff] %v369_v9  ;;  %372 = vst [vmem:[%s1896_s8 + $0x250] sm:$0xff] %v371_v10  ;;  %v379_v14 = vld [vmem:[%s1888_s7 + $0x990] sm:$0xff]  ;;  %v381_v15 = vld [vmem:[%s1888_s7 + $0x998] sm:$0xff] }
  0x38   : > { %374 = vst [vmem:[%s1896_s8 + $0x258] sm:$0xff] %v373_v11  ;;  %376 = vst [vmem:[%s1896_s8 + $0x260] sm:$0xff] %v375_v12  ;;  %v383_v16 = vld [vmem:[%s1888_s7 + $0xa00] sm:$0xff]  ;;  %v385_v17 = vld [vmem:[%s1888_s7 + $0xa08] sm:$0xff] }
  0x39   : > { %378 = vst [vmem:[%s1896_s8 + $0x268] sm:$0xff] %v377_v13  ;;  %380 = vst [vmem:[%s1896_s8 + $0x270] sm:$0xff] %v379_v14  ;;  %v387_v18 = vld [vmem:[%s1888_s7 + $0xa10] sm:$0xff]  ;;  %v389_v19 = vld [vmem:[%s1888_s7 + $0xa18] sm:$0xff] }
  0x3a   : > { %382 = vst [vmem:[%s1896_s8 + $0x278] sm:$0xff] %v381_v15  ;;  %384 = vst [vmem:[%s1896_s8 + $0x280] sm:$0xff] %v383_v16  ;;  %v391_v20 = vld [vmem:[%s1888_s7 + $0xa80] sm:$0xff]  ;;  %v393_v21 = vld [vmem:[%s1888_s7 + $0xa88] sm:$0xff] }
  0x3b   : > { %386 = vst [vmem:[%s1896_s8 + $0x288] sm:$0xff] %v385_v17  ;;  %388 = vst [vmem:[%s1896_s8 + $0x290] sm:$0xff] %v387_v18  ;;  %v395_v22 = vld [vmem:[%s1888_s7 + $0xa90] sm:$0xff]  ;;  %v397_v23 = vld [vmem:[%s1888_s7 + $0xa98] sm:$0xff] }
  0x3c   : > { %390 = vst [vmem:[%s1896_s8 + $0x298] sm:$0xff] %v389_v19  ;;  %392 = vst [vmem:[%s1896_s8 + $0x2a0] sm:$0xff] %v391_v20  ;;  %v399_v24 = vld [vmem:[%s1888_s7 + $0xb00] sm:$0xff]  ;;  %v401_v25 = vld [vmem:[%s1888_s7 + $0xb08] sm:$0xff] }
  0x3d   : > { %394 = vst [vmem:[%s1896_s8 + $0x2a8] sm:$0xff] %v393_v21  ;;  %396 = vst [vmem:[%s1896_s8 + $0x2b0] sm:$0xff] %v395_v22  ;;  %v403_v26 = vld [vmem:[%s1888_s7 + $0xb10] sm:$0xff]  ;;  %v405_v27 = vld [vmem:[%s1888_s7 + $0xb18] sm:$0xff] }
  0x3e   : > { %398 = vst [vmem:[%s1896_s8 + $0x2b8] sm:$0xff] %v397_v23  ;;  %400 = vst [vmem:[%s1896_s8 + $0x2c0] sm:$0xff] %v399_v24  ;;  %v407_v28 = vld [vmem:[%s1888_s7 + $0xb80] sm:$0xff]  ;;  %v409_v29 = vld [vmem:[%s1888_s7 + $0xb88] sm:$0xff] }
  0x3f   : > { %402 = vst [vmem:[%s1896_s8 + $0x2c8] sm:$0xff] %v401_v25  ;;  %404 = vst [vmem:[%s1896_s8 + $0x2d0] sm:$0xff] %v403_v26  ;;  %v411_v30 = vld [vmem:[%s1888_s7 + $0xb90] sm:$0xff]  ;;  %v413_v31 = vld [vmem:[%s1888_s7 + $0xb98] sm:$0xff] }
  0x40   : > { %406 = vst [vmem:[%s1896_s8 + $0x2d8] sm:$0xff] %v405_v27  ;;  %408 = vst [vmem:[%s1896_s8 + $0x2e0] sm:$0xff] %v407_v28  ;;  %v415_v32 = vld [vmem:[%s1888_s7 + $0xc00] sm:$0xff]  ;;  %v417_v33 = vld [vmem:[%s1888_s7 + $0xc08] sm:$0xff] }
  0x41   : > { %410 = vst [vmem:[%s1896_s8 + $0x2e8] sm:$0xff] %v409_v29  ;;  %412 = vst [vmem:[%s1896_s8 + $0x2f0] sm:$0xff] %v411_v30  ;;  %v419_v34 = vld [vmem:[%s1888_s7 + $0xc10] sm:$0xff]  ;;  %v421_v35 = vld [vmem:[%s1888_s7 + $0xc18] sm:$0xff] }
  0x42   : > { %414 = vst [vmem:[%s1896_s8 + $0x2f8] sm:$0xff] %v413_v31  ;;  %416 = vst [vmem:[%s1896_s8 + $0x300] sm:$0xff] %v415_v32  ;;  %v423_v36 = vld [vmem:[%s1888_s7 + $0xc80] sm:$0xff]  ;;  %v425_v37 = vld [vmem:[%s1888_s7 + $0xc88] sm:$0xff] }
  0x43   : > { %418 = vst [vmem:[%s1896_s8 + $0x308] sm:$0xff] %v417_v33  ;;  %420 = vst [vmem:[%s1896_s8 + $0x310] sm:$0xff] %v419_v34  ;;  %v427_v38 = vld [vmem:[%s1888_s7 + $0xc90] sm:$0xff]  ;;  %v429_v39 = vld [vmem:[%s1888_s7 + $0xc98] sm:$0xff] }
  0x44   : > { %422 = vst [vmem:[%s1896_s8 + $0x318] sm:$0xff] %v421_v35  ;;  %424 = vst [vmem:[%s1896_s8 + $0x320] sm:$0xff] %v423_v36  ;;  %v431_v40 = vld [vmem:[%s1888_s7 + $0xd00] sm:$0xff]  ;;  %v433_v41 = vld [vmem:[%s1888_s7 + $0xd08] sm:$0xff] }
  0x45   : > { %426 = vst [vmem:[%s1896_s8 + $0x328] sm:$0xff] %v425_v37  ;;  %428 = vst [vmem:[%s1896_s8 + $0x330] sm:$0xff] %v427_v38  ;;  %v435_v42 = vld [vmem:[%s1888_s7 + $0xd10] sm:$0xff]  ;;  %v437_v43 = vld [vmem:[%s1888_s7 + $0xd18] sm:$0xff] }
  0x46   : > { %430 = vst [vmem:[%s1896_s8 + $0x338] sm:$0xff] %v429_v39  ;;  %432 = vst [vmem:[%s1896_s8 + $0x340] sm:$0xff] %v431_v40 }
  0x47   : > { %434 = vst [vmem:[%s1896_s8 + $0x348] sm:$0xff] %v433_v41  ;;  %436 = vst [vmem:[%s1896_s8 + $0x350] sm:$0xff] %v435_v42 }
  0x48   : > { %438 = vst [vmem:[%s1896_s8 + $0x358] sm:$0xff] %v437_v43 }
  0x49 PF: > { %p1587_p6 = scmp.ge.s32.totalorder %s1811_s22, 1  ;;  %p443_p7 = scmp.lt.s32.totalorder %s1811_s22, 5 }
  0x4b   : > { %p444_p8 = pnand %p1587_p6, %p443_p7 }
  0x4c   : > { %s450_s9 = sand.u32 (!%p444_p8), 1, %s1795_s18   ;;  %s1588_s10 = sshll.u32 (!%p444_p8), %s1803_s20, 3 }
  0x4d   : > { %447 = sbr.rel (%p444_p8) target bundleno = 579 (0x243), region = 51  ;;  %p493_p9 = scmp.lt.s32.totalorder (!%p444_p8), %s1588_s10, 31 }
  0x4e   : > { %s1719_s11 = smul.u32 (!%p444_p8), 864, %s450_s9  ;;  %p1590_p10 = scmp.ne.s32.totalorder (!%p444_p8), %s1803_s20, 0 }
  0x50   : > { %s2117_s16 = scalar_lea.vmem (!%p444_p8), [#allocation2], %s1719_s11 }
  0x54   : > { %s2318_s10 = smov (!%p493_p9, %s1588_s10), 31  ;;  %512 = sbr.rel (%p1590_p10) target bundleno = 91 (0x5b), region = 59 }
  0x55   : > { %s1589_s12 = sshll.u32 %s2318_s10, 3  ;;  %vm513_vm0 = vcmask (!%p1590_p10), 7168   ;;  %v1813_v44 = vmov (!%p1590_p10), 0.0  }
  0x56   : > { %s2115_s15 = scalar_lea.vmem %s2308_s3, %s1589_s12  ;;  %514 = vst.msk [vmem:[%s2309_s4] sm:$0xff] (!%p1590_p10), %vm513_vm0, %v1813_v44  ;;  %515 = vst.msk [vmem:[%s2310_s5] sm:$0xff] (!%p1590_p10), %vm513_vm0, %v1813_v44 }
  0x5b PF: > { %v517_v45 = vld [vmem:[%s2117_s16] sm:$0xff]  ;;  %v518_v47 = vld [vmem:[%s2117_s16 + $0x8] sm:$0xff]  ;;  %v1814_v53 = vmov 0   ;;  %vm1177_vm1 = vcmask 719872   ;;  %vm1181_vm2 = vcmask 1043456   ;;  %vm1413_vm11 = vcmask 7168  }
  0x5c   : > { %v521_v46 = vld [vmem:[%s2117_s16 + $0x20] sm:$0xff]  ;;  %v522_v49 = vld [vmem:[%s2117_s16 + $0x28] sm:$0xff]  ;;  %1762 = vset.pattern.permute.xlu0 %v1814_v53 }
  0x5d   : > { %v1594_v48 = vcombine.high %v517_v45, %v521_v46  ;;  %v1593_v50 = vcombine.low %v517_v45, %v521_v46  ;;  %v525_v51 = vld [vmem:[%s2117_s16 + $0x40] sm:$0xff]  ;;  %v1596_v54 = vcombine.high %v518_v47, %v522_v49  ;;  %v1595_v55 = vcombine.low %v518_v47, %v522_v49  ;;  %v526_v57 = vld [vmem:[%s2117_s16 + $0x48] sm:$0xff] }
  0x5e   : > { %v529_v52 = vld [vmem:[%s2117_s16 + $0x60] sm:$0xff]  ;;  %v530_v58 = vld [vmem:[%s2117_s16 + $0x68] sm:$0xff] }
  0x5f   : > { %v1602_v56 = vcombine.high %v525_v51, %v529_v52  ;;  %v533_v59 = vld [vmem:[%s2117_s16 + $0x80] sm:$0xff]  ;;  %1206 = vmatprep.subr.bf16.mxu0 %v1594_v48  ;;  %v1604_v60 = vcombine.high %v526_v57, %v530_v58  ;;  %v534_v62 = vld [vmem:[%s2117_s16 + $0x88] sm:$0xff]  ;;  %1247 = vmatprep.subr.bf16.mxu1 %v1596_v54  ;;  %v1601_v0 = vcombine.low %v525_v51, %v529_v52 }
  0x60   : > { %v537_v61 = vld [vmem:[%s2117_s16 + $0xa0] sm:$0xff]  ;;  %v538_v63 = vld [vmem:[%s2117_s16 + $0xa8] sm:$0xff]  ;;  %1207 = vmatpush1.bf16.msra.mxu0 %v1593_v50  ;;  %1248 = vmatpush1.bf16.msra.mxu1 %v1595_v55  ;;  %v1603_v1 = vcombine.low %v526_v57, %v530_v58 }
  0x61   : > { %1208 = vmatprep.subr.bf16.mxu0 %v1602_v56  ;;  %v1610_v2 = vcombine.high %v533_v59, %v537_v61  ;;  %1249 = vmatprep.subr.bf16.mxu1 %v1604_v60  ;;  %v1612_v3 = vcombine.high %v534_v62, %v538_v63  ;;  %v541_v4 = vld [vmem:[%s2117_s16 + $0xc0] sm:$0xff]  ;;  %v542_v6 = vld [vmem:[%s2117_s16 + $0xc8] sm:$0xff]  ;;  %v1609_v8 = vcombine.low %v533_v59, %v537_v61 }
  0x62   : > { %v545_v5 = vld [vmem:[%s2117_s16 + $0xe0] sm:$0xff]  ;;  %v546_v7 = vld [vmem:[%s2117_s16 + $0xe8] sm:$0xff]  ;;  %v1611_v9 = vcombine.low %v534_v62, %v538_v63 }
  0x63   : > { %v1618_v10 = vcombine.high %v541_v4, %v545_v5  ;;  %v1620_v11 = vcombine.high %v542_v6, %v546_v7  ;;  %v549_v12 = vld [vmem:[%s2117_s16 + $0x100] sm:$0xff]  ;;  %v550_v14 = vld [vmem:[%s2117_s16 + $0x108] sm:$0xff]  ;;  %v1617_v16 = vcombine.low %v541_v4, %v545_v5  ;;  %v1619_v17 = vcombine.low %v542_v6, %v546_v7 }
  0x64   : > { %1209 = vmatpush1.bf16.msra.mxu0 %v1601_v0  ;;  %1250 = vmatpush1.bf16.msra.mxu1 %v1603_v1  ;;  %v553_v13 = vld [vmem:[%s2117_s16 + $0x120] sm:$0xff]  ;;  %v554_v15 = vld [vmem:[%s2117_s16 + $0x128] sm:$0xff] }
  0x65   : > { %1210 = vmatprep.subr.bf16.mxu0 %v1610_v2  ;;  %1251 = vmatprep.subr.bf16.mxu1 %v1612_v3  ;;  %v1626_v18 = vcombine.high %v549_v12, %v553_v13  ;;  %v1628_v19 = vcombine.high %v550_v14, %v554_v15  ;;  %v557_v20 = vld [vmem:[%s2117_s16 + $0x140] sm:$0xff]  ;;  %v558_v22 = vld [vmem:[%s2117_s16 + $0x148] sm:$0xff]  ;;  %v1625_v24 = vcombine.low %v549_v12, %v553_v13 }
  0x66   : > { %v561_v21 = vld [vmem:[%s2117_s16 + $0x160] sm:$0xff]  ;;  %v562_v23 = vld [vmem:[%s2117_s16 + $0x168] sm:$0xff]  ;;  %v1627_v25 = vcombine.low %v550_v14, %v554_v15 }
  0x67   : > { %v1634_v26 = vcombine.high %v557_v20, %v561_v21  ;;  %v1636_v27 = vcombine.high %v558_v22, %v562_v23  ;;  %v565_v28 = vld [vmem:[%s2117_s16 + $0x180] sm:$0xff]  ;;  %v2155_v30 = vld [vmem:[%s2306_s1] sm:$0xff]  ;;  %v1633_v34 = vcombine.low %v557_v20, %v561_v21  ;;  %v1635_v35 = vcombine.low %v558_v22, %v562_v23 }
  0x68   : > { %1211 = vmatpush1.bf16.msra.mxu0 %v1609_v8  ;;  %1252 = vmatpush1.bf16.msra.mxu1 %v1611_v9  ;;  %v569_v29 = vld [vmem:[%s2117_s16 + $0x1a0] sm:$0xff]  ;;  %v566_v31 = vld [vmem:[%s2117_s16 + $0x188] sm:$0xff]  ;;  %v2161_v33 = vcombine.high %v2155_v30, %v2155_v30 }
  0x69   : > { %1212 = vmatprep.subr.bf16.mxu0 %v1618_v10  ;;  %1253 = vmatprep.subr.bf16.mxu1 %v1620_v11  ;;  %v570_v32 = vld [vmem:[%s2117_s16 + $0x1a8] sm:$0xff]  ;;  %v1642_v36 = vcombine.high %v565_v28, %v569_v29  ;;  %v573_v38 = vld [vmem:[%s2117_s16 + $0x1c0] sm:$0xff]  ;;  %v1641_v42 = vcombine.low %v565_v28, %v569_v29 }
  0x6a   : > { %v1644_v37 = vcombine.high %v566_v31, %v570_v32  ;;  %v577_v39 = vld [vmem:[%s2117_s16 + $0x1e0] sm:$0xff]  ;;  %1706 = vmatprep.mubr.msk.bf16.mxu0 %vm1177_vm1, %v2161_v33  ;;  %v574_v40 = vld [vmem:[%s2117_s16 + $0x1c8] sm:$0xff]  ;;  %1708 = vmatprep.mubr.msk.bf16.mxu1 %vm1177_vm1, %v2161_v33  ;;  %v1643_v43 = vcombine.low %v566_v31, %v570_v32  ;;  %v519_v32 = vld [vmem:[%s2117_s16 + $0x10] sm:$0xff] }
  0x6b   : > { %v578_v41 = vld [vmem:[%s2117_s16 + $0x1e8] sm:$0xff]  ;;  %v1650_v44 = vcombine.high %v573_v38, %v577_v39  ;;  %v581_v46 = vld [vmem:[%s2117_s16 + $0x200] sm:$0xff]  ;;  %v1649_v50 = vcombine.low %v573_v38, %v577_v39 }
  0x6c   : > { %1213 = vmatpush1.bf16.msra.mxu0 %v1617_v16  ;;  %1254 = vmatpush1.bf16.msra.mxu1 %v1619_v17  ;;  %v1652_v45 = vcombine.high %v574_v40, %v578_v41  ;;  %v585_v47 = vld [vmem:[%s2117_s16 + $0x220] sm:$0xff]  ;;  %v582_v48 = vld [vmem:[%s2117_s16 + $0x208] sm:$0xff]  ;;  %v1651_v51 = vcombine.low %v574_v40, %v578_v41  ;;  %v527_v41 = vld [vmem:[%s2117_s16 + $0x50] sm:$0xff] }
  0x6d   : > { %1214 = vmatprep.subr.bf16.mxu0 %v1626_v18  ;;  %1255 = vmatprep.subr.bf16.mxu1 %v1628_v19  ;;  %v586_v49 = vld [vmem:[%s2117_s16 + $0x228] sm:$0xff]  ;;  %v1658_v52 = vcombine.high %v581_v46, %v585_v47  ;;  %v589_v54 = vld [vmem:[%s2117_s16 + $0x240] sm:$0xff]  ;;  %v1657_v58 = vcombine.low %v581_v46, %v585_v47 }
  0x6e   : > { %v1660_v53 = vcombine.high %v582_v48, %v586_v49  ;;  %v593_v55 = vld [vmem:[%s2117_s16 + $0x260] sm:$0xff]  ;;  %v590_v56 = vld [vmem:[%s2117_s16 + $0x248] sm:$0xff]  ;;  %v1659_v59 = vcombine.low %v582_v48, %v586_v49 }
  0x6f   : > { %v594_v57 = vld [vmem:[%s2117_s16 + $0x268] sm:$0xff]  ;;  %v1666_v60 = vcombine.high %v589_v54, %v593_v55  ;;  %v597_v62 = vld [vmem:[%s2117_s16 + $0x280] sm:$0xff]  ;;  %v1665_v2 = vcombine.low %v589_v54, %v593_v55 }
  0x70   : > { %1215 = vmatpush1.bf16.msra.mxu0 %v1625_v24  ;;  %1256 = vmatpush1.bf16.msra.mxu1 %v1627_v25  ;;  %v1668_v61 = vcombine.high %v590_v56, %v594_v57  ;;  %v601_v63 = vld [vmem:[%s2117_s16 + $0x2a0] sm:$0xff]  ;;  %v598_v0 = vld [vmem:[%s2117_s16 + $0x288] sm:$0xff]  ;;  %v1667_v4 = vcombine.low %v590_v56, %v594_v57  ;;  %v543_v57 = vld [vmem:[%s2117_s16 + $0xd0] sm:$0xff] }
  0x71   : > { %1216 = vmatprep.subr.bf16.mxu0 %v1634_v26  ;;  %1257 = vmatprep.subr.bf16.mxu1 %v1636_v27  ;;  %v602_v1 = vld [vmem:[%s2117_s16 + $0x2a8] sm:$0xff]  ;;  %v1674_v5 = vcombine.high %v597_v62, %v601_v63  ;;  %v605_v7 = vld [vmem:[%s2117_s16 + $0x2c0] sm:$0xff]  ;;  %v1673_v11 = vcombine.low %v597_v62, %v601_v63 }
  0x72   : > { %v625_v3 = vld [vmem:[%s2307_s2] sm:$0xff]  ;;  %v1676_v6 = vcombine.high %v598_v0, %v602_v1  ;;  %v609_v8 = vld [vmem:[%s2117_s16 + $0x2e0] sm:$0xff]  ;;  %v1675_v12 = vcombine.low %v598_v0, %v602_v1  ;;  %v551_v1 = vld [vmem:[%s2117_s16 + $0x110] sm:$0xff] }
  0x73   : > { %628 = vperm.xlu0 %1762, %v625_v3   ;;  %v606_v9 = vld [vmem:[%s2117_s16 + $0x2c8] sm:$0xff]  ;;  %v1682_v13 = vcombine.high %v605_v7, %v609_v8  ;;  %v613_v15 = vld [vmem:[%s2117_s16 + $0x300] sm:$0xff]  ;;  %v1681_v19 = vcombine.low %v605_v7, %v609_v8  ;;  %v552_v3 = vld [vmem:[%s2117_s16 + $0x118] sm:$0xff] }
  0x74   : > { %1217 = vmatpush1.bf16.msra.mxu0 %v1633_v34  ;;  %1258 = vmatpush1.bf16.msra.mxu1 %v1635_v35  ;;  %v610_v10 = vld [vmem:[%s2117_s16 + $0x2e8] sm:$0xff]  ;;  %v617_v16 = vld [vmem:[%s2117_s16 + $0x320] sm:$0xff]  ;;  %v523_v34 = vld [vmem:[%s2117_s16 + $0x30] sm:$0xff] }
  0x75   : > { %1218 = vmatprep.subr.bf16.mxu0 %v1642_v36  ;;  %1259 = vmatprep.subr.bf16.mxu1 %v1644_v37  ;;  %v1684_v14 = vcombine.high %v606_v9, %v610_v10  ;;  %v614_v17 = vld [vmem:[%s2117_s16 + $0x308] sm:$0xff]  ;;  %v1683_v20 = vcombine.low %v606_v9, %v610_v10  ;;  %v1690_v21 = vcombine.high %v613_v15, %v617_v16  ;;  %v621_v23 = vld [vmem:[%s2117_s16 + $0x340] sm:$0xff]  ;;  %v520_v35 = vld [vmem:[%s2117_s16 + $0x18] sm:$0xff] }
  0x76   : > { %v618_v18 = vld [vmem:[%s2117_s16 + $0x328] sm:$0xff]  ;;  %v1689_v25 = vcombine.low %v613_v15, %v617_v16  ;;  %v1698_v27 = vcombine.high %v621_v23, %v621_v23  ;;  %v1697_v28 = vcombine.low %v621_v23, %v621_v23  ;;  %v524_v36 = vld [vmem:[%s2117_s16 + $0x38] sm:$0xff]  ;;  %v1598_v38 = vcombine.high %v519_v32, %v523_v34  ;;  %v559_v8 = vld [vmem:[%s2117_s16 + $0x150] sm:$0xff] }
  0x77   : > { %v1692_v22 = vcombine.high %v614_v17, %v618_v18  ;;  %v622_v24 = vld [vmem:[%s2117_s16 + $0x348] sm:$0xff]  ;;  %v1691_v26 = vcombine.low %v614_v17, %v618_v18  ;;  %v1600_v40 = vcombine.high %v520_v35, %v524_v36  ;;  %v1597_v46 = vcombine.low %v519_v32, %v523_v34  ;;  %v563_v9 = vld [vmem:[%s2117_s16 + $0x170] sm:$0xff]  ;;  %v560_v10 = vld [vmem:[%s2117_s16 + $0x158] sm:$0xff] }
  0x78   : > { %1219 = vmatpush1.bf16.msra.mxu0 %v1641_v42  ;;  %1260 = vmatpush1.bf16.msra.mxu1 %v1643_v43  ;;  %v1700_v29 = vcombine.high %v622_v24, %v622_v24  ;;  %v1699_v31 = vcombine.low %v622_v24, %v622_v24  ;;  %v1183_v37 = vsel %vm1181_vm2, %v1697_v28, 0  ;;  %v531_v42 = vld [vmem:[%s2117_s16 + $0x70] sm:$0xff]  ;;  %v2208_v43 = vcombine.low %v2155_v30, %v2155_v30  ;;  %v536_v30 = vld [vmem:[%s2117_s16 + $0x98] sm:$0xff] }
  0x79   : > { %1220 = vmatprep.subr.bf16.mxu0 %v1650_v44  ;;  %1261 = vmatprep.subr.bf16.mxu1 %v1652_v45  ;;  %v528_v44 = vld [vmem:[%s2117_s16 + $0x58] sm:$0xff]  ;;  %v1599_v47 = vcombine.low %v520_v35, %v524_v36  ;;  %v1606_v48 = vcombine.high %v527_v41, %v531_v42  ;;  %v567_v16 = vld [vmem:[%s2117_s16 + $0x190] sm:$0xff] }
  0x7a   : > { %v1189_v39 = vsel %vm1181_vm2, %v1699_v31, 0  ;;  %v532_v45 = vld [vmem:[%s2117_s16 + $0x78] sm:$0xff]  ;;  %v571_v17 = vld [vmem:[%s2117_s16 + $0x1b0] sm:$0xff] }
  0x7b   : > { %v1608_v49 = vcombine.high %v528_v44, %v532_v45  ;;  %v1607_v54 = vcombine.low %v528_v44, %v532_v45  ;;  %v568_v18 = vld [vmem:[%s2117_s16 + $0x198] sm:$0xff]  ;;  %v575_v24 = vld [vmem:[%s2117_s16 + $0x1d0] sm:$0xff]  ;;  %v1645_v28 = vcombine.low %v567_v16, %v571_v17 }
  0x7c   : > { %1221 = vmatpush1.bf16.msra.mxu0 %v1649_v50  ;;  %1262 = vmatpush1.bf16.msra.mxu1 %v1651_v51  ;;  %v535_v50 = vld [vmem:[%s2117_s16 + $0x90] sm:$0xff]  ;;  %v584_v36 = vld [vmem:[%s2117_s16 + $0x218] sm:$0xff] }
  0x7d   : > { %1222 = vmatprep.subr.bf16.mxu0 %v1658_v52  ;;  %1263 = vmatprep.subr.bf16.mxu1 %v1660_v53  ;;  %v539_v51 = vld [vmem:[%s2117_s16 + $0xb0] sm:$0xff]  ;;  %v540_v52 = vld [vmem:[%s2117_s16 + $0xb8] sm:$0xff]  ;;  %v1605_v53 = vcombine.low %v527_v41, %v531_v42 }
  0x7e   : > { %v1614_v55 = vcombine.high %v535_v50, %v539_v51  ;;  %v1616_v56 = vcombine.high %v536_v30, %v540_v52  ;;  %v1615_v62 = vcombine.low %v536_v30, %v540_v52  ;;  %v583_v34 = vld [vmem:[%s2117_s16 + $0x210] sm:$0xff]  ;;  %v592_v45 = vld [vmem:[%s2117_s16 + $0x258] sm:$0xff] }
  0x7f   : > { %v587_v35 = vld [vmem:[%s2117_s16 + $0x230] sm:$0xff]  ;;  %v600_v52 = vld [vmem:[%s2117_s16 + $0x298] sm:$0xff] }
  0x80   : > { %1223 = vmatpush1.bf16.msra.mxu0 %v1657_v58  ;;  %1264 = vmatpush1.bf16.msra.mxu1 %v1659_v59  ;;  %v547_v58 = vld [vmem:[%s2117_s16 + $0xf0] sm:$0xff]  ;;  %v544_v59 = vld [vmem:[%s2117_s16 + $0xd8] sm:$0xff] }
  0x81   : > { %1224 = vmatprep.subr.bf16.mxu0 %v1666_v60  ;;  %1265 = vmatprep.subr.bf16.mxu1 %v1668_v61  ;;  %v548_v60 = vld [vmem:[%s2117_s16 + $0xf8] sm:$0xff]  ;;  %v1613_v61 = vcombine.low %v535_v50, %v539_v51  ;;  %v1622_v63 = vcombine.high %v543_v57, %v547_v58  ;;  %v591_v42 = vld [vmem:[%s2117_s16 + $0x250] sm:$0xff] }
  0x82   : > { %v1624_v0 = vcombine.high %v544_v59, %v548_v60  ;;  %v595_v44 = vld [vmem:[%s2117_s16 + $0x270] sm:$0xff] }
  0x83   : > { %v599_v51 = vld [vmem:[%s2117_s16 + $0x290] sm:$0xff] }
  0x84   : > { %1225 = vmatpush1.bf16.msra.mxu0 %v1665_v2  ;;  %1266 = vmatpush1.bf16.msra.mxu1 %v1667_v4  ;;  %v555_v2 = vld [vmem:[%s2117_s16 + $0x130] sm:$0xff]  ;;  %v556_v4 = vld [vmem:[%s2117_s16 + $0x138] sm:$0xff] }
  0x85   : > { %1226 = vmatprep.subr.bf16.mxu0 %v1674_v5  ;;  %1267 = vmatprep.subr.bf16.mxu1 %v1676_v6  ;;  %v1621_v5 = vcombine.low %v543_v57, %v547_v58  ;;  %v1630_v6 = vcombine.high %v551_v1, %v555_v2  ;;  %v1632_v7 = vcombine.high %v552_v3, %v556_v4  ;;  %v603_v30 = vld [vmem:[%s2117_s16 + $0x2b0] sm:$0xff] }
  0x86   : > { %v607_v58 = vld [vmem:[%s2117_s16 + $0x2d0] sm:$0xff] }
  0x88   : > { %1227 = vmatpush1.bf16.msra.mxu0 %v1673_v11  ;;  %1268 = vmatpush1.bf16.msra.mxu1 %v1675_v12  ;;  %v564_v11 = vld [vmem:[%s2117_s16 + $0x178] sm:$0xff]  ;;  %v1629_v12 = vcombine.low %v551_v1, %v555_v2  ;;  %v615_v2 = vld [vmem:[%s2117_s16 + $0x310] sm:$0xff] }
  0x89   : > { %1228 = vmatprep.subr.bf16.mxu0 %v1682_v13  ;;  %1269 = vmatprep.subr.bf16.mxu1 %v1684_v14  ;;  %v1631_v13 = vcombine.low %v552_v3, %v556_v4  ;;  %v1638_v14 = vcombine.high %v559_v8, %v563_v9  ;;  %v1640_v15 = vcombine.high %v560_v10, %v564_v11  ;;  %v619_v3 = vld [vmem:[%s2117_s16 + $0x330] sm:$0xff]  ;;  %v616_v4 = vld [vmem:[%s2117_s16 + $0x318] sm:$0xff] }
  0x8c   : > { %1229 = vmatpush1.bf16.msra.mxu0 %v1681_v19  ;;  %1270 = vmatpush1.bf16.msra.mxu1 %v1683_v20  ;;  %v572_v19 = vld [vmem:[%s2117_s16 + $0x1b8] sm:$0xff]  ;;  %v1637_v20 = vcombine.low %v559_v8, %v563_v9  ;;  %v623_v9 = vld [vmem:[%s2117_s16 + $0x350] sm:$0xff] }
  0x8d   : > { %1230 = vmatprep.subr.bf16.mxu0 %v1690_v21  ;;  %1271 = vmatprep.subr.bf16.mxu1 %v1692_v22  ;;  %v1639_v21 = vcombine.low %v560_v10, %v564_v11  ;;  %v1646_v22 = vcombine.high %v567_v16, %v571_v17  ;;  %v1648_v23 = vcombine.high %v568_v18, %v572_v19  ;;  %v624_v10 = vld [vmem:[%s2117_s16 + $0x358] sm:$0xff] }
  0x8e   : > { %v1693_v11 = vcombine.low %v615_v2, %v619_v3  ;;  %v1703_v16 = vcombine.low %v624_v10, %v624_v10 }
  0x90   : > { %1231 = vmatpush1.bf16.msra.mxu0 %v1689_v25  ;;  %1272 = vmatpush1.bf16.msra.mxu1 %v1691_v26  ;;  %v579_v25 = vld [vmem:[%s2117_s16 + $0x1f0] sm:$0xff]  ;;  %v576_v26 = vld [vmem:[%s2117_s16 + $0x1d8] sm:$0xff] }
  0x91   : > { %1705 = vmatprep.subr.msk.bf16.mxu0 %vm1181_vm2, %v1698_v27  ;;  %1707 = vmatprep.subr.msk.bf16.mxu1 %vm1181_vm2, %v1700_v29  ;;  %v580_v27 = vld [vmem:[%s2117_s16 + $0x1f8] sm:$0xff]  ;;  %v1647_v29 = vcombine.low %v568_v18, %v572_v19  ;;  %v1654_v31 = vcombine.high %v575_v24, %v579_v25  ;;  %v1201_v18 = vsel %vm1181_vm2, %v1703_v16, 0 }
  0x92   : > { %v1656_v32 = vcombine.high %v576_v26, %v580_v27 }
  0x94   : > { %1233 = vmatpush1.bf16.msra.mxu0 %v1183_v37  ;;  %1274 = vmatpush1.bf16.msra.mxu1 %v1189_v39  ;;  %v588_v37 = vld [vmem:[%s2117_s16 + $0x238] sm:$0xff]  ;;  %v1655_v39 = vcombine.low %v576_v26, %v580_v27 }
  0x95   : > { %1288 = vmatprep.subr.bf16.mxu0 %v1598_v38  ;;  %1329 = vmatprep.subr.bf16.mxu1 %v1600_v40  ;;  %v1653_v38 = vcombine.low %v575_v24, %v579_v25  ;;  %v1662_v40 = vcombine.high %v583_v34, %v587_v35  ;;  %v1664_v41 = vcombine.high %v584_v36, %v588_v37 }
  0x97   : > { %1239 = vmatmul.mubr.bf16.vlgmr.msra.gmra.mrb[0].mxu0 %v2208_v43  ;;  %1280 = vmatmul.mubr.bf16.vlgmr.msra.gmra.mrb[0].mxu1 %v2208_v43 }
  0x98   : > { %1289 = vmatpush1.bf16.msra.mxu0 %v1597_v46  ;;  %1330 = vmatpush1.bf16.msra.mxu1 %v1599_v47  ;;  %v596_v46 = vld [vmem:[%s2117_s16 + $0x278] sm:$0xff]  ;;  %v1661_v47 = vcombine.low %v583_v34, %v587_v35 }
  0x99   : > { %1290 = vmatprep.subr.bf16.mxu0 %v1606_v48  ;;  %1331 = vmatprep.subr.bf16.mxu1 %v1608_v49  ;;  %v1663_v48 = vcombine.low %v584_v36, %v588_v37  ;;  %v1670_v49 = vcombine.high %v591_v42, %v595_v44  ;;  %v1672_v50 = vcombine.high %v592_v45, %v596_v46 }
  0x9a   : > { %1710 = vmatprep.mubr.msk.bf16.mxu0 %vm1177_vm1, %v2161_v33  ;;  %1712 = vmatprep.mubr.msk.bf16.mxu1 %vm1177_vm1, %v2161_v33  ;;  %v1623_v33 = vcombine.low %v544_v59, %v548_v60  ;;  %v611_v59 = vld [vmem:[%s2117_s16 + $0x2f0] sm:$0xff]  ;;  %v608_v60 = vld [vmem:[%s2117_s16 + $0x2d8] sm:$0xff] }
  0x9c   : > { %1291 = vmatpush1.bf16.msra.mxu0 %v1605_v53  ;;  %1332 = vmatpush1.bf16.msra.mxu1 %v1607_v54  ;;  %v604_v53 = vld [vmem:[%s2117_s16 + $0x2b8] sm:$0xff]  ;;  %v1669_v54 = vcombine.low %v591_v42, %v595_v44 }
  0x9d   : > { %1292 = vmatprep.subr.bf16.mxu0 %v1614_v55  ;;  %1333 = vmatprep.subr.bf16.mxu1 %v1616_v56  ;;  %v1671_v55 = vcombine.low %v592_v45, %v596_v46  ;;  %v1678_v56 = vcombine.high %v599_v51, %v603_v30  ;;  %v1680_v57 = vcombine.high %v600_v52, %v604_v53 }
  0xa0   : > { %1293 = vmatpush1.bf16.msra.mxu0 %v1613_v61  ;;  %1334 = vmatpush1.bf16.msra.mxu1 %v1615_v62  ;;  %v612_v61 = vld [vmem:[%s2117_s16 + $0x2f8] sm:$0xff]  ;;  %v1677_v62 = vcombine.low %v599_v51, %v603_v30 }
  0xa1   : > { %1294 = vmatprep.subr.bf16.mxu0 %v1622_v63  ;;  %1335 = vmatprep.subr.bf16.mxu1 %v1624_v0  ;;  %v1679_v63 = vcombine.low %v600_v52, %v604_v53  ;;  %v1686_v0 = vcombine.high %v607_v58, %v611_v59  ;;  %v1688_v1 = vcombine.high %v608_v60, %v612_v61 }
  0xa4   : > { %1295 = vmatpush1.bf16.msra.mxu0 %v1621_v5  ;;  %1336 = vmatpush1.bf16.msra.mxu1 %v1623_v33  ;;  %v620_v5 = vld [vmem:[%s2117_s16 + $0x338] sm:$0xff]  ;;  %v1685_v33 = vcombine.low %v607_v58, %v611_v59 }
  0xa5   : > { %1296 = vmatprep.subr.bf16.mxu0 %v1630_v6  ;;  %1337 = vmatprep.subr.bf16.mxu1 %v1632_v7  ;;  %v1687_v6 = vcombine.low %v608_v60, %v612_v61  ;;  %v1694_v7 = vcombine.high %v615_v2, %v619_v3  ;;  %v1696_v8 = vcombine.high %v616_v4, %v620_v5 }
  0xa8   : > { %1297 = vmatpush1.bf16.msra.mxu0 %v1629_v12  ;;  %1338 = vmatpush1.bf16.msra.mxu1 %v1631_v13  ;;  %v1695_v12 = vcombine.low %v616_v4, %v620_v5  ;;  %v1702_v13 = vcombine.high %v623_v9, %v623_v9 }
  0xa9   : > { %1298 = vmatprep.subr.bf16.mxu0 %v1638_v14  ;;  %1339 = vmatprep.subr.bf16.mxu1 %v1640_v15  ;;  %v1701_v14 = vcombine.low %v623_v9, %v623_v9  ;;  %v1704_v15 = vcombine.high %v624_v10, %v624_v10 }
  0xab   : > { %v1195_v17 = vsel %vm1181_vm2, %v1701_v14, 0 }
  0xac   : > { %1299 = vmatpush1.bf16.msra.mxu0 %v1637_v20  ;;  %1340 = vmatpush1.bf16.msra.mxu1 %v1639_v21 }
  0xad   : > { %1300 = vmatprep.subr.bf16.mxu0 %v1646_v22  ;;  %1341 = vmatprep.subr.bf16.mxu1 %v1648_v23 }
  0xb0   : > { %1301 = vmatpush1.bf16.msra.mxu0 %v1645_v28  ;;  %1342 = vmatpush1.bf16.msra.mxu1 %v1647_v29 }
  0xb1   : > { %1302 = vmatprep.subr.bf16.mxu0 %v1654_v31  ;;  %1343 = vmatprep.subr.bf16.mxu1 %v1656_v32 }
  0xb4   : > { %1303 = vmatpush1.bf16.msra.mxu0 %v1653_v38  ;;  %1344 = vmatpush1.bf16.msra.mxu1 %v1655_v39 }
  0xb5   : > { %1304 = vmatprep.subr.bf16.mxu0 %v1662_v40  ;;  %1345 = vmatprep.subr.bf16.mxu1 %v1664_v41 }
  0xb8   : > { %1305 = vmatpush1.bf16.msra.mxu0 %v1661_v47  ;;  %1346 = vmatpush1.bf16.msra.mxu1 %v1663_v48 }
  0xb9   : > { %1306 = vmatprep.subr.bf16.mxu0 %v1670_v49  ;;  %1347 = vmatprep.subr.bf16.mxu1 %v1672_v50 }
  0xbc   : > { %1307 = vmatpush1.bf16.msra.mxu0 %v1669_v54  ;;  %1348 = vmatpush1.bf16.msra.mxu1 %v1671_v55 }
  0xbd   : > { %1308 = vmatprep.subr.bf16.mxu0 %v1678_v56  ;;  %1349 = vmatprep.subr.bf16.mxu1 %v1680_v57 }
  0xc0   : > { %1309 = vmatpush1.bf16.msra.mxu0 %v1677_v62  ;;  %1350 = vmatpush1.bf16.msra.mxu1 %v1679_v63 }
  0xc1   : > { %1310 = vmatprep.subr.bf16.mxu0 %v1686_v0  ;;  %1351 = vmatprep.subr.bf16.mxu1 %v1688_v1 }
  0xc4   : > { %1311 = vmatpush1.bf16.msra.mxu0 %v1685_v33  ;;  %1352 = vmatpush1.bf16.msra.mxu1 %v1687_v6 }
  0xc5   : > { %1312 = vmatprep.subr.bf16.mxu0 %v1694_v7  ;;  %1353 = vmatprep.subr.bf16.mxu1 %v1696_v8 }
  0xc8   : > { %1313 = vmatpush1.bf16.msra.mxu0 %v1693_v11  ;;  %1354 = vmatpush1.bf16.msra.mxu1 %v1695_v12 }
  0xc9   : > { %1709 = vmatprep.subr.msk.bf16.mxu0 %vm1181_vm2, %v1702_v13  ;;  %1711 = vmatprep.subr.msk.bf16.mxu1 %vm1181_vm2, %v1704_v15 }
  0xcc   : > { %1315 = vmatpush1.bf16.msra.mxu0 %v1195_v17  ;;  %1356 = vmatpush1.bf16.msra.mxu1 %v1201_v18  ;;  %v1402_v18 = vld [vmem:[%s2309_s4] sm:$0xff] }
  0xcf   : > { %1321 = vmatmul.mubr.bf16.vlgmr.msra.gmra.mrb[4].mxu0 %v2208_v43  ;;  %1362 = vmatmul.mubr.bf16.vlgmr.msra.gmra.mrb[4].mxu1 %v2208_v43 }
  0xf2   : > { %v629_v19 = vpop.permute.xlu0 %628 }
 0x16a   : > { %v1240_v20 = vpop.f32.mrb[0].mxu0  ;;  %v1281_v23 = vpop.f32.mrb[0].mxu1 }
 0x16b   : > { %v1241_v21 = vadd.f32 %v1240_v20, %v629_v19  ;;  %v1242_v22 = vpop.f32.mrb[1].mxu0  ;;  %v1282_v26 = vadd.f32 %v1281_v23, %v629_v19  ;;  %v1283_v27 = vpop.f32.mrb[1].mxu1  ;;  %v1415_v20 = vld [vmem:[%s2310_s5] sm:$0xff] }
 0x16c   : > { %v1243_v24 = vadd.f32 %v1242_v22, %v629_v19  ;;  %v1244_v25 = vpop.f32.mrb[2].mxu0  ;;  %v1284_v31 = vadd.f32 %v1283_v27, %v629_v19  ;;  %v1285_v32 = vpop.f32.mrb[2].mxu1 }
 0x16d   : > { %vm1370_vm3 = vcmp.gt.f32.partialorder %v1241_v21, 0.0  ;;  %v1378_v28 = vmul.f32 0.1, %v1241_v21  ;;  %v1245_v29 = vpop.f32.mrb[3].mxu0  ;;  %vm1372_vm5 = vcmp.gt.f32.partialorder %v1282_v26, 0.0  ;;  %v1286_v37 = vpop.f32.mrb[3].mxu1 }
 0x16e   : > { %vm1371_vm4 = vcmp.gt.f32.partialorder %v1243_v24, 0.0  ;;  %v1379_v34 = vmul.f32 0.1, %v1243_v24  ;;  %v1380_v43 = vmul.f32 0.1, %v1282_v26  ;;  %vm1373_vm6 = vcmp.gt.f32.partialorder %v1284_v31, 0.0 }
 0x16f   : > { %v1386_v35 = vsel %vm1370_vm3, %v1241_v21, %v1378_v28  ;;  %v1381_v36 = vmul.f32 0.1, %v1284_v31 }
 0x170   : > { %1394 = vst [vmem:[%s2115_s15] sm:$0xff] %v1386_v35  ;;  %v1416_v38 = vmul.f32 %v1386_v35, %v1386_v35  ;;  %v1387_v39 = vsel %vm1371_vm4, %v1243_v24, %v1379_v34  ;;  %v1388_v40 = vsel %vm1372_vm5, %v1282_v26, %v1380_v43 }
 0x171   : > { %1395 = vst [vmem:[%s2115_s15 + $0x8] sm:$0xff] %v1387_v39  ;;  %v1403_v41 = vadd.f32 %v1387_v39, %v1386_v35  ;;  %v1417_v42 = vmul.f32 %v1387_v39, %v1387_v39  ;;  %1396 = vst [vmem:[%s2115_s15 + $0x10] sm:$0xff] %v1388_v40  ;;  %v1418_v44 = vmul.f32 %v1388_v40, %v1388_v40 }
 0x172   : > { %v1389_v45 = vsel %vm1373_vm6, %v1284_v31, %v1381_v36 }
 0x173   : > { %1397 = vst [vmem:[%s2115_s15 + $0x18] sm:$0xff] %v1389_v45  ;;  %v1424_v46 = vadd.f32 %v1417_v42, %v1416_v38  ;;  %v1404_v47 = vadd.f32 %v1403_v41, %v1388_v40  ;;  %v1419_v50 = vmul.f32 %v1389_v45, %v1389_v45 }
 0x175   : > { %v1425_v48 = vadd.f32 %v1424_v46, %v1418_v44  ;;  %v1405_v49 = vadd.f32 %v1404_v47, %v1389_v45 }
 0x177   : > { %v1426_v51 = vadd.f32 %v1425_v48, %v1419_v50 }
 0x1a2   : > { %v1322_v30 = vpop.f32.mrb[4].mxu0  ;;  %v1363_v53 = vpop.f32.mrb[4].mxu1 }
 0x1a3   : > { %v1323_v52 = vadd.f32 %v1322_v30, %v629_v19  ;;  %v1324_v54 = vpop.f32.mrb[5].mxu0  ;;  %v1364_v55 = vadd.f32 %v1363_v53, %v629_v19  ;;  %v1365_v57 = vpop.f32.mrb[5].mxu1 }
 0x1a4   : > { %v1325_v56 = vadd.f32 %v1324_v54, %v629_v19  ;;  %v1326_v58 = vpop.f32.mrb[6].mxu0  ;;  %v1366_v60 = vadd.f32 %v1365_v57, %v629_v19  ;;  %v1367_v62 = vpop.f32.mrb[6].mxu1 }
 0x1a5   : > { %vm1374_vm7 = vcmp.gt.f32.partialorder %v1323_v52, 0.0  ;;  %v1382_v59 = vmul.f32 0.1, %v1323_v52  ;;  %v1327_v61 = vpop.f32.mrb[7].mxu0  ;;  %vm1376_vm8 = vcmp.gt.f32.partialorder %v1364_v55, 0.0  ;;  %v1368_v3 = vpop.f32.mrb[7].mxu1 }
 0x1a6   : > { %v1384_v63 = vmul.f32 0.1, %v1364_v55  ;;  %vm1375_vm9 = vcmp.gt.f32.partialorder %v1325_v56, 0.0  ;;  %v1383_v0 = vmul.f32 0.1, %v1325_v56  ;;  %vm1377_vm10 = vcmp.gt.f32.partialorder %v1366_v60, 0.0 }
 0x1a7   : > { %v1390_v1 = vsel %vm1374_vm7, %v1323_v52, %v1382_v59  ;;  %v1385_v2 = vmul.f32 0.1, %v1366_v60 }
 0x1a8   : > { %1398 = vst [vmem:[%s2115_s15 + $0x20] sm:$0xff] %v1390_v1  ;;  %v1406_v4 = vadd.f32 %v1405_v49, %v1390_v1  ;;  %v1420_v5 = vmul.f32 %v1390_v1, %v1390_v1  ;;  %v1392_v33 = vsel %vm1376_vm8, %v1364_v55, %v1384_v63  ;;  %v1391_v6 = vsel %vm1375_vm9, %v1325_v56, %v1383_v0 }
 0x1a9   : > { %1400 = vst [vmem:[%s2115_s15 + $0x30] sm:$0xff] %v1392_v33  ;;  %1399 = vst [vmem:[%s2115_s15 + $0x28] sm:$0xff] %v1391_v6  ;;  %v1393_v7 = vsel %vm1377_vm10, %v1366_v60, %v1385_v2  ;;  %v1421_v8 = vmul.f32 %v1391_v6, %v1391_v6  ;;  %v1422_v12 = vmul.f32 %v1392_v33, %v1392_v33 }
 0x1aa   : > { %1401 = vst [vmem:[%s2115_s15 + $0x38] sm:$0xff] %v1393_v7  ;;  %v1407_v9 = vadd.f32 %v1406_v4, %v1391_v6  ;;  %v1427_v10 = vadd.f32 %v1426_v51, %v1420_v5  ;;  %v1423_v15 = vmul.f32 %v1393_v7, %v1393_v7 }
 0x1ac   : > { %v1408_v11 = vadd.f32 %v1407_v9, %v1392_v33  ;;  %v1428_v13 = vadd.f32 %v1427_v10, %v1421_v8 }
 0x1ae   : > { %v1409_v14 = vadd.f32 %v1408_v11, %v1393_v7  ;;  %v1429_v16 = vadd.f32 %v1428_v13, %v1422_v12 }
 0x1b0   : > { %1410 = vadd.xlane.f32.xlu0 %v1409_v14  ;;  %v1430_v17 = vadd.f32 %v1429_v16, %v1423_v15 }
 0x1b2   : > { %1431 = vadd.xlane.f32.xlu1 %v1430_v17 }
 0x23d   : > { %v1411_v19 = vpop.xlane.xlu0 %1410 }
 0x23e   : > { %v1412_v21 = vadd.f32 %v1411_v19, %v1402_v18 }
 0x23f   : > { %v1432_v22 = vpop.xlane.xlu1 %1431 }
 0x240   : > { %1414 = vst.msk [vmem:[%s2309_s4] sm:$0xff] %vm1413_vm11, %v1412_v21  ;;  %v1433_v23 = vadd.f32 %v1432_v22, %v1415_v20 }
 0x242   : > { %1434 = vst.msk [vmem:[%s2310_s5] sm:$0xff] %vm1413_vm11, %v1433_v23 }
 0x243 PF: > { %s16_s22 = sadd.s32 1, %s1811_s22   ;;  %s2311_s18 = smov %s1799_s19 }
 0x244   : > { %p13_p11 = scmp.ge.s32.totalorder %s16_s22, 6   ;;  %s2312_s19 = smov %s1880_s26 }
 0x245   : > { %s2313_s20 = smov %s1807_s21  ;;  %s2314_s21 = smov %s2316_s23 }
 0x246   :  { %15 = sbr.rel (!%p13_p11) target bundleno = 3 (0x3), region = 118 }

// kernel: _lambda_.61
= control target key start
LH: loop header
LB: loop body
LE: loop exit
PB: predicated region body
PF: predicated region fallthrough
CT: control target
= control target key end

     0   :  { %s1821_s18 = smov 0   ;;  %s1823_s19 = smov 0   ;;  %s2281_s0 = inlined_call_operand.vmem [shape: bf16[1,216,4096], index: 0, kind: input, shape index: {}]   ;;  %s2282_s1 = inlined_call_operand.vmem [shape: bf16[8,216], index: 1, kind: input, shape index: {}]   ;;  %s2283_s2 = inlined_call_operand.vmem [shape: f32[8,1], index: 2, kind: input, shape index: {}]   ;;  %s2284_s3 = inlined_call_operand.vmem [shape: f32[1,8,4096], index: 3, kind: output, shape index: {0}]   ;;  %s2285_s4 = inlined_call_operand.vmem [shape: f32[1,8,1], index: 4, kind: output, shape index: {1}]   ;;  %s2286_s5 = inlined_call_operand.vmem [shape: f32[1,8,1], index: 5, kind: output, shape index: {2}]  }
   0x1   :  { %s1825_s20 = smov 0   ;;  %s1827_s21 = smov 0  }
   0x2   :  { %s1829_s22 = smov 0  }
   0x3 LB: > { %s25_s23 = sadd.s32 1, %s1783_s21  ;;  %p44_p1 = scmp.ne.s32.totalorder %s1775_s19, %s1771_s18  ;;  %s1787_s22 = sphi %s1829_s22, %s16_s22   ;;  %s1783_s21 = sphi %s1827_s21, %s2290_s21   ;;  %s1779_s20 = sphi %s1825_s20, %s2289_s20   ;;  %s1775_s19 = sphi %s1823_s19, %s2288_s19   ;;  %s1771_s18 = sphi %s1821_s18, %s2287_s18  }
   0x4   : > { %p26_p0 = scmp.ge.s32.totalorder %s25_s23, 4  ;;  %p45_p2 = scmp.eq.s32.totalorder %s1787_s22, 0 }
   0x5   : > { %s37_s25 = sadd.s32 1, %s1775_s19  ;;  %p1560_p5 = scmp.ge.s32.totalorder %s1787_s22, 4 }
   0x6   : > { %s2292_s23 = smov (%p26_p0, %s25_s23), 0  ;;  %p46_p3 = por %p45_p2, %p44_p1 }
   0x7   : > { %s33_s24 = ssub.s32 %s1783_s21, %s2292_s23  ;;  %198 = sbr.rel (%p1560_p5) target bundleno = 73 (0x49), region = 24 }
   0x8   : > { %p35_p4 = scmp.eq.s32.totalorder %s33_s24, 0 }
   0xa   : > { %s1856_s26 = scalar_select %p35_p4, %s1775_s19, %s37_s25  }
   0xe   : > { %201 = sbr.rel (!%p46_p3) target bundleno = 73 (0x49), region = 28  ;;  %s203_s27 = sand.u32 (%p46_p3), 1, %s1775_s19  }
   0xf   : > { %s1693_s28 = sshll.u32 (%p46_p3), %s1783_s21, 5  ;;  %s1694_s29 = smul.u32 (%p46_p3), 864, %s203_s27 }
  0x10   : > { %s1864_s7 = scalar_lea.vmem (%p46_p3), %s2281_s0, %s1693_s28 }
  0x11   : > { %v223_v0 = vld [vmem:[%s1864_s7] sm:$0xff] (%p46_p3)  ;;  %v225_v1 = vld [vmem:[%s1864_s7 + $0x8] sm:$0xff] (%p46_p3)  ;;  %v227_v2 = vld [vmem:[%s1864_s7 + $0x10] sm:$0xff] (%p46_p3)  ;;  %s1872_s8 = scalar_lea.vmem (%p46_p3), [#allocation2], %s1694_s29 }
  0x12   : > { %v229_v3 = vld [vmem:[%s1864_s7 + $0x18] sm:$0xff] (%p46_p3)  ;;  %v231_v4 = vld [vmem:[%s1864_s7 + $0x80] sm:$0xff] (%p46_p3)  ;;  %v233_v5 = vld [vmem:[%s1864_s7 + $0x88] sm:$0xff] (%p46_p3)  ;;  %224 = vst [vmem:[%s1872_s8] sm:$0xff] (%p46_p3), %v223_v0 }
  0x13   : > { %226 = vst [vmem:[%s1872_s8 + $0x8] sm:$0xff] (%p46_p3), %v225_v1  ;;  %228 = vst [vmem:[%s1872_s8 + $0x10] sm:$0xff] (%p46_p3), %v227_v2  ;;  %v235_v6 = vld [vmem:[%s1864_s7 + $0x90] sm:$0xff] (%p46_p3)  ;;  %v237_v7 = vld [vmem:[%s1864_s7 + $0x98] sm:$0xff] (%p46_p3) }
  0x14   : > { %230 = vst [vmem:[%s1872_s8 + $0x18] sm:$0xff] (%p46_p3), %v229_v3  ;;  %232 = vst [vmem:[%s1872_s8 + $0x20] sm:$0xff] (%p46_p3), %v231_v4  ;;  %v239_v8 = vld [vmem:[%s1864_s7 + $0x100] sm:$0xff] (%p46_p3)  ;;  %v241_v9 = vld [vmem:[%s1864_s7 + $0x108] sm:$0xff] (%p46_p3) }
  0x15   : > { %234 = vst [vmem:[%s1872_s8 + $0x28] sm:$0xff] %v233_v5  ;;  %236 = vst [vmem:[%s1872_s8 + $0x30] sm:$0xff] %v235_v6  ;;  %v243_v10 = vld [vmem:[%s1864_s7 + $0x110] sm:$0xff]  ;;  %v245_v11 = vld [vmem:[%s1864_s7 + $0x118] sm:$0xff] }
  0x16   : > { %238 = vst [vmem:[%s1872_s8 + $0x38] sm:$0xff] %v237_v7  ;;  %240 = vst [vmem:[%s1872_s8 + $0x40] sm:$0xff] %v239_v8  ;;  %v247_v12 = vld [vmem:[%s1864_s7 + $0x180] sm:$0xff]  ;;  %v249_v13 = vld [vmem:[%s1864_s7 + $0x188] sm:$0xff] }
  0x17   : > { %242 = vst [vmem:[%s1872_s8 + $0x48] sm:$0xff] %v241_v9  ;;  %244 = vst [vmem:[%s1872_s8 + $0x50] sm:$0xff] %v243_v10  ;;  %v251_v14 = vld [vmem:[%s1864_s7 + $0x190] sm:$0xff]  ;;  %v253_v15 = vld [vmem:[%s1864_s7 + $0x198] sm:$0xff] }
  0x18   : > { %246 = vst [vmem:[%s1872_s8 + $0x58] sm:$0xff] %v245_v11  ;;  %248 = vst [vmem:[%s1872_s8 + $0x60] sm:$0xff] %v247_v12  ;;  %v255_v16 = vld [vmem:[%s1864_s7 + $0x200] sm:$0xff]  ;;  %v257_v17 = vld [vmem:[%s1864_s7 + $0x208] sm:$0xff] }
  0x19   : > { %250 = vst [vmem:[%s1872_s8 + $0x68] sm:$0xff] %v249_v13  ;;  %252 = vst [vmem:[%s1872_s8 + $0x70] sm:$0xff] %v251_v14  ;;  %v259_v18 = vld [vmem:[%s1864_s7 + $0x210] sm:$0xff]  ;;  %v261_v19 = vld [vmem:[%s1864_s7 + $0x218] sm:$0xff] }
  0x1a   : > { %254 = vst [vmem:[%s1872_s8 + $0x78] sm:$0xff] %v253_v15  ;;  %256 = vst [vmem:[%s1872_s8 + $0x80] sm:$0xff] %v255_v16  ;;  %v263_v20 = vld [vmem:[%s1864_s7 + $0x280] sm:$0xff]  ;;  %v265_v21 = vld [vmem:[%s1864_s7 + $0x288] sm:$0xff] }
  0x1b   : > { %258 = vst [vmem:[%s1872_s8 + $0x88] sm:$0xff] %v257_v17  ;;  %260 = vst [vmem:[%s1872_s8 + $0x90] sm:$0xff] %v259_v18  ;;  %v267_v22 = vld [vmem:[%s1864_s7 + $0x290] sm:$0xff]  ;;  %v269_v23 = vld [vmem:[%s1864_s7 + $0x298] sm:$0xff] }
  0x1c   : > { %262 = vst [vmem:[%s1872_s8 + $0x98] sm:$0xff] %v261_v19  ;;  %264 = vst [vmem:[%s1872_s8 + $0xa0] sm:$0xff] %v263_v20  ;;  %v271_v24 = vld [vmem:[%s1864_s7 + $0x300] sm:$0xff]  ;;  %v273_v25 = vld [vmem:[%s1864_s7 + $0x308] sm:$0xff] }
  0x1d   : > { %266 = vst [vmem:[%s1872_s8 + $0xa8] sm:$0xff] %v265_v21  ;;  %268 = vst [vmem:[%s1872_s8 + $0xb0] sm:$0xff] %v267_v22  ;;  %v275_v26 = vld [vmem:[%s1864_s7 + $0x310] sm:$0xff]  ;;  %v277_v27 = vld [vmem:[%s1864_s7 + $0x318] sm:$0xff] }
  0x1e   : > { %270 = vst [vmem:[%s1872_s8 + $0xb8] sm:$0xff] %v269_v23  ;;  %272 = vst [vmem:[%s1872_s8 + $0xc0] sm:$0xff] %v271_v24  ;;  %v279_v28 = vld [vmem:[%s1864_s7 + $0x380] sm:$0xff]  ;;  %v281_v29 = vld [vmem:[%s1864_s7 + $0x388] sm:$0xff] }
  0x1f   : > { %274 = vst [vmem:[%s1872_s8 + $0xc8] sm:$0xff] %v273_v25  ;;  %276 = vst [vmem:[%s1872_s8 + $0xd0] sm:$0xff] %v275_v26  ;;  %v283_v30 = vld [vmem:[%s1864_s7 + $0x390] sm:$0xff]  ;;  %v285_v31 = vld [vmem:[%s1864_s7 + $0x398] sm:$0xff] }
  0x20   : > { %278 = vst [vmem:[%s1872_s8 + $0xd8] sm:$0xff] %v277_v27  ;;  %280 = vst [vmem:[%s1872_s8 + $0xe0] sm:$0xff] %v279_v28  ;;  %v287_v32 = vld [vmem:[%s1864_s7 + $0x400] sm:$0xff]  ;;  %v289_v33 = vld [vmem:[%s1864_s7 + $0x408] sm:$0xff] }
  0x21   : > { %282 = vst [vmem:[%s1872_s8 + $0xe8] sm:$0xff] %v281_v29  ;;  %284 = vst [vmem:[%s1872_s8 + $0xf0] sm:$0xff] %v283_v30  ;;  %v291_v34 = vld [vmem:[%s1864_s7 + $0x410] sm:$0xff]  ;;  %v293_v35 = vld [vmem:[%s1864_s7 + $0x418] sm:$0xff] }
  0x22   : > { %286 = vst [vmem:[%s1872_s8 + $0xf8] sm:$0xff] %v285_v31  ;;  %288 = vst [vmem:[%s1872_s8 + $0x100] sm:$0xff] %v287_v32  ;;  %v295_v36 = vld [vmem:[%s1864_s7 + $0x480] sm:$0xff]  ;;  %v297_v37 = vld [vmem:[%s1864_s7 + $0x488] sm:$0xff] }
  0x23   : > { %290 = vst [vmem:[%s1872_s8 + $0x108] sm:$0xff] %v289_v33  ;;  %292 = vst [vmem:[%s1872_s8 + $0x110] sm:$0xff] %v291_v34  ;;  %v299_v38 = vld [vmem:[%s1864_s7 + $0x490] sm:$0xff]  ;;  %v301_v39 = vld [vmem:[%s1864_s7 + $0x498] sm:$0xff] }
  0x24   : > { %294 = vst [vmem:[%s1872_s8 + $0x118] sm:$0xff] %v293_v35  ;;  %296 = vst [vmem:[%s1872_s8 + $0x120] sm:$0xff] %v295_v36  ;;  %v303_v40 = vld [vmem:[%s1864_s7 + $0x500] sm:$0xff]  ;;  %v305_v41 = vld [vmem:[%s1864_s7 + $0x508] sm:$0xff] }
  0x25   : > { %298 = vst [vmem:[%s1872_s8 + $0x128] sm:$0xff] %v297_v37  ;;  %300 = vst [vmem:[%s1872_s8 + $0x130] sm:$0xff] %v299_v38  ;;  %v307_v42 = vld [vmem:[%s1864_s7 + $0x510] sm:$0xff]  ;;  %v309_v43 = vld [vmem:[%s1864_s7 + $0x518] sm:$0xff] }
  0x26   : > { %302 = vst [vmem:[%s1872_s8 + $0x138] sm:$0xff] %v301_v39  ;;  %304 = vst [vmem:[%s1872_s8 + $0x140] sm:$0xff] %v303_v40  ;;  %v311_v44 = vld [vmem:[%s1864_s7 + $0x580] sm:$0xff]  ;;  %v313_v45 = vld [vmem:[%s1864_s7 + $0x588] sm:$0xff] }
  0x27   : > { %306 = vst [vmem:[%s1872_s8 + $0x148] sm:$0xff] %v305_v41  ;;  %308 = vst [vmem:[%s1872_s8 + $0x150] sm:$0xff] %v307_v42  ;;  %v315_v46 = vld [vmem:[%s1864_s7 + $0x590] sm:$0xff]  ;;  %v317_v47 = vld [vmem:[%s1864_s7 + $0x598] sm:$0xff] }
  0x28   : > { %310 = vst [vmem:[%s1872_s8 + $0x158] sm:$0xff] %v309_v43  ;;  %312 = vst [vmem:[%s1872_s8 + $0x160] sm:$0xff] %v311_v44  ;;  %v319_v48 = vld [vmem:[%s1864_s7 + $0x600] sm:$0xff]  ;;  %v321_v49 = vld [vmem:[%s1864_s7 + $0x608] sm:$0xff] }
  0x29   : > { %314 = vst [vmem:[%s1872_s8 + $0x168] sm:$0xff] %v313_v45  ;;  %316 = vst [vmem:[%s1872_s8 + $0x170] sm:$0xff] %v315_v46  ;;  %v323_v50 = vld [vmem:[%s1864_s7 + $0x610] sm:$0xff]  ;;  %v325_v51 = vld [vmem:[%s1864_s7 + $0x618] sm:$0xff] }
  0x2a   : > { %318 = vst [vmem:[%s1872_s8 + $0x178] sm:$0xff] %v317_v47  ;;  %320 = vst [vmem:[%s1872_s8 + $0x180] sm:$0xff] %v319_v48  ;;  %v327_v52 = vld [vmem:[%s1864_s7 + $0x680] sm:$0xff]  ;;  %v329_v53 = vld [vmem:[%s1864_s7 + $0x688] sm:$0xff] }
  0x2b   : > { %322 = vst [vmem:[%s1872_s8 + $0x188] sm:$0xff] %v321_v49  ;;  %324 = vst [vmem:[%s1872_s8 + $0x190] sm:$0xff] %v323_v50  ;;  %v331_v54 = vld [vmem:[%s1864_s7 + $0x690] sm:$0xff]  ;;  %v333_v55 = vld [vmem:[%s1864_s7 + $0x698] sm:$0xff] }
  0x2c   : > { %326 = vst [vmem:[%s1872_s8 + $0x198] sm:$0xff] %v325_v51  ;;  %328 = vst [vmem:[%s1872_s8 + $0x1a0] sm:$0xff] %v327_v52  ;;  %v335_v56 = vld [vmem:[%s1864_s7 + $0x700] sm:$0xff]  ;;  %v337_v57 = vld [vmem:[%s1864_s7 + $0x708] sm:$0xff] }
  0x2d   : > { %330 = vst [vmem:[%s1872_s8 + $0x1a8] sm:$0xff] %v329_v53  ;;  %332 = vst [vmem:[%s1872_s8 + $0x1b0] sm:$0xff] %v331_v54  ;;  %v339_v58 = vld [vmem:[%s1864_s7 + $0x710] sm:$0xff]  ;;  %v341_v59 = vld [vmem:[%s1864_s7 + $0x718] sm:$0xff] }
  0x2e   : > { %334 = vst [vmem:[%s1872_s8 + $0x1b8] sm:$0xff] %v333_v55  ;;  %336 = vst [vmem:[%s1872_s8 + $0x1c0] sm:$0xff] %v335_v56  ;;  %v343_v60 = vld [vmem:[%s1864_s7 + $0x780] sm:$0xff]  ;;  %v345_v61 = vld [vmem:[%s1864_s7 + $0x788] sm:$0xff] }
  0x2f   : > { %338 = vst [vmem:[%s1872_s8 + $0x1c8] sm:$0xff] %v337_v57  ;;  %340 = vst [vmem:[%s1872_s8 + $0x1d0] sm:$0xff] %v339_v58  ;;  %v347_v62 = vld [vmem:[%s1864_s7 + $0x790] sm:$0xff]  ;;  %v349_v63 = vld [vmem:[%s1864_s7 + $0x798] sm:$0xff] }
  0x30   : > { %342 = vst [vmem:[%s1872_s8 + $0x1d8] sm:$0xff] %v341_v59  ;;  %344 = vst [vmem:[%s1872_s8 + $0x1e0] sm:$0xff] %v343_v60  ;;  %v351_v0 = vld [vmem:[%s1864_s7 + $0x800] sm:$0xff]  ;;  %v353_v1 = vld [vmem:[%s1864_s7 + $0x808] sm:$0xff] }
  0x31   : > { %346 = vst [vmem:[%s1872_s8 + $0x1e8] sm:$0xff] %v345_v61  ;;  %348 = vst [vmem:[%s1872_s8 + $0x1f0] sm:$0xff] %v347_v62  ;;  %v355_v2 = vld [vmem:[%s1864_s7 + $0x810] sm:$0xff]  ;;  %v357_v3 = vld [vmem:[%s1864_s7 + $0x818] sm:$0xff] }
  0x32   : > { %350 = vst [vmem:[%s1872_s8 + $0x1f8] sm:$0xff] %v349_v63  ;;  %352 = vst [vmem:[%s1872_s8 + $0x200] sm:$0xff] %v351_v0  ;;  %v359_v4 = vld [vmem:[%s1864_s7 + $0x880] sm:$0xff]  ;;  %v361_v5 = vld [vmem:[%s1864_s7 + $0x888] sm:$0xff] }
  0x33   : > { %354 = vst [vmem:[%s1872_s8 + $0x208] sm:$0xff] %v353_v1  ;;  %356 = vst [vmem:[%s1872_s8 + $0x210] sm:$0xff] %v355_v2  ;;  %v363_v6 = vld [vmem:[%s1864_s7 + $0x890] sm:$0xff]  ;;  %v365_v7 = vld [vmem:[%s1864_s7 + $0x898] sm:$0xff] }
  0x34   : > { %358 = vst [vmem:[%s1872_s8 + $0x218] sm:$0xff] %v357_v3  ;;  %360 = vst [vmem:[%s1872_s8 + $0x220] sm:$0xff] %v359_v4  ;;  %v367_v8 = vld [vmem:[%s1864_s7 + $0x900] sm:$0xff]  ;;  %v369_v9 = vld [vmem:[%s1864_s7 + $0x908] sm:$0xff] }
  0x35   : > { %362 = vst [vmem:[%s1872_s8 + $0x228] sm:$0xff] %v361_v5  ;;  %364 = vst [vmem:[%s1872_s8 + $0x230] sm:$0xff] %v363_v6  ;;  %v371_v10 = vld [vmem:[%s1864_s7 + $0x910] sm:$0xff]  ;;  %v373_v11 = vld [vmem:[%s1864_s7 + $0x918] sm:$0xff] }
  0x36   : > { %366 = vst [vmem:[%s1872_s8 + $0x238] sm:$0xff] %v365_v7  ;;  %368 = vst [vmem:[%s1872_s8 + $0x240] sm:$0xff] %v367_v8  ;;  %v375_v12 = vld [vmem:[%s1864_s7 + $0x980] sm:$0xff]  ;;  %v377_v13 = vld [vmem:[%s1864_s7 + $0x988] sm:$0xff] }
  0x37   : > { %370 = vst [vmem:[%s1872_s8 + $0x248] sm:$0xff] %v369_v9  ;;  %372 = vst [vmem:[%s1872_s8 + $0x250] sm:$0xff] %v371_v10  ;;  %v379_v14 = vld [vmem:[%s1864_s7 + $0x990] sm:$0xff]  ;;  %v381_v15 = vld [vmem:[%s1864_s7 + $0x998] sm:$0xff] }
  0x38   : > { %374 = vst [vmem:[%s1872_s8 + $0x258] sm:$0xff] %v373_v11  ;;  %376 = vst [vmem:[%s1872_s8 + $0x260] sm:$0xff] %v375_v12  ;;  %v383_v16 = vld [vmem:[%s1864_s7 + $0xa00] sm:$0xff]  ;;  %v385_v17 = vld [vmem:[%s1864_s7 + $0xa08] sm:$0xff] }
  0x39   : > { %378 = vst [vmem:[%s1872_s8 + $0x268] sm:$0xff] %v377_v13  ;;  %380 = vst [vmem:[%s1872_s8 + $0x270] sm:$0xff] %v379_v14  ;;  %v387_v18 = vld [vmem:[%s1864_s7 + $0xa10] sm:$0xff]  ;;  %v389_v19 = vld [vmem:[%s1864_s7 + $0xa18] sm:$0xff] }
  0x3a   : > { %382 = vst [vmem:[%s1872_s8 + $0x278] sm:$0xff] %v381_v15  ;;  %384 = vst [vmem:[%s1872_s8 + $0x280] sm:$0xff] %v383_v16  ;;  %v391_v20 = vld [vmem:[%s1864_s7 + $0xa80] sm:$0xff]  ;;  %v393_v21 = vld [vmem:[%s1864_s7 + $0xa88] sm:$0xff] }
  0x3b   : > { %386 = vst [vmem:[%s1872_s8 + $0x288] sm:$0xff] %v385_v17  ;;  %388 = vst [vmem:[%s1872_s8 + $0x290] sm:$0xff] %v387_v18  ;;  %v395_v22 = vld [vmem:[%s1864_s7 + $0xa90] sm:$0xff]  ;;  %v397_v23 = vld [vmem:[%s1864_s7 + $0xa98] sm:$0xff] }
  0x3c   : > { %390 = vst [vmem:[%s1872_s8 + $0x298] sm:$0xff] %v389_v19  ;;  %392 = vst [vmem:[%s1872_s8 + $0x2a0] sm:$0xff] %v391_v20  ;;  %v399_v24 = vld [vmem:[%s1864_s7 + $0xb00] sm:$0xff]  ;;  %v401_v25 = vld [vmem:[%s1864_s7 + $0xb08] sm:$0xff] }
  0x3d   : > { %394 = vst [vmem:[%s1872_s8 + $0x2a8] sm:$0xff] %v393_v21  ;;  %396 = vst [vmem:[%s1872_s8 + $0x2b0] sm:$0xff] %v395_v22  ;;  %v403_v26 = vld [vmem:[%s1864_s7 + $0xb10] sm:$0xff]  ;;  %v405_v27 = vld [vmem:[%s1864_s7 + $0xb18] sm:$0xff] }
  0x3e   : > { %398 = vst [vmem:[%s1872_s8 + $0x2b8] sm:$0xff] %v397_v23  ;;  %400 = vst [vmem:[%s1872_s8 + $0x2c0] sm:$0xff] %v399_v24  ;;  %v407_v28 = vld [vmem:[%s1864_s7 + $0xb80] sm:$0xff]  ;;  %v409_v29 = vld [vmem:[%s1864_s7 + $0xb88] sm:$0xff] }
  0x3f   : > { %402 = vst [vmem:[%s1872_s8 + $0x2c8] sm:$0xff] %v401_v25  ;;  %404 = vst [vmem:[%s1872_s8 + $0x2d0] sm:$0xff] %v403_v26  ;;  %v411_v30 = vld [vmem:[%s1864_s7 + $0xb90] sm:$0xff]  ;;  %v413_v31 = vld [vmem:[%s1864_s7 + $0xb98] sm:$0xff] }
  0x40   : > { %406 = vst [vmem:[%s1872_s8 + $0x2d8] sm:$0xff] %v405_v27  ;;  %408 = vst [vmem:[%s1872_s8 + $0x2e0] sm:$0xff] %v407_v28  ;;  %v415_v32 = vld [vmem:[%s1864_s7 + $0xc00] sm:$0xff]  ;;  %v417_v33 = vld [vmem:[%s1864_s7 + $0xc08] sm:$0xff] }
  0x41   : > { %410 = vst [vmem:[%s1872_s8 + $0x2e8] sm:$0xff] %v409_v29  ;;  %412 = vst [vmem:[%s1872_s8 + $0x2f0] sm:$0xff] %v411_v30  ;;  %v419_v34 = vld [vmem:[%s1864_s7 + $0xc10] sm:$0xff]  ;;  %v421_v35 = vld [vmem:[%s1864_s7 + $0xc18] sm:$0xff] }
  0x42   : > { %414 = vst [vmem:[%s1872_s8 + $0x2f8] sm:$0xff] %v413_v31  ;;  %416 = vst [vmem:[%s1872_s8 + $0x300] sm:$0xff] %v415_v32  ;;  %v423_v36 = vld [vmem:[%s1864_s7 + $0xc80] sm:$0xff]  ;;  %v425_v37 = vld [vmem:[%s1864_s7 + $0xc88] sm:$0xff] }
  0x43   : > { %418 = vst [vmem:[%s1872_s8 + $0x308] sm:$0xff] %v417_v33  ;;  %420 = vst [vmem:[%s1872_s8 + $0x310] sm:$0xff] %v419_v34  ;;  %v427_v38 = vld [vmem:[%s1864_s7 + $0xc90] sm:$0xff]  ;;  %v429_v39 = vld [vmem:[%s1864_s7 + $0xc98] sm:$0xff] }
  0x44   : > { %422 = vst [vmem:[%s1872_s8 + $0x318] sm:$0xff] %v421_v35  ;;  %424 = vst [vmem:[%s1872_s8 + $0x320] sm:$0xff] %v423_v36  ;;  %v431_v40 = vld [vmem:[%s1864_s7 + $0xd00] sm:$0xff]  ;;  %v433_v41 = vld [vmem:[%s1864_s7 + $0xd08] sm:$0xff] }
  0x45   : > { %426 = vst [vmem:[%s1872_s8 + $0x328] sm:$0xff] %v425_v37  ;;  %428 = vst [vmem:[%s1872_s8 + $0x330] sm:$0xff] %v427_v38  ;;  %v435_v42 = vld [vmem:[%s1864_s7 + $0xd10] sm:$0xff]  ;;  %v437_v43 = vld [vmem:[%s1864_s7 + $0xd18] sm:$0xff] }
  0x46   : > { %430 = vst [vmem:[%s1872_s8 + $0x338] sm:$0xff] %v429_v39  ;;  %432 = vst [vmem:[%s1872_s8 + $0x340] sm:$0xff] %v431_v40 }
  0x47   : > { %434 = vst [vmem:[%s1872_s8 + $0x348] sm:$0xff] %v433_v41  ;;  %436 = vst [vmem:[%s1872_s8 + $0x350] sm:$0xff] %v435_v42 }
  0x48   : > { %438 = vst [vmem:[%s1872_s8 + $0x358] sm:$0xff] %v437_v43 }
  0x49 PF: > { %p1563_p6 = scmp.ge.s32.totalorder %s1787_s22, 1  ;;  %p443_p7 = scmp.lt.s32.totalorder %s1787_s22, 5 }
  0x4b   : > { %p444_p8 = pnand %p1563_p6, %p443_p7 }
  0x4c   : > { %s450_s9 = sand.u32 (!%p444_p8), 1, %s1771_s18   ;;  %s1564_s10 = sshll.u32 (!%p444_p8), %s1779_s20, 3 }
  0x4d   : > { %447 = sbr.rel (%p444_p8) target bundleno = 576 (0x240), region = 51  ;;  %p493_p9 = scmp.lt.s32.totalorder (!%p444_p8), %s1564_s10, 31 }
  0x4e   : > { %s1695_s11 = smul.u32 (!%p444_p8), 864, %s450_s9  ;;  %p1566_p10 = scmp.ne.s32.totalorder (!%p444_p8), %s1779_s20, 0 }
  0x50   : > { %s2093_s16 = scalar_lea.vmem (!%p444_p8), [#allocation2], %s1695_s11 }
  0x54   : > { %s2294_s10 = smov (!%p493_p9, %s1564_s10), 31  ;;  %512 = sbr.rel (%p1566_p10) target bundleno = 91 (0x5b), region = 59 }
  0x55   : > { %s1565_s12 = sshll.u32 %s2294_s10, 3  ;;  %vm513_vm0 = vcmask (!%p1566_p10), 7168   ;;  %v1789_v44 = vmov (!%p1566_p10), 0.0  }
  0x56   : > { %s2091_s15 = scalar_lea.vmem %s2284_s3, %s1565_s12  ;;  %514 = vst.msk [vmem:[%s2285_s4] sm:$0xff] (!%p1566_p10), %vm513_vm0, %v1789_v44  ;;  %515 = vst.msk [vmem:[%s2286_s5] sm:$0xff] (!%p1566_p10), %vm513_vm0, %v1789_v44 }
  0x5b PF: > { %v517_v45 = vld [vmem:[%s2093_s16] sm:$0xff]  ;;  %v518_v47 = vld [vmem:[%s2093_s16 + $0x8] sm:$0xff]  ;;  %v1790_v53 = vmov 0   ;;  %vm1177_vm1 = vcmask 719872   ;;  %vm1181_vm2 = vcmask 1043456   ;;  %vm1389_vm3 = vcmask 7168  }
  0x5c   : > { %v521_v46 = vld [vmem:[%s2093_s16 + $0x20] sm:$0xff]  ;;  %v522_v49 = vld [vmem:[%s2093_s16 + $0x28] sm:$0xff]  ;;  %1738 = vset.pattern.permute.xlu0 %v1790_v53 }
  0x5d   : > { %v1570_v48 = vcombine.high %v517_v45, %v521_v46  ;;  %v1569_v50 = vcombine.low %v517_v45, %v521_v46  ;;  %v525_v51 = vld [vmem:[%s2093_s16 + $0x40] sm:$0xff]  ;;  %v1572_v54 = vcombine.high %v518_v47, %v522_v49  ;;  %v1571_v55 = vcombine.low %v518_v47, %v522_v49  ;;  %v526_v57 = vld [vmem:[%s2093_s16 + $0x48] sm:$0xff] }
  0x5e   : > { %v529_v52 = vld [vmem:[%s2093_s16 + $0x60] sm:$0xff]  ;;  %v530_v58 = vld [vmem:[%s2093_s16 + $0x68] sm:$0xff] }
  0x5f   : > { %v1578_v56 = vcombine.high %v525_v51, %v529_v52  ;;  %v533_v59 = vld [vmem:[%s2093_s16 + $0x80] sm:$0xff]  ;;  %1206 = vmatprep.subr.bf16.mxu0 %v1570_v48  ;;  %v1580_v60 = vcombine.high %v526_v57, %v530_v58  ;;  %v534_v62 = vld [vmem:[%s2093_s16 + $0x88] sm:$0xff]  ;;  %1247 = vmatprep.subr.bf16.mxu1 %v1572_v54  ;;  %v1577_v0 = vcombine.low %v525_v51, %v529_v52 }
  0x60   : > { %v537_v61 = vld [vmem:[%s2093_s16 + $0xa0] sm:$0xff]  ;;  %v538_v63 = vld [vmem:[%s2093_s16 + $0xa8] sm:$0xff]  ;;  %1207 = vmatpush1.bf16.msra.mxu0 %v1569_v50  ;;  %1248 = vmatpush1.bf16.msra.mxu1 %v1571_v55  ;;  %v1579_v1 = vcombine.low %v526_v57, %v530_v58 }
  0x61   : > { %1208 = vmatprep.subr.bf16.mxu0 %v1578_v56  ;;  %v1586_v2 = vcombine.high %v533_v59, %v537_v61  ;;  %1249 = vmatprep.subr.bf16.mxu1 %v1580_v60  ;;  %v1588_v3 = vcombine.high %v534_v62, %v538_v63  ;;  %v541_v4 = vld [vmem:[%s2093_s16 + $0xc0] sm:$0xff]  ;;  %v542_v6 = vld [vmem:[%s2093_s16 + $0xc8] sm:$0xff]  ;;  %v1585_v8 = vcombine.low %v533_v59, %v537_v61 }
  0x62   : > { %v545_v5 = vld [vmem:[%s2093_s16 + $0xe0] sm:$0xff]  ;;  %v546_v7 = vld [vmem:[%s2093_s16 + $0xe8] sm:$0xff]  ;;  %v1587_v9 = vcombine.low %v534_v62, %v538_v63 }
  0x63   : > { %v1594_v10 = vcombine.high %v541_v4, %v545_v5  ;;  %v1596_v11 = vcombine.high %v542_v6, %v546_v7  ;;  %v549_v12 = vld [vmem:[%s2093_s16 + $0x100] sm:$0xff]  ;;  %v550_v14 = vld [vmem:[%s2093_s16 + $0x108] sm:$0xff]  ;;  %v1593_v16 = vcombine.low %v541_v4, %v545_v5  ;;  %v1595_v17 = vcombine.low %v542_v6, %v546_v7 }
  0x64   : > { %1209 = vmatpush1.bf16.msra.mxu0 %v1577_v0  ;;  %1250 = vmatpush1.bf16.msra.mxu1 %v1579_v1  ;;  %v553_v13 = vld [vmem:[%s2093_s16 + $0x120] sm:$0xff]  ;;  %v554_v15 = vld [vmem:[%s2093_s16 + $0x128] sm:$0xff] }
  0x65   : > { %1210 = vmatprep.subr.bf16.mxu0 %v1586_v2  ;;  %1251 = vmatprep.subr.bf16.mxu1 %v1588_v3  ;;  %v1602_v18 = vcombine.high %v549_v12, %v553_v13  ;;  %v1604_v19 = vcombine.high %v550_v14, %v554_v15  ;;  %v557_v20 = vld [vmem:[%s2093_s16 + $0x140] sm:$0xff]  ;;  %v558_v22 = vld [vmem:[%s2093_s16 + $0x148] sm:$0xff]  ;;  %v1601_v24 = vcombine.low %v549_v12, %v553_v13 }
  0x66   : > { %v561_v21 = vld [vmem:[%s2093_s16 + $0x160] sm:$0xff]  ;;  %v562_v23 = vld [vmem:[%s2093_s16 + $0x168] sm:$0xff]  ;;  %v1603_v25 = vcombine.low %v550_v14, %v554_v15 }
  0x67   : > { %v1610_v26 = vcombine.high %v557_v20, %v561_v21  ;;  %v1612_v27 = vcombine.high %v558_v22, %v562_v23  ;;  %v565_v28 = vld [vmem:[%s2093_s16 + $0x180] sm:$0xff]  ;;  %v2131_v30 = vld [vmem:[%s2282_s1] sm:$0xff]  ;;  %v1609_v34 = vcombine.low %v557_v20, %v561_v21  ;;  %v1611_v35 = vcombine.low %v558_v22, %v562_v23 }
  0x68   : > { %1211 = vmatpush1.bf16.msra.mxu0 %v1585_v8  ;;  %1252 = vmatpush1.bf16.msra.mxu1 %v1587_v9  ;;  %v569_v29 = vld [vmem:[%s2093_s16 + $0x1a0] sm:$0xff]  ;;  %v566_v31 = vld [vmem:[%s2093_s16 + $0x188] sm:$0xff]  ;;  %v2137_v33 = vcombine.high %v2131_v30, %v2131_v30 }
  0x69   : > { %1212 = vmatprep.subr.bf16.mxu0 %v1594_v10  ;;  %1253 = vmatprep.subr.bf16.mxu1 %v1596_v11  ;;  %v570_v32 = vld [vmem:[%s2093_s16 + $0x1a8] sm:$0xff]  ;;  %v1618_v36 = vcombine.high %v565_v28, %v569_v29  ;;  %v573_v38 = vld [vmem:[%s2093_s16 + $0x1c0] sm:$0xff]  ;;  %v1617_v42 = vcombine.low %v565_v28, %v569_v29 }
  0x6a   : > { %v1620_v37 = vcombine.high %v566_v31, %v570_v32  ;;  %v577_v39 = vld [vmem:[%s2093_s16 + $0x1e0] sm:$0xff]  ;;  %1682 = vmatprep.mubr.msk.bf16.mxu0 %vm1177_vm1, %v2137_v33  ;;  %v574_v40 = vld [vmem:[%s2093_s16 + $0x1c8] sm:$0xff]  ;;  %1684 = vmatprep.mubr.msk.bf16.mxu1 %vm1177_vm1, %v2137_v33  ;;  %v1619_v43 = vcombine.low %v566_v31, %v570_v32  ;;  %v519_v32 = vld [vmem:[%s2093_s16 + $0x10] sm:$0xff] }
  0x6b   : > { %v578_v41 = vld [vmem:[%s2093_s16 + $0x1e8] sm:$0xff]  ;;  %v1626_v44 = vcombine.high %v573_v38, %v577_v39  ;;  %v581_v46 = vld [vmem:[%s2093_s16 + $0x200] sm:$0xff]  ;;  %v1625_v50 = vcombine.low %v573_v38, %v577_v39 }
  0x6c   : > { %1213 = vmatpush1.bf16.msra.mxu0 %v1593_v16  ;;  %1254 = vmatpush1.bf16.msra.mxu1 %v1595_v17  ;;  %v1628_v45 = vcombine.high %v574_v40, %v578_v41  ;;  %v585_v47 = vld [vmem:[%s2093_s16 + $0x220] sm:$0xff]  ;;  %v582_v48 = vld [vmem:[%s2093_s16 + $0x208] sm:$0xff]  ;;  %v1627_v51 = vcombine.low %v574_v40, %v578_v41  ;;  %v527_v41 = vld [vmem:[%s2093_s16 + $0x50] sm:$0xff] }
  0x6d   : > { %1214 = vmatprep.subr.bf16.mxu0 %v1602_v18  ;;  %1255 = vmatprep.subr.bf16.mxu1 %v1604_v19  ;;  %v586_v49 = vld [vmem:[%s2093_s16 + $0x228] sm:$0xff]  ;;  %v1634_v52 = vcombine.high %v581_v46, %v585_v47  ;;  %v589_v54 = vld [vmem:[%s2093_s16 + $0x240] sm:$0xff]  ;;  %v1633_v58 = vcombine.low %v581_v46, %v585_v47 }
  0x6e   : > { %v1636_v53 = vcombine.high %v582_v48, %v586_v49  ;;  %v593_v55 = vld [vmem:[%s2093_s16 + $0x260] sm:$0xff]  ;;  %v590_v56 = vld [vmem:[%s2093_s16 + $0x248] sm:$0xff]  ;;  %v1635_v59 = vcombine.low %v582_v48, %v586_v49 }
  0x6f   : > { %v594_v57 = vld [vmem:[%s2093_s16 + $0x268] sm:$0xff]  ;;  %v1642_v60 = vcombine.high %v589_v54, %v593_v55  ;;  %v597_v62 = vld [vmem:[%s2093_s16 + $0x280] sm:$0xff]  ;;  %v1641_v2 = vcombine.low %v589_v54, %v593_v55 }
  0x70   : > { %1215 = vmatpush1.bf16.msra.mxu0 %v1601_v24  ;;  %1256 = vmatpush1.bf16.msra.mxu1 %v1603_v25  ;;  %v1644_v61 = vcombine.high %v590_v56, %v594_v57  ;;  %v601_v63 = vld [vmem:[%s2093_s16 + $0x2a0] sm:$0xff]  ;;  %v598_v0 = vld [vmem:[%s2093_s16 + $0x288] sm:$0xff]  ;;  %v1643_v4 = vcombine.low %v590_v56, %v594_v57  ;;  %v543_v57 = vld [vmem:[%s2093_s16 + $0xd0] sm:$0xff] }
  0x71   : > { %1216 = vmatprep.subr.bf16.mxu0 %v1610_v26  ;;  %1257 = vmatprep.subr.bf16.mxu1 %v1612_v27  ;;  %v602_v1 = vld [vmem:[%s2093_s16 + $0x2a8] sm:$0xff]  ;;  %v1650_v5 = vcombine.high %v597_v62, %v601_v63  ;;  %v605_v7 = vld [vmem:[%s2093_s16 + $0x2c0] sm:$0xff]  ;;  %v1649_v11 = vcombine.low %v597_v62, %v601_v63 }
  0x72   : > { %v625_v3 = vld [vmem:[%s2283_s2] sm:$0xff]  ;;  %v1652_v6 = vcombine.high %v598_v0, %v602_v1  ;;  %v609_v8 = vld [vmem:[%s2093_s16 + $0x2e0] sm:$0xff]  ;;  %v1651_v12 = vcombine.low %v598_v0, %v602_v1  ;;  %v551_v1 = vld [vmem:[%s2093_s16 + $0x110] sm:$0xff] }
  0x73   : > { %628 = vperm.xlu0 %1738, %v625_v3   ;;  %v606_v9 = vld [vmem:[%s2093_s16 + $0x2c8] sm:$0xff]  ;;  %v1658_v13 = vcombine.high %v605_v7, %v609_v8  ;;  %v613_v15 = vld [vmem:[%s2093_s16 + $0x300] sm:$0xff]  ;;  %v1657_v19 = vcombine.low %v605_v7, %v609_v8  ;;  %v552_v3 = vld [vmem:[%s2093_s16 + $0x118] sm:$0xff] }
  0x74   : > { %1217 = vmatpush1.bf16.msra.mxu0 %v1609_v34  ;;  %1258 = vmatpush1.bf16.msra.mxu1 %v1611_v35  ;;  %v610_v10 = vld [vmem:[%s2093_s16 + $0x2e8] sm:$0xff]  ;;  %v617_v16 = vld [vmem:[%s2093_s16 + $0x320] sm:$0xff]  ;;  %v523_v34 = vld [vmem:[%s2093_s16 + $0x30] sm:$0xff] }
  0x75   : > { %1218 = vmatprep.subr.bf16.mxu0 %v1618_v36  ;;  %1259 = vmatprep.subr.bf16.mxu1 %v1620_v37  ;;  %v1660_v14 = vcombine.high %v606_v9, %v610_v10  ;;  %v614_v17 = vld [vmem:[%s2093_s16 + $0x308] sm:$0xff]  ;;  %v1659_v20 = vcombine.low %v606_v9, %v610_v10  ;;  %v1666_v21 = vcombine.high %v613_v15, %v617_v16  ;;  %v621_v23 = vld [vmem:[%s2093_s16 + $0x340] sm:$0xff]  ;;  %v520_v35 = vld [vmem:[%s2093_s16 + $0x18] sm:$0xff] }
  0x76   : > { %v618_v18 = vld [vmem:[%s2093_s16 + $0x328] sm:$0xff]  ;;  %v1665_v25 = vcombine.low %v613_v15, %v617_v16  ;;  %v1674_v27 = vcombine.high %v621_v23, %v621_v23  ;;  %v1673_v28 = vcombine.low %v621_v23, %v621_v23  ;;  %v524_v36 = vld [vmem:[%s2093_s16 + $0x38] sm:$0xff]  ;;  %v1574_v38 = vcombine.high %v519_v32, %v523_v34  ;;  %v559_v8 = vld [vmem:[%s2093_s16 + $0x150] sm:$0xff] }
  0x77   : > { %v1668_v22 = vcombine.high %v614_v17, %v618_v18  ;;  %v622_v24 = vld [vmem:[%s2093_s16 + $0x348] sm:$0xff]  ;;  %v1667_v26 = vcombine.low %v614_v17, %v618_v18  ;;  %v1576_v40 = vcombine.high %v520_v35, %v524_v36  ;;  %v1573_v46 = vcombine.low %v519_v32, %v523_v34  ;;  %v563_v9 = vld [vmem:[%s2093_s16 + $0x170] sm:$0xff]  ;;  %v560_v10 = vld [vmem:[%s2093_s16 + $0x158] sm:$0xff] }
  0x78   : > { %1219 = vmatpush1.bf16.msra.mxu0 %v1617_v42  ;;  %1260 = vmatpush1.bf16.msra.mxu1 %v1619_v43  ;;  %v1676_v29 = vcombine.high %v622_v24, %v622_v24  ;;  %v1675_v31 = vcombine.low %v622_v24, %v622_v24  ;;  %v1183_v37 = vsel %vm1181_vm2, %v1673_v28, 0  ;;  %v531_v42 = vld [vmem:[%s2093_s16 + $0x70] sm:$0xff]  ;;  %v2184_v43 = vcombine.low %v2131_v30, %v2131_v30  ;;  %v536_v30 = vld [vmem:[%s2093_s16 + $0x98] sm:$0xff] }
  0x79   : > { %1220 = vmatprep.subr.bf16.mxu0 %v1626_v44  ;;  %1261 = vmatprep.subr.bf16.mxu1 %v1628_v45  ;;  %v528_v44 = vld [vmem:[%s2093_s16 + $0x58] sm:$0xff]  ;;  %v1575_v47 = vcombine.low %v520_v35, %v524_v36  ;;  %v1582_v48 = vcombine.high %v527_v41, %v531_v42  ;;  %v567_v16 = vld [vmem:[%s2093_s16 + $0x190] sm:$0xff] }
  0x7a   : > { %v1189_v39 = vsel %vm1181_vm2, %v1675_v31, 0  ;;  %v532_v45 = vld [vmem:[%s2093_s16 + $0x78] sm:$0xff]  ;;  %v571_v17 = vld [vmem:[%s2093_s16 + $0x1b0] sm:$0xff] }
  0x7b   : > { %v1584_v49 = vcombine.high %v528_v44, %v532_v45  ;;  %v1583_v54 = vcombine.low %v528_v44, %v532_v45  ;;  %v568_v18 = vld [vmem:[%s2093_s16 + $0x198] sm:$0xff]  ;;  %v575_v24 = vld [vmem:[%s2093_s16 + $0x1d0] sm:$0xff]  ;;  %v1621_v28 = vcombine.low %v567_v16, %v571_v17 }
  0x7c   : > { %1221 = vmatpush1.bf16.msra.mxu0 %v1625_v50  ;;  %1262 = vmatpush1.bf16.msra.mxu1 %v1627_v51  ;;  %v535_v50 = vld [vmem:[%s2093_s16 + $0x90] sm:$0xff]  ;;  %v584_v36 = vld [vmem:[%s2093_s16 + $0x218] sm:$0xff] }
  0x7d   : > { %1222 = vmatprep.subr.bf16.mxu0 %v1634_v52  ;;  %1263 = vmatprep.subr.bf16.mxu1 %v1636_v53  ;;  %v539_v51 = vld [vmem:[%s2093_s16 + $0xb0] sm:$0xff]  ;;  %v540_v52 = vld [vmem:[%s2093_s16 + $0xb8] sm:$0xff]  ;;  %v1581_v53 = vcombine.low %v527_v41, %v531_v42 }
  0x7e   : > { %v1590_v55 = vcombine.high %v535_v50, %v539_v51  ;;  %v1592_v56 = vcombine.high %v536_v30, %v540_v52  ;;  %v1591_v62 = vcombine.low %v536_v30, %v540_v52  ;;  %v583_v34 = vld [vmem:[%s2093_s16 + $0x210] sm:$0xff]  ;;  %v592_v45 = vld [vmem:[%s2093_s16 + $0x258] sm:$0xff] }
  0x7f   : > { %v587_v35 = vld [vmem:[%s2093_s16 + $0x230] sm:$0xff]  ;;  %v600_v52 = vld [vmem:[%s2093_s16 + $0x298] sm:$0xff] }
  0x80   : > { %1223 = vmatpush1.bf16.msra.mxu0 %v1633_v58  ;;  %1264 = vmatpush1.bf16.msra.mxu1 %v1635_v59  ;;  %v547_v58 = vld [vmem:[%s2093_s16 + $0xf0] sm:$0xff]  ;;  %v544_v59 = vld [vmem:[%s2093_s16 + $0xd8] sm:$0xff] }
  0x81   : > { %1224 = vmatprep.subr.bf16.mxu0 %v1642_v60  ;;  %1265 = vmatprep.subr.bf16.mxu1 %v1644_v61  ;;  %v548_v60 = vld [vmem:[%s2093_s16 + $0xf8] sm:$0xff]  ;;  %v1589_v61 = vcombine.low %v535_v50, %v539_v51  ;;  %v1598_v63 = vcombine.high %v543_v57, %v547_v58  ;;  %v591_v42 = vld [vmem:[%s2093_s16 + $0x250] sm:$0xff] }
  0x82   : > { %v1600_v0 = vcombine.high %v544_v59, %v548_v60  ;;  %v595_v44 = vld [vmem:[%s2093_s16 + $0x270] sm:$0xff] }
  0x83   : > { %v599_v51 = vld [vmem:[%s2093_s16 + $0x290] sm:$0xff] }
  0x84   : > { %1225 = vmatpush1.bf16.msra.mxu0 %v1641_v2  ;;  %1266 = vmatpush1.bf16.msra.mxu1 %v1643_v4  ;;  %v555_v2 = vld [vmem:[%s2093_s16 + $0x130] sm:$0xff]  ;;  %v556_v4 = vld [vmem:[%s2093_s16 + $0x138] sm:$0xff] }
  0x85   : > { %1226 = vmatprep.subr.bf16.mxu0 %v1650_v5  ;;  %1267 = vmatprep.subr.bf16.mxu1 %v1652_v6  ;;  %v1597_v5 = vcombine.low %v543_v57, %v547_v58  ;;  %v1606_v6 = vcombine.high %v551_v1, %v555_v2  ;;  %v1608_v7 = vcombine.high %v552_v3, %v556_v4  ;;  %v603_v30 = vld [vmem:[%s2093_s16 + $0x2b0] sm:$0xff] }
  0x86   : > { %v607_v58 = vld [vmem:[%s2093_s16 + $0x2d0] sm:$0xff] }
  0x88   : > { %1227 = vmatpush1.bf16.msra.mxu0 %v1649_v11  ;;  %1268 = vmatpush1.bf16.msra.mxu1 %v1651_v12  ;;  %v564_v11 = vld [vmem:[%s2093_s16 + $0x178] sm:$0xff]  ;;  %v1605_v12 = vcombine.low %v551_v1, %v555_v2  ;;  %v615_v2 = vld [vmem:[%s2093_s16 + $0x310] sm:$0xff] }
  0x89   : > { %1228 = vmatprep.subr.bf16.mxu0 %v1658_v13  ;;  %1269 = vmatprep.subr.bf16.mxu1 %v1660_v14  ;;  %v1607_v13 = vcombine.low %v552_v3, %v556_v4  ;;  %v1614_v14 = vcombine.high %v559_v8, %v563_v9  ;;  %v1616_v15 = vcombine.high %v560_v10, %v564_v11  ;;  %v619_v3 = vld [vmem:[%s2093_s16 + $0x330] sm:$0xff]  ;;  %v616_v4 = vld [vmem:[%s2093_s16 + $0x318] sm:$0xff] }
  0x8c   : > { %1229 = vmatpush1.bf16.msra.mxu0 %v1657_v19  ;;  %1270 = vmatpush1.bf16.msra.mxu1 %v1659_v20  ;;  %v572_v19 = vld [vmem:[%s2093_s16 + $0x1b8] sm:$0xff]  ;;  %v1613_v20 = vcombine.low %v559_v8, %v563_v9  ;;  %v623_v9 = vld [vmem:[%s2093_s16 + $0x350] sm:$0xff] }
  0x8d   : > { %1230 = vmatprep.subr.bf16.mxu0 %v1666_v21  ;;  %1271 = vmatprep.subr.bf16.mxu1 %v1668_v22  ;;  %v1615_v21 = vcombine.low %v560_v10, %v564_v11  ;;  %v1622_v22 = vcombine.high %v567_v16, %v571_v17  ;;  %v1624_v23 = vcombine.high %v568_v18, %v572_v19  ;;  %v624_v10 = vld [vmem:[%s2093_s16 + $0x358] sm:$0xff] }
  0x8e   : > { %v1669_v11 = vcombine.low %v615_v2, %v619_v3  ;;  %v1679_v16 = vcombine.low %v624_v10, %v624_v10 }
  0x90   : > { %1231 = vmatpush1.bf16.msra.mxu0 %v1665_v25  ;;  %1272 = vmatpush1.bf16.msra.mxu1 %v1667_v26  ;;  %v579_v25 = vld [vmem:[%s2093_s16 + $0x1f0] sm:$0xff]  ;;  %v576_v26 = vld [vmem:[%s2093_s16 + $0x1d8] sm:$0xff] }
  0x91   : > { %1681 = vmatprep.subr.msk.bf16.mxu0 %vm1181_vm2, %v1674_v27  ;;  %1683 = vmatprep.subr.msk.bf16.mxu1 %vm1181_vm2, %v1676_v29  ;;  %v580_v27 = vld [vmem:[%s2093_s16 + $0x1f8] sm:$0xff]  ;;  %v1623_v29 = vcombine.low %v568_v18, %v572_v19  ;;  %v1630_v31 = vcombine.high %v575_v24, %v579_v25  ;;  %v1201_v18 = vsel %vm1181_vm2, %v1679_v16, 0 }
  0x92   : > { %v1632_v32 = vcombine.high %v576_v26, %v580_v27 }
  0x94   : > { %1233 = vmatpush1.bf16.msra.mxu0 %v1183_v37  ;;  %1274 = vmatpush1.bf16.msra.mxu1 %v1189_v39  ;;  %v588_v37 = vld [vmem:[%s2093_s16 + $0x238] sm:$0xff]  ;;  %v1631_v39 = vcombine.low %v576_v26, %v580_v27 }
  0x95   : > { %1288 = vmatprep.subr.bf16.mxu0 %v1574_v38  ;;  %1329 = vmatprep.subr.bf16.mxu1 %v1576_v40  ;;  %v1629_v38 = vcombine.low %v575_v24, %v579_v25  ;;  %v1638_v40 = vcombine.high %v583_v34, %v587_v35  ;;  %v1640_v41 = vcombine.high %v584_v36, %v588_v37 }
  0x97   : > { %1239 = vmatmul.mubr.bf16.vlgmr.msra.gmra.mrb[0].mxu0 %v2184_v43  ;;  %1280 = vmatmul.mubr.bf16.vlgmr.msra.gmra.mrb[0].mxu1 %v2184_v43 }
  0x98   : > { %1289 = vmatpush1.bf16.msra.mxu0 %v1573_v46  ;;  %1330 = vmatpush1.bf16.msra.mxu1 %v1575_v47  ;;  %v596_v46 = vld [vmem:[%s2093_s16 + $0x278] sm:$0xff]  ;;  %v1637_v47 = vcombine.low %v583_v34, %v587_v35 }
  0x99   : > { %1290 = vmatprep.subr.bf16.mxu0 %v1582_v48  ;;  %1331 = vmatprep.subr.bf16.mxu1 %v1584_v49  ;;  %v1639_v48 = vcombine.low %v584_v36, %v588_v37  ;;  %v1646_v49 = vcombine.high %v591_v42, %v595_v44  ;;  %v1648_v50 = vcombine.high %v592_v45, %v596_v46 }
  0x9a   : > { %1686 = vmatprep.mubr.msk.bf16.mxu0 %vm1177_vm1, %v2137_v33  ;;  %1688 = vmatprep.mubr.msk.bf16.mxu1 %vm1177_vm1, %v2137_v33  ;;  %v1599_v33 = vcombine.low %v544_v59, %v548_v60  ;;  %v611_v59 = vld [vmem:[%s2093_s16 + $0x2f0] sm:$0xff]  ;;  %v608_v60 = vld [vmem:[%s2093_s16 + $0x2d8] sm:$0xff] }
  0x9c   : > { %1291 = vmatpush1.bf16.msra.mxu0 %v1581_v53  ;;  %1332 = vmatpush1.bf16.msra.mxu1 %v1583_v54  ;;  %v604_v53 = vld [vmem:[%s2093_s16 + $0x2b8] sm:$0xff]  ;;  %v1645_v54 = vcombine.low %v591_v42, %v595_v44 }
  0x9d   : > { %1292 = vmatprep.subr.bf16.mxu0 %v1590_v55  ;;  %1333 = vmatprep.subr.bf16.mxu1 %v1592_v56  ;;  %v1647_v55 = vcombine.low %v592_v45, %v596_v46  ;;  %v1654_v56 = vcombine.high %v599_v51, %v603_v30  ;;  %v1656_v57 = vcombine.high %v600_v52, %v604_v53 }
  0xa0   : > { %1293 = vmatpush1.bf16.msra.mxu0 %v1589_v61  ;;  %1334 = vmatpush1.bf16.msra.mxu1 %v1591_v62  ;;  %v612_v61 = vld [vmem:[%s2093_s16 + $0x2f8] sm:$0xff]  ;;  %v1653_v62 = vcombine.low %v599_v51, %v603_v30 }
  0xa1   : > { %1294 = vmatprep.subr.bf16.mxu0 %v1598_v63  ;;  %1335 = vmatprep.subr.bf16.mxu1 %v1600_v0  ;;  %v1655_v63 = vcombine.low %v600_v52, %v604_v53  ;;  %v1662_v0 = vcombine.high %v607_v58, %v611_v59  ;;  %v1664_v1 = vcombine.high %v608_v60, %v612_v61 }
  0xa4   : > { %1295 = vmatpush1.bf16.msra.mxu0 %v1597_v5  ;;  %1336 = vmatpush1.bf16.msra.mxu1 %v1599_v33  ;;  %v620_v5 = vld [vmem:[%s2093_s16 + $0x338] sm:$0xff]  ;;  %v1661_v33 = vcombine.low %v607_v58, %v611_v59 }
  0xa5   : > { %1296 = vmatprep.subr.bf16.mxu0 %v1606_v6  ;;  %1337 = vmatprep.subr.bf16.mxu1 %v1608_v7  ;;  %v1663_v6 = vcombine.low %v608_v60, %v612_v61  ;;  %v1670_v7 = vcombine.high %v615_v2, %v619_v3  ;;  %v1672_v8 = vcombine.high %v616_v4, %v620_v5  ;;  %v1378_v3 = vld [vmem:[%s2285_s4] sm:$0xff] }
  0xa8   : > { %1297 = vmatpush1.bf16.msra.mxu0 %v1605_v12  ;;  %1338 = vmatpush1.bf16.msra.mxu1 %v1607_v13  ;;  %v1671_v12 = vcombine.low %v616_v4, %v620_v5  ;;  %v1678_v13 = vcombine.high %v623_v9, %v623_v9  ;;  %v1391_v5 = vld [vmem:[%s2286_s5] sm:$0xff] }
  0xa9   : > { %1298 = vmatprep.subr.bf16.mxu0 %v1614_v14  ;;  %1339 = vmatprep.subr.bf16.mxu1 %v1616_v15  ;;  %v1677_v14 = vcombine.low %v623_v9, %v623_v9  ;;  %v1680_v15 = vcombine.high %v624_v10, %v624_v10 }
  0xab   : > { %v1195_v17 = vsel %vm1181_vm2, %v1677_v14, 0 }
  0xac   : > { %1299 = vmatpush1.bf16.msra.mxu0 %v1613_v20  ;;  %1340 = vmatpush1.bf16.msra.mxu1 %v1615_v21 }
  0xad   : > { %1300 = vmatprep.subr.bf16.mxu0 %v1622_v22  ;;  %1341 = vmatprep.subr.bf16.mxu1 %v1624_v23 }
  0xb0   : > { %1301 = vmatpush1.bf16.msra.mxu0 %v1621_v28  ;;  %1342 = vmatpush1.bf16.msra.mxu1 %v1623_v29 }
  0xb1   : > { %1302 = vmatprep.subr.bf16.mxu0 %v1630_v31  ;;  %1343 = vmatprep.subr.bf16.mxu1 %v1632_v32 }
  0xb4   : > { %1303 = vmatpush1.bf16.msra.mxu0 %v1629_v38  ;;  %1344 = vmatpush1.bf16.msra.mxu1 %v1631_v39 }
  0xb5   : > { %1304 = vmatprep.subr.bf16.mxu0 %v1638_v40  ;;  %1345 = vmatprep.subr.bf16.mxu1 %v1640_v41 }
  0xb8   : > { %1305 = vmatpush1.bf16.msra.mxu0 %v1637_v47  ;;  %1346 = vmatpush1.bf16.msra.mxu1 %v1639_v48 }
  0xb9   : > { %1306 = vmatprep.subr.bf16.mxu0 %v1646_v49  ;;  %1347 = vmatprep.subr.bf16.mxu1 %v1648_v50 }
  0xbc   : > { %1307 = vmatpush1.bf16.msra.mxu0 %v1645_v54  ;;  %1348 = vmatpush1.bf16.msra.mxu1 %v1647_v55 }
  0xbd   : > { %1308 = vmatprep.subr.bf16.mxu0 %v1654_v56  ;;  %1349 = vmatprep.subr.bf16.mxu1 %v1656_v57 }
  0xc0   : > { %1309 = vmatpush1.bf16.msra.mxu0 %v1653_v62  ;;  %1350 = vmatpush1.bf16.msra.mxu1 %v1655_v63 }
  0xc1   : > { %1310 = vmatprep.subr.bf16.mxu0 %v1662_v0  ;;  %1351 = vmatprep.subr.bf16.mxu1 %v1664_v1 }
  0xc4   : > { %1311 = vmatpush1.bf16.msra.mxu0 %v1661_v33  ;;  %1352 = vmatpush1.bf16.msra.mxu1 %v1663_v6 }
  0xc5   : > { %1312 = vmatprep.subr.bf16.mxu0 %v1670_v7  ;;  %1353 = vmatprep.subr.bf16.mxu1 %v1672_v8 }
  0xc8   : > { %1313 = vmatpush1.bf16.msra.mxu0 %v1669_v11  ;;  %1354 = vmatpush1.bf16.msra.mxu1 %v1671_v12 }
  0xc9   : > { %1685 = vmatprep.subr.msk.bf16.mxu0 %vm1181_vm2, %v1678_v13  ;;  %1687 = vmatprep.subr.msk.bf16.mxu1 %vm1181_vm2, %v1680_v15 }
  0xcc   : > { %1315 = vmatpush1.bf16.msra.mxu0 %v1195_v17  ;;  %1356 = vmatpush1.bf16.msra.mxu1 %v1201_v18 }
  0xcf   : > { %1321 = vmatmul.mubr.bf16.vlgmr.msra.gmra.mrb[4].mxu0 %v2184_v43  ;;  %1362 = vmatmul.mubr.bf16.vlgmr.msra.gmra.mrb[4].mxu1 %v2184_v43 }
  0xf2   : > { %v629_v19 = vpop.permute.xlu0 %628 }
 0x16a   : > { %v1240_v20 = vpop.f32.mrb[0].mxu0  ;;  %v1281_v23 = vpop.f32.mrb[0].mxu1 }
 0x16b   : > { %v1241_v21 = vadd.f32 %v1240_v20, %v629_v19  ;;  %v1242_v22 = vpop.f32.mrb[1].mxu0  ;;  %v1282_v26 = vadd.f32 %v1281_v23, %v629_v19  ;;  %v1283_v27 = vpop.f32.mrb[1].mxu1 }
 0x16c   : > { %v1243_v24 = vadd.f32 %v1242_v22, %v629_v19  ;;  %v1244_v25 = vpop.f32.mrb[2].mxu0  ;;  %v1284_v31 = vadd.f32 %v1283_v27, %v629_v19  ;;  %v1285_v32 = vpop.f32.mrb[2].mxu1 }
 0x16d   : > { %1370 = vst [vmem:[%s2091_s15] sm:$0xff] %v1241_v21  ;;  %v1392_v28 = vmul.f32 %v1241_v21, %v1241_v21  ;;  %v1245_v29 = vpop.f32.mrb[3].mxu0  ;;  %1372 = vst [vmem:[%s2091_s15 + $0x10] sm:$0xff] %v1282_v26  ;;  %v1394_v43 = vmul.f32 %v1282_v26, %v1282_v26  ;;  %v1286_v36 = vpop.f32.mrb[3].mxu1 }
 0x16e   : > { %1371 = vst [vmem:[%s2091_s15 + $0x8] sm:$0xff] %v1243_v24  ;;  %v1379_v34 = vadd.f32 %v1243_v24, %v1241_v21  ;;  %v1393_v35 = vmul.f32 %v1243_v24, %v1243_v24  ;;  %1373 = vst [vmem:[%s2091_s15 + $0x18] sm:$0xff] %v1284_v31  ;;  %v1395_v39 = vmul.f32 %v1284_v31, %v1284_v31 }
 0x170   : > { %v1400_v37 = vadd.f32 %v1393_v35, %v1392_v28  ;;  %v1380_v38 = vadd.f32 %v1379_v34, %v1282_v26 }
 0x172   : > { %v1401_v40 = vadd.f32 %v1400_v37, %v1394_v43  ;;  %v1381_v41 = vadd.f32 %v1380_v38, %v1284_v31 }
 0x174   : > { %v1402_v42 = vadd.f32 %v1401_v40, %v1395_v39 }
 0x1a2   : > { %v1322_v44 = vpop.f32.mrb[4].mxu0  ;;  %v1363_v46 = vpop.f32.mrb[4].mxu1 }
 0x1a3   : > { %v1323_v45 = vadd.f32 %v1322_v44, %v629_v19  ;;  %v1324_v47 = vpop.f32.mrb[5].mxu0  ;;  %v1364_v48 = vadd.f32 %v1363_v46, %v629_v19  ;;  %v1365_v50 = vpop.f32.mrb[5].mxu1 }
 0x1a4   : > { %v1325_v49 = vadd.f32 %v1324_v47, %v629_v19  ;;  %v1326_v51 = vpop.f32.mrb[6].mxu0  ;;  %v1366_v53 = vadd.f32 %v1365_v50, %v629_v19  ;;  %v1367_v55 = vpop.f32.mrb[6].mxu1 }
 0x1a5   : > { %1374 = vst [vmem:[%s2091_s15 + $0x20] sm:$0xff] %v1323_v45  ;;  %v1382_v30 = vadd.f32 %v1381_v41, %v1323_v45  ;;  %v1396_v52 = vmul.f32 %v1323_v45, %v1323_v45  ;;  %v1327_v54 = vpop.f32.mrb[7].mxu0  ;;  %1376 = vst [vmem:[%s2091_s15 + $0x30] sm:$0xff] %v1364_v48  ;;  %v1368_v57 = vpop.f32.mrb[7].mxu1  ;;  %v1398_v61 = vmul.f32 %v1364_v48, %v1364_v48 }
 0x1a6   : > { %1375 = vst [vmem:[%s2091_s15 + $0x28] sm:$0xff] %v1325_v49  ;;  %v1397_v56 = vmul.f32 %v1325_v49, %v1325_v49  ;;  %1377 = vst [vmem:[%s2091_s15 + $0x38] sm:$0xff] %v1366_v53  ;;  %v1399_v0 = vmul.f32 %v1366_v53, %v1366_v53 }
 0x1a7   : > { %v1383_v58 = vadd.f32 %v1382_v30, %v1325_v49  ;;  %v1403_v59 = vadd.f32 %v1402_v42, %v1396_v52 }
 0x1a9   : > { %v1384_v60 = vadd.f32 %v1383_v58, %v1364_v48  ;;  %v1404_v62 = vadd.f32 %v1403_v59, %v1397_v56 }
 0x1ab   : > { %v1385_v63 = vadd.f32 %v1384_v60, %v1366_v53  ;;  %v1405_v1 = vadd.f32 %v1404_v62, %v1398_v61 }
 0x1ad   : > { %1386 = vadd.xlane.f32.xlu0 %v1385_v63  ;;  %v1406_v2 = vadd.f32 %v1405_v1, %v1399_v0 }
 0x1af   : > { %1407 = vadd.xlane.f32.xlu1 %v1406_v2 }
 0x23a   : > { %v1387_v4 = vpop.xlane.xlu0 %1386 }
 0x23b   : > { %v1388_v33 = vadd.f32 %v1387_v4, %v1378_v3 }
 0x23c   : > { %v1408_v6 = vpop.xlane.xlu1 %1407 }
 0x23d   : > { %1390 = vst.msk [vmem:[%s2285_s4] sm:$0xff] %vm1389_vm3, %v1388_v33  ;;  %v1409_v7 = vadd.f32 %v1408_v6, %v1391_v5 }
 0x23f   : > { %1410 = vst.msk [vmem:[%s2286_s5] sm:$0xff] %vm1389_vm3, %v1409_v7 }
 0x240 PF: > { %s16_s22 = sadd.s32 1, %s1787_s22   ;;  %s2287_s18 = smov %s1775_s19 }
 0x241   : > { %p13_p11 = scmp.ge.s32.totalorder %s16_s22, 6   ;;  %s2288_s19 = smov %s1856_s26 }
 0x242   : > { %s2289_s20 = smov %s1783_s21  ;;  %s2290_s21 = smov %s2292_s23 }
 0x243   :  { %15 = sbr.rel (!%p13_p11) target bundleno = 3 (0x3), region = 118 }

// kernel: _lambda_.62
= control target key start
LH: loop header
LB: loop body
LE: loop exit
PB: predicated region body
PF: predicated region fallthrough
CT: control target
= control target key end

     0   :  { %s617_s15 = smov 0   ;;  %s619_s16 = smov 0   ;;  %s672_s0 = inlined_call_operand.vmem [shape: f32[1,8,4096], index: 0, kind: input, shape index: {}]   ;;  %s673_s1 = inlined_call_operand.vmem [shape: f32[1,8,1], index: 1, kind: input, shape index: {}]   ;;  %s674_s2 = inlined_call_operand.vmem [shape: f32[1,8,1], index: 2, kind: input, shape index: {}]   ;;  %s675_s3 = inlined_call_operand.vmem [shape: f32[1,8,4096], index: 3, kind: input, shape index: {}]   ;;  %s676_s4 = inlined_call_operand.vmem [shape: f32[1,8,4096], index: 4, kind: output, shape index: {}]  }
   0x1   :  { %s621_s17 = smov 0  }
   0x2 LB: > { %s23_s18 = sadd.s32 1, %s585_s16  ;;  %p532_p0 = scmp.ge.s32.totalorder %s589_s17, 1  ;;  %s589_s17 = sphi %s621_s17, %s14_s17   ;;  %s585_s16 = sphi %s619_s16, %s678_s16   ;;  %s581_s15 = sphi %s617_s15, %s677_s15  }
   0x3   : > { %p24_p1 = scmp.ge.s32.totalorder %s23_s18, 4  ;;  %p218_p2 = scmp.lt.s32.totalorder %s589_s17, 5 }
   0x5   : > { %s680_s18 = smov (%p24_p1, %s23_s18), 0  ;;  %p219_p3 = pnand %p532_p0, %p218_p2 }
   0x6   : > { %v315_v0 = vld [vmem:[%s673_s1] sm:$0xff] (!%p219_p3)  ;;  %v591_v1 = vmov (!%p219_p3), 0   ;;  %s533_s23 = sshll.u32 (!%p219_p3), %s581_s15, 3 }
   0x7   : > { %222 = sbr.rel (%p219_p3) target bundleno = 154 (0x9a), region = 36  ;;  %566 = vset.pattern.permute.xlu0 (!%p219_p3), %v591_v1  ;;  %v329_v2 = vld [vmem:[%s674_s2] sm:$0xff] (!%p219_p3)  ;;  %p272_p4 = scmp.lt.s32.totalorder (!%p219_p3), %s533_s23, 31 }
   0x8   : > { %318 = vperm.xlu0 (!%p219_p3), %566, %v315_v0  }
   0xc   : > { %332 = vperm.xlu0 (!%p219_p3), %566, %v329_v2  }
   0xe   : > { %s682_s23 = smov (!%p272_p4, %s533_s23), 31 }
   0xf   : > { %s641_s24 = sshll.u32 %s682_s23, 3 }
  0x10   : > { %s277_s27 = scalar_lea.vmem %s672_s0, %s641_s24  ;;  %s295_s30 = scalar_lea.vmem %s675_s3, %s641_s24 }
  0x11   : > { %v307_v3 = vld [vmem:[%s277_s27] sm:$0xff]  ;;  %v308_v4 = vld [vmem:[%s277_s27 + $0x8] sm:$0xff]  ;;  %v309_v6 = vld [vmem:[%s277_s27 + $0x10] sm:$0xff]  ;;  %s305_s7 = scalar_lea.vmem %s676_s4, %s641_s24 }
  0x12   : > { %v310_v7 = vld [vmem:[%s277_s27 + $0x18] sm:$0xff]  ;;  %v311_v8 = vld [vmem:[%s277_s27 + $0x20] sm:$0xff]  ;;  %v312_v9 = vld [vmem:[%s277_s27 + $0x28] sm:$0xff] }
  0x13   : > { %v313_v10 = vld [vmem:[%s277_s27 + $0x30] sm:$0xff]  ;;  %v314_v11 = vld [vmem:[%s277_s27 + $0x38] sm:$0xff]  ;;  %v343_v16 = vld [vmem:[%s295_s30] sm:$0xff] }
  0x14   : > { %v344_v17 = vld [vmem:[%s295_s30 + $0x8] sm:$0xff]  ;;  %v345_v23 = vld [vmem:[%s295_s30 + $0x10] sm:$0xff]  ;;  %v346_v24 = vld [vmem:[%s295_s30 + $0x18] sm:$0xff] }
  0x15   : > { %v347_v25 = vld [vmem:[%s295_s30 + $0x20] sm:$0xff]  ;;  %v348_v30 = vld [vmem:[%s295_s30 + $0x28] sm:$0xff]  ;;  %v349_v31 = vld [vmem:[%s295_s30 + $0x30] sm:$0xff] }
  0x16   : > { %v350_v32 = vld [vmem:[%s295_s30 + $0x38] sm:$0xff] }
  0x87   : > { %v319_v5 = vpop.permute.xlu0 %318 }
  0x88   : > { %v321_v12 = vmul.f32 %v319_v5, %v307_v3  ;;  %v322_v13 = vmul.f32 %v319_v5, %v308_v4  ;;  %v323_v14 = vmul.f32 %v319_v5, %v309_v6  ;;  %v324_v15 = vmul.f32 %v319_v5, %v310_v7 }
  0x89   : > { %v325_v19 = vmul.f32 %v319_v5, %v311_v8  ;;  %v326_v20 = vmul.f32 %v319_v5, %v312_v9  ;;  %v327_v21 = vmul.f32 %v319_v5, %v313_v10  ;;  %v328_v22 = vmul.f32 %v319_v5, %v314_v11 }
  0x8b   : > { %v333_v18 = vpop.permute.xlu0 %332 }
  0x8c   : > { %v335_v26 = vadd.f32 %v333_v18, %v321_v12  ;;  %v336_v27 = vadd.f32 %v333_v18, %v322_v13  ;;  %v337_v28 = vadd.f32 %v333_v18, %v323_v14  ;;  %v338_v29 = vadd.f32 %v333_v18, %v324_v15 }
  0x8d   : > { %v339_v33 = vadd.f32 %v333_v18, %v325_v19  ;;  %v340_v34 = vadd.f32 %v333_v18, %v326_v20  ;;  %v341_v35 = vadd.f32 %v333_v18, %v327_v21  ;;  %v342_v36 = vadd.f32 %v333_v18, %v328_v22 }
  0x8e   : > { %v351_v37 = vadd.f32 %v343_v16, %v335_v26  ;;  %v352_v38 = vadd.f32 %v344_v17, %v336_v27  ;;  %v353_v39 = vadd.f32 %v345_v23, %v337_v28  ;;  %v354_v40 = vadd.f32 %v346_v24, %v338_v29 }
  0x8f   : > { %v355_v41 = vadd.f32 %v347_v25, %v339_v33  ;;  %v356_v42 = vadd.f32 %v348_v30, %v340_v34  ;;  %v357_v43 = vadd.f32 %v349_v31, %v341_v35  ;;  %v358_v44 = vadd.f32 %v350_v32, %v342_v36 }
  0x90   : > { %vm359_vm0 = vcmp.gt.f32.partialorder %v351_v37, 0.0  ;;  %vm360_vm1 = vcmp.gt.f32.partialorder %v352_v38, 0.0  ;;  %vm361_vm2 = vcmp.gt.f32.partialorder %v353_v39, 0.0  ;;  %vm362_vm3 = vcmp.gt.f32.partialorder %v354_v40, 0.0 }
  0x91   : > { %vm363_vm4 = vcmp.gt.f32.partialorder %v355_v41, 0.0  ;;  %vm364_vm5 = vcmp.gt.f32.partialorder %v356_v42, 0.0  ;;  %vm365_vm6 = vcmp.gt.f32.partialorder %v357_v43, 0.0  ;;  %vm366_vm7 = vcmp.gt.f32.partialorder %v358_v44, 0.0 }
  0x92   : > { %v367_v45 = vmul.f32 0.1, %v351_v37  ;;  %v368_v46 = vmul.f32 0.1, %v352_v38  ;;  %v369_v47 = vmul.f32 0.1, %v353_v39 }
  0x93   : > { %v370_v48 = vmul.f32 0.1, %v354_v40  ;;  %v371_v49 = vmul.f32 0.1, %v355_v41  ;;  %v372_v50 = vmul.f32 0.1, %v356_v42 }
  0x94   : > { %v373_v51 = vmul.f32 0.1, %v357_v43  ;;  %v374_v52 = vmul.f32 0.1, %v358_v44  ;;  %v375_v53 = vsel %vm359_vm0, %v351_v37, %v367_v45  ;;  %v376_v54 = vsel %vm360_vm1, %v352_v38, %v368_v46 }
  0x95   : > { %v377_v55 = vsel %vm361_vm2, %v353_v39, %v369_v47  ;;  %v378_v56 = vsel %vm362_vm3, %v354_v40, %v370_v48  ;;  %v379_v57 = vsel %vm363_vm4, %v355_v41, %v371_v49  ;;  %v380_v58 = vsel %vm364_vm5, %v356_v42, %v372_v50  ;;  %383 = vst [vmem:[%s305_s7] sm:$0xff] %v375_v53 }
  0x96   : > { %384 = vst [vmem:[%s305_s7 + $0x8] sm:$0xff] %v376_v54  ;;  %v381_v59 = vsel %vm365_vm6, %v357_v43, %v373_v51  ;;  %v382_v60 = vsel %vm366_vm7, %v358_v44, %v374_v52  ;;  %385 = vst [vmem:[%s305_s7 + $0x10] sm:$0xff] %v377_v55 }
  0x97   : > { %386 = vst [vmem:[%s305_s7 + $0x18] sm:$0xff] %v378_v56  ;;  %387 = vst [vmem:[%s305_s7 + $0x20] sm:$0xff] %v379_v57 }
  0x98   : > { %388 = vst [vmem:[%s305_s7 + $0x28] sm:$0xff] %v380_v58  ;;  %389 = vst [vmem:[%s305_s7 + $0x30] sm:$0xff] %v381_v59 }
  0x99   : > { %390 = vst [vmem:[%s305_s7 + $0x38] sm:$0xff] %v382_v60 }
  0x9a PF: > { %s14_s17 = sadd.s32 1, %s589_s17   ;;  %s677_s15 = smov %s585_s16 }
  0x9b   : > { %p11_p5 = scmp.ge.s32.totalorder %s14_s17, 6   ;;  %s678_s16 = smov %s680_s18 }
  0x9d   :  { %13 = sbr.rel (!%p11_p5) target bundleno = 2 (0x2), region = 75 }

// kernel: _lambda_.65
= control target key start
LH: loop header
LB: loop body
LE: loop exit
PB: predicated region body
PF: predicated region fallthrough
CT: control target
= control target key end

     0   :  { %11 = vsyncpa [#allocation3], 0  ;;  %s1068_s0 = inlined_call_operand.vmem [shape: bf16[1,8,4096], index: 0, kind: input, shape index: {}]   ;;  %s1069_s1 = inlined_call_operand.vmem [shape: bf16[2,8], index: 1, kind: input, shape index: {}]   ;;  %s1070_s2 = inlined_call_operand.vmem [shape: f32[2,1], index: 2, kind: input, shape index: {}]   ;;  %s1071_s3 = inlined_call_operand.vmem [shape: f32[1,2,4096], index: 3, kind: output, shape index: {0}]   ;;  %s1072_s4 = inlined_call_operand.hbm [shape: f32[1,2,1], index: 4, kind: output, shape index: {1}]   ;;  %s1073_s5 = inlined_call_operand.hbm [shape: f32[1,2,1], index: 5, kind: output, shape index: {2}]  }
   0x1   :  { %12 = vsyncpa [#allocation5], 0  ;;  %s941_s18 = smov 0   ;;  %s943_s19 = smov 0  }
   0x2   :  { %s945_s20 = smov 0  }
   0x3 LB: > { %s740_s21 = sadd.s32 4294967295, %s904_s20   ;;  %s27_s22 = sadd.s32 1, %s900_s19  ;;  %s904_s20 = sphi %s945_s20, %s18_s20   ;;  %s900_s19 = sphi %s943_s19, %s1076_s19   ;;  %s896_s18 = sphi %s941_s18, %s1075_s18  }
   0x4   : > { %p28_p0 = scmp.ge.s32.totalorder %s27_s22, 4  ;;  %p744_p1 = scmp.ge.s32.totalorder %s904_s20, 1 }
   0x5   : > { %p215_p2 = scmp.lt.s32.totalorder %s904_s20, 5 }
   0x6   : > { %s1078_s22 = smov (%p28_p0, %s27_s22), 0 }
   0x7   : > { %p216_p3 = pnand %p744_p1, %p215_p2 }
   0x8   : > { %s745_s23 = sshll.u32 (!%p216_p3), %s896_s18, 3  ;;  %p749_p5 = scmp.ne.s32.totalorder (!%p216_p3), %s896_s18, 0 }
   0x9   : > { %219 = sbr.rel (%p216_p3) target bundleno = 443 (0x1bb), region = 32  ;;  %p254_p4 = scmp.lt.s32.totalorder (!%p216_p3), %s745_s23, 31 }
  0x10   : > { %s1080_s23 = smov (!%p254_p4, %s745_s23), 31  ;;  %275 = sbr.rel (%p749_p5) target bundleno = 23 (0x17), region = 36 }
  0x11   : > { %s746_s24 = sshll.u32 %s1080_s23, 2  ;;  %s748_s25 = sshll.u32 %s1080_s23, 1  ;;  %vm276_vm0 = vcmask (!%p749_p5), 1024   ;;  %v906_v0 = vmov (!%p749_p5), 0.0  }
  0x12   : > { %s259_s28 = scalar_lea.vmem %s1068_s0, %s746_s24  ;;  %s966_s6 = scalar_lea.vmem %s1071_s3, %s748_s25  ;;  %277 = vst.msk [vmem:[#allocation2] sm:$0x3] (!%p749_p5), %vm276_vm0, %v906_v0  ;;  %278 = vst.msk [vmem:[#allocation4] sm:$0x3] (!%p749_p5), %vm276_vm0, %v906_v0 }
  0x17 PF: > { %v280_v1 = vld [vmem:[%s259_s28] sm:$0xff]  ;;  %vm314_vm1 = vcmask 1043456   ;;  %v281_v2 = vld [vmem:[%s259_s28 + $0x8] sm:$0xff]  ;;  %v907_v7 = vmov 0   ;;  %v282_v8 = vld [vmem:[%s259_s28 + $0x10] sm:$0xff]  ;;  %vm310_vm2 = vcmask 64512   ;;  %v516_v22 = vlaneseq }
  0x18   : > { %v751_v3 = vcombine.high %v280_v1, %v280_v1  ;;  %v753_v4 = vcombine.high %v281_v2, %v281_v2  ;;  %v750_v5 = vcombine.low %v280_v1, %v280_v1  ;;  %v752_v6 = vcombine.low %v281_v2, %v281_v2  ;;  %371 = vmatprep.mubr.bf16.mxu0 %v907_v7  ;;  %v283_v9 = vld [vmem:[%s259_s28 + $0x18] sm:$0xff]  ;;  %v284_v16 = vld [vmem:[%s1070_s2] sm:$0x3]  ;;  %s909_s11 = smov [#allocation2]   ;;  %p1002_p6 = scmp.eq.s32.totalorder %s740_s21, 3 }
  0x19   : > { %412 = vmatprep.mubr.bf16.mxu1 %v907_v7  ;;  %v755_v10 = vcombine.high %v282_v8, %v282_v8  ;;  %v754_v11 = vcombine.low %v282_v8, %v282_v8  ;;  %v757_v12 = vcombine.high %v283_v9, %v283_v9  ;;  %813 = vset.pattern.permute.xlu0 %v907_v7  ;;  %v279_v17 = vld [vmem:[%s1069_s1] sm:$0x1]  ;;  %v908_v20 = vmov 1983009808   ;;  %s621_s12 = sshll.u32 %s909_s11, 4  ;;  %s910_s14 = smov [#allocation4]   ;;  %s622_s12 = int_to_ptr.vmem [resolvable:$true] %s621_s12 }
  0x1a   : > { %758 = vmatprep.subr.msk.bf16.mxu0 %vm314_vm1, %v751_v3  ;;  %760 = vmatprep.subr.msk.bf16.mxu1 %vm314_vm1, %v753_v4  ;;  %v316_v13 = vsel %vm314_vm1, %v750_v5, 0  ;;  %v322_v14 = vsel %vm314_vm1, %v752_v6, 0  ;;  %v756_v15 = vcombine.low %v283_v9, %v283_v9  ;;  %v514_v21 = vunpack.c.l.s4 %v908_v20  ;;  %s634_s15 = sshll.u32 %s910_s14, 4  ;;  %s822_s16 = scalar_lea.vmem %s622_s12, 32  ;;  %s1007_s15 = int_to_ptr.vmem [resolvable:$true] %s634_s15 }
  0x1b   : > { %340 = vmatpush1.bf16.msra.mxu0 %v316_v13  ;;  %381 = vmatpush1.bf16.msra.mxu1 %v322_v14  ;;  %v328_v18 = vsel %vm314_vm1, %v754_v11, 0  ;;  %v517_v25 = vshrl.u32 %v516_v22, 7  ;;  %vm550_vm3 = vcmask 1041408   ;;  %vm569_vm4 = vcmask 1024   ;;  %p823_p7 = scmp.ne.s32.totalorder %s622_s12, %s822_s16  ;;  %p829_p10 = scmp.lt.s32.totalorder %s622_s12, %s622_s12 }
  0x1c   : > { %762 = vmatprep.subr.msk.bf16.mxu0 %vm314_vm1, %v755_v10  ;;  %764 = vmatprep.subr.msk.bf16.mxu1 %vm314_vm1, %v757_v12  ;;  %v334_v19 = vsel %vm314_vm1, %v756_v15, 0  ;;  %v515_v24 = vunpack.c.0.s8 %v514_v21  ;;  %p830_p11 = scmp.lt.s32.totalorder %s822_s16, %s822_s16 }
  0x1d   : > { %287 = vperm.xlu0 %813, %v284_v16   ;;  %p824_p8 = pnand %p823_p7, %p1002_p6 }
  0x1e   : > { %759 = vmatmul.mubr.msk.bf16.vlgmr.msra.gmra.mrb[0].mxu0 %vm310_vm2, %v279_v17  ;;  %761 = vmatmul.mubr.msk.bf16.vlgmr.msra.gmra.mrb[0].mxu1 %vm310_vm2, %v279_v17  ;;  %v518_v33 = vsub.s32 %v515_v24, %v517_v25  ;;  %p831_p12 = por %p830_p11, %p829_p10 }
  0x1f   : > { %422 = vmatpush1.bf16.msra.mxu0 %v328_v18  ;;  %463 = vmatpush1.bf16.msra.mxu1 %v334_v19  ;;  %p825_p9 = pneg %p824_p8 }
  0x20   : > { %453 = vmatprep.mubr.bf16.mxu0 %v907_v7  ;;  %494 = vmatprep.mubr.bf16.mxu1 %v907_v7 }
  0x21   : > { %p832_p13 = pnand %p831_p12, %p825_p9 }
  0x26   : > { %763 = vmatmul.mubr.msk.bf16.vlgmr.msra.gmra.mrb[4].mxu0 %vm310_vm2, %v279_v17  ;;  %765 = vmatmul.mubr.msk.bf16.vlgmr.msra.gmra.mrb[4].mxu1 %vm310_vm2, %v279_v17 }
  0x9c   : > { %v288_v23 = vpop.permute.xlu0 %287 }
  0xf1   : > { %v373_v26 = vpop.f32.mrb[0].mxu0  ;;  %v414_v27 = vpop.f32.mrb[0].mxu1 }
  0xf2   : > { %v374_v28 = vadd.f32 %v373_v26, %v288_v23  ;;  %v375_v29 = vpop.f32.mrb[1].mxu0  ;;  %v415_v30 = vadd.f32 %v414_v27, %v288_v23  ;;  %v416_v31 = vpop.f32.mrb[1].mxu1 }
  0xf3   : > { %v376_v32 = vadd.f32 %v375_v29, %v288_v23  ;;  %v417_v34 = vadd.f32 %v416_v31, %v288_v23  ;;  %v377_v35 = vpop.f32.mrb[2].mxu0  ;;  %v418_v36 = vpop.f32.mrb[2].mxu1 }
  0xf4   : > { %v551_v37 = vsel %vm550_vm3, %v374_v28, 0.0  ;;  %v572_v38 = vmul.f32 %v374_v28, %v374_v28  ;;  %v554_v39 = vsel %vm550_vm3, %v415_v30, 0.0  ;;  %v378_v40 = vpop.f32.mrb[3].mxu0  ;;  %v419_v41 = vpop.f32.mrb[3].mxu1  ;;  %v574_v42 = vmul.f32 %v415_v30, %v415_v30 }
  0xf5   : > { %v511_v43 = vcombine.low %v374_v28, %v376_v32  ;;  %v552_v44 = vsel %vm550_vm3, %v376_v32, 0.0  ;;  %v573_v45 = vmul.f32 %v376_v32, %v376_v32  ;;  %v512_v46 = vcombine.low %v415_v30, %v417_v34 }
  0xf6   : > { %v553_v47 = vadd.f32 %v552_v44, %v551_v37  ;;  %v580_v48 = vsel %vm550_vm3, %v572_v38, 0.0  ;;  %v583_v52 = vsel %vm550_vm3, %v574_v42, 0.0  ;;  %v575_v55 = vmul.f32 %v417_v34, %v417_v34  ;;  %v571_v38 = vld [vmem:[#allocation4] sm:$0x3] }
  0xf7   : > { %v519_v49 = vrot.slane %v511_v43, %v518_v33  ;;  %v581_v50 = vsel %vm550_vm3, %v573_v45, 0.0  ;;  %v526_v51 = vrot.slane %v512_v46, %v518_v33  ;;  %v556_v57 = vsel %vm550_vm3, %v417_v34, 0.0 }
  0xf8   : > { %v582_v53 = vadd.f32 %v581_v50, %v580_v48  ;;  %v555_v54 = vadd.f32 %v554_v39, %v553_v47  ;;  %v585_v6 = vsel %vm550_vm3, %v575_v55, 0.0 }
  0xf9   : > { %v527_v56 = vcombine.low %v519_v49, %v526_v51  ;;  %v455_v58 = vpop.f32.mrb[4].mxu0  ;;  %v496_v59 = vpop.f32.mrb[4].mxu1 }
  0xfa   : > { %v557_v60 = vadd.f32 %v556_v57, %v555_v54  ;;  %v456_v61 = vadd.f32 %v455_v58, %v288_v23  ;;  %v497_v62 = vadd.f32 %v496_v59, %v288_v23  ;;  %v457_v63 = vpop.f32.mrb[5].mxu0  ;;  %v498_v0 = vpop.f32.mrb[5].mxu1  ;;  %v584_v1 = vadd.f32 %v583_v52, %v582_v53 }
  0xfb   : > { %547 = vst [vmem:[%s966_s6] sm:$0xff] %v527_v56  ;;  %v458_v2 = vadd.f32 %v457_v63, %v288_v23  ;;  %v499_v3 = vadd.f32 %v498_v0, %v288_v23  ;;  %v459_v4 = vpop.f32.mrb[6].mxu0  ;;  %v500_v5 = vpop.f32.mrb[6].mxu1 }
  0xfc   : > { %v558_v7 = vsel %vm550_vm3, %v456_v61, 0.0  ;;  %v576_v8 = vmul.f32 %v456_v61, %v456_v61  ;;  %v460_v9 = vpop.f32.mrb[7].mxu0  ;;  %v501_v10 = vpop.f32.mrb[7].mxu1  ;;  %v578_v16 = vmul.f32 %v497_v62, %v497_v62  ;;  %v586_v17 = vadd.f32 %v585_v6, %v584_v1 }
  0xfd   : > { %v559_v11 = vadd.f32 %v558_v7, %v557_v60  ;;  %v528_v12 = vcombine.low %v456_v61, %v458_v2  ;;  %v560_v13 = vsel %vm550_vm3, %v458_v2, 0.0  ;;  %v577_v14 = vmul.f32 %v458_v2, %v458_v2 }
  0xfe   : > { %v529_v15 = vcombine.low %v497_v62, %v499_v3  ;;  %v587_v20 = vsel %vm550_vm3, %v576_v8, 0.0  ;;  %v562_v23 = vsel %vm550_vm3, %v497_v62, 0.0  ;;  %v579_v26 = vmul.f32 %v499_v3, %v499_v3 }
  0xff   : > { %v536_v18 = vrot.slane %v528_v12, %v518_v33  ;;  %v561_v19 = vadd.f32 %v560_v13, %v559_v11  ;;  %v589_v21 = vsel %vm550_vm3, %v577_v14, 0.0  ;;  %v588_v24 = vadd.f32 %v587_v20, %v586_v17 }
 0x100   : > { %v543_v22 = vrot.slane %v529_v15, %v518_v33  ;;  %v564_v28 = vsel %vm550_vm3, %v499_v3, 0.0  ;;  %v591_v31 = vsel %vm550_vm3, %v578_v16, 0.0  ;;  %v593_v34 = vsel %vm550_vm3, %v579_v26, 0.0  ;;  %v549_v33 = vld [vmem:[#allocation2] sm:$0x3] }
 0x101   : > { %v563_v25 = vadd.f32 %v562_v23, %v561_v19  ;;  %v590_v29 = vadd.f32 %v589_v21, %v588_v24 }
 0x102   : > { %v544_v27 = vcombine.low %v536_v18, %v543_v22 }
 0x103   : > { %v565_v30 = vadd.f32 %v564_v28, %v563_v25  ;;  %v592_v32 = vadd.f32 %v591_v31, %v590_v29 }
 0x104   : > { %548 = vst [vmem:[%s966_s6 + $0x8] sm:$0xff] %v544_v27 }
 0x105   : > { %566 = vadd.xlane.f32.xlu0 %v565_v30  ;;  %v594_v35 = vadd.f32 %v593_v34, %v592_v32 }
 0x107   : > { %595 = vadd.xlane.f32.xlu1 %v594_v35 }
 0x192   : > { %v567_v36 = vpop.xlane.xlu0 %566 }
 0x193   : > { %v568_v37 = vadd.f32 %v567_v36, %v549_v33 }
 0x194   : > { %v596_v39 = vpop.xlane.xlu1 %595 }
 0x195   : > { %570 = vst.msk [vmem:[#allocation2] sm:$0x3] %vm569_vm4, %v568_v37  ;;  %v597_v40 = vadd.f32 %v596_v39, %v571_v38 }
 0x196   : > { %835 = shalt.err (!%p832_p13)
}
 0x197   : > { %s836_s21 = scalar_lea.hbm %s1072_s4, 32 }
 0x198   : > { %p837_p0 = scmp.ne.s32.totalorder %s1072_s4, %s836_s21  ;;  %p842_p3 = scmp.lt.u32.totalorder %s836_s21, %s1072_s4 }
 0x19a   : > { %p838_p1 = pnand %p837_p0, %p1002_p6 }
 0x19c   : > { %p839_p2 = pneg %p838_p1 }
 0x19e   : > { %p844_p4 = pnand %p842_p3, %p839_p2 }
 0x1a0   : > { %847 = shalt.err (!%p844_p4)
}
 0x1a1   : > { %773 = dma.vmem_to_hbm [thread:$0]  (%p1002_p6), %s622_s12, 32, %s1072_s4, [#allocation3]   ;;  %598 = vst.msk [vmem:[#allocation4] sm:$0x3] %vm569_vm4, %v597_v40 }
 0x1a2   : > { %s848_s29 = scalar_lea.vmem %s1007_s15, 32  ;;  %p855_p9 = scmp.lt.s32.totalorder %s1007_s15, %s1007_s15 }
 0x1a3   : > { %p849_p5 = scmp.ne.s32.totalorder %s1007_s15, %s848_s29  ;;  %p856_p10 = scmp.lt.s32.totalorder %s848_s29, %s848_s29 }
 0x1a5   : > { %p850_p7 = pnand %p849_p5, %p1002_p6  ;;  %p857_p11 = por %p856_p10, %p855_p9 }
 0x1a7   : > { %p851_p8 = pneg %p850_p7 }
 0x1a9   : > { %p858_p12 = pnand %p857_p11, %p851_p8 }
 0x1ab   : > { %861 = shalt.err (!%p858_p12)
}
 0x1ac   : > { %s862_s7 = scalar_lea.hbm %s1073_s5, 32 }
 0x1ad   : > { %p863_p13 = scmp.ne.s32.totalorder %s1073_s5, %s862_s7  ;;  %p868_p2 = scmp.lt.u32.totalorder %s862_s7, %s1073_s5 }
 0x1af   : > { %p864_p0 = pnand %p863_p13, %p1002_p6 }
 0x1b1   : > { %p865_p1 = pneg %p864_p0 }
 0x1b3   : > { %p870_p3 = pnand %p868_p2, %p865_p1 }
 0x1b5   : > { %873 = shalt.err (!%p870_p3)
}
 0x1b6   : > { %775 = dma.vmem_to_hbm [thread:$0]  (%p1002_p6), %s1007_s15, 32, %s1073_s5, [#allocation5]  }
 0x1b7   : > { %887 = dma.done.wait (%p1002_p6), [#allocation3], 32  }
 0x1b8   : > { %889 = vsyncadd (%p1002_p6), [#allocation3], 4294967264 }
 0x1b9   : > { %891 = dma.done.wait (%p1002_p6), [#allocation5], 32  }
 0x1ba   : > { %893 = vsyncadd (%p1002_p6), [#allocation5], 4294967264 }
 0x1bb PF: > { %s18_s20 = sadd.s32 1, %s904_s20   ;;  %s1075_s18 = smov %s900_s19 }
 0x1bc   : > { %p15_p4 = scmp.ge.s32.totalorder %s18_s20, 6   ;;  %s1076_s19 = smov %s1078_s22 }
 0x1be   :  { %17 = sbr.rel (!%p15_p4) target bundleno = 3 (0x3), region = 85 }
 0x1c5   :  { %663 = vsyncpa [#allocation3], 1 }
 0x1c6   :  { %665 = vsyncpa [#allocation3 + $0x1], 1 }
 0x1c7   :  { %666 = vsyncpa [#allocation5], 1 }

</bundles_post_ra>
